<compile_context>
chip_gen: v6e
topology: v6e:2x2x1
jax: 0.10.0
libtpu: 0.0.40
codegen_flags: <defaults>
</compile_context>

<pallas_src>
import functools

import numpy as np
import jax
import jax.numpy as jnp
from jax import lax
from jax.experimental import pallas as pl
from jax.experimental.pallas import tpu as pltpu

EPS = 1e-5


# ----------------------------------------------------------------------------
# Fused whole-network Pallas kernel (one image per grid step)
# ----------------------------------------------------------------------------
def _cnn_fused_kernel(x_ref, w1_ref, b1_ref, w2_ref, b2_ref, w3_ref, b3_ref,
                      sel1_ref, sel2_ref, wfc1_ref, bfc1_ref, wfc2_ref, bfc2_ref,
                      o_ref):
    f32, bf16 = jnp.float32, jnp.bfloat16

    def pool2x2(y, row_w):
        """y rows are (h, w) flattened with row width `row_w`.  Returns t with
        t[2*ho*row_w + 2*wo] = max over the 2x2 block (2ho:2ho+2, 2wo:2wo+2).
        Pairing uses shifted value slices (no masks, reshapes or strided ops);
        invalid/garbage rows are simply never picked downstream."""
        mh = jnp.maximum(y[:-row_w, :], y[row_w:, :])   # rows h / h+1
        return jnp.maximum(mh[:-1, :], mh[1:, :])       # cols w / w+1

    def conv3x3(a, w_ref, b_ref, out_rows, row_w):
        """3x3 SAME conv (+folded-BN bias + ReLU) over a zero-padded bf16 slab
        (row width `row_w`) as 9 shifted bf16 MXU matmuls, f32 accumulation."""
        acc = jnp.zeros((out_rows, w_ref.shape[-1]), f32)
        for dh in range(3):
            for dw in range(3):
                off = dh * row_w + dw
                acc = acc + jnp.dot(a[off:off + out_rows, :], w_ref[dh * 3 + dw],
                                    preferred_element_type=f32)
        return jnp.maximum(acc + b_ref[...], 0.0)

    # ---- layer 1: im2col conv (K=27 padded to 32) + BN + ReLU + pool -------
    y1 = jnp.dot(x_ref[0], w1_ref[...], preferred_element_type=f32)    # (1024, 32)
    y1 = jnp.maximum(y1 + b1_ref[...], 0.0)
    p1 = pool2x2(y1, 32)                                               # (991, 32)
    # single selection matmul: gather pooled pixels AND embed them into the
    # zero-padded 18x18 input slab of layer 2 (padding ring stays exactly 0).
    a2 = jnp.dot(sel1_ref[...], p1.astype(bf16),
                 preferred_element_type=f32).astype(bf16)              # (326, 32)

    # ---- layer 2 ------------------------------------------------------------
    y2 = conv3x3(a2, w2_ref, b2_ref, 16 * 18, 18)                      # (288, 64)
    p2 = pool2x2(y2, 18)                                               # (269, 64)
    a3 = jnp.dot(sel2_ref[...], p2.astype(bf16),
                 preferred_element_type=f32).astype(bf16)              # (102, 64)

    # ---- layer 3 ------------------------------------------------------------
    y3 = conv3x3(a3, w3_ref, b3_ref, 8 * 10, 10)                       # (80, 128)
    p3 = pool2x2(y3, 10)                                               # (69, 128)

    # ---- classifier: flatten (HWC) + fc1(+BN) + ReLU + fc2 ------------------
    # TODO(synk): Dropout(0.5) is identity in eval/inference; training-mode
    # dropout and batch-statistic BatchNorm are not implemented.
    h = bfc1_ref[...]                                                  # (1, 512) f32
    for ho in range(4):
        for wo in range(4):
            r = 2 * ho * 10 + 2 * wo                                   # pooled pixel (ho, wo)
            h = h + jnp.dot(p3[r:r + 1, :].astype(bf16), wfc1_ref[ho * 4 + wo],
                            preferred_element_type=f32)
    h = jnp.maximum(h, 0.0).astype(bf16)                               # (1, 512)
    o_ref[0] = jnp.dot(h, wfc2_ref[...], preferred_element_type=f32) + bfc2_ref[...]


# ----------------------------------------------------------------------------
# Wrapper: one pallas_call for the whole network
# ----------------------------------------------------------------------------
def cnn_forward_pallas(x_nchw, prep, *, num_classes):
    x = jnp.transpose(x_nchw, (0, 2, 3, 1))                  # NCHW -> NHWC (f32)
    N, H, W, C = x.shape
    assert (H, W, C) == (32, 32, 3), (H, W, C)

    # Layer-1 im2col patch slab: (N, H*W, 27) with K padded to 32 lanes, bf16.
    xp = jnp.pad(x, ((0, 0), (1, 1), (1, 1), (0, 0)))
    taps = [xp[:, dh:dh + H, dw:dw + W, :] for dh in range(3) for dw in range(3)]
    patches = jnp.concatenate(taps, axis=-1).reshape(N, H * W, 27)
    patches = jnp.pad(patches, ((0, 0), (0, 0), (0, 5))).astype(jnp.bfloat16)

    npad = prep["wfc2"].shape[1]

    def resident(a):                      # whole array, DMA'd once, stays in VMEM
        zeros = (0,) * a.ndim
        return pl.BlockSpec(a.shape, lambda n, _z=zeros: _z)

    weights = (prep["w1"], prep["b1"], prep["w2"], prep["b2"], prep["w3"], prep["b3"],
               prep["sel1"], prep["sel2"], prep["wfc1"], prep["bfc1"],
               prep["wfc2"], prep["bfc2"])

    out = pl.pallas_call(
        _cnn_fused_kernel,
        out_shape=jax.ShapeDtypeStruct((N, 1, npad), jnp.float32),
        grid_spec=pltpu.PrefetchScalarGridSpec(
            num_scalar_prefetch=0,
            grid=(N,),                                        # one image per step
            in_specs=[pl.BlockSpec((1, H * W, 32), lambda n: (n, 0, 0))]
                     + [resident(w) for w in weights],
            out_specs=pl.BlockSpec((1, 1, npad), lambda n: (n, 0, 0)),
        ),
        compiler_params=pltpu.CompilerParams(dimension_semantics=("parallel",)),
    )(patches, *weights)
    return out.reshape(N, npad)[:, :num_classes]


# ----------------------------------------------------------------------------
# One-time parameter preparation (hoisted out of the jitted forward)
# ----------------------------------------------------------------------------
def fold_bn(gamma, beta, mean, var, prior_bias):
    """Fold (bias-add -> BatchNorm, running stats) into one (scale, bias) affine."""
    scale = gamma * lax.rsqrt(var + EPS)
    bias = (prior_bias - mean) * scale + beta
    return scale, bias


def _pool_embed_sel(ph, pw, row_w, slab_rows, slab_row_w):
    """0/1 matrix S (bf16): S @ pool2x2(y) picks pooled pixel (ho, wo)
    (= row 2*ho*row_w + 2*wo of the paired tensor) and places it at row
    (ho+1)*slab_row_w + (wo+1) of the next layer's zero-padded input slab;
    every other slab row (padding ring + 2 spare rows) stays exactly zero."""
    cols = (2 * ph - 1) * row_w - 1
    S = np.zeros((slab_rows, cols), np.float32)
    for ho in range(ph):
        for wo in range(pw):
            S[(ho + 1) * slab_row_w + (wo + 1), 2 * ho * row_w + 2 * wo] = 1.0
    return S


def prepare_params(params, num_classes):
    """Run once at load time: BN folding, bf16 casts/reshapes, fc2 zero-padding
    and the pooling selection matrices.  Nothing here is in the per-call path."""
    prep = {}
    # conv1: fold BN scale, lay out as a (27 -> 32, 32) im2col weight
    s, b = fold_bn(params["bn0_gamma"], params["bn0_beta"], params["bn0_mean"],
                   params["bn0_var"], params["conv0_b"])
    w = (params["conv0_w"] * s).reshape(27, 32)
    prep["w1"] = jnp.pad(w, ((0, 5), (0, 0))).astype(jnp.bfloat16)
    prep["b1"] = b.reshape(1, 32)
    # conv2 / conv3: (9, Cin, Cout) bf16 tap slabs with BN scale folded in
    for i, wkey, bkey in ((1, "w2", "b2"), (2, "w3", "b3")):
        s, b = fold_bn(params[f"bn{i}_gamma"], params[f"bn{i}_beta"],
                       params[f"bn{i}_mean"], params[f"bn{i}_var"],
                       params[f"conv{i}_b"])
        cin, cout = params[f"conv{i}_w"].shape[2:]
        prep[wkey] = (params[f"conv{i}_w"] * s).reshape(9, cin, cout).astype(jnp.bfloat16)
        prep[bkey] = b.reshape(1, cout)
    # pooling selection / zero-pad embedding matrices (resident kernel inputs)
    prep["sel1"] = jnp.asarray(_pool_embed_sel(16, 16, 32, 18 * 18 + 2, 18),
                               dtype=jnp.bfloat16)
    prep["sel2"] = jnp.asarray(_pool_embed_sel(8, 8, 18, 10 * 10 + 2, 10),
                               dtype=jnp.bfloat16)
    # fc1 (+BN fold) as 16 per-spatial-position (128, 512) blocks (HWC order)
    s1, b1 = fold_bn(params["bnf_gamma"], params["bnf_beta"], params["bnf_mean"],
                     params["bnf_var"], params["fc1_b"])
    prep["wfc1"] = (params["fc1_w"] * s1[None, :]).reshape(16, 128, 512).astype(jnp.bfloat16)
    prep["bfc1"] = b1.reshape(1, 512)
    # fc2 padded to 128 output lanes (lane-dense logits store)
    npad = max(128, ((num_classes + 127) // 128) * 128)
    w2 = jnp.zeros((512, npad), jnp.float32).at[:, :num_classes].set(params["fc2_w"])
    prep["wfc2"] = w2.astype(jnp.bfloat16)
    prep["bfc2"] = jnp.zeros((1, npad), jnp.float32).at[0, :num_classes].set(params["fc2_b"])
    return prep


# ----------------------------------------------------------------------------
# Parameter init (matches the PyTorch module's shapes) + pure-JAX reference
# ----------------------------------------------------------------------------
def init_params(key, num_classes=100):
    params = {}
    channels = [3, 32, 64, 128]
    keys = iter(jax.random.split(key, 32))
    for i in range(3):
        cin, cout = channels[i], channels[i + 1]
        params[f"conv{i}_w"] = jax.random.normal(
            next(keys), (3, 3, cin, cout), jnp.float32) * (2.0 / (9 * cin)) ** 0.5
        params[f"conv{i}_b"] = 0.05 * jax.random.normal(next(keys), (cout,), jnp.float32)
        params[f"bn{i}_gamma"] = 1.0 + 0.1 * jax.random.normal(next(keys), (cout,), jnp.float32)
        params[f"bn{i}_beta"] = 0.1 * jax.random.normal(next(keys), (cout,), jnp.float32)
        params[f"bn{i}_mean"] = 0.1 * jax.random.normal(next(keys), (cout,), jnp.float32)
        params[f"bn{i}_var"] = 0.5 + jax.random.uniform(next(keys), (cout,), jnp.float32)
    params["fc1_w"] = jax.random.normal(next(keys), (128 * 4 * 4, 512), jnp.float32) * (2.0 / 2048) ** 0.5
    params["fc1_b"] = 0.05 * jax.random.normal(next(keys), (512,), jnp.float32)
    params["bnf_gamma"] = 1.0 + 0.1 * jax.random.normal(next(keys), (512,), jnp.float32)
    params["bnf_beta"] = 0.1 * jax.random.normal(next(keys), (512,), jnp.float32)
    params["bnf_mean"] = 0.1 * jax.random.normal(next(keys), (512,), jnp.float32)
    params["bnf_var"] = 0.5 + jax.random.uniform(next(keys), (512,), jnp.float32)
    params["fc2_w"] = jax.random.normal(next(keys), (512, num_classes), jnp.float32) * (1.0 / 512) ** 0.5
    params["fc2_b"] = 0.05 * jax.random.normal(next(keys), (num_classes,), jnp.float32)
    return params


def cnn_forward_ref(x_nchw, params):
    x = jnp.transpose(x_nchw, (0, 2, 3, 1)).astype(jnp.float32)
    for i in range(3):
        y = lax.conv_general_dilated(
            x, params[f"conv{i}_w"], (1, 1), "SAME",
            dimension_numbers=("NHWC", "HWIO", "NHWC"),
            precision=lax.Precision.HIGHEST) + params[f"conv{i}_b"]
        y = (y - params[f"bn{i}_mean"]) * lax.rsqrt(params[f"bn{i}_var"] + EPS) \
            * params[f"bn{i}_gamma"] + params[f"bn{i}_beta"]
        y = jnp.maximum(y, 0.0)
        N, H, W, C = y.shape
        x = y.reshape(N, H // 2, 2, W // 2, 2, C).max(axis=(2, 4))
    feat = x.reshape(x.shape[0], -1)                         # HWC flatten (see header)
    h = jnp.dot(feat, params["fc1_w"], precision=lax.Precision.HIGHEST) + params["fc1_b"]
    h = (h - params["bnf_mean"]) * lax.rsqrt(params["bnf_var"] + EPS) \
        * params["bnf_gamma"] + params["bnf_beta"]
    h = jnp.maximum(h, 0.0)
    return jnp.dot(h, params["fc2_w"], precision=lax.Precision.HIGHEST) + params["fc2_b"]


if __name__ == "__main__":
    num_classes = 100
    key = jax.random.PRNGKey(0)
    kx, kp = jax.random.split(key)
    x = jax.random.normal(kx, (2, 3, 32, 32), jnp.float32)   # NCHW, CIFAR-sized
    params = init_params(kp, num_classes=num_classes)
    prep = prepare_params(params, num_classes)               # hoisted, runs once

    fwd = jax.jit(functools.partial(cnn_forward_pallas, num_classes=num_classes))
    out = jax.block_until_ready(fwd(x, prep))
    ref = jax.block_until_ready(cnn_forward_ref(x, params))

    assert out.shape == (2, num_classes), out.shape
    rel_err = float(jnp.max(jnp.abs(out - ref)) / (jnp.max(jnp.abs(ref)) + 1e-6))
    assert rel_err < 3e-2, f"mismatch vs reference: rel_err={rel_err}"
    print("KERNEL_OK")
</pallas_src>

<mosaic_0001>
module attributes {stable_mosaic.version = 11 : i64} {
  func.func @_cnn_fused_kernel(%arg0: i32, %arg1: memref<1x1024x32xbf16, #tpu.memory_space<vmem>>, %arg2: memref<32x32xbf16, #tpu.memory_space<vmem>>, %arg3: memref<1x32xf32, #tpu.memory_space<vmem>>, %arg4: memref<9x32x64xbf16, #tpu.memory_space<vmem>>, %arg5: memref<1x64xf32, #tpu.memory_space<vmem>>, %arg6: memref<9x64x128xbf16, #tpu.memory_space<vmem>>, %arg7: memref<1x128xf32, #tpu.memory_space<vmem>>, %arg8: memref<326x991xbf16, #tpu.memory_space<vmem>>, %arg9: memref<102x269xbf16, #tpu.memory_space<vmem>>, %arg10: memref<16x128x512xbf16, #tpu.memory_space<vmem>>, %arg11: memref<1x512xf32, #tpu.memory_space<vmem>>, %arg12: memref<512x128xbf16, #tpu.memory_space<vmem>>, %arg13: memref<1x128xf32, #tpu.memory_space<vmem>>, %arg14: memref<1x1x128xf32, #tpu.memory_space<vmem>>) attributes {dimension_semantics = [#tpu.dimension_semantics<parallel>], iteration_bounds = array<i64: 2>, scalar_prefetch = 0 : i64, scratch_operands = 0 : i64, tpu.core_type = #tpu.core_type<tc>, window_params = [{transform_indices = @transform_0, window_bounds = array<i64: 1, 1024, 32>}, {pipeline_mode = #tpu.pipeline_mode<synchronous>, transform_indices = @transform_1, window_bounds = array<i64: 32, 32>}, {pipeline_mode = #tpu.pipeline_mode<synchronous>, transform_indices = @transform_2, window_bounds = array<i64: 1, 32>}, {pipeline_mode = #tpu.pipeline_mode<synchronous>, transform_indices = @transform_3, window_bounds = array<i64: 9, 32, 64>}, {pipeline_mode = #tpu.pipeline_mode<synchronous>, transform_indices = @transform_4, window_bounds = array<i64: 1, 64>}, {pipeline_mode = #tpu.pipeline_mode<synchronous>, transform_indices = @transform_5, window_bounds = array<i64: 9, 64, 128>}, {pipeline_mode = #tpu.pipeline_mode<synchronous>, transform_indices = @transform_6, window_bounds = array<i64: 1, 128>}, {pipeline_mode = #tpu.pipeline_mode<synchronous>, transform_indices = @transform_7, window_bounds = array<i64: 326, 991>}, {pipeline_mode = #tpu.pipeline_mode<synchronous>, transform_indices = @transform_8, window_bounds = array<i64: 102, 269>}, {pipeline_mode = #tpu.pipeline_mode<synchronous>, transform_indices = @transform_9, window_bounds = array<i64: 16, 128, 512>}, {pipeline_mode = #tpu.pipeline_mode<synchronous>, transform_indices = @transform_10, window_bounds = array<i64: 1, 512>}, {pipeline_mode = #tpu.pipeline_mode<synchronous>, transform_indices = @transform_11, window_bounds = array<i64: 512, 128>}, {pipeline_mode = #tpu.pipeline_mode<synchronous>, transform_indices = @transform_12, window_bounds = array<i64: 1, 128>}, {transform_indices = @transform_13, window_bounds = array<i64: 1, 1, 128>}]} {
    %c0 = arith.constant 0 : index
    %c0_0 = arith.constant 0 : index
    %c0_1 = arith.constant 0 : index
    %0 = vector.load %arg1[%c0, %c0_0, %c0_1] : memref<1x1024x32xbf16, #tpu.memory_space<vmem>>, vector<1x1024x32xbf16>
    %1 = vector.shape_cast %0 : vector<1x1024x32xbf16> to vector<1024x32xbf16>
    %c0_2 = arith.constant 0 : index
    %c0_3 = arith.constant 0 : index
    %2 = vector.load %arg2[%c0_2, %c0_3] : memref<32x32xbf16, #tpu.memory_space<vmem>>, vector<32x32xbf16>
    %cst = arith.constant dense<0.000000e+00> : vector<1024x32xf32>
    %3 = tpu.matmul %1, %2, %cst {dimension_numbers = #tpu.dot_dimension_numbers<[1], [0], [0], [1], [0, 0, 1, 1], [], []>} : vector<1024x32xbf16>, vector<32x32xbf16>, vector<1024x32xf32> -> vector<1024x32xf32>
    %c0_4 = arith.constant 0 : index
    %c0_5 = arith.constant 0 : index
    %4 = vector.load %arg3[%c0_4, %c0_5] : memref<1x32xf32, #tpu.memory_space<vmem>>, vector<1x32xf32>
    %5 = vector.broadcast %4 : vector<1x32xf32> to vector<1024x32xf32>
    %6 = arith.addf %3, %5 : vector<1024x32xf32>
    %cst_6 = arith.constant 0.000000e+00 : f32
    %7 = vector.broadcast %cst_6 : f32 to vector<1024x32xf32>
    %8 = arith.maximumf %6, %7 : vector<1024x32xf32>
    %9 = vector.extract_strided_slice %8 {offsets = [0, 0], sizes = [992, 32], strides = [1, 1]} : vector<1024x32xf32> to vector<992x32xf32>
    %10 = vector.extract_strided_slice %8 {offsets = [32, 0], sizes = [992, 32], strides = [1, 1]} : vector<1024x32xf32> to vector<992x32xf32>
    %11 = arith.maximumf %9, %10 : vector<992x32xf32>
    %12 = vector.extract_strided_slice %11 {offsets = [0, 0], sizes = [991, 32], strides = [1, 1]} : vector<992x32xf32> to vector<991x32xf32>
    %13 = vector.extract_strided_slice %11 {offsets = [1, 0], sizes = [991, 32], strides = [1, 1]} : vector<992x32xf32> to vector<991x32xf32>
    %14 = arith.maximumf %12, %13 : vector<991x32xf32>
    %c0_7 = arith.constant 0 : index
    %c0_8 = arith.constant 0 : index
    %15 = vector.load %arg8[%c0_7, %c0_8] : memref<326x991xbf16, #tpu.memory_space<vmem>>, vector<326x991xbf16>
    %16 = arith.truncf %14 : vector<991x32xf32> to vector<991x32xbf16>
    %cst_9 = arith.constant dense<0.000000e+00> : vector<326x32xf32>
    %17 = tpu.matmul %15, %16, %cst_9 {dimension_numbers = #tpu.dot_dimension_numbers<[1], [0], [0], [1], [0, 0, 1, 1], [], []>} : vector<326x991xbf16>, vector<991x32xbf16>, vector<326x32xf32> -> vector<326x32xf32>
    %18 = arith.truncf %17 : vector<326x32xf32> to vector<326x32xbf16>
    %cst_10 = arith.constant 0.000000e+00 : f32
    %19 = vector.broadcast %cst_10 : f32 to vector<288x64xf32>
    %20 = vector.extract_strided_slice %18 {offsets = [0, 0], sizes = [288, 32], strides = [1, 1]} : vector<326x32xbf16> to vector<288x32xbf16>
    %c0_11 = arith.constant 0 : index
    %c0_12 = arith.constant 0 : index
    %c0_13 = arith.constant 0 : index
    %21 = vector.load %arg4[%c0_11, %c0_12, %c0_13] : memref<9x32x64xbf16, #tpu.memory_space<vmem>>, vector<1x32x64xbf16>
    %22 = vector.shape_cast %21 : vector<1x32x64xbf16> to vector<32x64xbf16>
    %cst_14 = arith.constant dense<0.000000e+00> : vector<288x64xf32>
    %23 = tpu.matmul %20, %22, %cst_14 {dimension_numbers = #tpu.dot_dimension_numbers<[1], [0], [0], [1], [0, 0, 1, 1], [], []>} : vector<288x32xbf16>, vector<32x64xbf16>, vector<288x64xf32> -> vector<288x64xf32>
    %24 = arith.addf %19, %23 : vector<288x64xf32>
    %25 = vector.extract_strided_slice %18 {offsets = [1, 0], sizes = [288, 32], strides = [1, 1]} : vector<326x32xbf16> to vector<288x32xbf16>
    %c1 = arith.constant 1 : index
    %c0_15 = arith.constant 0 : index
    %c0_16 = arith.constant 0 : index
    %26 = vector.load %arg4[%c1, %c0_15, %c0_16] : memref<9x32x64xbf16, #tpu.memory_space<vmem>>, vector<1x32x64xbf16>
    %27 = vector.shape_cast %26 : vector<1x32x64xbf16> to vector<32x64xbf16>
    %cst_17 = arith.constant dense<0.000000e+00> : vector<288x64xf32>
    %28 = tpu.matmul %25, %27, %cst_17 {dimension_numbers = #tpu.dot_dimension_numbers<[1], [0], [0], [1], [0, 0, 1, 1], [], []>} : vector<288x32xbf16>, vector<32x64xbf16>, vector<288x64xf32> -> vector<288x64xf32>
    %29 = arith.addf %24, %28 : vector<288x64xf32>
    %30 = vector.extract_strided_slice %18 {offsets = [2, 0], sizes = [288, 32], strides = [1, 1]} : vector<326x32xbf16> to vector<288x32xbf16>
    %c2 = arith.constant 2 : index
    %c0_18 = arith.constant 0 : index
    %c0_19 = arith.constant 0 : index
    %31 = vector.load %arg4[%c2, %c0_18, %c0_19] : memref<9x32x64xbf16, #tpu.memory_space<vmem>>, vector<1x32x64xbf16>
    %32 = vector.shape_cast %31 : vector<1x32x64xbf16> to vector<32x64xbf16>
    %cst_20 = arith.constant dense<0.000000e+00> : vector<288x64xf32>
    %33 = tpu.matmul %30, %32, %cst_20 {dimension_numbers = #tpu.dot_dimension_numbers<[1], [0], [0], [1], [0, 0, 1, 1], [], []>} : vector<288x32xbf16>, vector<32x64xbf16>, vector<288x64xf32> -> vector<288x64xf32>
    %34 = arith.addf %29, %33 : vector<288x64xf32>
    %35 = vector.extract_strided_slice %18 {offsets = [18, 0], sizes = [288, 32], strides = [1, 1]} : vector<326x32xbf16> to vector<288x32xbf16>
    %c3 = arith.constant 3 : index
    %c0_21 = arith.constant 0 : index
    %c0_22 = arith.constant 0 : index
    %36 = vector.load %arg4[%c3, %c0_21, %c0_22] : memref<9x32x64xbf16, #tpu.memory_space<vmem>>, vector<1x32x64xbf16>
    %37 = vector.shape_cast %36 : vector<1x32x64xbf16> to vector<32x64xbf16>
    %cst_23 = arith.constant dense<0.000000e+00> : vector<288x64xf32>
    %38 = tpu.matmul %35, %37, %cst_23 {dimension_numbers = #tpu.dot_dimension_numbers<[1], [0], [0], [1], [0, 0, 1, 1], [], []>} : vector<288x32xbf16>, vector<32x64xbf16>, vector<288x64xf32> -> vector<288x64xf32>
    %39 = arith.addf %34, %38 : vector<288x64xf32>
    %40 = vector.extract_strided_slice %18 {offsets = [19, 0], sizes = [288, 32], strides = [1, 1]} : vector<326x32xbf16> to vector<288x32xbf16>
    %c4 = arith.constant 4 : index
    %c0_24 = arith.constant 0 : index
    %c0_25 = arith.constant 0 : index
    %41 = vector.load %arg4[%c4, %c0_24, %c0_25] : memref<9x32x64xbf16, #tpu.memory_space<vmem>>, vector<1x32x64xbf16>
    %42 = vector.shape_cast %41 : vector<1x32x64xbf16> to vector<32x64xbf16>
    %cst_26 = arith.constant dense<0.000000e+00> : vector<288x64xf32>
    %43 = tpu.matmul %40, %42, %cst_26 {dimension_numbers = #tpu.dot_dimension_numbers<[1], [0], [0], [1], [0, 0, 1, 1], [], []>} : vector<288x32xbf16>, vector<32x64xbf16>, vector<288x64xf32> -> vector<288x64xf32>
    %44 = arith.addf %39, %43 : vector<288x64xf32>
    %45 = vector.extract_strided_slice %18 {offsets = [20, 0], sizes = [288, 32], strides = [1, 1]} : vector<326x32xbf16> to vector<288x32xbf16>
    %c5 = arith.constant 5 : index
    %c0_27 = arith.constant 0 : index
    %c0_28 = arith.constant 0 : index
    %46 = vector.load %arg4[%c5, %c0_27, %c0_28] : memref<9x32x64xbf16, #tpu.memory_space<vmem>>, vector<1x32x64xbf16>
    %47 = vector.shape_cast %46 : vector<1x32x64xbf16> to vector<32x64xbf16>
    %cst_29 = arith.constant dense<0.000000e+00> : vector<288x64xf32>
    %48 = tpu.matmul %45, %47, %cst_29 {dimension_numbers = #tpu.dot_dimension_numbers<[1], [0], [0], [1], [0, 0, 1, 1], [], []>} : vector<288x32xbf16>, vector<32x64xbf16>, vector<288x64xf32> -> vector<288x64xf32>
    %49 = arith.addf %44, %48 : vector<288x64xf32>
    %50 = vector.extract_strided_slice %18 {offsets = [36, 0], sizes = [288, 32], strides = [1, 1]} : vector<326x32xbf16> to vector<288x32xbf16>
    %c6 = arith.constant 6 : index
    %c0_30 = arith.constant 0 : index
    %c0_31 = arith.constant 0 : index
    %51 = vector.load %arg4[%c6, %c0_30, %c0_31] : memref<9x32x64xbf16, #tpu.memory_space<vmem>>, vector<1x32x64xbf16>
    %52 = vector.shape_cast %51 : vector<1x32x64xbf16> to vector<32x64xbf16>
    %cst_32 = arith.constant dense<0.000000e+00> : vector<288x64xf32>
    %53 = tpu.matmul %50, %52, %cst_32 {dimension_numbers = #tpu.dot_dimension_numbers<[1], [0], [0], [1], [0, 0, 1, 1], [], []>} : vector<288x32xbf16>, vector<32x64xbf16>, vector<288x64xf32> -> vector<288x64xf32>
    %54 = arith.addf %49, %53 : vector<288x64xf32>
    %55 = vector.extract_strided_slice %18 {offsets = [37, 0], sizes = [288, 32], strides = [1, 1]} : vector<326x32xbf16> to vector<288x32xbf16>
    %c7 = arith.constant 7 : index
    %c0_33 = arith.constant 0 : index
    %c0_34 = arith.constant 0 : index
    %56 = vector.load %arg4[%c7, %c0_33, %c0_34] : memref<9x32x64xbf16, #tpu.memory_space<vmem>>, vector<1x32x64xbf16>
    %57 = vector.shape_cast %56 : vector<1x32x64xbf16> to vector<32x64xbf16>
    %cst_35 = arith.constant dense<0.000000e+00> : vector<288x64xf32>
    %58 = tpu.matmul %55, %57, %cst_35 {dimension_numbers = #tpu.dot_dimension_numbers<[1], [0], [0], [1], [0, 0, 1, 1], [], []>} : vector<288x32xbf16>, vector<32x64xbf16>, vector<288x64xf32> -> vector<288x64xf32>
    %59 = arith.addf %54, %58 : vector<288x64xf32>
    %60 = vector.extract_strided_slice %18 {offsets = [38, 0], sizes = [288, 32], strides = [1, 1]} : vector<326x32xbf16> to vector<288x32xbf16>
    %c8 = arith.constant 8 : index
    %c0_36 = arith.constant 0 : index
    %c0_37 = arith.constant 0 : index
    %61 = vector.load %arg4[%c8, %c0_36, %c0_37] : memref<9x32x64xbf16, #tpu.memory_space<vmem>>, vector<1x32x64xbf16>
    %62 = vector.shape_cast %61 : vector<1x32x64xbf16> to vector<32x64xbf16>
    %cst_38 = arith.constant dense<0.000000e+00> : vector<288x64xf32>
    %63 = tpu.matmul %60, %62, %cst_38 {dimension_numbers = #tpu.dot_dimension_numbers<[1], [0], [0], [1], [0, 0, 1, 1], [], []>} : vector<288x32xbf16>, vector<32x64xbf16>, vector<288x64xf32> -> vector<288x64xf32>
    %64 = arith.addf %59, %63 : vector<288x64xf32>
    %c0_39 = arith.constant 0 : index
    %c0_40 = arith.constant 0 : index
    %65 = vector.load %arg5[%c0_39, %c0_40] : memref<1x64xf32, #tpu.memory_space<vmem>>, vector<1x64xf32>
    %66 = vector.broadcast %65 : vector<1x64xf32> to vector<288x64xf32>
    %67 = arith.addf %64, %66 : vector<288x64xf32>
    %cst_41 = arith.constant 0.000000e+00 : f32
    %68 = vector.broadcast %cst_41 : f32 to vector<288x64xf32>
    %69 = arith.maximumf %67, %68 : vector<288x64xf32>
    %70 = vector.extract_strided_slice %69 {offsets = [0, 0], sizes = [270, 64], strides = [1, 1]} : vector<288x64xf32> to vector<270x64xf32>
    %71 = vector.extract_strided_slice %69 {offsets = [18, 0], sizes = [270, 64], strides = [1, 1]} : vector<288x64xf32> to vector<270x64xf32>
    %72 = arith.maximumf %70, %71 : vector<270x64xf32>
    %73 = vector.extract_strided_slice %72 {offsets = [0, 0], sizes = [269, 64], strides = [1, 1]} : vector<270x64xf32> to vector<269x64xf32>
    %74 = vector.extract_strided_slice %72 {offsets = [1, 0], sizes = [269, 64], strides = [1, 1]} : vector<270x64xf32> to vector<269x64xf32>
    %75 = arith.maximumf %73, %74 : vector<269x64xf32>
    %c0_42 = arith.constant 0 : index
    %c0_43 = arith.constant 0 : index
    %76 = vector.load %arg9[%c0_42, %c0_43] : memref<102x269xbf16, #tpu.memory_space<vmem>>, vector<102x269xbf16>
    %77 = arith.truncf %75 : vector<269x64xf32> to vector<269x64xbf16>
    %cst_44 = arith.constant dense<0.000000e+00> : vector<102x64xf32>
    %78 = tpu.matmul %76, %77, %cst_44 {dimension_numbers = #tpu.dot_dimension_numbers<[1], [0], [0], [1], [0, 0, 1, 1], [], []>} : vector<102x269xbf16>, vector<269x64xbf16>, vector<102x64xf32> -> vector<102x64xf32>
    %79 = arith.truncf %78 : vector<102x64xf32> to vector<102x64xbf16>
    %cst_45 = arith.constant 0.000000e+00 : f32
    %80 = vector.broadcast %cst_45 : f32 to vector<80x128xf32>
    %81 = vector.extract_strided_slice %79 {offsets = [0, 0], sizes = [80, 64], strides = [1, 1]} : vector<102x64xbf16> to vector<80x64xbf16>
    %c0_46 = arith.constant 0 : index
    %c0_47 = arith.constant 0 : index
    %c0_48 = arith.constant 0 : index
    %82 = vector.load %arg6[%c0_46, %c0_47, %c0_48] : memref<9x64x128xbf16, #tpu.memory_space<vmem>>, vector<1x64x128xbf16>
    %83 = vector.shape_cast %82 : vector<1x64x128xbf16> to vector<64x128xbf16>
    %cst_49 = arith.constant dense<0.000000e+00> : vector<80x128xf32>
    %84 = tpu.matmul %81, %83, %cst_49 {dimension_numbers = #tpu.dot_dimension_numbers<[1], [0], [0], [1], [0, 0, 1, 1], [], []>} : vector<80x64xbf16>, vector<64x128xbf16>, vector<80x128xf32> -> vector<80x128xf32>
    %85 = arith.addf %80, %84 : vector<80x128xf32>
    %86 = vector.extract_strided_slice %79 {offsets = [1, 0], sizes = [80, 64], strides = [1, 1]} : vector<102x64xbf16> to vector<80x64xbf16>
    %c1_50 = arith.constant 1 : index
    %c0_51 = arith.constant 0 : index
    %c0_52 = arith.constant 0 : index
    %87 = vector.load %arg6[%c1_50, %c0_51, %c0_52] : memref<9x64x128xbf16, #tpu.memory_space<vmem>>, vector<1x64x128xbf16>
    %88 = vector.shape_cast %87 : vector<1x64x128xbf16> to vector<64x128xbf16>
    %cst_53 = arith.constant dense<0.000000e+00> : vector<80x128xf32>
    %89 = tpu.matmul %86, %88, %cst_53 {dimension_numbers = #tpu.dot_dimension_numbers<[1], [0], [0], [1], [0, 0, 1, 1], [], []>} : vector<80x64xbf16>, vector<64x128xbf16>, vector<80x128xf32> -> vector<80x128xf32>
    %90 = arith.addf %85, %89 : vector<80x128xf32>
    %91 = vector.extract_strided_slice %79 {offsets = [2, 0], sizes = [80, 64], strides = [1, 1]} : vector<102x64xbf16> to vector<80x64xbf16>
    %c2_54 = arith.constant 2 : index
    %c0_55 = arith.constant 0 : index
    %c0_56 = arith.constant 0 : index
    %92 = vector.load %arg6[%c2_54, %c0_55, %c0_56] : memref<9x64x128xbf16, #tpu.memory_space<vmem>>, vector<1x64x128xbf16>
    %93 = vector.shape_cast %92 : vector<1x64x128xbf16> to vector<64x128xbf16>
    %cst_57 = arith.constant dense<0.000000e+00> : vector<80x128xf32>
    %94 = tpu.matmul %91, %93, %cst_57 {dimension_numbers = #tpu.dot_dimension_numbers<[1], [0], [0], [1], [0, 0, 1, 1], [], []>} : vector<80x64xbf16>, vector<64x128xbf16>, vector<80x128xf32> -> vector<80x128xf32>
    %95 = arith.addf %90, %94 : vector<80x128xf32>
    %96 = vector.extract_strided_slice %79 {offsets = [10, 0], sizes = [80, 64], strides = [1, 1]} : vector<102x64xbf16> to vector<80x64xbf16>
    %c3_58 = arith.constant 3 : index
    %c0_59 = arith.constant 0 : index
    %c0_60 = arith.constant 0 : index
    %97 = vector.load %arg6[%c3_58, %c0_59, %c0_60] : memref<9x64x128xbf16, #tpu.memory_space<vmem>>, vector<1x64x128xbf16>
    %98 = vector.shape_cast %97 : vector<1x64x128xbf16> to vector<64x128xbf16>
    %cst_61 = arith.constant dense<0.000000e+00> : vector<80x128xf32>
    %99 = tpu.matmul %96, %98, %cst_61 {dimension_numbers = #tpu.dot_dimension_numbers<[1], [0], [0], [1], [0, 0, 1, 1], [], []>} : vector<80x64xbf16>, vector<64x128xbf16>, vector<80x128xf32> -> vector<80x128xf32>
    %100 = arith.addf %95, %99 : vector<80x128xf32>
    %101 = vector.extract_strided_slice %79 {offsets = [11, 0], sizes = [80, 64], strides = [1, 1]} : vector<102x64xbf16> to vector<80x64xbf16>
    %c4_62 = arith.constant 4 : index
    %c0_63 = arith.constant 0 : index
    %c0_64 = arith.constant 0 : index
    %102 = vector.load %arg6[%c4_62, %c0_63, %c0_64] : memref<9x64x128xbf16, #tpu.memory_space<vmem>>, vector<1x64x128xbf16>
    %103 = vector.shape_cast %102 : vector<1x64x128xbf16> to vector<64x128xbf16>
    %cst_65 = arith.constant dense<0.000000e+00> : vector<80x128xf32>
    %104 = tpu.matmul %101, %103, %cst_65 {dimension_numbers = #tpu.dot_dimension_numbers<[1], [0], [0], [1], [0, 0, 1, 1], [], []>} : vector<80x64xbf16>, vector<64x128xbf16>, vector<80x128xf32> -> vector<80x128xf32>
    %105 = arith.addf %100, %104 : vector<80x128xf32>
    %106 = vector.extract_strided_slice %79 {offsets = [12, 0], sizes = [80, 64], strides = [1, 1]} : vector<102x64xbf16> to vector<80x64xbf16>
    %c5_66 = arith.constant 5 : index
    %c0_67 = arith.constant 0 : index
    %c0_68 = arith.constant 0 : index
    %107 = vector.load %arg6[%c5_66, %c0_67, %c0_68] : memref<9x64x128xbf16, #tpu.memory_space<vmem>>, vector<1x64x128xbf16>
    %108 = vector.shape_cast %107 : vector<1x64x128xbf16> to vector<64x128xbf16>
    %cst_69 = arith.constant dense<0.000000e+00> : vector<80x128xf32>
    %109 = tpu.matmul %106, %108, %cst_69 {dimension_numbers = #tpu.dot_dimension_numbers<[1], [0], [0], [1], [0, 0, 1, 1], [], []>} : vector<80x64xbf16>, vector<64x128xbf16>, vector<80x128xf32> -> vector<80x128xf32>
    %110 = arith.addf %105, %109 : vector<80x128xf32>
    %111 = vector.extract_strided_slice %79 {offsets = [20, 0], sizes = [80, 64], strides = [1, 1]} : vector<102x64xbf16> to vector<80x64xbf16>
    %c6_70 = arith.constant 6 : index
    %c0_71 = arith.constant 0 : index
    %c0_72 = arith.constant 0 : index
    %112 = vector.load %arg6[%c6_70, %c0_71, %c0_72] : memref<9x64x128xbf16, #tpu.memory_space<vmem>>, vector<1x64x128xbf16>
    %113 = vector.shape_cast %112 : vector<1x64x128xbf16> to vector<64x128xbf16>
    %cst_73 = arith.constant dense<0.000000e+00> : vector<80x128xf32>
    %114 = tpu.matmul %111, %113, %cst_73 {dimension_numbers = #tpu.dot_dimension_numbers<[1], [0], [0], [1], [0, 0, 1, 1], [], []>} : vector<80x64xbf16>, vector<64x128xbf16>, vector<80x128xf32> -> vector<80x128xf32>
    %115 = arith.addf %110, %114 : vector<80x128xf32>
    %116 = vector.extract_strided_slice %79 {offsets = [21, 0], sizes = [80, 64], strides = [1, 1]} : vector<102x64xbf16> to vector<80x64xbf16>
    %c7_74 = arith.constant 7 : index
    %c0_75 = arith.constant 0 : index
    %c0_76 = arith.constant 0 : index
    %117 = vector.load %arg6[%c7_74, %c0_75, %c0_76] : memref<9x64x128xbf16, #tpu.memory_space<vmem>>, vector<1x64x128xbf16>
    %118 = vector.shape_cast %117 : vector<1x64x128xbf16> to vector<64x128xbf16>
    %cst_77 = arith.constant dense<0.000000e+00> : vector<80x128xf32>
    %119 = tpu.matmul %116, %118, %cst_77 {dimension_numbers = #tpu.dot_dimension_numbers<[1], [0], [0], [1], [0, 0, 1, 1], [], []>} : vector<80x64xbf16>, vector<64x128xbf16>, vector<80x128xf32> -> vector<80x128xf32>
    %120 = arith.addf %115, %119 : vector<80x128xf32>
    %121 = vector.extract_strided_slice %79 {offsets = [22, 0], sizes = [80, 64], strides = [1, 1]} : vector<102x64xbf16> to vector<80x64xbf16>
    %c8_78 = arith.constant 8 : index
    %c0_79 = arith.constant 0 : index
    %c0_80 = arith.constant 0 : index
    %122 = vector.load %arg6[%c8_78, %c0_79, %c0_80] : memref<9x64x128xbf16, #tpu.memory_space<vmem>>, vector<1x64x128xbf16>
    %123 = vector.shape_cast %122 : vector<1x64x128xbf16> to vector<64x128xbf16>
    %cst_81 = arith.constant dense<0.000000e+00> : vector<80x128xf32>
    %124 = tpu.matmul %121, %123, %cst_81 {dimension_numbers = #tpu.dot_dimension_numbers<[1], [0], [0], [1], [0, 0, 1, 1], [], []>} : vector<80x64xbf16>, vector<64x128xbf16>, vector<80x128xf32> -> vector<80x128xf32>
    %125 = arith.addf %120, %124 : vector<80x128xf32>
    %c0_82 = arith.constant 0 : index
    %c0_83 = arith.constant 0 : index
    %126 = vector.load %arg7[%c0_82, %c0_83] : memref<1x128xf32, #tpu.memory_space<vmem>>, vector<1x128xf32>
    %127 = vector.broadcast %126 : vector<1x128xf32> to vector<80x128xf32>
    %128 = arith.addf %125, %127 : vector<80x128xf32>
    %cst_84 = arith.constant 0.000000e+00 : f32
    %129 = vector.broadcast %cst_84 : f32 to vector<80x128xf32>
    %130 = arith.maximumf %128, %129 : vector<80x128xf32>
    %131 = vector.extract_strided_slice %130 {offsets = [0, 0], sizes = [70, 128], strides = [1, 1]} : vector<80x128xf32> to vector<70x128xf32>
    %132 = vector.extract_strided_slice %130 {offsets = [10, 0], sizes = [70, 128], strides = [1, 1]} : vector<80x128xf32> to vector<70x128xf32>
    %133 = arith.maximumf %131, %132 : vector<70x128xf32>
    %134 = vector.extract_strided_slice %133 {offsets = [0, 0], sizes = [69, 128], strides = [1, 1]} : vector<70x128xf32> to vector<69x128xf32>
    %135 = vector.extract_strided_slice %133 {offsets = [1, 0], sizes = [69, 128], strides = [1, 1]} : vector<70x128xf32> to vector<69x128xf32>
    %136 = arith.maximumf %134, %135 : vector<69x128xf32>
    %c0_85 = arith.constant 0 : index
    %c0_86 = arith.constant 0 : index
    %137 = vector.load %arg11[%c0_85, %c0_86] : memref<1x512xf32, #tpu.memory_space<vmem>>, vector<1x512xf32>
    %138 = vector.extract_strided_slice %136 {offsets = [0, 0], sizes = [1, 128], strides = [1, 1]} : vector<69x128xf32> to vector<1x128xf32>
    %139 = arith.truncf %138 : vector<1x128xf32> to vector<1x128xbf16>
    %c0_87 = arith.constant 0 : index
    %c0_88 = arith.constant 0 : index
    %c0_89 = arith.constant 0 : index
    %140 = vector.load %arg10[%c0_87, %c0_88, %c0_89] : memref<16x128x512xbf16, #tpu.memory_space<vmem>>, vector<1x128x512xbf16>
    %141 = vector.shape_cast %140 : vector<1x128x512xbf16> to vector<128x512xbf16>
    %cst_90 = arith.constant dense<0.000000e+00> : vector<1x512xf32>
    %142 = tpu.matmul %139, %141, %cst_90 {dimension_numbers = #tpu.dot_dimension_numbers<[1], [0], [0], [1], [0, 0, 1, 1], [], []>} : vector<1x128xbf16>, vector<128x512xbf16>, vector<1x512xf32> -> vector<1x512xf32>
    %143 = arith.addf %137, %142 : vector<1x512xf32>
    %144 = vector.extract_strided_slice %136 {offsets = [2, 0], sizes = [1, 128], strides = [1, 1]} : vector<69x128xf32> to vector<1x128xf32>
    %145 = arith.truncf %144 : vector<1x128xf32> to vector<1x128xbf16>
    %c1_91 = arith.constant 1 : index
    %c0_92 = arith.constant 0 : index
    %c0_93 = arith.constant 0 : index
    %146 = vector.load %arg10[%c1_91, %c0_92, %c0_93] : memref<16x128x512xbf16, #tpu.memory_space<vmem>>, vector<1x128x512xbf16>
    %147 = vector.shape_cast %146 : vector<1x128x512xbf16> to vector<128x512xbf16>
    %cst_94 = arith.constant dense<0.000000e+00> : vector<1x512xf32>
    %148 = tpu.matmul %145, %147, %cst_94 {dimension_numbers = #tpu.dot_dimension_numbers<[1], [0], [0], [1], [0, 0, 1, 1], [], []>} : vector<1x128xbf16>, vector<128x512xbf16>, vector<1x512xf32> -> vector<1x512xf32>
    %149 = arith.addf %143, %148 : vector<1x512xf32>
    %150 = vector.extract_strided_slice %136 {offsets = [4, 0], sizes = [1, 128], strides = [1, 1]} : vector<69x128xf32> to vector<1x128xf32>
    %151 = arith.truncf %150 : vector<1x128xf32> to vector<1x128xbf16>
    %c2_95 = arith.constant 2 : index
    %c0_96 = arith.constant 0 : index
    %c0_97 = arith.constant 0 : index
    %152 = vector.load %arg10[%c2_95, %c0_96, %c0_97] : memref<16x128x512xbf16, #tpu.memory_space<vmem>>, vector<1x128x512xbf16>
    %153 = vector.shape_cast %152 : vector<1x128x512xbf16> to vector<128x512xbf16>
    %cst_98 = arith.constant dense<0.000000e+00> : vector<1x512xf32>
    %154 = tpu.matmul %151, %153, %cst_98 {dimension_numbers = #tpu.dot_dimension_numbers<[1], [0], [0], [1], [0, 0, 1, 1], [], []>} : vector<1x128xbf16>, vector<128x512xbf16>, vector<1x512xf32> -> vector<1x512xf32>
    %155 = arith.addf %149, %154 : vector<1x512xf32>
    %156 = vector.extract_strided_slice %136 {offsets = [6, 0], sizes = [1, 128], strides = [1, 1]} : vector<69x128xf32> to vector<1x128xf32>
    %157 = arith.truncf %156 : vector<1x128xf32> to vector<1x128xbf16>
    %c3_99 = arith.constant 3 : index
    %c0_100 = arith.constant 0 : index
    %c0_101 = arith.constant 0 : index
    %158 = vector.load %arg10[%c3_99, %c0_100, %c0_101] : memref<16x128x512xbf16, #tpu.memory_space<vmem>>, vector<1x128x512xbf16>
    %159 = vector.shape_cast %158 : vector<1x128x512xbf16> to vector<128x512xbf16>
    %cst_102 = arith.constant dense<0.000000e+00> : vector<1x512xf32>
    %160 = tpu.matmul %157, %159, %cst_102 {dimension_numbers = #tpu.dot_dimension_numbers<[1], [0], [0], [1], [0, 0, 1, 1], [], []>} : vector<1x128xbf16>, vector<128x512xbf16>, vector<1x512xf32> -> vector<1x512xf32>
    %161 = arith.addf %155, %160 : vector<1x512xf32>
    %162 = vector.extract_strided_slice %136 {offsets = [20, 0], sizes = [1, 128], strides = [1, 1]} : vector<69x128xf32> to vector<1x128xf32>
    %163 = arith.truncf %162 : vector<1x128xf32> to vector<1x128xbf16>
    %c4_103 = arith.constant 4 : index
    %c0_104 = arith.constant 0 : index
    %c0_105 = arith.constant 0 : index
    %164 = vector.load %arg10[%c4_103, %c0_104, %c0_105] : memref<16x128x512xbf16, #tpu.memory_space<vmem>>, vector<1x128x512xbf16>
    %165 = vector.shape_cast %164 : vector<1x128x512xbf16> to vector<128x512xbf16>
    %cst_106 = arith.constant dense<0.000000e+00> : vector<1x512xf32>
    %166 = tpu.matmul %163, %165, %cst_106 {dimension_numbers = #tpu.dot_dimension_numbers<[1], [0], [0], [1], [0, 0, 1, 1], [], []>} : vector<1x128xbf16>, vector<128x512xbf16>, vector<1x512xf32> -> vector<1x512xf32>
    %167 = arith.addf %161, %166 : vector<1x512xf32>
    %168 = vector.extract_strided_slice %136 {offsets = [22, 0], sizes = [1, 128], strides = [1, 1]} : vector<69x128xf32> to vector<1x128xf32>
    %169 = arith.truncf %168 : vector<1x128xf32> to vector<1x128xbf16>
    %c5_107 = arith.constant 5 : index
    %c0_108 = arith.constant 0 : index
    %c0_109 = arith.constant 0 : index
    %170 = vector.load %arg10[%c5_107, %c0_108, %c0_109] : memref<16x128x512xbf16, #tpu.memory_space<vmem>>, vector<1x128x512xbf16>
    %171 = vector.shape_cast %170 : vector<1x128x512xbf16> to vector<128x512xbf16>
    %cst_110 = arith.constant dense<0.000000e+00> : vector<1x512xf32>
    %172 = tpu.matmul %169, %171, %cst_110 {dimension_numbers = #tpu.dot_dimension_numbers<[1], [0], [0], [1], [0, 0, 1, 1], [], []>} : vector<1x128xbf16>, vector<128x512xbf16>, vector<1x512xf32> -> vector<1x512xf32>
    %173 = arith.addf %167, %172 : vector<1x512xf32>
    %174 = vector.extract_strided_slice %136 {offsets = [24, 0], sizes = [1, 128], strides = [1, 1]} : vector<69x128xf32> to vector<1x128xf32>
    %175 = arith.truncf %174 : vector<1x128xf32> to vector<1x128xbf16>
    %c6_111 = arith.constant 6 : index
    %c0_112 = arith.constant 0 : index
    %c0_113 = arith.constant 0 : index
    %176 = vector.load %arg10[%c6_111, %c0_112, %c0_113] : memref<16x128x512xbf16, #tpu.memory_space<vmem>>, vector<1x128x512xbf16>
    %177 = vector.shape_cast %176 : vector<1x128x512xbf16> to vector<128x512xbf16>
    %cst_114 = arith.constant dense<0.000000e+00> : vector<1x512xf32>
    %178 = tpu.matmul %175, %177, %cst_114 {dimension_numbers = #tpu.dot_dimension_numbers<[1], [0], [0], [1], [0, 0, 1, 1], [], []>} : vector<1x128xbf16>, vector<128x512xbf16>, vector<1x512xf32> -> vector<1x512xf32>
    %179 = arith.addf %173, %178 : vector<1x512xf32>
    %180 = vector.extract_strided_slice %136 {offsets = [26, 0], sizes = [1, 128], strides = [1, 1]} : vector<69x128xf32> to vector<1x128xf32>
    %181 = arith.truncf %180 : vector<1x128xf32> to vector<1x128xbf16>
    %c7_115 = arith.constant 7 : index
    %c0_116 = arith.constant 0 : index
    %c0_117 = arith.constant 0 : index
    %182 = vector.load %arg10[%c7_115, %c0_116, %c0_117] : memref<16x128x512xbf16, #tpu.memory_space<vmem>>, vector<1x128x512xbf16>
    %183 = vector.shape_cast %182 : vector<1x128x512xbf16> to vector<128x512xbf16>
    %cst_118 = arith.constant dense<0.000000e+00> : vector<1x512xf32>
    %184 = tpu.matmul %181, %183, %cst_118 {dimension_numbers = #tpu.dot_dimension_numbers<[1], [0], [0], [1], [0, 0, 1, 1], [], []>} : vector<1x128xbf16>, vector<128x512xbf16>, vector<1x512xf32> -> vector<1x512xf32>
    %185 = arith.addf %179, %184 : vector<1x512xf32>
    %186 = vector.extract_strided_slice %136 {offsets = [40, 0], sizes = [1, 128], strides = [1, 1]} : vector<69x128xf32> to vector<1x128xf32>
    %187 = arith.truncf %186 : vector<1x128xf32> to vector<1x128xbf16>
    %c8_119 = arith.constant 8 : index
    %c0_120 = arith.constant 0 : index
    %c0_121 = arith.constant 0 : index
    %188 = vector.load %arg10[%c8_119, %c0_120, %c0_121] : memref<16x128x512xbf16, #tpu.memory_space<vmem>>, vector<1x128x512xbf16>
    %189 = vector.shape_cast %188 : vector<1x128x512xbf16> to vector<128x512xbf16>
    %cst_122 = arith.constant dense<0.000000e+00> : vector<1x512xf32>
    %190 = tpu.matmul %187, %189, %cst_122 {dimension_numbers = #tpu.dot_dimension_numbers<[1], [0], [0], [1], [0, 0, 1, 1], [], []>} : vector<1x128xbf16>, vector<128x512xbf16>, vector<1x512xf32> -> vector<1x512xf32>
    %191 = arith.addf %185, %190 : vector<1x512xf32>
    %192 = vector.extract_strided_slice %136 {offsets = [42, 0], sizes = [1, 128], strides = [1, 1]} : vector<69x128xf32> to vector<1x128xf32>
    %193 = arith.truncf %192 : vector<1x128xf32> to vector<1x128xbf16>
    %c9 = arith.constant 9 : index
    %c0_123 = arith.constant 0 : index
    %c0_124 = arith.constant 0 : index
    %194 = vector.load %arg10[%c9, %c0_123, %c0_124] : memref<16x128x512xbf16, #tpu.memory_space<vmem>>, vector<1x128x512xbf16>
    %195 = vector.shape_cast %194 : vector<1x128x512xbf16> to vector<128x512xbf16>
    %cst_125 = arith.constant dense<0.000000e+00> : vector<1x512xf32>
    %196 = tpu.matmul %193, %195, %cst_125 {dimension_numbers = #tpu.dot_dimension_numbers<[1], [0], [0], [1], [0, 0, 1, 1], [], []>} : vector<1x128xbf16>, vector<128x512xbf16>, vector<1x512xf32> -> vector<1x512xf32>
    %197 = arith.addf %191, %196 : vector<1x512xf32>
    %198 = vector.extract_strided_slice %136 {offsets = [44, 0], sizes = [1, 128], strides = [1, 1]} : vector<69x128xf32> to vector<1x128xf32>
    %199 = arith.truncf %198 : vector<1x128xf32> to vector<1x128xbf16>
    %c10 = arith.constant 10 : index
    %c0_126 = arith.constant 0 : index
    %c0_127 = arith.constant 0 : index
    %200 = vector.load %arg10[%c10, %c0_126, %c0_127] : memref<16x128x512xbf16, #tpu.memory_space<vmem>>, vector<1x128x512xbf16>
    %201 = vector.shape_cast %200 : vector<1x128x512xbf16> to vector<128x512xbf16>
    %cst_128 = arith.constant dense<0.000000e+00> : vector<1x512xf32>
    %202 = tpu.matmul %199, %201, %cst_128 {dimension_numbers = #tpu.dot_dimension_numbers<[1], [0], [0], [1], [0, 0, 1, 1], [], []>} : vector<1x128xbf16>, vector<128x512xbf16>, vector<1x512xf32> -> vector<1x512xf32>
    %203 = arith.addf %197, %202 : vector<1x512xf32>
    %204 = vector.extract_strided_slice %136 {offsets = [46, 0], sizes = [1, 128], strides = [1, 1]} : vector<69x128xf32> to vector<1x128xf32>
    %205 = arith.truncf %204 : vector<1x128xf32> to vector<1x128xbf16>
    %c11 = arith.constant 11 : index
    %c0_129 = arith.constant 0 : index
    %c0_130 = arith.constant 0 : index
    %206 = vector.load %arg10[%c11, %c0_129, %c0_130] : memref<16x128x512xbf16, #tpu.memory_space<vmem>>, vector<1x128x512xbf16>
    %207 = vector.shape_cast %206 : vector<1x128x512xbf16> to vector<128x512xbf16>
    %cst_131 = arith.constant dense<0.000000e+00> : vector<1x512xf32>
    %208 = tpu.matmul %205, %207, %cst_131 {dimension_numbers = #tpu.dot_dimension_numbers<[1], [0], [0], [1], [0, 0, 1, 1], [], []>} : vector<1x128xbf16>, vector<128x512xbf16>, vector<1x512xf32> -> vector<1x512xf32>
    %209 = arith.addf %203, %208 : vector<1x512xf32>
    %210 = vector.extract_strided_slice %136 {offsets = [60, 0], sizes = [1, 128], strides = [1, 1]} : vector<69x128xf32> to vector<1x128xf32>
    %211 = arith.truncf %210 : vector<1x128xf32> to vector<1x128xbf16>
    %c12 = arith.constant 12 : index
    %c0_132 = arith.constant 0 : index
    %c0_133 = arith.constant 0 : index
    %212 = vector.load %arg10[%c12, %c0_132, %c0_133] : memref<16x128x512xbf16, #tpu.memory_space<vmem>>, vector<1x128x512xbf16>
    %213 = vector.shape_cast %212 : vector<1x128x512xbf16> to vector<128x512xbf16>
    %cst_134 = arith.constant dense<0.000000e+00> : vector<1x512xf32>
    %214 = tpu.matmul %211, %213, %cst_134 {dimension_numbers = #tpu.dot_dimension_numbers<[1], [0], [0], [1], [0, 0, 1, 1], [], []>} : vector<1x128xbf16>, vector<128x512xbf16>, vector<1x512xf32> -> vector<1x512xf32>
    %215 = arith.addf %209, %214 : vector<1x512xf32>
    %216 = vector.extract_strided_slice %136 {offsets = [62, 0], sizes = [1, 128], strides = [1, 1]} : vector<69x128xf32> to vector<1x128xf32>
    %217 = arith.truncf %216 : vector<1x128xf32> to vector<1x128xbf16>
    %c13 = arith.constant 13 : index
    %c0_135 = arith.constant 0 : index
    %c0_136 = arith.constant 0 : index
    %218 = vector.load %arg10[%c13, %c0_135, %c0_136] : memref<16x128x512xbf16, #tpu.memory_space<vmem>>, vector<1x128x512xbf16>
    %219 = vector.shape_cast %218 : vector<1x128x512xbf16> to vector<128x512xbf16>
    %cst_137 = arith.constant dense<0.000000e+00> : vector<1x512xf32>
    %220 = tpu.matmul %217, %219, %cst_137 {dimension_numbers = #tpu.dot_dimension_numbers<[1], [0], [0], [1], [0, 0, 1, 1], [], []>} : vector<1x128xbf16>, vector<128x512xbf16>, vector<1x512xf32> -> vector<1x512xf32>
    %221 = arith.addf %215, %220 : vector<1x512xf32>
    %222 = vector.extract_strided_slice %136 {offsets = [64, 0], sizes = [1, 128], strides = [1, 1]} : vector<69x128xf32> to vector<1x128xf32>
    %223 = arith.truncf %222 : vector<1x128xf32> to vector<1x128xbf16>
    %c14 = arith.constant 14 : index
    %c0_138 = arith.constant 0 : index
    %c0_139 = arith.constant 0 : index
    %224 = vector.load %arg10[%c14, %c0_138, %c0_139] : memref<16x128x512xbf16, #tpu.memory_space<vmem>>, vector<1x128x512xbf16>
    %225 = vector.shape_cast %224 : vector<1x128x512xbf16> to vector<128x512xbf16>
    %cst_140 = arith.constant dense<0.000000e+00> : vector<1x512xf32>
    %226 = tpu.matmul %223, %225, %cst_140 {dimension_numbers = #tpu.dot_dimension_numbers<[1], [0], [0], [1], [0, 0, 1, 1], [], []>} : vector<1x128xbf16>, vector<128x512xbf16>, vector<1x512xf32> -> vector<1x512xf32>
    %227 = arith.addf %221, %226 : vector<1x512xf32>
    %228 = vector.extract_strided_slice %136 {offsets = [66, 0], sizes = [1, 128], strides = [1, 1]} : vector<69x128xf32> to vector<1x128xf32>
    %229 = arith.truncf %228 : vector<1x128xf32> to vector<1x128xbf16>
    %c15 = arith.constant 15 : index
    %c0_141 = arith.constant 0 : index
    %c0_142 = arith.constant 0 : index
    %230 = vector.load %arg10[%c15, %c0_141, %c0_142] : memref<16x128x512xbf16, #tpu.memory_space<vmem>>, vector<1x128x512xbf16>
    %231 = vector.shape_cast %230 : vector<1x128x512xbf16> to vector<128x512xbf16>
    %cst_143 = arith.constant dense<0.000000e+00> : vector<1x512xf32>
    %232 = tpu.matmul %229, %231, %cst_143 {dimension_numbers = #tpu.dot_dimension_numbers<[1], [0], [0], [1], [0, 0, 1, 1], [], []>} : vector<1x128xbf16>, vector<128x512xbf16>, vector<1x512xf32> -> vector<1x512xf32>
    %233 = arith.addf %227, %232 : vector<1x512xf32>
    %cst_144 = arith.constant 0.000000e+00 : f32
    %234 = vector.broadcast %cst_144 : f32 to vector<1x512xf32>
    %235 = arith.maximumf %233, %234 : vector<1x512xf32>
    %236 = arith.truncf %235 : vector<1x512xf32> to vector<1x512xbf16>
    %c0_145 = arith.constant 0 : index
    %c0_146 = arith.constant 0 : index
    %237 = vector.load %arg12[%c0_145, %c0_146] : memref<512x128xbf16, #tpu.memory_space<vmem>>, vector<512x128xbf16>
    %cst_147 = arith.constant dense<0.000000e+00> : vector<1x128xf32>
    %238 = tpu.matmul %236, %237, %cst_147 {dimension_numbers = #tpu.dot_dimension_numbers<[1], [0], [0], [1], [0, 0, 1, 1], [], []>} : vector<1x512xbf16>, vector<512x128xbf16>, vector<1x128xf32> -> vector<1x128xf32>
    %c0_148 = arith.constant 0 : index
    %c0_149 = arith.constant 0 : index
    %239 = vector.load %arg13[%c0_148, %c0_149] : memref<1x128xf32, #tpu.memory_space<vmem>>, vector<1x128xf32>
    %240 = arith.addf %238, %239 : vector<1x128xf32>
    %c0_150 = arith.constant 0 : index
    %c0_151 = arith.constant 0 : index
    %c0_152 = arith.constant 0 : index
    %241 = vector.load %arg14[%c0_150, %c0_151, %c0_152] : memref<1x1x128xf32, #tpu.memory_space<vmem>>, vector<1x1x128xf32>
    %242 = vector.shape_cast %241 : vector<1x1x128xf32> to vector<1x128xf32>
    %243 = vector.shape_cast %240 : vector<1x128xf32> to vector<1x1x128xf32>
    tpu.vector_store %arg14[%c0_150, %c0_151, %c0_152], %243 {strides = array<i32>} : memref<1x1x128xf32, #tpu.memory_space<vmem>>, vector<1x1x128xf32>,
    return
  }
  func.func @transform_0(%arg0: i32) -> (i32, i32, i32) {
    %c0_i32 = arith.constant 0 : i32
    %c0_i32_0 = arith.constant 0 : i32
    %c0_i32_1 = arith.constant 0 : i32
    return %arg0, %c0_i32, %c0_i32_0 : i32, i32, i32
  }
  func.func @transform_1(%arg0: i32) -> (i32, i32) {
    %c0_i32 = arith.constant 0 : i32
    %c0_i32_0 = arith.constant 0 : i32
    %c0_i32_1 = arith.constant 0 : i32
    return %c0_i32, %c0_i32_0 : i32, i32
  }
  func.func @transform_2(%arg0: i32) -> (i32, i32) {
    %c0_i32 = arith.constant 0 : i32
    %c0_i32_0 = arith.constant 0 : i32
    %c0_i32_1 = arith.constant 0 : i32
    return %c0_i32, %c0_i32_0 : i32, i32
  }
  func.func @transform_3(%arg0: i32) -> (i32, i32, i32) {
    %c0_i32 = arith.constant 0 : i32
    %c0_i32_0 = arith.constant 0 : i32
    %c0_i32_1 = arith.constant 0 : i32
    %c0_i32_2 = arith.constant 0 : i32
    return %c0_i32, %c0_i32_0, %c0_i32_1 : i32, i32, i32
  }
  func.func @transform_4(%arg0: i32) -> (i32, i32) {
    %c0_i32 = arith.constant 0 : i32
    %c0_i32_0 = arith.constant 0 : i32
    %c0_i32_1 = arith.constant 0 : i32
    return %c0_i32, %c0_i32_0 : i32, i32
  }
  func.func @transform_5(%arg0: i32) -> (i32, i32, i32) {
    %c0_i32 = arith.constant 0 : i32
    %c0_i32_0 = arith.constant 0 : i32
    %c0_i32_1 = arith.constant 0 : i32
    %c0_i32_2 = arith.constant 0 : i32
    return %c0_i32, %c0_i32_0, %c0_i32_1 : i32, i32, i32
  }
  func.func @transform_6(%arg0: i32) -> (i32, i32) {
    %c0_i32 = arith.constant 0 : i32
    %c0_i32_0 = arith.constant 0 : i32
    %c0_i32_1 = arith.constant 0 : i32
    return %c0_i32, %c0_i32_0 : i32, i32
  }
  func.func @transform_7(%arg0: i32) -> (i32, i32) {
    %c0_i32 = arith.constant 0 : i32
    %c0_i32_0 = arith.constant 0 : i32
    %c0_i32_1 = arith.constant 0 : i32
    return %c0_i32, %c0_i32_0 : i32, i32
  }
  func.func @transform_8(%arg0: i32) -> (i32, i32) {
    %c0_i32 = arith.constant 0 : i32
    %c0_i32_0 = arith.constant 0 : i32
    %c0_i32_1 = arith.constant 0 : i32
    return %c0_i32, %c0_i32_0 : i32, i32
  }
  func.func @transform_9(%arg0: i32) -> (i32, i32, i32) {
    %c0_i32 = arith.constant 0 : i32
    %c0_i32_0 = arith.constant 0 : i32
    %c0_i32_1 = arith.constant 0 : i32
    %c0_i32_2 = arith.constant 0 : i32
    return %c0_i32, %c0_i32_0, %c0_i32_1 : i32, i32, i32
  }
  func.func @transform_10(%arg0: i32) -> (i32, i32) {
    %c0_i32 = arith.constant 0 : i32
    %c0_i32_0 = arith.constant 0 : i32
    %c0_i32_1 = arith.constant 0 : i32
    return %c0_i32, %c0_i32_0 : i32, i32
  }
  func.func @transform_11(%arg0: i32) -> (i32, i32) {
    %c0_i32 = arith.constant 0 : i32
    %c0_i32_0 = arith.constant 0 : i32
    %c0_i32_1 = arith.constant 0 : i32
    return %c0_i32, %c0_i32_0 : i32, i32
  }
  func.func @transform_12(%arg0: i32) -> (i32, i32) {
    %c0_i32 = arith.constant 0 : i32
    %c0_i32_0 = arith.constant 0 : i32
    %c0_i32_1 = arith.constant 0 : i32
    return %c0_i32, %c0_i32_0 : i32, i32
  }
  func.func @transform_13(%arg0: i32) -> (i32, i32, i32) {
    %c0_i32 = arith.constant 0 : i32
    %c0_i32_0 = arith.constant 0 : i32
    %c0_i32_1 = arith.constant 0 : i32
    return %arg0, %c0_i32, %c0_i32_0 : i32, i32, i32
  }
}

</mosaic_0001>

<bundles_post_ra>
// kernel: cnn_forward_pallas.1
= control target key start
LH: loop header
LB: loop body
LE: loop exit
PB: predicated region body
PF: predicated region fallthrough
CT: control target
= control target key end

     0   :  { %s26297_s0 = inlined_call_operand.vmem [shape: bf16[2,1024,32], index: 0, kind: input, shape index: {}]   ;;  %s26298_s1 = inlined_call_operand.vmem [shape: bf16[32,32], index: 1, kind: input, shape index: {}]   ;;  %s26299_s2 = inlined_call_operand.vmem [shape: f32[1,32], index: 2, kind: input, shape index: {}]   ;;  %s26300_s3 = inlined_call_operand.vmem [shape: bf16[9,32,64], index: 3, kind: input, shape index: {}]   ;;  %s26301_s4 = inlined_call_operand.vmem [shape: f32[1,64], index: 4, kind: input, shape index: {}]   ;;  %s26302_s5 = inlined_call_operand.vmem [shape: bf16[9,64,128], index: 5, kind: input, shape index: {}]   ;;  %s26303_s6 = inlined_call_operand.vmem [shape: f32[1,128], index: 6, kind: input, shape index: {}]   ;;  %s26304_s7 = inlined_call_operand.vmem [shape: bf16[326,991], index: 7, kind: input, shape index: {}]   ;;  %s26305_s8 = inlined_call_operand.vmem [shape: bf16[102,269], index: 8, kind: input, shape index: {}]   ;;  %s26306_s9 = inlined_call_operand.vmem [shape: bf16[16,128,512], index: 9, kind: input, shape index: {}]   ;;  %s26307_s10 = inlined_call_operand.vmem [shape: f32[1,512], index: 10, kind: input, shape index: {}]   ;;  %s26308_s11 = inlined_call_operand.vmem [shape: bf16[512,128], index: 11, kind: input, shape index: {}]   ;;  %s26309_s12 = inlined_call_operand.vmem [shape: f32[1,128], index: 12, kind: input, shape index: {}]   ;;  %s26310_s13 = inlined_call_operand.hbm [shape: f32[2,1,128], index: 13, kind: output, shape index: {}]  }
   0x1   :  { %26372 = sst [smem:[#allocation104_spill]] %s26297_s0 }
   0x2   :  { %26373 = sst [smem:[#allocation105_spill]] %s26298_s1 }
   0x3   :  { %26374 = sst [smem:[#allocation106_spill]] %s26299_s2 }
   0x4   :  { %18 = vsyncpa [#allocation3], 0 }
   0x5   :  { %20 = vsyncpa [#allocation3 + $0x1], 0  ;;  %s18891_s25 = smov 0   ;;  %s18893_s26 = smov 0  }
   0x6   :  { %s18895_s27 = smov 0   ;;  %s18897_s28 = smov 0  }
   0x7 LB: > { %s18912_s29 = sadd.s32 4294967295, %s18813_s28   ;;  %s14800_s30 = sadd.s32 4294967294, %s18813_s28   ;;  %s18813_s28 = sphi %s18897_s28, %s26828_s28   ;;  %s18809_s27 = sphi %s18895_s27, %s26827_s27   ;;  %s18805_s26 = sphi %s18893_s26, %s26826_s26   ;;  %s18801_s25 = sphi %s18891_s25, %s26825_s25  }
   0x8   : > { %s18916_s14 = sadd.s32 1, %s18813_s28   ;;  %s311_s15 = sadd.s32 1, %s18809_s27 }
   0x9   : > { %s308_s16 = ssub.s32 %s18813_s28, %s18916_s14  ;;  %p321_p0 = scmp.ne.s32.totalorder %s18809_s27, %s18805_s26 }
   0xa   : > { %p309_p1 = scmp.eq.s32.totalorder %s308_s16, 0  ;;  %p322_p2 = scmp.eq.s32.totalorder %s18912_s29, 1 }
   0xb   : > { %p327_p3 = scmp.ne.s32.totalorder %s18805_s26, %s18801_s25  ;;  %p328_p4 = scmp.eq.s32.totalorder %s14800_s30, 1 }
   0xc   : > { %s18927_s17 = scalar_select %p309_p1, %s18809_s27, %s311_s15  }
   0xd   : > { %p18929_p5 = por %p322_p2, %p321_p0  ;;  %p18933_p6 = por %p328_p4, %p327_p3 }
   0xe   : > { %26375 = sst [smem:[#allocation5_spill]] %s18927_s17  ;;  %p14803_p7 = scmp.ge.s32.totalorder %s18813_s28, 1 }
   0xf   : > { %p390_p8 = scmp.lt.s32.totalorder %s18813_s28, 3 }
  0x11   : > { %p391_p9 = pnand %p14803_p7, %p390_p8 }
  0x13   : > { %394 = sbr.rel (%p391_p9) target bundleno = 3146 (0xc4a), region = 72 }
  0x18   : > { %s26378_s1 = sld [smem:[#allocation105_spill]]  ;;  %p433_p10 = scmp.lt.s32.totalorder %s18912_s29, 1  ;;  %vm910_vm0 = vcmask 261120   ;;  %v26325_v35 = vmov 0   ;;  %v19053_v52 = vld [vmem:[%s26304_s7] sm:$0xff]  ;;  %vm2024_vm1 = vcmask 1046528  }
  0x19   : > { %s26379_s0 = sld [smem:[#allocation104_spill]]  ;;  %3623 = vmatprep.subr.bf16.mxu1 %v26325_v35  ;;  %v19058_v53 = vld [vmem:[%s26304_s7 + $0x20] sm:$0xff]  ;;  %vm3617_vm2 = vcmask 1047552   ;;  %vm3553_vm3 = vcmask 777216   ;;  %vm4453_vm4 = vsmask.f32 7424 }
  0x1a   : > { %s434_s24 = scalar_select %p433_p10, %s18912_s29, 1  ;;  %v14938_v54 = vcombine.high %v19053_v52, %v19058_v53  ;;  %v14937_v55 = vcombine.low %v19053_v52, %v19058_v53  ;;  %vm5652_vm5 = vsmask.f32 6400  ;;  %vm6577_vm6 = vsmask.f32 5376 }
  0x1b   : > { %s26380_s2 = sld [smem:[#allocation106_spill]]  ;;  %vm6019_vm7 = vcmask 1045504   ;;  %vm6942_vm8 = vcmask 1044480   ;;  %vm18818_vm9 = vmmov 0   ;;  %vm7820_vm10 = vcmask 105472  }
  0x1c   : > { %s16540_s30 = sshll.u32 %s434_s24, 9  ;;  %3655 = vmatprep.mubr.bf16.mxu1 %v14938_v54  ;;  %vm8115_vm11 = vcmask 523264   ;;  %vm8468_vm12 = vcmask 1042432   ;;  %vm8768_vm13 = vcmask 1041408   ;;  %vm8611_vm14 = vsmask.f32 2304 }
  0x1e   : > { %v17796_v0 = vld [vmem:[%s26378_s1 + $0x8] sm:$0xff]   ;;  %v17797_v1 = vld [vmem:[%s26378_s1] sm:$0xff]  }
  0x1f   : > { %16978 = vmatprep.subr.bf16.mxu0 %v17796_v0  ;;  %s18950_s17 = scalar_lea.vmem %s26379_s0, %s16540_s30  ;;  %s431_s0 = sand.u32 1, %s18805_s26  }
  0x20   : > { %16979 = vmatpush3.bf16.msra.mxu0 %v17796_v0  ;;  %v17798_v2 = vld [vmem:[%s18950_s17] sm:$0xff]   ;;  %v17799_v3 = vld [vmem:[%s18950_s17 + $0x8] sm:$0xff]   ;;  %v17800_v4 = vld [vmem:[%s18950_s17 + $0x10] sm:$0xff]   ;;  %s432_s20 = scalar_lea.vmem [#allocation2], %s431_s0  ;;  %s14733_s30 = scalar_lea.sflag [#allocation3], %s431_s0 }
  0x21   : > { %16980 = vmatprep.subr.bf16.mxu0 %v17797_v1  ;;  %16982 = vmatprep.mubr.msk.bf16.mxu0 %vm910_vm0, %v17798_v2  ;;  %v17801_v5 = vld [vmem:[%s18950_s17 + $0x18] sm:$0xff]   ;;  %v17802_v6 = vld [vmem:[%s18950_s17 + $0x20] sm:$0xff]   ;;  %v17803_v7 = vld [vmem:[%s18950_s17 + $0x28] sm:$0xff]   ;;  %s14745_s21 = sshll.u32 %s432_s20, 4  ;;  %s14746_s21 = int_to_ptr.vmem [resolvable:$true] %s14745_s21 }
  0x22   : > { %v17804_v8 = vld [vmem:[%s18950_s17 + $0x30] sm:$0xff]   ;;  %v17805_v9 = vld [vmem:[%s18950_s17 + $0x38] sm:$0xff]   ;;  %v17806_v10 = vld [vmem:[%s18950_s17 + $0x40] sm:$0xff]  }
  0x23   : > { %v17807_v11 = vld [vmem:[%s18950_s17 + $0x48] sm:$0xff]   ;;  %v17808_v12 = vld [vmem:[%s18950_s17 + $0x50] sm:$0xff]   ;;  %v17809_v13 = vld [vmem:[%s18950_s17 + $0x58] sm:$0xff]  }
  0x24   : > { %16981 = vmatpush3.bf16.msra.mxu0 %v17797_v1  ;;  %v17810_v14 = vld [vmem:[%s18950_s17 + $0x60] sm:$0xff]   ;;  %v17811_v15 = vld [vmem:[%s18950_s17 + $0x68] sm:$0xff]   ;;  %v17812_v16 = vld [vmem:[%s18950_s17 + $0x70] sm:$0xff]  }
  0x25   : > { %v17813_v17 = vld [vmem:[%s18950_s17 + $0x78] sm:$0xff]   ;;  %v17814_v18 = vld [vmem:[%s18950_s17 + $0x80] sm:$0xff]   ;;  %v17815_v19 = vld [vmem:[%s18950_s17 + $0x88] sm:$0xff]   ;;  %4023 = vmatprep.subr.bf16.mxu0 %v26325_v35 }
  0x26   : > { %v17816_v20 = vld [vmem:[%s18950_s17 + $0x90] sm:$0xff]   ;;  %v17817_v21 = vld [vmem:[%s18950_s17 + $0x98] sm:$0xff]   ;;  %v17818_v22 = vld [vmem:[%s18950_s17 + $0xa0] sm:$0xff]  }
  0x27   : > { %16983 = vmatmul.mubr.msk.bf16.vlgmr.msra.gmra.mxu0 %vm910_vm0, %v17799_v3  ;;  %v17819_v23 = vld [vmem:[%s18950_s17 + $0xa8] sm:$0xff]   ;;  %v17820_v24 = vld [vmem:[%s18950_s17 + $0xb0] sm:$0xff]   ;;  %v17821_v25 = vld [vmem:[%s18950_s17 + $0xb8] sm:$0xff]  }
  0x28   : > { %16986 = vmatprep.mubr.msk.bf16.mxu0 %vm910_vm0, %v17800_v4  ;;  %v17822_v26 = vld [vmem:[%s18950_s17 + $0xc0] sm:$0xff]   ;;  %v17823_v27 = vld [vmem:[%s18950_s17 + $0xc8] sm:$0xff]   ;;  %v17824_v28 = vld [vmem:[%s18950_s17 + $0xd0] sm:$0xff]  }
  0x29   : > { %v17825_v29 = vld [vmem:[%s18950_s17 + $0xd8] sm:$0xff]   ;;  %v17826_v30 = vld [vmem:[%s18950_s17 + $0xe0] sm:$0xff]   ;;  %v17827_v31 = vld [vmem:[%s18950_s17 + $0xe8] sm:$0xff]  }
  0x2a   : > { %v17828_v32 = vld [vmem:[%s18950_s17 + $0xf0] sm:$0xff]   ;;  %v17829_v33 = vld [vmem:[%s18950_s17 + $0xf8] sm:$0xff]   ;;  %v17830_v34 = vld [vmem:[%s18950_s17 + $0x100] sm:$0xff]  }
  0x2b   : > { %v17831_v36 = vld [vmem:[%s18950_s17 + $0x108] sm:$0xff]   ;;  %v17832_v37 = vld [vmem:[%s18950_s17 + $0x110] sm:$0xff]   ;;  %v17833_v38 = vld [vmem:[%s18950_s17 + $0x118] sm:$0xff]  }
  0x2c   : > { %v17834_v39 = vld [vmem:[%s18950_s17 + $0x120] sm:$0xff]   ;;  %v17835_v40 = vld [vmem:[%s18950_s17 + $0x128] sm:$0xff]   ;;  %v17836_v41 = vld [vmem:[%s18950_s17 + $0x130] sm:$0xff]  }
  0x2d   : > { %v17837_v42 = vld [vmem:[%s18950_s17 + $0x138] sm:$0xff]   ;;  %v17838_v43 = vld [vmem:[%s18950_s17 + $0x140] sm:$0xff]   ;;  %v17839_v44 = vld [vmem:[%s18950_s17 + $0x148] sm:$0xff]  }
  0x2e   : > { %v17840_v45 = vld [vmem:[%s18950_s17 + $0x150] sm:$0xff]   ;;  %v17841_v46 = vld [vmem:[%s18950_s17 + $0x158] sm:$0xff]   ;;  %v17842_v47 = vld [vmem:[%s18950_s17 + $0x160] sm:$0xff]  }
  0x2f   : > { %16987 = vmatmul.mubr.msk.bf16.gmra.mxu0 %vm910_vm0, %v17801_v5  ;;  %v17843_v48 = vld [vmem:[%s18950_s17 + $0x168] sm:$0xff]   ;;  %v17844_v49 = vld [vmem:[%s18950_s17 + $0x170] sm:$0xff]   ;;  %v17845_v50 = vld [vmem:[%s18950_s17 + $0x178] sm:$0xff]  }
  0x30   : > { %16990 = vmatprep.mubr.msk.bf16.mxu0 %vm910_vm0, %v17802_v6  ;;  %v17846_v51 = vld [vmem:[%s18950_s17 + $0x180] sm:$0xff]   ;;  %v17847_v56 = vld [vmem:[%s18950_s17 + $0x188] sm:$0xff]   ;;  %v17848_v57 = vld [vmem:[%s18950_s17 + $0x190] sm:$0xff]  }
  0x31   : > { %v17849_v60 = vld [vmem:[%s18950_s17 + $0x198] sm:$0xff]   ;;  %v19074_v62 = vld [vmem:[%s26380_s2] ss:$0 sm:$0xff]  ;;  %v17851_v5 = vld [vmem:[%s18950_s17 + $0x1a8] sm:$0xff]  }
  0x32   : > { %v17850_v63 = vld [vmem:[%s18950_s17 + $0x1a0] sm:$0xff]  }
  0x37   : > { %16991 = vmatmul.mubr.msk.bf16.gmra.mxu0 %vm910_vm0, %v17803_v7 }
  0x38   : > { %16994 = vmatprep.mubr.msk.bf16.mxu0 %vm910_vm0, %v17804_v8 }
  0x3f   : > { %16995 = vmatmul.mubr.msk.bf16.gmra.mxu0 %vm910_vm0, %v17805_v9 }
  0x40   : > { %16998 = vmatprep.mubr.msk.bf16.mxu0 %vm910_vm0, %v17806_v10 }
  0x47   : > { %16999 = vmatmul.mubr.msk.bf16.gmra.mxu0 %vm910_vm0, %v17807_v11 }
  0x48   : > { %17002 = vmatprep.mubr.msk.bf16.mxu0 %vm910_vm0, %v17808_v12 }
  0x4f   : > { %17003 = vmatmul.mubr.msk.bf16.gmra.mxu0 %vm910_vm0, %v17809_v13  ;;  %v17852_v13 = vld [vmem:[%s18950_s17 + $0x1b0] sm:$0xff]  }
  0x50   : > { %17006 = vmatprep.mubr.msk.bf16.mxu0 %vm910_vm0, %v17810_v14 }
  0x57   : > { %17007 = vmatmul.mubr.msk.bf16.gmra.mxu0 %vm910_vm0, %v17811_v15 }
  0x58   : > { %17010 = vmatprep.mubr.msk.bf16.mxu0 %vm910_vm0, %v17812_v16 }
  0x5f   : > { %17011 = vmatmul.mubr.msk.bf16.gmra.mxu0 %vm910_vm0, %v17813_v17 }
  0x60   : > { %17014 = vmatprep.mubr.msk.bf16.mxu0 %vm910_vm0, %v17814_v18 }
  0x67   : > { %17015 = vmatmul.mubr.msk.bf16.gmra.mxu0 %vm910_vm0, %v17815_v19 }
  0x68   : > { %17018 = vmatprep.mubr.msk.bf16.mxu0 %vm910_vm0, %v17816_v20 }
  0x6f   : > { %17019 = vmatmul.mubr.msk.bf16.gmra.mxu0 %vm910_vm0, %v17817_v21 }
  0x70   : > { %17022 = vmatprep.mubr.msk.bf16.mxu0 %vm910_vm0, %v17818_v22 }
  0x77   : > { %17023 = vmatmul.mubr.msk.bf16.gmra.mxu0 %vm910_vm0, %v17819_v23 }
  0x78   : > { %17026 = vmatprep.mubr.msk.bf16.mxu0 %vm910_vm0, %v17820_v24 }
  0x7f   : > { %17027 = vmatmul.mubr.msk.bf16.gmra.mxu0 %vm910_vm0, %v17821_v25 }
  0x80   : > { %17030 = vmatprep.mubr.msk.bf16.mxu0 %vm910_vm0, %v17822_v26 }
  0x87   : > { %17031 = vmatmul.mubr.msk.bf16.gmra.mxu0 %vm910_vm0, %v17823_v27 }
  0x88   : > { %17034 = vmatprep.mubr.msk.bf16.mxu0 %vm910_vm0, %v17824_v28  ;;  %v17853_v28 = vld [vmem:[%s18950_s17 + $0x1b8] sm:$0xff]  }
  0x8f   : > { %17035 = vmatmul.mubr.msk.bf16.gmra.mxu0 %vm910_vm0, %v17825_v29 }
  0x90   : > { %17038 = vmatprep.mubr.msk.bf16.mxu0 %vm910_vm0, %v17826_v30 }
  0x97   : > { %17039 = vmatmul.mubr.msk.bf16.gmra.mxu0 %vm910_vm0, %v17827_v31 }
  0x98   : > { %17042 = vmatprep.mubr.msk.bf16.mxu0 %vm910_vm0, %v17828_v32 }
  0x9f   : > { %17043 = vmatmul.mubr.msk.bf16.gmra.mxu0 %vm910_vm0, %v17829_v33 }
  0xa0   : > { %17046 = vmatprep.mubr.msk.bf16.mxu0 %vm910_vm0, %v17830_v34 }
  0xa7   : > { %17047 = vmatmul.mubr.msk.bf16.gmra.mxu0 %vm910_vm0, %v17831_v36 }
  0xa8   : > { %17050 = vmatprep.mubr.msk.bf16.mxu0 %vm910_vm0, %v17832_v37  ;;  %v17854_v37 = vld [vmem:[%s18950_s17 + $0x1c0] sm:$0xff]  }
  0xaf   : > { %17051 = vmatmul.mubr.msk.bf16.gmra.mxu0 %vm910_vm0, %v17833_v38 }
  0xb0   : > { %17054 = vmatprep.mubr.msk.bf16.mxu0 %vm910_vm0, %v17834_v39 }
  0xb7   : > { %17055 = vmatmul.mubr.msk.bf16.gmra.mxu0 %vm910_vm0, %v17835_v40 }
  0xb8   : > { %17058 = vmatprep.mubr.msk.bf16.mxu0 %vm910_vm0, %v17836_v41 }
  0xbf   : > { %17059 = vmatmul.mubr.msk.bf16.gmra.mxu0 %vm910_vm0, %v17837_v42 }
  0xc0   : > { %17062 = vmatprep.mubr.msk.bf16.mxu0 %vm910_vm0, %v17838_v43 }
  0xc7   : > { %17063 = vmatmul.mubr.msk.bf16.gmra.mxu0 %vm910_vm0, %v17839_v44 }
  0xc8   : > { %17066 = vmatprep.mubr.msk.bf16.mxu0 %vm910_vm0, %v17840_v45 }
  0xcf   : > { %17067 = vmatmul.mubr.msk.bf16.gmra.mxu0 %vm910_vm0, %v17841_v46 }
  0xd0   : > { %17070 = vmatprep.mubr.msk.bf16.mxu0 %vm910_vm0, %v17842_v47 }
  0xd7   : > { %17071 = vmatmul.mubr.msk.bf16.gmra.mxu0 %vm910_vm0, %v17843_v48  ;;  %v17855_v48 = vld [vmem:[%s18950_s17 + $0x1c8] sm:$0xff]  }
  0xd8   : > { %17074 = vmatprep.mubr.msk.bf16.mxu0 %vm910_vm0, %v17844_v49 }
  0xdf   : > { %17075 = vmatmul.mubr.msk.bf16.gmra.mxu0 %vm910_vm0, %v17845_v50 }
  0xe0   : > { %17078 = vmatprep.mubr.msk.bf16.mxu0 %vm910_vm0, %v17846_v51 }
  0xe7   : > { %v16984_v58 = vpop.f32.mrf.mxu0  ;;  %17079 = vmatmul.mubr.msk.bf16.gmra.mxu0 %vm910_vm0, %v17847_v56 }
  0xe8   : > { %17082 = vmatprep.mubr.msk.bf16.mxu0 %vm910_vm0, %v17848_v57  ;;  %v1146_v3 = vadd.f32 %v16984_v58, %v19074_v62  ;;  %v17856_v57 = vld [vmem:[%s18950_s17 + $0x1d0] sm:$0xff]  }
  0xe9   : > { %v1137_v59 = vpop.f32.mrf.mxu0 }
  0xea   : > { %v1138_v8 = vadd.f32 %v19074_v62, %v1137_v59  ;;  %v1650_v14 = vmax.f32 %v1146_v3, 0.0 }
  0xeb   : > { %v16985_v61 = vpop.f32.mrf.mxu0 }
  0xec   : > { %v1149_v6 = vadd.f32 %v16985_v61, %v19074_v62  ;;  %v1648_v20 = vmax.f32 %v1138_v8, 0.0 }
  0xed   : > { %v1140_v0 = vpop.f32.mrf.mxu0 }
  0xee   : > { %v1141_v11 = vadd.f32 %v19074_v62, %v1140_v0  ;;  %v1651_v17 = vmax.f32 %v1149_v6, 0.0  ;;  %v17857_v0 = vld [vmem:[%s18950_s17 + $0x1d8] sm:$0xff]   ;;  %v17858_v6 = vld [vmem:[%s18950_s17 + $0x1e0] sm:$0xff]  }
  0xef   : > { %v16988_v1 = vpop.f32.mrf.mxu0  ;;  %17083 = vmatmul.mubr.msk.bf16.gmra.mxu0 %vm910_vm0, %v17849_v60 }
  0xf0   : > { %v19079_v2 = vadd.f32 %v16988_v1, %v19074_v62  ;;  %17086 = vmatprep.mubr.msk.bf16.mxu0 %vm910_vm0, %v17850_v63  ;;  %v1649_v23 = vmax.f32 %v1141_v11, 0.0 }
  0xf1   : > { %v1153_v4 = vpop.f32.mrf.mxu0 }
  0xf2   : > { %v1154_v7 = vadd.f32 %v19074_v62, %v1153_v4  ;;  %v1654_v9 = vmax.f32 %v19079_v2, 0.0 }
  0xf3   : > { %v16989_v10 = vpop.f32.mrf.mxu0 }
  0xf4   : > { %v19090_v12 = vadd.f32 %v16989_v10, %v19074_v62  ;;  %v1652_v15 = vmax.f32 %v1154_v7, 0.0  ;;  %v1778_v21 = vmax.f32 %v1650_v14, %v1654_v9 }
  0xf5   : > { %v1156_v16 = vpop.f32.mrf.mxu0 }
  0xf6   : > { %v1655_v18 = vmax.f32 %v19090_v12, 0.0  ;;  %v19095_v19 = vadd.f32 %v19074_v62, %v1156_v16  ;;  %v1776_v26 = vmax.f32 %v1648_v20, %v1652_v15  ;;  %v2028_v32 = vrot.slane %v1778_v21, 1 }
  0xf7   : > { %v19099_v22 = vpop.f32.mrf.mxu0  ;;  %17087 = vmatmul.mubr.msk.bf16.gmra.mxu0 %vm910_vm0, %v17851_v5 }
  0xf8   : > { %v1779_v24 = vmax.f32 %v1651_v17, %v1655_v18  ;;  %v1653_v25 = vmax.f32 %v19095_v19, 0.0  ;;  %17090 = vmatprep.mubr.msk.bf16.mxu0 %vm910_vm0, %v17852_v13  ;;  %v2025_v38 = vrot.slane %v1776_v26, 1 }
  0xf9   : > { %v1169_v27 = vpop.f32.mrf.mxu0 }
  0xfa   : > { %v2030_v29 = vrot.slane %v1779_v24, 1  ;;  %v1777_v30 = vmax.f32 %v1649_v23, %v1653_v25  ;;  %v19110_v31 = vadd.f32 %v19074_v62, %v1169_v27 }
  0xfb   : > { %v16993_v33 = vpop.f32.mrf.mxu0 }
  0xfc   : > { %v2026_v34 = vrot.slane %v1777_v30, 1  ;;  %v1656_v36 = vmax.f32 %v19110_v31, 0.0  ;;  %v2031_v40 = vsel %vm2024_vm1, %v2028_v32, %v2030_v29 }
  0xfd   : > { %v1172_v39 = vpop.f32.mrf.mxu0  ;;  %v2398_v43 = vmax.f32 %v1778_v21, %v2031_v40 }
  0xfe   : > { %v19117_v41 = vmax.f32 %v1652_v15, %v1656_v36  ;;  %v2027_v44 = vsel %vm2024_vm1, %v2025_v38, %v2026_v34  ;;  %v2029_v45 = vsel %vm2024_vm1, %v2026_v34, %v2028_v32  ;;  %v1181_v32 = vadd.f32 %v16993_v33, %v19074_v62 }
  0xff   : > { %v16996_v42 = vpop.f32.mrf.mxu0  ;;  %17091 = vmatmul.mubr.msk.bf16.gmra.mxu0 %vm910_vm0, %v17853_v28  ;;  %v2396_v49 = vmax.f32 %v1776_v26, %v2027_v44  ;;  %v2397_v50 = vmax.f32 %v1777_v30, %v2029_v45  ;;  %v17859_v26 = vld [vmem:[%s18950_s17 + $0x1e8] sm:$0xff]   ;;  %v1178_v44 = vadd.f32 %v19099_v22, %v19074_v62  ;;  %v1173_v33 = vadd.f32 %v19074_v62, %v1172_v39  ;;  %v17861_v39 = vld [vmem:[%s18950_s17 + $0x1f8] sm:$0xff]  }
 0x100   : > { %v2032_v46 = vrot.slane %v19117_v41, 1  ;;  %17094 = vmatprep.mubr.msk.bf16.mxu0 %vm910_vm0, %v17854_v37  ;;  %v1194_v7 = vadd.f32 %v16996_v42, %v19074_v62 }
 0x101   : > { %v1185_v47 = vpop.f32.mrf.mxu0  ;;  %v19128_v56 = vpack.c.bf16 %v2397_v50, %v2396_v49  ;;  %v1659_v50 = vmax.f32 %v1181_v32, 0.0  ;;  %v1658_v22 = vmax.f32 %v1178_v44, 0.0 }
 0x102   : > { %v2033_v54 = vsel %vm2024_vm1, %v2030_v29, %v2032_v46  ;;  %v1186_v16 = vadd.f32 %v19074_v62, %v1185_v47  ;;  %v1662_v23 = vmax.f32 %v1194_v7, 0.0 }
 0x103   : > { %v16997_v51 = vpop.f32.mrf.mxu0  ;;  %v2399_v59 = vmax.f32 %v1779_v24, %v2033_v54 }
 0x104   : > { %v1197_v3 = vadd.f32 %v16997_v51, %v19074_v62  ;;  %v1660_v37 = vmax.f32 %v1186_v16, 0.0  ;;  %v1786_v7 = vmax.f32 %v1658_v22, %v1662_v23 }
 0x105   : > { %v1188_v58 = vpop.f32.mrf.mxu0  ;;  %v19132_v61 = vpack.c.bf16 %v2399_v59, %v2398_v43  ;;  %v17860_v43 = vld [vmem:[%s18950_s17 + $0x1f0] sm:$0xff]   ;;  %s18753_s17 = scalar_lea.vmem %s14746_s21, 16 }
 0x106   : > { %v1189_v10 = vadd.f32 %v19074_v62, %v1188_v58  ;;  %v1663_v17 = vmax.f32 %v1197_v3, 0.0  ;;  %p18754_p11 = scmp.ne.s32.totalorder %s14746_s21, %s18753_s17 }
 0x107   : > { %v17000_v60 = vpop.f32.mrf.mxu0  ;;  %17095 = vmatmul.mubr.msk.bf16.gmra.mxu0 %vm910_vm0, %v17855_v48 }
 0x108   : > { %17098 = vmatprep.mubr.msk.bf16.mxu0 %vm910_vm0, %v17856_v57  ;;  %v19138_v4 = vadd.f32 %v17000_v60, %v19074_v62  ;;  %v1661_v27 = vmax.f32 %v1189_v10, 0.0  ;;  %v1657_v60 = vmax.f32 %v1173_v33, 0.0  ;;  %p18755_p12 = pnand %p18754_p11, %p18929_p5 }
 0x109   : > { %v1201_v63 = vpop.f32.mrf.mxu0 }
 0x10a   : > { %v1202_v11 = vadd.f32 %v19074_v62, %v1201_v63  ;;  %v1666_v20 = vmax.f32 %v19138_v4, 0.0  ;;  %v1787_v63 = vmax.f32 %v1659_v50, %v1663_v17  ;;  %p18756_p13 = pneg %p18755_p12 }
 0x10b   : > { %v17001_v1 = vpop.f32.mrf.mxu0 }
 0x10c   : > { %v19141_v5 = vadd.f32 %v17001_v1, %v19074_v62  ;;  %v1664_v28 = vmax.f32 %v1202_v11, 0.0  ;;  %v1790_v38 = vmax.f32 %v1662_v23, %v1666_v20  ;;  %v2044_v23 = vrot.slane %v1786_v7, 1 }
 0x10d   : > { %v1204_v8 = vpop.f32.mrf.mxu0 }
 0x10e   : > { %v1667_v13 = vmax.f32 %v19141_v5, 0.0  ;;  %v19149_v14 = vadd.f32 %v19074_v62, %v1204_v8  ;;  %v1788_v47 = vmax.f32 %v1660_v37, %v1664_v28  ;;  %v2052_v54 = vrot.slane %v1790_v38, 1 }
 0x10f   : > { %v19151_v15 = vpop.f32.mrf.mxu0  ;;  %17099 = vmatmul.mubr.msk.bf16.gmra.mxu0 %vm910_vm0, %v17857_v0  ;;  %v1785_v8 = vmax.f32 %v1657_v60, %v1661_v27 }
 0x110   : > { %v1665_v21 = vmax.f32 %v19149_v14, 0.0  ;;  %17102 = vmatprep.mubr.msk.bf16.mxu0 %vm910_vm0, %v17858_v6  ;;  %v1791_v29 = vmax.f32 %v1663_v17, %v1667_v13  ;;  %v2048_v0 = vrot.slane %v1788_v47, 1  ;;  %v1784_v17 = vmax.f32 %v1656_v36, %v1660_v37 }
 0x111   : > { %v1217_v24 = vpop.f32.mrf.mxu0  ;;  %v1781_v36 = vmax.f32 %v1653_v25, %v1657_v60 }
 0x112   : > { %v19162_v30 = vadd.f32 %v19074_v62, %v1217_v24  ;;  %v1789_v40 = vmax.f32 %v1661_v27, %v1665_v21  ;;  %v2054_v48 = vrot.slane %v1791_v29, 1  ;;  %v2042_v27 = vrot.slane %v1785_v8, 1 }
 0x113   : > { %v19165_v34 = vpop.f32.mrf.mxu0 }
 0x114   : > { %v1668_v42 = vmax.f32 %v19162_v30, 0.0  ;;  %v2050_v57 = vrot.slane %v1789_v40, 1  ;;  %v2055_v1 = vsel %vm2024_vm1, %v2052_v54, %v2054_v48  ;;  %v19324_v30 = vld [vmem:[%s26380_s2] ss:$0 sm:$0xff] }
 0x115   : > { %v19175_v45 = vpop.f32.mrf.mxu0  ;;  %v2410_v24 = vmax.f32 %v1790_v38, %v2055_v1  ;;  %v1783_v38 = vmax.f32 %v1655_v18, %v1659_v50  ;;  %v2034_v1 = vrot.slane %v1781_v36, 1 }
 0x116   : > { %v19180_v49 = vmax.f32 %v1664_v28, %v1668_v42  ;;  %v2051_v10 = vsel %vm2024_vm1, %v2048_v0, %v2050_v57  ;;  %v2053_v11 = vsel %vm2024_vm1, %v2050_v57, %v2052_v54  ;;  %v2046_v28 = vrot.slane %v1787_v63, 1 }
 0x117   : > { %v19182_v51 = vpop.f32.mrf.mxu0  ;;  %17103 = vmatmul.mubr.msk.bf16.gmra.mxu0 %vm910_vm0, %v17859_v26  ;;  %v2408_v44 = vmax.f32 %v1788_v47, %v2051_v10  ;;  %v2409_v33 = vmax.f32 %v1789_v40, %v2053_v11  ;;  %v1782_v57 = vmax.f32 %v1654_v9, %v1658_v22  ;;  %v2038_v50 = vrot.slane %v1783_v38, 1 }
 0x118   : > { %v2056_v58 = vrot.slane %v19180_v49, 1  ;;  %17106 = vmatprep.mubr.msk.bf16.mxu0 %vm910_vm0, %v17860_v43  ;;  %v2047_v31 = vsel %vm2024_vm1, %v2044_v23, %v2046_v28 }
 0x119   : > { %v19187_v59 = vpop.f32.mrf.mxu0  ;;  %v2690_v40 = vpack.c.bf16 %v2409_v33, %v2408_v44  ;;  %v2406_v18 = vmax.f32 %v1786_v7, %v2047_v31  ;;  %v2036_v10 = vrot.slane %v1782_v57, 1 }
 0x11a   : > { %v2057_v6 = vsel %vm2024_vm1, %v2054_v48, %v2056_v58  ;;  %v2049_v48 = vsel %vm2024_vm1, %v2046_v28, %v2048_v0  ;;  %v2045_v0 = vsel %vm2024_vm1, %v2042_v27, %v2044_v23 }
 0x11b   : > { %v19191_v3 = vpop.f32.mrf.mxu0  ;;  %v2411_v26 = vmax.f32 %v1791_v29, %v2057_v6  ;;  %v2040_v29 = vrot.slane %v1784_v17, 1  ;;  %v2407_v47 = vmax.f32 %v1787_v63, %v2049_v48  ;;  %v2405_v60 = vmax.f32 %v1785_v8, %v2045_v0 }
 0x11c   : > { %v2039_v9 = vsel %vm2024_vm1, %v2036_v10, %v2038_v50  ;;  %v2037_v28 = vsel %vm2024_vm1, %v2034_v1, %v2036_v10  ;;  %v1226_v10 = vadd.f32 %v19151_v15, %v19074_v62  ;;  %v1234_v15 = vadd.f32 %v19074_v62, %v19187_v59 }
 0x11d   : > { %v19198_v16 = vpop.f32.mrf.mxu0  ;;  %v2691_v43 = vpack.c.bf16 %v2411_v26, %v2410_v24  ;;  %v2689_v19 = vpack.c.bf16 %v2407_v47, %v2406_v18  ;;  %v2041_v63 = vsel %vm2024_vm1, %v2038_v50, %v2040_v29  ;;  %v2035_v24 = vsel %vm2024_vm1, %v2032_v46, %v2034_v1 }
 0x11e   : > { %v2403_v7 = vmax.f32 %v1783_v38, %v2041_v63  ;;  %v2402_v33 = vmax.f32 %v1782_v57, %v2039_v9  ;;  %v2400_v31 = vmax.f32 %v19117_v41, %v2035_v24  ;;  %v1245_v41 = vadd.f32 %v19191_v3, %v19074_v62 }
 0x11f   : > { %v17012_v32 = vpop.f32.mrf.mxu0  ;;  %17107 = vmatmul.mubr.msk.bf16.gmra.mxu0 %vm910_vm0, %v17861_v39  ;;  %3624 = vmatpush1.bf16.msra.mxu1 %v2691_v43  ;;  %v2043_v39 = vsel %vm2024_vm1, %v2040_v29, %v2042_v27  ;;  %v1242_v63 = vadd.f32 %v19182_v51, %v19074_v62 }
 0x120   : > { %3625 = vmatprep.subr.bf16.mxu1 %v26325_v35  ;;  %v2404_v25 = vmax.f32 %v1784_v17, %v2043_v39  ;;  %v1258_v43 = vadd.f32 %v17012_v32, %v19074_v62  ;;  %v2687_v29 = vpack.c.bf16 %v2403_v7, %v2402_v33  ;;  %v2401_v32 = vmax.f32 %v1781_v36, %v2037_v28 }
 0x121   : > { %v1249_v54 = vpop.f32.mrf.mxu0  ;;  %v1675_v7 = vmax.f32 %v1245_v41, 0.0  ;;  %v1674_v33 = vmax.f32 %v1242_v63, 0.0 }
 0x122   : > { %v2688_v11 = vpack.c.bf16 %v2405_v60, %v2404_v25  ;;  %v1678_v39 = vmax.f32 %v1258_v43, 0.0  ;;  %v2686_v36 = vpack.c.bf16 %v2401_v32, %v2400_v31  ;;  %v1229_v43 = vadd.f32 %v19165_v34, %v19074_v62 }
 0x123   : > { %v17013_v37 = vpop.f32.mrf.mxu0  ;;  %3626 = vmatpush1.bf16.msra.mxu1 %v2690_v40  ;;  %v1672_v32 = vmax.f32 %v1234_v15, 0.0 }
 0x124   : > { %3627 = vmatprep.subr.bf16.mxu1 %v26325_v35  ;;  %v1261_v26 = vadd.f32 %v17013_v37, %v19074_v62  ;;  %v1250_v37 = vadd.f32 %v19074_v62, %v1249_v54 }
 0x125   : > { %v1252_v12 = vpop.f32.mrf.mxu0 }
 0x126   : > { %v1253_v23 = vadd.f32 %v19074_v62, %v1252_v12  ;;  %v1679_v40 = vmax.f32 %v1261_v26, 0.0 }
 0x127   : > { %v17016_v6 = vpop.f32.mrf.mxu0  ;;  %3628 = vmatpush1.bf16.msra.mxu1 %v2689_v19 }
 0x128   : > { %3629 = vmatprep.subr.bf16.mxu1 %v26325_v35  ;;  %v19223_v8 = vadd.f32 %v17016_v6, %v19074_v62  ;;  %v1677_v12 = vmax.f32 %v1253_v23, 0.0  ;;  %v1676_v6 = vmax.f32 %v1250_v37, 0.0 }
 0x129   : > { %v1265_v2 = vpop.f32.mrf.mxu0 }
 0x12a   : > { %v1266_v27 = vadd.f32 %v19074_v62, %v1265_v2  ;;  %v1682_v47 = vmax.f32 %v19223_v8, 0.0  ;;  %v1237_v2 = vadd.f32 %v19074_v62, %v19198_v16  ;;  %v1670_v16 = vmax.f32 %v1226_v10, 0.0 }
 0x12b   : > { %v17017_v22 = vpop.f32.mrf.mxu0  ;;  %3630 = vmatpush1.bf16.msra.mxu1 %v2688_v11  ;;  %v1671_v10 = vmax.f32 %v1229_v43, 0.0 }
 0x12c   : > { %v19226_v17 = vadd.f32 %v17017_v22, %v19074_v62  ;;  %3631 = vmatprep.subr.bf16.mxu1 %v26325_v35  ;;  %v1680_v18 = vmax.f32 %v1266_v27, 0.0  ;;  %v1806_v19 = vmax.f32 %v1678_v39, %v1682_v47  ;;  %v1673_v59 = vmax.f32 %v1237_v2, 0.0 }
 0x12d   : > { %v1268_v44 = vpop.f32.mrf.mxu0  ;;  %v1803_v27 = vmax.f32 %v1675_v7, %v1679_v40  ;;  %v1800_v2 = vmax.f32 %v1672_v32, %v1676_v6 }
 0x12e   : > { %v1683_v46 = vmax.f32 %v19226_v17, 0.0  ;;  %v19234_v48 = vadd.f32 %v19074_v62, %v1268_v44  ;;  %v1804_v9 = vmax.f32 %v1676_v6, %v1680_v18  ;;  %v2084_v51 = vrot.slane %v1806_v19, 1  ;;  %v19516_v17 = vld [vmem:[%s26304_s7 + $0x80] sm:$0xff] }
 0x12f   : > { %v19237_v38 = vpop.f32.mrf.mxu0  ;;  %3632 = vmatpush1.bf16.msra.mxu1 %v2687_v29  ;;  %v1221_v44 = vadd.f32 %v19074_v62, %v19175_v45  ;;  %v19312_v6 = vmax.f32 %v1668_v42, %v1672_v32  ;;  %v2072_v43 = vrot.slane %v1800_v2, 1 }
 0x130   : > { %v1681_v57 = vmax.f32 %v19234_v48, 0.0  ;;  %v1807_v50 = vmax.f32 %v1679_v40, %v1683_v46  ;;  %3633 = vmatprep.subr.bf16.mxu1 %v26325_v35  ;;  %v2080_v29 = vrot.slane %v1804_v9, 1  ;;  %v19297_v40 = vmax.f32 %v1666_v20, %v1670_v16 }
 0x131   : > { %v1281_v0 = vpop.f32.mrf.mxu0  ;;  %v1669_v63 = vmax.f32 %v1221_v44, 0.0  ;;  %v19306_v20 = vmax.f32 %v1671_v10, %v1675_v7 }
 0x132   : > { %v19246_v1 = vadd.f32 %v19074_v62, %v1281_v0  ;;  %v19257_v25 = vmax.f32 %v1677_v12, %v1681_v57  ;;  %v2086_v22 = vrot.slane %v1807_v50, 1  ;;  %v1802_v0 = vmax.f32 %v1674_v33, %v1678_v39 }
 0x133   : > { %v19251_v54 = vpop.f32.mrf.mxu0  ;;  %3634 = vmatpush1.bf16.msra.mxu1 %v2686_v36  ;;  %v19291_v62 = vmax.f32 %v1673_v59, %v1677_v12  ;;  %v2078_v39 = vrot.slane %v1803_v27, 1  ;;  %v19303_v12 = vmax.f32 %v1670_v16, %v1674_v33  ;;  %v19314_v16 = vmax.f32 %v1669_v63, %v1673_v59 }
 0x134   : > { %v1684_v60 = vmax.f32 %v19246_v1, 0.0  ;;  %3635 = vmatprep.subr.bf16.mxu1 %v26325_v35  ;;  %v2082_v26 = vrot.slane %v19257_v25, 1  ;;  %v2087_v31 = vsel %vm2024_vm1, %v2084_v51, %v2086_v22 }
 0x135   : > { %v19264_v3 = vpop.f32.mrf.mxu0  ;;  %v2426_v41 = vmax.f32 %v1806_v19, %v2087_v31  ;;  %v2068_v7 = vrot.slane %v19303_v12, 1  ;;  %v2070_v31 = vrot.slane %v19306_v20, 1 }
 0x136   : > { %v19270_v11 = vmax.f32 %v1680_v18, %v1684_v60  ;;  %v2085_v45 = vsel %vm2024_vm1, %v2082_v26, %v2084_v51 }
 0x137   : > { %v19275_v24 = vpop.f32.mrf.mxu0  ;;  %3636 = vmatpush1.bf16.msra.mxu1 %v19132_v61  ;;  %v2083_v61 = vsel %vm2024_vm1, %v2080_v29, %v2082_v26  ;;  %v2425_v4 = vmax.f32 %v19257_v25, %v2085_v45  ;;  %v2074_v26 = vrot.slane %v19291_v62, 1 }
 0x138   : > { %v26315_v28 = vrot.slane %v19270_v11, 1  ;;  %3637 = vmatprep.subr.bf16.mxu1 %v26325_v35  ;;  %v2424_v51 = vmax.f32 %v1804_v9, %v2083_v61  ;;  %v2060_v9 = vrot.slane %v19297_v40, 1  ;;  %v19345_v5 = vadd.f32 %v19324_v30, %v19275_v24 }
 0x139   : > { %v19284_v23 = vpop.f32.mrf.mxu0  ;;  %v2075_v59 = vsel %vm2024_vm1, %v2072_v43, %v2074_v26 }
 0x13a   : > { %v2089_v34 = vsel %vm2024_vm1, %v2086_v22, %v26315_v28  ;;  %v2698_v33 = vpack.c.bf16 %v2425_v4, %v2424_v51  ;;  %v2420_v14 = vmax.f32 %v1800_v2, %v2075_v59 }
 0x13b   : > { %v17025_v37 = vpop.f32.mrf.mxu0  ;;  %3638 = vmatpush1.bf16.msra.mxu1 %v19128_v56  ;;  %v2427_v36 = vmax.f32 %v1807_v50, %v2089_v34  ;;  %v2076_v56 = vrot.slane %v1802_v0, 1  ;;  %v2081_v50 = vsel %vm2024_vm1, %v2078_v39, %v2080_v29  ;;  %v19333_v34 = vmax.f32 %v1667_v13, %v1671_v10 }
 0x13c   : > { %3639 = vmatprep.subr.bf16.mxu1 %v26325_v35  ;;  %v2423_v29 = vmax.f32 %v1803_v27, %v2081_v50  ;;  %v19337_v27 = vmax.f32 %v1665_v21, %v1669_v63  ;;  %v19349_v63 = vadd.f32 %v19324_v30, %v17025_v37 }
 0x13d   : > { %v19300_v18 = vpop.f32.mrf.mxu0  ;;  %v2699_v15 = vpack.c.bf16 %v2427_v36, %v2426_v41  ;;  %v2079_v25 = vsel %vm2024_vm1, %v2076_v56, %v2078_v39  ;;  %v2077_v32 = vsel %vm2024_vm1, %v2074_v26, %v2076_v56  ;;  %v2064_v41 = vrot.slane %v19312_v6, 1 }
 0x13e   : > { %v2422_v45 = vmax.f32 %v1802_v0, %v2079_v25  ;;  %v2066_v36 = vrot.slane %v19314_v16, 1  ;;  %v2073_v39 = vsel %vm2024_vm1, %v2070_v31, %v2072_v43  ;;  %v2421_v21 = vmax.f32 %v19291_v62, %v2077_v32 }
 0x13f   : > { %v17028_v22 = vpop.f32.mrf.mxu0  ;;  %3640 = vmatpush2.bf16.msra.mxu1 %v2699_v15  ;;  %v2062_v51 = vrot.slane %v19333_v34, 1  ;;  %v2058_v24 = vrot.slane %v19337_v27, 1  ;;  %v2071_v26 = vsel %vm2024_vm1, %v2068_v7, %v2070_v31  ;;  %v1690_v43 = vmax.f32 %v19345_v5, 0.0 }
 0x140   : > { %3641 = vmatprep.subr.bf16.mxu1 %v26325_v35  ;;  %v19327_v42 = vadd.f32 %v19324_v30, %v17028_v22  ;;  %v2697_v10 = vpack.c.bf16 %v2423_v29, %v2422_v45  ;;  %v2067_v50 = vsel %vm2024_vm1, %v2064_v41, %v2066_v36  ;;  %v1691_v29 = vmax.f32 %v19349_v63, 0.0  ;;  %v19544_v63 = vld [vmem:[%s26304_s7 + $0xe0] sm:$0xff] }
 0x141   : > { %v1313_v19 = vpop.f32.mrf.mxu0 }
 0x142   : > { %v1694_v0 = vmax.f32 %v19327_v42, 0.0  ;;  %v19359_v4 = vadd.f32 %v19324_v30, %v1313_v19  ;;  %v2696_v19 = vpack.c.bf16 %v2421_v21, %v2420_v14  ;;  %v2416_v14 = vmax.f32 %v19312_v6, %v2067_v50 }
 0x143   : > { %v17029_v44 = vpop.f32.mrf.mxu0  ;;  %3642 = vmatpush2.bf16.msra.mxu1 %v2698_v33  ;;  %v2069_v33 = vsel %vm2024_vm1, %v2066_v36, %v2068_v7  ;;  %v2063_v6 = vsel %vm2024_vm1, %v2060_v9, %v2062_v51 }
 0x144   : > { %3643 = vmatprep.subr.bf16.mxu1 %v26325_v35  ;;  %v1325_v22 = vadd.f32 %v19324_v30, %v17029_v44  ;;  %v2419_v44 = vmax.f32 %v19306_v20, %v2073_v39  ;;  %v1692_v31 = vmax.f32 %v19359_v4, 0.0  ;;  %v2418_v20 = vmax.f32 %v19303_v12, %v2071_v26 }
 0x145   : > { %v1316_v61 = vpop.f32.mrf.mxu0  ;;  %v2417_v21 = vmax.f32 %v19314_v16, %v2069_v33  ;;  %v19395_v12 = vadd.f32 %v19324_v30, %v19284_v23  ;;  %v2059_v16 = vsel %vm2024_vm1, %v2056_v58, %v2058_v24  ;;  %v19425_v58 = vmax.f32 %v1690_v43, %v1694_v0 }
 0x146   : > { %v19362_v2 = vadd.f32 %v19324_v30, %v1316_v61  ;;  %v1695_v42 = vmax.f32 %v1325_v22, 0.0  ;;  %v2065_v22 = vsel %vm2024_vm1, %v2062_v51, %v2064_v41  ;;  %v19421_v51 = vadd.f32 %v19324_v30, %v19300_v18 }
 0x147   : > { %v17032_v13 = vpop.f32.mrf.mxu0  ;;  %3644 = vmatpush2.bf16.msra.mxu1 %v2697_v10  ;;  %v2695_v10 = vpack.c.bf16 %v2419_v44, %v2418_v20  ;;  %v2694_v44 = vpack.c.bf16 %v2417_v21, %v2416_v14  ;;  %v2415_v33 = vmax.f32 %v19333_v34, %v2065_v22  ;;  %v2061_v18 = vsel %vm2024_vm1, %v2058_v24, %v2060_v9 }
 0x148   : > { %v19354_v15 = vadd.f32 %v19324_v30, %v17032_v13  ;;  %3645 = vmatprep.subr.bf16.mxu1 %v26325_v35  ;;  %v1693_v61 = vmax.f32 %v19362_v2, 0.0  ;;  %v19433_v20 = vmax.f32 %v1691_v29, %v1695_v42  ;;  %v2412_v14 = vmax.f32 %v19180_v49, %v2059_v16 }
 0x149   : > { %v1329_v37 = vpop.f32.mrf.mxu0  ;;  %v1689_v9 = vmax.f32 %v19421_v51, 0.0  ;;  %v2108_v24 = vrot.slane %v19425_v58, 1  ;;  %v2413_v49 = vmax.f32 %v19337_v27, %v2061_v18  ;;  %v1293_v16 = vadd.f32 %v19324_v30, %v19251_v54 }
 0x14a   : > { %v26314_v62 = vmax.f32 %v19354_v15, 0.0  ;;  %v1330_v56 = vadd.f32 %v19324_v30, %v1329_v37  ;;  %v2110_v51 = vrot.slane %v19433_v20, 1 }
 0x14b   : > { %v17033_v25 = vpop.f32.mrf.mxu0  ;;  %3646 = vmatpush2.bf16.msra.mxu1 %v2696_v19  ;;  %v19473_v18 = vmax.f32 %v1689_v9, %v1693_v61 }
 0x14c   : > { %v19375_v59 = vmax.f32 %v1694_v0, %v26314_v62  ;;  %v19378_v32 = vadd.f32 %v19324_v30, %v17033_v25  ;;  %v1696_v39 = vmax.f32 %v1330_v56, 0.0  ;;  %3647 = vmatprep.subr.bf16.mxu1 %v26325_v35  ;;  %v2692_v62 = vpack.c.bf16 %v2413_v49, %v2412_v14 }
 0x14d   : > { %v1332_v45 = vpop.f32.mrf.mxu0  ;;  %v2111_v4 = vsel %vm2024_vm1, %v2108_v24, %v2110_v51 }
 0x14e   : > { %v26313_v7 = vmax.f32 %v19378_v32, 0.0  ;;  %v19385_v36 = vadd.f32 %v19324_v30, %v1332_v45  ;;  %v2116_v2 = vrot.slane %v19375_v59, 1  ;;  %v19409_v23 = vmax.f32 %v1692_v31, %v1696_v39 }
 0x14f   : > { %v19388_v13 = vpop.f32.mrf.mxu0  ;;  %3648 = vmatpush2.bf16.msra.mxu1 %v2695_v10  ;;  %v1688_v45 = vmax.f32 %v19395_v12, 0.0 }
 0x150   : > { %v1823_v37 = vmax.f32 %v1695_v42, %v26313_v7  ;;  %v26312_v56 = vmax.f32 %v19385_v36, 0.0  ;;  %3649 = vmatprep.subr.bf16.mxu1 %v26325_v35  ;;  %v2112_v34 = vrot.slane %v19409_v23, 1  ;;  %v1290_v7 = vadd.f32 %v19324_v30, %v19237_v38 }
 0x151   : > { %v1345_v26 = vpop.f32.mrf.mxu0  ;;  %v19567_v5 = vmax.f32 %v1684_v60, %v1688_v45 }
 0x152   : > { %v2118_v41 = vrot.slane %v1823_v37, 1  ;;  %v19413_v50 = vmax.f32 %v1693_v61, %v26312_v56  ;;  %v19416_v25 = vadd.f32 %v19324_v30, %v1345_v26  ;;  %v2414_v26 = vmax.f32 %v19297_v40, %v2063_v6  ;;  %v19459_v6 = vld [vmem:[%s26304_s7 + $0x40] sm:$0xff] }
 0x153   : > { %v19427_v19 = vpop.f32.mrf.mxu0  ;;  %3650 = vmatpush2.bf16.msra.mxu1 %v2694_v44  ;;  %v19489_v61 = vmax.f32 %v1688_v45, %v1692_v31  ;;  %v2113_v31 = vsel %vm2024_vm1, %v2110_v51, %v2112_v34  ;;  %v19539_v51 = vld [vmem:[%s26304_s7 + $0xc0] sm:$0xff] }
 0x154   : > { %v26311_v10 = vmax.f32 %v19416_v25, 0.0  ;;  %v2119_v21 = vsel %vm2024_vm1, %v2116_v2, %v2118_v41  ;;  %v2114_v42 = vrot.slane %v19413_v50, 1  ;;  %3651 = vmatprep.subr.bf16.mxu1 %v26325_v35  ;;  %v2693_v40 = vpack.c.bf16 %v2415_v33, %v2414_v26 }
 0x155   : > { %v19439_v0 = vpop.f32.mrf.mxu0  ;;  %v2442_v27 = vmax.f32 %v19375_v59, %v2119_v21  ;;  %v1687_v59 = vmax.f32 %v1293_v16, 0.0  ;;  %v14962_v1 = vcombine.high %v19539_v51, %v19544_v63 }
 0x156   : > { %v19448_v22 = vmax.f32 %v1696_v39, %v26311_v10  ;;  %v19464_v39 = vld [vmem:[%s26304_s7 + $0x60] sm:$0xff]  ;;  %v2117_v26 = vsel %vm2024_vm1, %v2114_v42, %v2116_v2  ;;  %v2115_v54 = vsel %vm2024_vm1, %v2112_v34, %v2114_v42  ;;  %v1686_v42 = vmax.f32 %v1290_v7, 0.0 }
 0x157   : > { %v19453_v44 = vpop.f32.mrf.mxu0  ;;  %3652 = vmatpush2.bf16.msra.mxu1 %v2693_v40  ;;  %v14946_v2 = vcombine.high %v19459_v6, %v19464_v39  ;;  %v2441_v21 = vmax.f32 %v19413_v50, %v2117_v26  ;;  %v2438_v34 = vmax.f32 %v19425_v58, %v2111_v4  ;;  %v2439_v7 = vmax.f32 %v19433_v20, %v2113_v31 }
 0x158   : > { %v2120_v10 = vrot.slane %v19448_v22, 1  ;;  %3653 = vmatprep.subr.bf16.mxu1 %v26325_v35  ;;  %v19525_v52 = vmax.f32 %v1687_v59, %v1691_v29  ;;  %v19532_v58 = vmax.f32 %v1682_v47, %v1686_v42  ;;  %v1814_v8 = vmax.f32 %v1686_v42, %v1690_v43 }
 0x159   : > { %v19470_v33 = vpop.f32.mrf.mxu0  ;;  %v14945_v47 = vcombine.low %v19459_v6, %v19464_v39  ;;  %v2705_v39 = vpack.c.bf16 %v2439_v7, %v2438_v34  ;;  %v2096_v31 = vrot.slane %v19567_v5, 1 }
 0x15a   : > { %v2121_v56 = vsel %vm2024_vm1, %v2118_v41, %v2120_v10  ;;  %v1285_v41 = vadd.f32 %v19324_v30, %v19264_v3  ;;  %v19505_v3 = vmax.f32 %v1683_v46, %v1687_v59  ;;  %v19521_v46 = vld [vmem:[%s26304_s7 + $0xa0] sm:$0xff]  ;;  %v2092_v60 = vrot.slane %v19532_v58, 1 }
 0x15b   : > { %v19483_v40 = vpop.f32.mrf.mxu0  ;;  %v2443_v28 = vmax.f32 %v1823_v37, %v2121_v56  ;;  %3654 = vmatpush2.bf16.msra.mxu1 %v2692_v62  ;;  %v2440_v37 = vmax.f32 %v19409_v23, %v2115_v54  ;;  %v2106_v56 = vrot.slane %v19473_v18, 1  ;;  %v2104_v62 = vrot.slane %v19489_v61, 1 }
 0x15c   : > { %3823 = vmatprep.subr.bf16.mxu1 %v26325_v35  ;;  %v2094_v29 = vrot.slane %v19505_v3, 1  ;;  %v2102_v54 = vrot.slane %v19525_v52, 1  ;;  %v14953_v12 = vcombine.low %v19516_v17, %v19521_v46 }
 0x15d   : > { %v19496_v38 = vpop.f32.mrf.mxu0  ;;  %v2707_v14 = vpack.c.bf16 %v2443_v28, %v2442_v27  ;;  %v1685_v28 = vmax.f32 %v1285_v41, 0.0  ;;  %v2706_v50 = vpack.c.bf16 %v2441_v21, %v2440_v37  ;;  %v2109_v53 = vsel %vm2024_vm1, %v2106_v56, %v2108_v24  ;;  %v19556_v24 = vld [vmem:[%s26304_s7 + $0x100] sm:$0xff] }
 0x15e   : > { %3656 = vmatmul.mubr.bf16.vlgmr.msra.gmra.mxu1 %v14937_v55  ;;  %v2107_v55 = vsel %vm2024_vm1, %v2104_v62, %v2106_v56  ;;  %v19561_v27 = vld [vmem:[%s26304_s7 + $0x120] sm:$0xff]  ;;  %v2437_v43 = vmax.f32 %v19473_v18, %v2109_v53  ;;  %v2100_v41 = vrot.slane %v1814_v8, 1  ;;  %v2105_v21 = vsel %vm2024_vm1, %v2102_v54, %v2104_v62 }
 0x15f   : > { %v17044_v49 = vpop.f32.mrf.mxu0  ;;  %3824 = vmatpush1.bf16.msra.mxu1 %v2707_v14  ;;  %3663 = vmatprep.mubr.bf16.mxu1 %v14946_v2  ;;  %v19534_v20 = vmax.f32 %v1685_v28, %v1689_v9  ;;  %v14954_v9 = vcombine.high %v19516_v17, %v19521_v46  ;;  %v2436_v26 = vmax.f32 %v19489_v61, %v2107_v55 }
 0x160   : > { %3825 = vmatprep.subr.bf16.mxu1 %v26325_v35  ;;  %v19573_v59 = vadd.f32 %v19324_v30, %v17044_v49  ;;  %v14961_v61 = vcombine.low %v19539_v51, %v19544_v63  ;;  %v14970_v2 = vcombine.high %v19556_v24, %v19561_v27  ;;  %v19598_v4 = vsel %vm2024_vm1, %v2092_v60, %v2094_v29 }
 0x161   : > { %v1377_v23 = vpop.f32.mrf.mxu0  ;;  %v2098_v45 = vrot.slane %v19534_v20, 1  ;;  %v19602_v56 = vmax.f32 %v1681_v57, %v1685_v28  ;;  %v2704_v49 = vpack.c.bf16 %v2437_v43, %v2436_v26  ;;  %v2103_v62 = vsel %vm2024_vm1, %v2100_v41, %v2102_v54 }
 0x162   : > { %v19608_v34 = vadd.f32 %v19324_v30, %v1377_v23  ;;  %v2435_v17 = vmax.f32 %v19525_v52, %v2105_v21  ;;  %v19620_v53 = vadd.f32 %v19324_v30, %v19453_v44  ;;  %v2434_v43 = vmax.f32 %v1814_v8, %v2103_v62 }
 0x163   : > { %v17045_v16 = vpop.f32.mrf.mxu0  ;;  %3826 = vmatpush1.bf16.msra.mxu1 %v2706_v50  ;;  %v1710_v50 = vmax.f32 %v19573_v59, 0.0  ;;  %v2101_v48 = vsel %vm2024_vm1, %v2098_v45, %v2100_v41  ;;  %v2099_v46 = vsel %vm2024_vm1, %v2096_v31, %v2098_v45  ;;  %v2430_v44 = vmax.f32 %v19532_v58, %v19598_v4 }
 0x164   : > { %3827 = vmatprep.subr.bf16.mxu1 %v26325_v35  ;;  %v19588_v14 = vadd.f32 %v19324_v30, %v17045_v16  ;;  %v2703_v45 = vpack.c.bf16 %v2435_v17, %v2434_v43  ;;  %v1706_v41 = vmax.f32 %v19620_v53, 0.0  ;;  %v19659_v4 = vadd.f32 %v19324_v30, %v19470_v33 }
 0x165   : > { %v1380_v6 = vpop.f32.mrf.mxu0  ;;  %v1357_v17 = vadd.f32 %v19324_v30, %v19427_v19  ;;  %v26381_v58 = vrot.slane %v19270_v11, 1 }
 0x166   : > { %3664 = vmatmul.mubr.bf16.gmra.mxu1 %v14945_v47  ;;  %v19614_v57 = vadd.f32 %v19324_v30, %v1380_v6  ;;  %v1711_v23 = vmax.f32 %v19588_v14, 0.0  ;;  %v2090_v47 = vrot.slane %v19602_v56, 1  ;;  %v2433_v6 = vmax.f32 %v19534_v20, %v2101_v48 }
 0x167   : > { %v17048_v18 = vpop.f32.mrf.mxu0  ;;  %3828 = vmatpush1.bf16.msra.mxu1 %v2705_v39  ;;  %3671 = vmatprep.mubr.bf16.mxu1 %v14954_v9  ;;  %v19630_v9 = vadd.f32 %v19324_v30, %v19483_v40  ;;  %v1708_v39 = vmax.f32 %v19608_v34, 0.0  ;;  %v2432_v20 = vmax.f32 %v19567_v5, %v2099_v46  ;;  %v19664_v5 = vadd.f32 %v19324_v30, %v19496_v38 }
 0x168   : > { %v19591_v37 = vadd.f32 %v19324_v30, %v17048_v18  ;;  %3829 = vmatprep.subr.bf16.mxu1 %v26325_v35  ;;  %v1709_v40 = vmax.f32 %v19614_v57, 0.0  ;;  %v2097_v18 = vsel %vm2024_vm1, %v2094_v29, %v2096_v31  ;;  %v2093_v38 = vsel %vm2024_vm1, %v2090_v47, %v2092_v60 }
 0x169   : > { %v1393_v42 = vpop.f32.mrf.mxu0  ;;  %v2702_v48 = vpack.c.bf16 %v2433_v6, %v2432_v20  ;;  %v2431_v57 = vmax.f32 %v19505_v3, %v2097_v18  ;;  %v2091_v60 = vsel %vm2024_vm1, %v26381_v58, %v2090_v47  ;;  %v19697_v43 = vmax.f32 %v1706_v41, %v1710_v50 }
 0x16a   : > { %v1714_v7 = vmax.f32 %v19591_v37, 0.0  ;;  %v1394_v55 = vadd.f32 %v19324_v30, %v1393_v42  ;;  %v1707_v42 = vmax.f32 %v19630_v9, 0.0 }
 0x16b   : > { %v17049_v28 = vpop.f32.mrf.mxu0  ;;  %3830 = vmatpush1.bf16.msra.mxu1 %v2704_v49  ;;  %v2701_v18 = vpack.c.bf16 %v2431_v57, %v2430_v44 }
 0x16c   : > { %v19625_v16 = vadd.f32 %v19324_v30, %v17049_v28  ;;  %v19638_v26 = vmax.f32 %v1710_v50, %v1714_v7  ;;  %3831 = vmatprep.subr.bf16.mxu1 %v26325_v35  ;;  %v1712_v21 = vmax.f32 %v1394_v55, 0.0  ;;  %v1354_v28 = vadd.f32 %v19324_v30, %v19388_v13 }
 0x16d   : > { %v1396_v52 = vpop.f32.mrf.mxu0  ;;  %v1704_v55 = vmax.f32 %v19659_v4, 0.0  ;;  %v19701_v13 = vmax.f32 %v1707_v42, %v1711_v23  ;;  %v2429_v50 = vmax.f32 %v19602_v56, %v2093_v38  ;;  %v2428_v4 = vmax.f32 %v19270_v11, %v2091_v60  ;;  %v19733_v11 = vld [vmem:[%s26304_s7 + $0x160] sm:$0xff] }
 0x16e   : > { %v1715_v54 = vmax.f32 %v19625_v16, 0.0  ;;  %v19644_v59 = vadd.f32 %v19324_v30, %v1396_v52  ;;  %3672 = vmatmul.mubr.bf16.gmra.mxu1 %v14953_v12  ;;  %v2148_v49 = vrot.slane %v19638_v26, 1  ;;  %v19668_v62 = vmax.f32 %v1708_v39, %v1712_v21  ;;  %v20053_v16 = vld [vmem:[%s26304_s7 + $0x280] sm:$0xff] }
 0x16f   : > { %v19646_v8 = vpop.f32.mrf.mxu0  ;;  %3832 = vmatpush1.bf16.msra.mxu1 %v2703_v45  ;;  %3679 = vmatprep.mubr.bf16.mxu1 %v14962_v1  ;;  %v1705_v52 = vmax.f32 %v19664_v5, 0.0  ;;  %v1702_v5 = vmax.f32 %v1354_v28, 0.0  ;;  %v2140_v56 = vrot.slane %v19697_v43, 1  ;;  %v19736_v44 = vmax.f32 %v1704_v55, %v1708_v39 }
 0x170   : > { %v19655_v14 = vmax.f32 %v1711_v23, %v1715_v54  ;;  %v1713_v29 = vmax.f32 %v19644_v59, 0.0  ;;  %3833 = vmatprep.subr.bf16.mxu1 %v26325_v35  ;;  %v2144_v3 = vrot.slane %v19668_v62, 1  ;;  %v1349_v23 = vadd.f32 %v19324_v30, %v19439_v0  ;;  %v19728_v0 = vld [vmem:[%s26304_s7 + $0x140] sm:$0xff] }
 0x171   : > { %v1409_v31 = vpop.f32.mrf.mxu0  ;;  %v19738_v38 = vmax.f32 %v1705_v52, %v1709_v40  ;;  %v2700_v58 = vpack.c.bf16 %v2429_v50, %v2428_v4  ;;  %v19768_v60 = vmax.f32 %v1702_v5, %v1706_v41  ;;  %v2136_v53 = vrot.slane %v19736_v44, 1 }
 0x172   : > { %v2150_v12 = vrot.slane %v19655_v14, 1  ;;  %v19672_v33 = vadd.f32 %v19324_v30, %v1409_v31  ;;  %v19680_v34 = vmax.f32 %v1709_v40, %v1713_v29  ;;  %v1703_v31 = vmax.f32 %v1357_v17, 0.0 }
 0x173   : > { %v19682_v1 = vpop.f32.mrf.mxu0  ;;  %3834 = vmatpush1.bf16.msra.mxu1 %v2702_v48  ;;  %v1701_v28 = vmax.f32 %v1349_v23, 0.0  ;;  %v2138_v9 = vrot.slane %v19738_v38, 1  ;;  %v26385_v4 = vmax.f32 %v19416_v25, 0.0 }
 0x174   : > { %v26317_v46 = vmax.f32 %v19672_v33, 0.0  ;;  %v2151_v6 = vsel %vm2024_vm1, %v2148_v49, %v2150_v12  ;;  %v2146_v47 = vrot.slane %v19680_v34, 1  ;;  %3835 = vmatprep.subr.bf16.mxu1 %v26325_v35 }
 0x175   : > { %v19703_v19 = vpop.f32.mrf.mxu0  ;;  %v2458_v63 = vmax.f32 %v19638_v26, %v2151_v6  ;;  %v19772_v6 = vmax.f32 %v1703_v31, %v1707_v42 }
 0x176   : > { %v19710_v45 = vmax.f32 %v1712_v21, %v26317_v46  ;;  %3680 = vmatmul.mubr.bf16.gmra.mxu1 %v14961_v61  ;;  %v14969_v21 = vcombine.low %v19556_v24, %v19561_v27  ;;  %v2142_v61 = vrot.slane %v19701_v13, 1  ;;  %v2149_v57 = vsel %vm2024_vm1, %v2146_v47, %v2148_v49 }
 0x177   : > { %v19716_v20 = vpop.f32.mrf.mxu0  ;;  %3836 = vmatpush1.bf16.msra.mxu1 %v2701_v18  ;;  %3687 = vmatprep.mubr.bf16.mxu1 %v14970_v2  ;;  %v2147_v40 = vsel %vm2024_vm1, %v2144_v3, %v2146_v47  ;;  %v14978_v27 = vcombine.high %v19728_v0, %v19733_v11  ;;  %v26382_v2 = vmax.f32 %v19354_v15, 0.0  ;;  %v26383_v49 = vmax.f32 %v19378_v32, 0.0 }
 0x178   : > { %v26316_v48 = vrot.slane %v19710_v45, 1  ;;  %3837 = vmatprep.subr.bf16.mxu1 %v26325_v35  ;;  %v2457_v15 = vmax.f32 %v19680_v34, %v2149_v57  ;;  %v2456_v23 = vmax.f32 %v19668_v62, %v2147_v40  ;;  %v2143_v41 = vsel %vm2024_vm1, %v2140_v56, %v2142_v61  ;;  %v19816_v57 = vld [vmem:[%s26304_s7 + $0x1e0] sm:$0xff] }
 0x179   : > { %v19740_v51 = vpop.f32.mrf.mxu0  ;;  %v19760_v26 = vmax.f32 %v26382_v2, %v1702_v5  ;;  %v2145_v42 = vsel %vm2024_vm1, %v2142_v61, %v2144_v3  ;;  %v2132_v34 = vrot.slane %v19768_v60, 1  ;;  %v19792_v5 = vmax.f32 %v26385_v4, %v1704_v55  ;;  %v19811_v61 = vld [vmem:[%s26304_s7 + $0x1c0] sm:$0xff] }
 0x17a   : > { %v2153_v39 = vsel %vm2024_vm1, %v2150_v12, %v26316_v48  ;;  %v19764_v12 = vmax.f32 %v26383_v49, %v1703_v31  ;;  %v2134_v62 = vrot.slane %v19772_v6, 1  ;;  %v19798_v31 = vld [vmem:[%s26304_s7 + $0x180] sm:$0xff]  ;;  %v2714_v25 = vpack.c.bf16 %v2457_v15, %v2456_v23 }
 0x17b   : > { %v19753_v17 = vpop.f32.mrf.mxu0  ;;  %v2459_v24 = vmax.f32 %v19655_v14, %v2153_v39  ;;  %v26384_v14 = vmax.f32 %v19385_v36, 0.0  ;;  %3838 = vmatpush1.bf16.msra.mxu1 %v2700_v58  ;;  %v19787_v36 = vmax.f32 %v1701_v28, %v1705_v52  ;;  %v19803_v52 = vld [vmem:[%s26304_s7 + $0x1a0] sm:$0xff]  ;;  %v2124_v3 = vrot.slane %v19760_v26, 1 }
 0x17c   : > { %3839 = vmatprep.subr.bf16.mxu1 %v26325_v35  ;;  %v2454_v55 = vmax.f32 %v19697_v43, %v2143_v41  ;;  %v2126_v39 = vrot.slane %v19764_v12, 1  ;;  %v2139_v43 = vsel %vm2024_vm1, %v2136_v53, %v2138_v9  ;;  %v14985_v2 = vcombine.low %v19798_v31, %v19803_v52  ;;  %v19838_v49 = vld [vmem:[%s26304_s7 + $0x220] sm:$0xff] }
 0x17d   : > { %v19776_v47 = vmax.f32 %v26384_v14, %v1701_v28  ;;  %v19779_v50 = vpop.f32.mrf.mxu0  ;;  %v2715_v32 = vpack.c.bf16 %v2459_v24, %v2458_v63  ;;  %v2141_v28 = vsel %vm2024_vm1, %v2138_v9, %v2140_v56  ;;  %v14977_v24 = vcombine.low %v19728_v0, %v19733_v11  ;;  %v19833_v56 = vld [vmem:[%s26304_s7 + $0x200] sm:$0xff] }
 0x17e   : > { %3688 = vmatmul.mubr.bf16.gmra.mxu1 %v14969_v21  ;;  %v2455_v21 = vmax.f32 %v19701_v13, %v2145_v42  ;;  %v2130_v13 = vrot.slane %v19787_v36, 1  ;;  %v2128_v14 = vrot.slane %v19792_v5, 1  ;;  %v2135_v0 = vsel %vm2024_vm1, %v2132_v34, %v2134_v62 }
 0x17f   : > { %v17060_v18 = vpop.f32.mrf.mxu0  ;;  %3840 = vmatpush2.bf16.msra.mxu1 %v2715_v32  ;;  %3695 = vmatprep.mubr.bf16.mxu1 %v14978_v27  ;;  %v2122_v40 = vrot.slane %v19776_v47, 1  ;;  %v14986_v27 = vcombine.high %v19798_v31, %v19803_v52  ;;  %v14994_v11 = vcombine.high %v19811_v61, %v19816_v57  ;;  %v14993_v15 = vcombine.low %v19811_v61, %v19816_v57 }
 0x180   : > { %3841 = vmatprep.subr.bf16.mxu1 %v26325_v35  ;;  %v2137_v32 = vsel %vm2024_vm1, %v2134_v62, %v2136_v53  ;;  %v2453_v23 = vmax.f32 %v19738_v38, %v2141_v28  ;;  %v2713_v9 = vpack.c.bf16 %v2455_v21, %v2454_v55  ;;  %v2452_v42 = vmax.f32 %v19736_v44, %v2139_v43  ;;  %v19864_v38 = vld [vmem:[%s26304_s7 + $0x10] sm:$0xff] }
 0x181   : > { %v1441_v63 = vpop.f32.mrf.mxu0  ;;  %v19850_v4 = vsel %vm2024_vm1, %v2124_v3, %v2126_v39  ;;  %v19853_v48 = vsel %vm2024_vm1, %v2122_v40, %v2124_v3  ;;  %v19856_v46 = vadd.f32 %v19324_v30, %v17060_v18  ;;  %v15002_v53 = vcombine.high %v19833_v56, %v19838_v49  ;;  %v19869_v44 = vld [vmem:[%s26304_s7 + $0x30] sm:$0xff] }
 0x182   : > { %v2133_v62 = vsel %vm2024_vm1, %v2130_v13, %v2132_v34  ;;  %v2450_v18 = vmax.f32 %v19768_v60, %v2135_v0  ;;  %v14942_v55 = vcombine.high %v19864_v38, %v19869_v44  ;;  %v19881_v21 = vadd.f32 %v19324_v30, %v1441_v63 }
 0x183   : > { %v17061_v58 = vpop.f32.mrf.mxu0  ;;  %3842 = vmatpush2.bf16.msra.mxu1 %v2714_v25  ;;  %v19876_v25 = vsel %vm2024_vm1, %v2120_v10, %v2122_v40  ;;  %v2451_v34 = vmax.f32 %v19772_v6, %v2137_v32  ;;  %v2131_v43 = vsel %vm2024_vm1, %v2128_v14, %v2130_v13  ;;  %v2712_v10 = vpack.c.bf16 %v2453_v23, %v2452_v42 }
 0x184   : > { %3843 = vmatprep.subr.bf16.mxu1 %v26325_v35  ;;  %v1453_v60 = vadd.f32 %v19324_v30, %v17061_v58  ;;  %v1726_v63 = vmax.f32 %v19856_v46, 0.0  ;;  %4055 = vmatprep.mubr.bf16.mxu0 %v14942_v55  ;;  %v2445_v13 = vmax.f32 %v19776_v47, %v19853_v48  ;;  %v19904_v58 = vadd.f32 %v19324_v30, %v19716_v20 }
 0x185   : > { %v1444_v41 = vpop.f32.mrf.mxu0  ;;  %v19908_v46 = vadd.f32 %v19324_v30, %v19753_v17  ;;  %v2446_v32 = vmax.f32 %v19760_v26, %v19850_v4  ;;  %v2129_v23 = vsel %vm2024_vm1, %v2126_v39, %v2128_v14  ;;  %v2444_v42 = vmax.f32 %v19448_v22, %v19876_v25 }
 0x186   : > { %3696 = vmatmul.mubr.bf16.gmra.mxu1 %v14977_v24  ;;  %v19893_v24 = vadd.f32 %v19324_v30, %v1444_v41  ;;  %v2449_v41 = vmax.f32 %v19787_v36, %v2133_v62  ;;  %v1727_v55 = vmax.f32 %v1453_v60, 0.0  ;;  %v2448_v40 = vmax.f32 %v19792_v5, %v2131_v43 }
 0x187   : > { %v17064_v3 = vpop.f32.mrf.mxu0  ;;  %3844 = vmatpush2.bf16.msra.mxu1 %v2713_v9  ;;  %3703 = vmatprep.mubr.bf16.mxu1 %v14986_v27  ;;  %v1724_v9 = vmax.f32 %v19881_v21, 0.0  ;;  %v1722_v22 = vmax.f32 %v19904_v58, 0.0  ;;  %v19934_v4 = vadd.f32 %v19324_v30, %v19740_v51  ;;  %v1723_v5 = vmax.f32 %v19908_v46, 0.0 }
 0x188   : > { %v19884_v28 = vadd.f32 %v19324_v30, %v17064_v3  ;;  %3845 = vmatprep.subr.bf16.mxu1 %v26325_v35  ;;  %v1725_v26 = vmax.f32 %v19893_v24, 0.0  ;;  %v19942_v25 = vadd.f32 %v19324_v30, %v19779_v50  ;;  %v2447_v51 = vmax.f32 %v19764_v12, %v2129_v23 }
 0x189   : > { %v1457_v0 = vpop.f32.mrf.mxu0  ;;  %v1418_v43 = vadd.f32 %v19324_v30, %v19646_v8  ;;  %v1421_v31 = vadd.f32 %v19324_v30, %v19682_v1  ;;  %v19979_v1 = vld [vmem:[%s26304_s7 + $0x260] sm:$0xff]  ;;  %v19984_v24 = vmax.f32 %v1723_v5, %v1727_v55 }
 0x18a   : > { %v26320_v3 = vmax.f32 %v19884_v28, 0.0  ;;  %v19897_v6 = vadd.f32 %v19324_v30, %v1457_v0  ;;  %v2711_v0 = vpack.c.bf16 %v2451_v34, %v2450_v18  ;;  %v1721_v46 = vmax.f32 %v19942_v25, 0.0 }
 0x18b   : > { %v17065_v27 = vpop.f32.mrf.mxu0  ;;  %3846 = vmatpush2.bf16.msra.mxu1 %v2712_v10  ;;  %v2710_v10 = vpack.c.bf16 %v2449_v41, %v2448_v40  ;;  %v19982_v40 = vmax.f32 %v1722_v22, %v1726_v63  ;;  %v1718_v25 = vmax.f32 %v1418_v43, 0.0  ;;  %v2708_v43 = vpack.c.bf16 %v2445_v13, %v2444_v42 }
 0x18c   : > { %v19918_v20 = vadd.f32 %v19324_v30, %v17065_v27  ;;  %v19924_v39 = vmax.f32 %v1726_v63, %v26320_v3  ;;  %v1728_v36 = vmax.f32 %v19897_v6, 0.0  ;;  %3847 = vmatprep.subr.bf16.mxu1 %v26325_v35 }
 0x18d   : > { %v1460_v17 = vpop.f32.mrf.mxu0  ;;  %v20040_v57 = vmax.f32 %v1718_v25, %v1722_v22 }
 0x18e   : > { %v19928_v14 = vadd.f32 %v19324_v30, %v1460_v17  ;;  %v26319_v62 = vmax.f32 %v19918_v20, 0.0  ;;  %v19944_v21 = vmax.f32 %v1724_v9, %v1728_v36  ;;  %3704 = vmatmul.mubr.bf16.gmra.mxu1 %v14985_v2  ;;  %v2180_v52 = vrot.slane %v19924_v39, 1  ;;  %v19974_v2 = vld [vmem:[%s26304_s7 + $0x240] sm:$0xff] }
 0x18f   : > { %v19938_v18 = vpop.f32.mrf.mxu0  ;;  %3848 = vmatpush2.bf16.msra.mxu1 %v2711_v0  ;;  %3711 = vmatprep.mubr.bf16.mxu1 %v14994_v11  ;;  %v1720_v11 = vmax.f32 %v19934_v4, 0.0  ;;  %v1413_v17 = vadd.f32 %v19324_v30, %v19703_v19  ;;  %v15001_v0 = vcombine.low %v19833_v56, %v19838_v49 }
 0x190   : > { %v26318_v34 = vmax.f32 %v19928_v14, 0.0  ;;  %v19955_v60 = vmax.f32 %v1727_v55, %v26319_v62  ;;  %3849 = vmatprep.subr.bf16.mxu1 %v26325_v35  ;;  %v2176_v27 = vrot.slane %v19944_v21, 1  ;;  %v2709_v55 = vpack.c.bf16 %v2447_v51, %v2446_v32 }
 0x191   : > { %v1473_v50 = vpop.f32.mrf.mxu0  ;;  %v20010_v19 = vmax.f32 %v1720_v11, %v1724_v9  ;;  %v2174_v32 = vrot.slane %v19984_v24, 1  ;;  %v1717_v47 = vmax.f32 %v1413_v17, 0.0  ;;  %v2164_v17 = vrot.slane %v20040_v57, 1 }
 0x192   : > { %v19965_v12 = vmax.f32 %v1725_v26, %v26318_v34  ;;  %v19968_v8 = vadd.f32 %v19324_v30, %v1473_v50  ;;  %v2182_v6 = vrot.slane %v19955_v60, 1  ;;  %v15010_v50 = vcombine.high %v19974_v2, %v19979_v1 }
 0x193   : > { %v19987_v58 = vpop.f32.mrf.mxu0  ;;  %3850 = vmatpush2.bf16.msra.mxu1 %v2710_v10  ;;  %v1719_v34 = vmax.f32 %v1421_v31, 0.0  ;;  %v2172_v30 = vrot.slane %v19982_v40, 1  ;;  %v20018_v10 = vmax.f32 %v1721_v46, %v1725_v26 }
 0x194   : > { %v2178_v23 = vrot.slane %v19965_v12, 1  ;;  %v26321_v41 = vmax.f32 %v19968_v8, 0.0  ;;  %v2183_v62 = vsel %vm2024_vm1, %v2180_v52, %v2182_v6  ;;  %3851 = vmatprep.subr.bf16.mxu1 %v26325_v35 }
 0x195   : > { %v19995_v63 = vpop.f32.mrf.mxu0  ;;  %v20032_v48 = vmax.f32 %v1715_v54, %v1719_v34  ;;  %v2474_v61 = vmax.f32 %v19924_v39, %v2183_v62  ;;  %v20058_v54 = vld [vmem:[%s26304_s7 + $0x2a0] sm:$0xff]  ;;  %v2175_v62 = vsel %vm2024_vm1, %v2172_v30, %v2174_v32 }
 0x196   : > { %v20004_v3 = vmax.f32 %v1728_v36, %v26321_v41  ;;  %v2181_v36 = vsel %vm2024_vm1, %v2178_v23, %v2180_v52  ;;  %3712 = vmatmul.mubr.bf16.gmra.mxu1 %v14993_v15  ;;  %v2179_v9 = vsel %vm2024_vm1, %v2176_v27, %v2178_v23  ;;  %v20028_v41 = vmax.f32 %v1714_v7, %v1718_v25  ;;  %v20092_v23 = vld [vmem:[%s26304_s7 + $0x300] sm:$0xff] }
 0x197   : > { %v20013_v51 = vpop.f32.mrf.mxu0  ;;  %3852 = vmatpush2.bf16.msra.mxu1 %v2709_v55  ;;  %3719 = vmatprep.mubr.bf16.mxu1 %v15002_v53  ;;  %v20042_v15 = vmax.f32 %v1719_v34, %v1723_v5  ;;  %v15009_v7 = vcombine.low %v19974_v2, %v19979_v1  ;;  %v20062_v53 = vmax.f32 %v1713_v29, %v1717_v47  ;;  %v2168_v5 = vrot.slane %v20010_v19, 1 }
 0x198   : > { %v26322_v31 = vrot.slane %v20004_v3, 1  ;;  %3853 = vmatprep.subr.bf16.mxu1 %v26325_v35  ;;  %v2473_v42 = vmax.f32 %v19965_v12, %v2181_v36  ;;  %v2472_v22 = vmax.f32 %v19944_v21, %v2179_v9  ;;  %v2170_v34 = vrot.slane %v20018_v10, 1  ;;  %v20082_v21 = vld [vmem:[%s26304_s7 + $0x2c0] sm:$0xff] }
 0x199   : > { %v20034_v13 = vpop.f32.mrf.mxu0  ;;  %v2177_v52 = vsel %vm2024_vm1, %v2174_v32, %v2176_v27  ;;  %v2156_v59 = vrot.slane %v20028_v41, 1  ;;  %v2158_v29 = vrot.slane %v20032_v48, 1  ;;  %v20087_v27 = vld [vmem:[%s26304_s7 + $0x2e0] sm:$0xff]  ;;  %v26386_v55 = vmax.f32 %v19672_v33, 0.0 }
 0x19a   : > { %v2185_v37 = vsel %vm2024_vm1, %v2182_v6, %v26322_v31  ;;  %v2166_v32 = vrot.slane %v20042_v15, 1  ;;  %v20107_v36 = vld [vmem:[%s26304_s7 + $0x320] sm:$0xff] }
 0x19b   : > { %v20065_v26 = vpop.f32.mrf.mxu0  ;;  %v2475_v39 = vmax.f32 %v19955_v60, %v2185_v37  ;;  %3854 = vmatpush2.bf16.msra.mxu1 %v2708_v43  ;;  %v15018_v60 = vcombine.high %v20053_v16, %v20058_v54  ;;  %v20099_v25 = vmax.f32 %v26386_v55, %v1720_v11  ;;  %v20102_v43 = vmax.f32 %v1717_v47, %v1721_v46  ;;  %v20112_v9 = vld [vmem:[%s26304_s7 + $0x340] sm:$0xff] }
 0x19c   : > { %v20117_v33 = vld [vmem:[%s26304_s7 + $0x360] sm:$0xff]  ;;  %4223 = vmatprep.subr.bf16.mxu1 %v26325_v35  ;;  %v2722_v11 = vpack.c.bf16 %v2473_v42, %v2472_v22  ;;  %v2470_v46 = vmax.f32 %v19982_v40, %v2175_v62  ;;  %v2471_v47 = vmax.f32 %v19984_v24, %v2177_v52  ;;  %v2154_v37 = vrot.slane %v20062_v53, 1 }
 0x19d   : > { %v20075_v12 = vpop.f32.mrf.mxu0  ;;  %v2723_v6 = vpack.c.bf16 %v2475_v39, %v2474_v61  ;;  %v2173_v39 = vsel %vm2024_vm1, %v2170_v34, %v2172_v30  ;;  %v2159_v22 = vsel %vm2024_vm1, %v2156_v59, %v2158_v29  ;;  %v2160_v62 = vrot.slane %v20099_v25, 1 }
 0x19e   : > { %3720 = vmatmul.mubr.bf16.gmra.mxu1 %v15001_v0  ;;  %v20147_v0 = vld [vmem:[%s26304_s7 + $0x380] sm:$0xff]  ;;  %v2162_v52 = vrot.slane %v20102_v43, 1  ;;  %v2169_v55 = vsel %vm2024_vm1, %v2166_v32, %v2168_v5  ;;  %v2469_v31 = vmax.f32 %v20018_v10, %v2173_v39  ;;  %v2721_v56 = vpack.c.bf16 %v2471_v47, %v2470_v46 }
 0x19f   : > { %v17076_v4 = vpop.f32.mrf.mxu0  ;;  %4024 = vmatpush1.bf16.msra.mxu0 %v2723_v6  ;;  %v2171_v6 = vsel %vm2024_vm1, %v2168_v5, %v2170_v34  ;;  %3727 = vmatprep.mubr.bf16.mxu1 %v15010_v50  ;;  %v20152_v50 = vld [vmem:[%s26304_s7 + $0x3a0] sm:$0xff]  ;;  %v2167_v34 = vsel %vm2024_vm1, %v2164_v17, %v2166_v32  ;;  %v20162_v24 = vsel %vm2024_vm1, %v2154_v37, %v2156_v59 }
 0x1a0   : > { %4025 = vmatprep.subr.bf16.mxu0 %v26325_v35  ;;  %v2468_v30 = vmax.f32 %v20010_v19, %v2171_v6  ;;  %v2161_v40 = vsel %vm2024_vm1, %v2158_v29, %v2160_v62  ;;  %v20173_v10 = vld [vmem:[%s26380_s2] ss:$0 sm:$0xff]  ;;  %v2466_v59 = vmax.f32 %v20040_v57, %v2167_v34  ;;  %v2462_v29 = vmax.f32 %v20028_v41, %v2159_v22  ;;  %s16537_s2 = sshll.u32 %s18912_s29, 4  ;;  %s18820_s29 = smov [#allocation2]  }
 0x1a1   : > { %v1505_v42 = vpop.f32.mrf.mxu0  ;;  %v1514_v19 = vadd.f32 %v20173_v10, %v17076_v4  ;;  %v2165_v47 = vsel %vm2024_vm1, %v2162_v52, %v2164_v17  ;;  %v20186_v39 = vadd.f32 %v20173_v10, %v20013_v51  ;;  %v2467_v6 = vmax.f32 %v20042_v15, %v2169_v55  ;;  %s14743_s24 = scalar_lea.hbm %s26310_s13, %s16537_s2  ;;  %s18757_s15 = sshll.u32 %s18820_s29, 4  ;;  %s18758_s15 = int_to_ptr.vmem [resolvable:$false] %s18757_s15 }
 0x1a2   : > { %v2163_v4 = vsel %vm2024_vm1, %v2160_v62, %v2162_v52  ;;  %v2461_v57 = vmax.f32 %v20062_v53, %v20162_v24  ;;  %v20194_v41 = vadd.f32 %v20173_v10, %v20065_v26  ;;  %v2463_v17 = vmax.f32 %v20032_v48, %v2161_v40  ;;  %s18759_s16 = scalar_lea.vmem %s18758_s15, 32  ;;  %p18760_p0 = scmp.lt.s32.totalorder %s14746_s21, %s18758_s15 }
 0x1a3   : > { %v17077_v49 = vpop.f32.mrf.mxu0  ;;  %4026 = vmatpush1.bf16.msra.mxu0 %v2722_v11  ;;  %v26387_v11 = vrot.slane %v19710_v45, 1  ;;  %v1506_v34 = vadd.f32 %v20173_v10, %v1505_v42  ;;  %v2465_v26 = vmax.f32 %v20102_v43, %v2165_v47  ;;  %v1742_v62 = vmax.f32 %v1514_v19, 0.0  ;;  %p18761_p1 = scmp.lt.s32.totalorder %s18759_s16, %s18753_s17 }
 0x1a4   : > { %4027 = vmatprep.subr.bf16.mxu0 %v26325_v35  ;;  %v1517_v51 = vadd.f32 %v20173_v10, %v17077_v49  ;;  %v1738_v2 = vmax.f32 %v20186_v39, 0.0  ;;  %v2719_v40 = vpack.c.bf16 %v2467_v6, %v2466_v59  ;;  %v20218_v43 = vadd.f32 %v20173_v10, %v20034_v13 }
 0x1a5   : > { %v1508_v32 = vpop.f32.mrf.mxu0  ;;  %v20181_v46 = vsel %vm2024_vm1, %v26387_v11, %v2154_v37  ;;  %v2720_v37 = vpack.c.bf16 %v2469_v31, %v2468_v30  ;;  %v2464_v31 = vmax.f32 %v20099_v25, %v2163_v4  ;;  %v1739_v42 = vmax.f32 %v20194_v41, 0.0  ;;  %p18762_p2 = por %p18761_p1, %p18760_p0 }
 0x1a6   : > { %3728 = vmatmul.mubr.bf16.gmra.mxu1 %v15009_v7  ;;  %v2460_v48 = vmax.f32 %v19710_v45, %v20181_v46  ;;  %v1509_v1 = vadd.f32 %v20173_v10, %v1508_v32  ;;  %v1740_v30 = vmax.f32 %v1506_v34, 0.0  ;;  %v1743_v49 = vmax.f32 %v1517_v51, 0.0 }
 0x1a7   : > { %v17080_v22 = vpop.f32.mrf.mxu0  ;;  %4028 = vmatpush1.bf16.msra.mxu0 %v2721_v56  ;;  %3735 = vmatprep.mubr.bf16.mxu1 %v15018_v60  ;;  %v20223_v60 = vadd.f32 %v20173_v10, %v20075_v12  ;;  %v2717_v55 = vpack.c.bf16 %v2463_v17, %v2462_v29  ;;  %v1482_v13 = vadd.f32 %v20173_v10, %v19938_v18  ;;  %v1736_v29 = vmax.f32 %v20218_v43, 0.0  ;;  %p18763_p3 = pnand %p18762_p2, %p18756_p13 }
 0x1a8   : > { %v20203_v15 = vadd.f32 %v20173_v10, %v17080_v22  ;;  %4029 = vmatprep.subr.bf16.mxu0 %v26325_v35  ;;  %v20234_v19 = vadd.f32 %v20173_v10, %v19987_v58  ;;  %v2718_v59 = vpack.c.bf16 %v2465_v26, %v2464_v31  ;;  %v1741_v11 = vmax.f32 %v1509_v1, 0.0 }
 0x1a9   : > { %v1521_v56 = vpop.f32.mrf.mxu0  ;;  %v1737_v6 = vmax.f32 %v20223_v60, 0.0  ;;  %v20244_v18 = vmax.f32 %v1738_v2, %v1742_v62  ;;  %v20246_v4 = vmax.f32 %v1739_v42, %v1743_v49  ;;  %v26388_v17 = vcombine.low %v20053_v16, %v20058_v54 }
 0x1aa   : > { %v1746_v7 = vmax.f32 %v20203_v15, 0.0  ;;  %v1522_v25 = vadd.f32 %v20173_v10, %v1521_v56  ;;  %v1734_v51 = vmax.f32 %v1482_v13, 0.0  ;;  %v26324_v15 = vmax.f32 %v20234_v19, 0.0 }
 0x1ab   : > { %v17081_v45 = vpop.f32.mrf.mxu0  ;;  %4030 = vmatpush1.bf16.msra.mxu0 %v2720_v37  ;;  %v20263_v26 = vadd.f32 %v20173_v10, %v19995_v63  ;;  %v26389_v31 = vcombine.high %v20082_v21, %v20087_v27  ;;  %v2204_v63 = vrot.slane %v20244_v18, 1 }
 0x1ac   : > { %v20227_v52 = vadd.f32 %v20173_v10, %v17081_v45  ;;  %4031 = vmatprep.subr.bf16.mxu0 %v26325_v35  ;;  %v20236_v12 = vmax.f32 %v1742_v62, %v1746_v7  ;;  %v1744_v46 = vmax.f32 %v1522_v25, 0.0  ;;  %v20281_v25 = vmax.f32 %v1736_v29, %v1740_v30 }
 0x1ad   : > { %v1524_v32 = vpop.f32.mrf.mxu0  ;;  %v2206_v45 = vrot.slane %v20246_v4, 1 }
 0x1ae   : > { %v1747_v47 = vmax.f32 %v20227_v52, 0.0  ;;  %v20240_v39 = vadd.f32 %v20173_v10, %v1524_v32  ;;  %v20248_v41 = vmax.f32 %v1740_v30, %v1744_v46  ;;  %3736 = vmatmul.mubr.bf16.gmra.mxu1 %v26388_v17  ;;  %v2212_v62 = vrot.slane %v20236_v12, 1 }
 0x1af   : > { %v17084_v58 = vpop.f32.mrf.mxu0  ;;  %4032 = vmatpush1.bf16.msra.mxu0 %v2719_v40  ;;  %3743 = vmatprep.mubr.bf16.mxu1 %v26389_v31  ;;  %v26390_v30 = vmax.f32 %v19884_v28, 0.0  ;;  %v2200_v61 = vrot.slane %v20281_v25, 1 }
 0x1b0   : > { %v20250_v22 = vmax.f32 %v1743_v49, %v1747_v47  ;;  %v1745_v37 = vmax.f32 %v20240_v39, 0.0  ;;  %v20257_v34 = vadd.f32 %v20173_v10, %v17084_v58  ;;  %4033 = vmatprep.subr.bf16.mxu0 %v26325_v35  ;;  %v20286_v49 = vmax.f32 %v1737_v6, %v1741_v11 }
 0x1b1   : > { %v1537_v56 = vpop.f32.mrf.mxu0  ;;  %v2208_v13 = vrot.slane %v20248_v41, 1 }
 0x1b2   : > { %v2214_v16 = vrot.slane %v20250_v22, 1  ;;  %v20272_v54 = vmax.f32 %v1741_v11, %v1745_v37  ;;  %v26323_v1 = vmax.f32 %v20257_v34, 0.0  ;;  %v20276_v40 = vadd.f32 %v20173_v10, %v1537_v56 }
 0x1b3   : > { %4034 = vmatpush1.bf16.msra.mxu0 %v2718_v59  ;;  %v17085_v52 = vpop.f32.mrf.mxu0  ;;  %v20298_v56 = vmax.f32 %v26390_v30, %v1734_v51  ;;  %v2716_v59 = vpack.c.bf16 %v2461_v57, %v2460_v48  ;;  %v2202_v48 = vrot.slane %v20286_v49, 1  ;;  %v26397_v60 = vmax.f32 %v20257_v34, 0.0 }
 0x1b4   : > { %v2210_v32 = vrot.slane %v20272_v54, 1  ;;  %v20292_v58 = vmax.f32 %v1746_v7, %v26323_v1  ;;  %v1748_v17 = vmax.f32 %v20276_v40, 0.0  ;;  %4035 = vmatprep.subr.bf16.mxu0 %v26325_v35  ;;  %v20305_v31 = vadd.f32 %v20173_v10, %v17085_v52 }
 0x1b5   : > { %v1540_v5 = vpop.f32.mrf.mxu0  ;;  %v20307_v7 = vmax.f32 %v1734_v51, %v1738_v2  ;;  %v20311_v40 = vmax.f32 %v26324_v15, %v1739_v42  ;;  %v2215_v28 = vsel %vm2024_vm1, %v2212_v62, %v2214_v16  ;;  %v20318_v1 = vsel %vm2024_vm1, %v2204_v63, %v2206_v45 }
 0x1b6   : > { %v20314_v30 = vmax.f32 %v1744_v46, %v1748_v17  ;;  %v2213_v53 = vsel %vm2024_vm1, %v2210_v32, %v2212_v62  ;;  %v1751_v24 = vmax.f32 %v20305_v31, 0.0  ;;  %v26391_v42 = vcombine.low %v20082_v21, %v20087_v27 }
 0x1b7   : > { %4036 = vmatpush1.bf16.msra.mxu0 %v2717_v55  ;;  %v17088_v57 = vpop.f32.mrf.mxu0  ;;  %v2211_v46 = vsel %vm2024_vm1, %v2208_v13, %v2210_v32  ;;  %v1541_v51 = vadd.f32 %v20173_v10, %v1540_v5  ;;  %v2209_v62 = vsel %vm2024_vm1, %v2206_v45, %v2208_v13  ;;  %v2220_v55 = vrot.slane %v20292_v58, 1 }
 0x1b8   : > { %v2216_v2 = vrot.slane %v20314_v30, 1  ;;  %3744 = vmatmul.mubr.bf16.gmra.mxu1 %v26391_v42  ;;  %4037 = vmatprep.subr.bf16.mxu0 %v26325_v35  ;;  %v26392_v52 = vcombine.high %v20092_v23, %v20107_v36  ;;  %v2490_v15 = vmax.f32 %v20236_v12, %v2215_v28  ;;  %v1875_v21 = vmax.f32 %v1747_v47, %v1751_v24 }
 0x1b9   : > { %v1553_v27 = vpop.f32.mrf.mxu0  ;;  %v2489_v42 = vmax.f32 %v20272_v54, %v2213_v53  ;;  %v1749_v11 = vmax.f32 %v1541_v51, 0.0  ;;  %v2488_v13 = vmax.f32 %v20248_v41, %v2211_v46  ;;  %v20346_v12 = vadd.f32 %v20173_v10, %v17088_v57 }
 0x1ba   : > { %3751 = vmatprep.mubr.bf16.mxu1 %v26392_v52  ;;  %v2217_v32 = vsel %vm2024_vm1, %v2214_v16, %v2216_v2  ;;  %v20341_v5 = vadd.f32 %v20173_v10, %v1553_v27  ;;  %v2222_v52 = vrot.slane %v1875_v21, 1  ;;  %v2196_v47 = vrot.slane %v20307_v7, 1 }
 0x1bb   : > { %4038 = vmatpush1.bf16.msra.mxu0 %v2716_v59  ;;  %v2491_v45 = vmax.f32 %v20250_v22, %v2217_v32  ;;  %v20348_v28 = vpop.f32.mrf.mxu0  ;;  %v2198_v54 = vrot.slane %v20311_v40, 1  ;;  %v1873_v16 = vmax.f32 %v1745_v37, %v1749_v11  ;;  %v2205_v22 = vsel %vm2024_vm1, %v2202_v48, %v2204_v63 }
 0x1bc   : > { %4039 = vmatprep.subr.bf16.mxu0 %v26325_v35  ;;  %v1752_v59 = vmax.f32 %v20341_v5, 0.0  ;;  %v2486_v53 = vmax.f32 %v20244_v18, %v20318_v1  ;;  %v2223_v57 = vsel %vm2024_vm1, %v2220_v55, %v2222_v52  ;;  %v2487_v51 = vmax.f32 %v20246_v4, %v2209_v62 }
 0x1bd   : > { %v2731_v41 = vpack.c.bf16 %v2491_v45, %v2490_v15  ;;  %v1556_v46 = vpop.f32.mrf.mxu0  ;;  %v2203_v27 = vsel %vm2024_vm1, %v2200_v61, %v2202_v48  ;;  %v2218_v32 = vrot.slane %v1873_v16, 1  ;;  %v2730_v37 = vpack.c.bf16 %v2489_v42, %v2488_v13 }
 0x1be   : > { %v1876_v39 = vmax.f32 %v1748_v17, %v1752_v59  ;;  %v1754_v15 = vmax.f32 %v20346_v12, 0.0  ;;  %v20368_v63 = vadd.f32 %v20173_v10, %v1556_v46  ;;  %v2494_v18 = vmax.f32 %v20292_v58, %v2223_v57 }
 0x1bf   : > { %4040 = vmatpush2.bf16.msra.mxu0 %v2731_v41  ;;  %v26393_v4 = vmax.f32 %v19968_v8, 0.0  ;;  %v26394_v48 = vmax.f32 %v20263_v26, 0.0  ;;  %v26395_v62 = vcombine.low %v20092_v23, %v20107_v36  ;;  %v2221_v58 = vsel %vm2024_vm1, %v2218_v32, %v2220_v55  ;;  %v20398_v23 = vpop.f32.mrf.mxu0 }
 0x1c0   : > { %4041 = vmatprep.subr.bf16.mxu0 %v26325_v35  ;;  %v2224_v42 = vrot.slane %v1876_v39, 1  ;;  %v26396_v8 = vcombine.high %v20112_v9, %v20117_v33  ;;  %v2493_v43 = vmax.f32 %v1873_v16, %v2221_v58  ;;  %v2219_v36 = vsel %vm2024_vm1, %v2216_v2, %v2218_v32 }
 0x1c1   : > { %v20375_v1 = vmax.f32 %v26393_v4, %v1736_v29  ;;  %v20381_v17 = vmax.f32 %v26394_v48, %v1737_v6  ;;  %3752 = vmatmul.mubr.bf16.gmra.mxu1 %v26395_v62  ;;  %v20395_v29 = vmax.f32 %v26397_v60, %v1754_v15  ;;  %v1753_v6 = vmax.f32 %v20368_v63, 0.0  ;;  %v2529_v63 = vld [vmem:[%s26304_s7 + $0x48] sm:$0xff] }
 0x1c2   : > { %3759 = vmatprep.mubr.bf16.mxu1 %v26396_v8  ;;  %v2199_v55 = vsel %vm2024_vm1, %v2196_v47, %v2198_v54  ;;  %v2485_v45 = vmax.f32 %v20286_v49, %v2205_v22  ;;  %v2484_v13 = vmax.f32 %v20281_v25, %v2203_v27  ;;  %v2225_v16 = vsel %vm2024_vm1, %v2222_v52, %v2224_v42  ;;  %v20419_v22 = vpop.f32.mrf.mxu0 }
 0x1c3   : > { %4042 = vmatpush2.bf16.msra.mxu0 %v2730_v37  ;;  %v2729_v41 = vpack.c.bf16 %v2487_v51, %v2486_v53  ;;  %v1877_v34 = vmax.f32 %v1749_v11, %v1753_v6  ;;  %v2495_v57 = vmax.f32 %v1875_v21, %v2225_v16  ;;  %v2492_v46 = vmax.f32 %v20314_v30, %v2219_v36 }
 0x1c4   : > { %v26398_v4 = vmax.f32 %v20234_v19, 0.0  ;;  %v26399_v2 = vmax.f32 %v19918_v20, 0.0  ;;  %v2192_v48 = vrot.slane %v20375_v1, 1  ;;  %v2194_v49 = vrot.slane %v20381_v17, 1  ;;  %4043 = vmatprep.subr.bf16.mxu0 %v26325_v35  ;;  %v20445_v8 = vpop.f32.mrf.mxu0 }
 0x1c5   : > { %v2201_v52 = vsel %vm2024_vm1, %v2198_v54, %v2200_v61  ;;  %v2228_v11 = vrot.slane %v20395_v29, 1  ;;  %v2226_v21 = vrot.slane %v1877_v34, 1  ;;  %v20421_v30 = vpack.c.bf16 %v2495_v57, %v2494_v18 }
 0x1c6   : > { %v1859_v32 = vmax.f32 %v26399_v2, %v26398_v4  ;;  %v20423_v19 = vpack.c.bf16 %v2493_v43, %v2492_v46  ;;  %v2188_v20 = vrot.slane %v20298_v56, 1  ;;  %v26400_v53 = vmax.f32 %v20263_v26, 0.0 }
 0x1c7   : > { %v26401_v51 = vmax.f32 %v19928_v14, 0.0  ;;  %v2482_v61 = vmax.f32 %v20307_v7, %v2199_v55  ;;  %4044 = vmatpush2.bf16.msra.mxu0 %v2729_v41  ;;  %v2728_v54 = vpack.c.bf16 %v2485_v45, %v2484_v13  ;;  %v2483_v27 = vmax.f32 %v20311_v40, %v2201_v52  ;;  %v20462_v41 = vpop.f32.mrf.mxu0 }
 0x1c8   : > { %v2229_v37 = vsel %vm2024_vm1, %v2226_v21, %v2228_v11  ;;  %v2227_v18 = vsel %vm2024_vm1, %v2224_v42, %v2226_v21  ;;  %v2190_v62 = vrot.slane %v1859_v32, 1  ;;  %v2197_v58 = vsel %vm2024_vm1, %v2194_v49, %v2196_v47  ;;  %4045 = vmatprep.subr.bf16.mxu0 %v26325_v35  ;;  %v2640_v47 = vld [vmem:[%s26304_s7 + $0x3c0] sm:$0xff] }
 0x1c9   : > { %v1857_v25 = vmax.f32 %v26401_v51, %v26400_v53  ;;  %v26402_v26 = vcombine.low %v20112_v9, %v20117_v33  ;;  %v2195_v14 = vsel %vm2024_vm1, %v2192_v48, %v2194_v49  ;;  %v2497_v7 = vmax.f32 %v1877_v34, %v2229_v37  ;;  %v2644_v9 = vld [vmem:[%s26304_s7 + $0x3e0] sm:$0xff]  ;;  %v2530_v53 = vld [vmem:[%s26304_s7 + $0x50] sm:$0xff] }
 0x1ca   : > { %v26403_v40 = vcombine.high %v20147_v0, %v20152_v50  ;;  %v2496_v43 = vmax.f32 %v1876_v39, %v2227_v18  ;;  %v2481_v33 = vmax.f32 %v20381_v17, %v2197_v58  ;;  %v2727_v42 = vpack.c.bf16 %v2483_v27, %v2482_v61  ;;  %v2534_v51 = vld [vmem:[%s26304_s7 + $0x70] sm:$0xff]  ;;  %v2660_v61 = vld [vmem:[%s26304_s7 + $0x460] sm:$0xff] }
 0x1cb   : > { %3760 = vmatmul.mubr.bf16.gmra.mxu1 %v26402_v26  ;;  %4046 = vmatpush2.bf16.msra.mxu0 %v2728_v54  ;;  %v2480_v60 = vmax.f32 %v20375_v1, %v2195_v14  ;;  %v2191_v55 = vsel %vm2024_vm1, %v2188_v20, %v2190_v62  ;;  %v2186_v45 = vrot.slane %v1857_v25, 1  ;;  %v2193_v39 = vsel %vm2024_vm1, %v2190_v62, %v2192_v48  ;;  %v2538_v58 = vld [vmem:[%s26304_s7 + $0x90] sm:$0xff] }
 0x1cc   : > { %3767 = vmatprep.mubr.bf16.mxu1 %v26403_v40  ;;  %v20455_v36 = vpack.c.bf16 %v2497_v7, %v2496_v43  ;;  %v15049_v13 = vcombine.low %v20147_v0, %v20152_v50  ;;  %4047 = vmatprep.subr.bf16.mxu0 %v26325_v35  ;;  %v15058_v16 = vcombine.high %v2640_v47, %v2644_v9  ;;  %v26404_v46 = vrot.slane %v20004_v3, 1  ;;  %v17096_v0 = vpop.f32.mrf.mxu0  ;;  %v2648_v50 = vld [vmem:[%s26304_s7 + $0x400] sm:$0xff]  ;;  %v2542_v26 = vld [vmem:[%s26304_s7 + $0xb0] sm:$0xff] }
 0x1cd   : > { %v2726_v17 = vpack.c.bf16 %v2481_v33, %v2480_v60  ;;  %v2478_v34 = vmax.f32 %v20298_v56, %v2191_v55  ;;  %v2479_v1 = vmax.f32 %v1859_v32, %v2193_v39  ;;  %v2189_v57 = vsel %vm2024_vm1, %v2186_v45, %v2188_v20  ;;  %v2652_v56 = vld [vmem:[%s26304_s7 + $0x420] sm:$0xff]  ;;  %v2550_v60 = vld [vmem:[%s26304_s7 + $0xf0] sm:$0xff] }
 0x1ce   : > { %v2187_v4 = vsel %vm2024_vm1, %v26404_v46, %v2186_v45  ;;  %v2477_v2 = vmax.f32 %v1857_v25, %v2189_v57  ;;  %v15057_v49 = vcombine.low %v2640_v47, %v2644_v9  ;;  %v15066_v52 = vcombine.high %v2648_v50, %v2652_v56  ;;  %v1585_v21 = vpop.f32.mrf.mxu0  ;;  %v2656_v25 = vld [vmem:[%s26304_s7 + $0x440] sm:$0xff] }
 0x1cf   : > { %4048 = vmatpush2.bf16.msra.mxu0 %v2727_v42  ;;  %v2725_v32 = vpack.c.bf16 %v2479_v1, %v2478_v34  ;;  %v2476_v48 = vmax.f32 %v20004_v3, %v2187_v4  ;;  %v14950_v54 = vcombine.high %v2530_v53, %v2534_v51  ;;  %v15065_v27 = vcombine.low %v2648_v50, %v2652_v56  ;;  %v2664_v7 = vld [vmem:[%s26304_s7 + $0x480] sm:$0xff]  ;;  %v2546_v42 = vld [vmem:[%s26304_s7 + $0xd0] sm:$0xff] }
 0x1d0   : > { %4049 = vmatprep.subr.bf16.mxu0 %v26325_v35  ;;  %v17097_v3 = vpop.f32.mrf.mxu0  ;;  %v15074_v37 = vcombine.high %v2656_v25, %v2660_v61  ;;  %v26405_v62 = vcombine.low %v19864_v38, %v19869_v44  ;;  %v2668_v38 = vld [vmem:[%s26304_s7 + $0x4a0] sm:$0xff]  ;;  %v14949_v44 = vcombine.low %v2530_v53, %v2534_v51  ;;  %v14958_v40 = vcombine.high %v2538_v58, %v2542_v26 }
 0x1d1   : > { %v2724_v20 = vpack.c.bf16 %v2477_v2, %v2476_v48  ;;  %v15073_v43 = vcombine.low %v2656_v25, %v2660_v61  ;;  %v15082_v47 = vcombine.high %v2664_v7, %v2668_v38  ;;  %v2672_v55 = vld [vmem:[%s26304_s7 + $0x4c0] sm:$0xff]  ;;  %v14957_v39 = vcombine.low %v2538_v58, %v2542_v26 }
 0x1d2   : > { %v1588_v18 = vpop.f32.mrf.mxu0  ;;  %v2676_v45 = vld [vmem:[%s26304_s7 + $0x4e0] sm:$0xff]  ;;  %v15081_v34 = vcombine.low %v2664_v7, %v2668_v38  ;;  %v1581_v1 = vadd.f32 %v20173_v10, %v20445_v8  ;;  %v20529_v57 = vadd.f32 %v20173_v10, %v17096_v0  ;;  %v1586_v4 = vadd.f32 %v20173_v10, %v1585_v21  ;;  %v2554_v8 = vld [vmem:[%s26304_s7 + $0x110] sm:$0xff] }
 0x1d3   : > { %3768 = vmatmul.mubr.bf16.gmra.mxu1 %v15049_v13  ;;  %4050 = vmatpush2.bf16.msra.mxu0 %v2726_v17  ;;  %v1578_v17 = vadd.f32 %v20173_v10, %v20398_v23  ;;  %v15090_v46 = vcombine.high %v2672_v55, %v2676_v45  ;;  %v20533_v50 = vadd.f32 %v20173_v10, %v17097_v3  ;;  %v2558_v0 = vld [vmem:[%s26304_s7 + $0x130] sm:$0xff]  ;;  %v2680_v25 = vld [vmem:[%s26304_s7 + $0x500] sm:$0x77] }
 0x1d4   : > { %3775 = vmatprep.mubr.bf16.mxu1 %v15058_v16  ;;  %4051 = vmatprep.subr.bf16.mxu0 %v26325_v35  ;;  %v20500_v14 = vpop.f32.mrf.mxu0  ;;  %v14966_v16 = vcombine.high %v2546_v42, %v2550_v60  ;;  %v1570_v48 = vadd.f32 %v20173_v10, %v20419_v22  ;;  %v1762_v21 = vmax.f32 %v20529_v57, 0.0  ;;  %v20553_v51 = vadd.f32 %v20173_v10, %v1588_v18 }
 0x1d5   : > { %v1758_v23 = vmax.f32 %v1578_v17, 0.0  ;;  %v1763_v53 = vmax.f32 %v20533_v50, 0.0  ;;  %v14974_v61 = vcombine.high %v2554_v8, %v2558_v0 }
 0x1d6   : > { %v1601_v9 = vpop.f32.mrf.mxu0  ;;  %v1761_v26 = vmax.f32 %v20553_v51, 0.0 }
 0x1d7   : > { %4052 = vmatpush2.bf16.msra.mxu0 %v2725_v32  ;;  %v20536_v56 = vadd.f32 %v20173_v10, %v1601_v9  ;;  %v14965_v32 = vcombine.low %v2546_v42, %v2550_v60  ;;  %v1886_v18 = vmax.f32 %v1758_v23, %v1762_v21 }
 0x1d8   : > { %4053 = vmatprep.subr.bf16.mxu0 %v26325_v35  ;;  %v20508_v33 = vpop.f32.mrf.mxu0 }
 0x1d9   : > { %v1764_v3 = vmax.f32 %v20536_v56, 0.0  ;;  %v2244_v9 = vrot.slane %v1886_v18, 1 }
 0x1da   : > { %v20522_v13 = vpop.f32.mrf.mxu0 }
 0x1db   : > { %3776 = vmatmul.mubr.bf16.gmra.mxu1 %v15057_v49  ;;  %4054 = vmatpush2.bf16.msra.mxu0 %v2724_v20  ;;  %v1759_v49 = vmax.f32 %v1581_v1, 0.0  ;;  %v1760_v20 = vmax.f32 %v1586_v4, 0.0  ;;  %v20593_v1 = vmax.f32 %v1754_v15, %v1758_v23  ;;  %v2570_v15 = vld [vmem:[%s26304_s7 + $0x190] sm:$0xff] }
 0x1dc   : > { %3783 = vmatprep.mubr.bf16.mxu1 %v15066_v52  ;;  %v20538_v2 = vpop.f32.mrf.mxu0  ;;  %v1573_v52 = vadd.f32 %v20173_v10, %v20462_v41  ;;  %v1565_v41 = vadd.f32 %v20173_v10, %v20348_v28  ;;  %v2562_v28 = vld [vmem:[%s26304_s7 + $0x150] sm:$0xff] }
 0x1dd   : > { %v1887_v58 = vmax.f32 %v1759_v49, %v1763_v53  ;;  %v20570_v7 = vmax.f32 %v1760_v20, %v1764_v3  ;;  %v2574_v23 = vld [vmem:[%s26304_s7 + $0x1b0] sm:$0xff] }
 0x1de   : > { %4056 = vmatmul.mubr.bf16.vlgmr.msra.gmra.mxu0 %v26405_v62  ;;  %v20559_v22 = vpop.f32.mrf.mxu0  ;;  %v15098_v62 = vcombine.high %v2680_v25, %v2680_v25 }
 0x1df   : > { %4063 = vmatprep.mubr.bf16.mxu0 %v14950_v54  ;;  %v15089_v54 = vcombine.low %v2672_v55, %v2676_v45  ;;  %v2246_v42 = vrot.slane %v1887_v58, 1  ;;  %v2248_v55 = vrot.slane %v20570_v7, 1  ;;  %v2521_v45 = vld [vmem:[%s26304_s7 + $0x8] sm:$0xff] }
 0x1e0   : > { %v20572_v38 = vpop.f32.mrf.mxu0 }
 0x1e3   : > { %3784 = vmatmul.mubr.bf16.gmra.mxu1 %v15065_v27  ;;  %v1756_v27 = vmax.f32 %v1570_v48, 0.0  ;;  %v2249_v48 = vsel %vm2024_vm1, %v2246_v42, %v2248_v55 }
 0x1e4   : > { %3791 = vmatprep.mubr.bf16.mxu1 %v15074_v37  ;;  %v1757_v37 = vmax.f32 %v1573_v52, 0.0 }
 0x1e6   : > { %4064 = vmatmul.mubr.bf16.gmra.mxu0 %v14949_v44  ;;  %v2566_v44 = vld [vmem:[%s26304_s7 + $0x170] sm:$0xff]  ;;  %v1885_v60 = vmax.f32 %v1757_v37, %v1761_v26  ;;  %v20607_v12 = vmax.f32 %v1753_v6, %v1757_v37  ;;  %v2533_v6 = vld [vmem:[%s26304_s7 + $0x68] sm:$0xff] }
 0x1e7   : > { %4071 = vmatprep.mubr.bf16.mxu0 %v14958_v40  ;;  %v1755_v40 = vmax.f32 %v1565_v41, 0.0  ;;  %v14982_v17 = vcombine.high %v2562_v28, %v2566_v44  ;;  %v14981_v41 = vcombine.low %v2562_v28, %v2566_v44 }
 0x1eb   : > { %3792 = vmatmul.mubr.bf16.gmra.mxu1 %v15073_v43  ;;  %v1884_v43 = vmax.f32 %v1756_v27, %v1760_v20  ;;  %v20603_v20 = vmax.f32 %v1752_v59, %v1756_v27  ;;  %v2507_v59 = vmax.f32 %v1887_v58, %v2249_v48  ;;  %v20657_v48 = vadd.f32 %v20173_v10, %v20538_v2 }
 0x1ec   : > { %3799 = vmatprep.mubr.bf16.mxu1 %v15082_v47  ;;  %v14973_v47 = vcombine.low %v2554_v8, %v2558_v0  ;;  %v2247_v8 = vsel %vm2024_vm1, %v2244_v9, %v2246_v42  ;;  %v2242_v0 = vrot.slane %v1885_v60, 1  ;;  %v14948_v42 = vcombine.high %v2529_v63, %v2533_v6 }
 0x1ed   : > { %v2506_v5 = vmax.f32 %v1886_v18, %v2247_v8  ;;  %v20629_v18 = vmax.f32 %v1751_v24, %v1755_v40  ;;  %v2232_v58 = vrot.slane %v20603_v20, 1 }
 0x1ee   : > { %4072 = vmatmul.mubr.bf16.gmra.mxu0 %v14957_v39  ;;  %v2525_v39 = vld [vmem:[%s26304_s7 + $0x28] sm:$0xff] }
 0x1ef   : > { %4079 = vmatprep.mubr.bf16.mxu0 %v14966_v16  ;;  %v20589_v16 = vpop.f32.mrf.mxu0  ;;  %v14940_v4 = vcombine.high %v2521_v45, %v2525_v39  ;;  %v14939_v27 = vcombine.low %v2521_v45, %v2525_v39  ;;  %v2230_v45 = vrot.slane %v20629_v18, 1  ;;  %v20641_v39 = vld [vmem:[%s26304_s7 + $0x1d0] sm:$0xff] }
 0x1f1   : > { %v17108_v52 = vpop.f32.mrf.mxu0 }
 0x1f3   : > { %3800 = vmatmul.mubr.bf16.gmra.mxu1 %v15081_v34  ;;  %v15097_v34 = vcombine.low %v2680_v25, %v2680_v25  ;;  %v20625_v37 = vpop.f32.mrf.mxu0 }
 0x1f4   : > { %3807 = vmatprep.mubr.bf16.mxu1 %v15090_v46  ;;  %v20595_v46 = vmax.f32 %v1755_v40, %v1759_v49  ;;  %v2236_v49 = vrot.slane %v20593_v1, 1  ;;  %v14989_v40 = vcombine.low %v2570_v15, %v2574_v23 }
 0x1f5   : > { %v17109_v44 = vpop.f32.mrf.mxu0 }
 0x1f6   : > { %4080 = vmatmul.mubr.bf16.gmra.mxu0 %v14965_v32  ;;  %v2240_v32 = vrot.slane %v1884_v43, 1  ;;  %v2238_v25 = vrot.slane %v20595_v46, 1 }
 0x1f7   : > { %4087 = vmatprep.mubr.bf16.mxu0 %v14974_v61  ;;  %v2245_v61 = vsel %vm2024_vm1, %v2242_v0, %v2244_v9  ;;  %v2739_v9 = vpack.c.bf16 %v2507_v59, %v2506_v5  ;;  %v14947_v5 = vcombine.low %v2529_v63, %v2533_v6 }
 0x1f8   : > { %v2241_v28 = vsel %vm2024_vm1, %v2238_v25, %v2240_v32 }
 0x1fb   : > { %3808 = vmatmul.mubr.bf16.gmra.mxu1 %v15089_v54  ;;  %v2243_v54 = vsel %vm2024_vm1, %v2240_v32, %v2242_v0  ;;  %v2503_v32 = vmax.f32 %v20595_v46, %v2241_v28  ;;  %v2541_v0 = vld [vmem:[%s26304_s7 + $0xa8] sm:$0xff]  ;;  %v1642_v46 = vadd.f32 %v20173_v10, %v17108_v52  ;;  %v1770_v52 = vmax.f32 %v20657_v48, 0.0 }
 0x1fc   : > { %3815 = vmatprep.mubr.bf16.mxu1 %v15098_v62  ;;  %v14990_v62 = vcombine.high %v2570_v15, %v2574_v23  ;;  %v20661_v15 = vadd.f32 %v20173_v10, %v20572_v38  ;;  %v1645_v23 = vadd.f32 %v20173_v10, %v17109_v44  ;;  %v2557_v48 = vld [vmem:[%s26304_s7 + $0x128] sm:$0xff] }
 0x1fe   : > { %4088 = vmatmul.mubr.bf16.gmra.mxu0 %v14973_v47  ;;  %v2234_v47 = vrot.slane %v20607_v12, 1 }
 0x1ff   : > { %4095 = vmatprep.mubr.bf16.mxu0 %v14982_v17  ;;  %v2239_v17 = vsel %vm2024_vm1, %v2236_v49, %v2238_v25  ;;  %v2231_v25 = vsel %vm2024_vm1, %v2228_v11, %v2230_v45  ;;  %v1636_v11 = vpop.f32.mrf.mxu0 }
 0x200   : > { %v2237_v31 = vsel %vm2024_vm1, %v2234_v47, %v2236_v49  ;;  %v2502_v24 = vmax.f32 %v20593_v1, %v2239_v17  ;;  %v2235_v8 = vsel %vm2024_vm1, %v2232_v58, %v2234_v47  ;;  %v2537_v1 = vld [vmem:[%s26304_s7 + $0x88] sm:$0xff]  ;;  %v2498_v63 = vmax.f32 %v20395_v29, %v2231_v25 }
 0x201   : > { %v14956_v59 = vcombine.high %v2537_v1, %v2541_v0  ;;  %v2501_v2 = vmax.f32 %v20607_v12, %v2237_v31  ;;  %v2500_v38 = vmax.f32 %v20603_v20, %v2235_v8  ;;  %v2586_v20 = vld [vmem:[%s26304_s7 + $0x210] sm:$0xff]  ;;  %v20686_v47 = vadd.f32 %v20173_v10, %v20559_v22  ;;  %v2549_v17 = vld [vmem:[%s26304_s7 + $0xe8] sm:$0xff] }
 0x202   : > { %v20690_v29 = vadd.f32 %v20173_v10, %v20589_v16  ;;  %v1634_v22 = vadd.f32 %v20173_v10, %v20625_v37  ;;  %v14955_v28 = vcombine.low %v2537_v1, %v2541_v0  ;;  %v20708_v31 = vadd.f32 %v20173_v10, %v20500_v14  ;;  %v20721_v14 = vld [vmem:[%s26304_s7 + $0x250] sm:$0xff]  ;;  %v20733_v0 = vld [vmem:[%s26304_s7 + $0x108] sm:$0xff] }
 0x203   : > { %3816 = vmatmul.mubr.bf16.gmra.mxu1 %v15097_v34  ;;  %v2505_v34 = vmax.f32 %v1885_v60, %v2245_v61  ;;  %v2233_v61 = vsel %vm2024_vm1, %v2230_v45, %v2232_v58  ;;  %v2590_v58 = vld [vmem:[%s26304_s7 + $0x230] sm:$0xff] }
 0x204   : > { %3855 = vmatprep.mubr.bf16.mxu1 %v14940_v4  ;;  %v2504_v4 = vmax.f32 %v1884_v43, %v2243_v54  ;;  %v2582_v43 = vld [vmem:[%s26304_s7 + $0x1f0] sm:$0xff]  ;;  %v2737_v54 = vpack.c.bf16 %v2503_v32, %v2502_v24  ;;  %v2499_v12 = vmax.f32 %v20629_v18, %v2233_v61  ;;  %v2736_v18 = vpack.c.bf16 %v2501_v2, %v2500_v38 }
 0x205   : > { %v14998_v49 = vcombine.high %v20641_v39, %v2582_v43  ;;  %v14997_v6 = vcombine.low %v20641_v39, %v2582_v43  ;;  %v20712_v24 = vadd.f32 %v20173_v10, %v20508_v33  ;;  %v1769_v37 = vmax.f32 %v20690_v29, 0.0  ;;  %v20726_v33 = vld [vmem:[%s26304_s7 + $0x270] sm:$0xff]  ;;  %v2565_v29 = vld [vmem:[%s26304_s7 + $0x168] sm:$0xff] }
 0x206   : > { %4096 = vmatmul.mubr.bf16.gmra.mxu0 %v14981_v41  ;;  %v2738_v60 = vpack.c.bf16 %v2505_v34, %v2504_v4  ;;  %v1771_v41 = vmax.f32 %v20661_v15, 0.0  ;;  %v15006_v4 = vcombine.high %v2586_v20, %v2590_v58  ;;  %v2735_v44 = vpack.c.bf16 %v2499_v12, %v2498_v63  ;;  %v20776_v15 = vld [vmem:[%s26304_s7 + $0x2b0] sm:$0xff] }
 0x207   : > { %4103 = vmatprep.mubr.bf16.mxu0 %v14990_v62  ;;  %v1775_v62 = vmax.f32 %v1645_v23, 0.0  ;;  %v1772_v43 = vmax.f32 %v1634_v22, 0.0  ;;  %v1766_v8 = vmax.f32 %v20708_v31, 0.0  ;;  %v1767_v1 = vmax.f32 %v20712_v24, 0.0 }
 0x208   : > { %v20740_v23 = vadd.f32 %v20173_v10, %v20522_v13  ;;  %v14972_v2 = vcombine.high %v20733_v0, %v2557_v48  ;;  %v26327_v38 = vmov 65535  }
 0x209   : > { %v1899_v16 = vmax.f32 %v1771_v41, %v1775_v62  ;;  %v20802_v22 = vmax.f32 %v1762_v21, %v1766_v8 }
 0x20a   : > { %v1765_v62 = vmax.f32 %v20740_v23, 0.0  ;;  %v2573_v23 = vld [vmem:[%s26304_s7 + $0x1a8] sm:$0xff] }
 0x20b   : > { %3856 = vmatmul.mubr.bf16.vlgmr.msra.gmra.mxu1 %v14939_v27  ;;  %v1774_v27 = vmax.f32 %v1642_v46, 0.0  ;;  %v15005_v46 = vcombine.low %v2586_v20, %v2590_v58 }
 0x20c   : > { %4224 = vmatpush1.bf16.msra.mxu1 %v2739_v9  ;;  %3863 = vmatprep.mubr.bf16.mxu1 %v14948_v42  ;;  %v2545_v42 = vld [vmem:[%s26304_s7 + $0xc8] sm:$0xff]  ;;  %v1637_v9 = vadd.f32 %v20173_v10, %v1636_v11  ;;  %v20760_v11 = vmax.f32 %v1767_v1, %v1771_v41  ;;  %v20793_v56 = vmax.f32 %v1765_v62, %v1769_v37 }
 0x20d   : > { %4225 = vmatprep.subr.bf16.mxu1 %v26325_v35  ;;  %v20699_v34 = vmax.f32 %v1770_v52, %v1774_v27  ;;  %v14964_v45 = vcombine.high %v2545_v42, %v2549_v17  ;;  %v14963_v61 = vcombine.low %v2545_v42, %v2549_v17  ;;  %v3618_v27 = vsel %vm2024_vm1, 4294967295, %v26327_v38 }
 0x20e   : > { %4104 = vmatmul.mubr.bf16.gmra.mxu0 %v14989_v40  ;;  %v1768_v40 = vmax.f32 %v20686_v47, 0.0  ;;  %v1773_v32 = vmax.f32 %v1637_v9, 0.0  ;;  %v2561_v47 = vld [vmem:[%s26304_s7 + $0x148] sm:$0xff]  ;;  %v2262_v42 = vrot.slane %v20760_v11, 1  ;;  %v14971_v9 = vcombine.low %v20733_v0, %v2557_v48 }
 0x20f   : > { %4111 = vmatprep.mubr.bf16.mxu0 %v14998_v49  ;;  %v2268_v39 = vrot.slane %v20699_v34, 1  ;;  %v2258_v24 = vrot.slane %v20793_v56, 1  ;;  %v14979_v51 = vcombine.low %v2561_v47, %v2565_v29 }
 0x210   : > { %4226 = vmatpush1.bf16.msra.mxu1 %v2738_v60  ;;  %v2270_v60 = vrot.slane %v1899_v16, 1  ;;  %v20742_v49 = vmax.f32 %v1768_v40, %v1772_v43  ;;  %v20781_v20 = vmax.f32 %v1764_v3, %v1768_v40  ;;  %v2252_v43 = vrot.slane %v20802_v22, 1 }
 0x211   : > { %4227 = vmatprep.subr.bf16.mxu1 %v26325_v35 }
 0x212   : > { %v2271_v25 = vsel %vm2024_vm1, %v2268_v39, %v2270_v60  ;;  %v2519_v13 = vmax.f32 %v1899_v16, %v2270_v60  ;;  %v2264_v63 = vrot.slane %v20742_v49, 1  ;;  %v2256_v57 = vrot.slane %v20781_v20, 1 }
 0x213   : > { %3864 = vmatmul.mubr.bf16.gmra.mxu1 %v14947_v5  ;;  %v20746_v5 = vmax.f32 %v1769_v37, %v1773_v32  ;;  %v2518_v10 = vmax.f32 %v20699_v34, %v2271_v25 }
 0x214   : > { %4228 = vmatpush1.bf16.msra.mxu1 %v2737_v54  ;;  %3871 = vmatprep.mubr.bf16.mxu1 %v14956_v59  ;;  %v15014_v59 = vcombine.high %v20721_v14, %v20726_v33  ;;  %v20751_v54 = vmax.f32 %v1766_v8, %v1770_v52  ;;  %v2265_v40 = vsel %vm2024_vm1, %v2262_v42, %v2264_v63 }
 0x215   : > { %4229 = vmatprep.subr.bf16.mxu1 %v26325_v35  ;;  %v2266_v52 = vrot.slane %v20746_v5, 1  ;;  %v2745_v58 = vpack.c.bf16 %v2519_v13, %v2518_v10  ;;  %v1889_v8 = vmax.f32 %v1761_v26, %v1765_v62  ;;  %v2259_v48 = vsel %vm2024_vm1, %v2256_v57, %v2258_v24  ;;  %v2618_v62 = vld [vmem:[%s26304_s7 + $0x310] sm:$0xff] }
 0x216   : > { %4112 = vmatmul.mubr.bf16.gmra.mxu0 %v14997_v6  ;;  %v20771_v6 = vld [vmem:[%s26304_s7 + $0x290] sm:$0xff]  ;;  %v2260_v41 = vrot.slane %v20751_v54, 1 }
 0x217   : > { %4119 = vmatprep.mubr.bf16.mxu0 %v15006_v4  ;;  %v2269_v3 = vsel %vm2024_vm1, %v2266_v52, %v2268_v39  ;;  %v15022_v34 = vcombine.high %v20771_v6, %v20776_v15  ;;  %v14980_v4 = vcombine.high %v2561_v47, %v2565_v29  ;;  %v2614_v39 = vld [vmem:[%s26304_s7 + $0x2f0] sm:$0xff] }
 0x218   : > { %4230 = vmatpush1.bf16.msra.mxu1 %v2736_v18  ;;  %v15013_v18 = vcombine.low %v20721_v14, %v20726_v33  ;;  %v2263_v21 = vsel %vm2024_vm1, %v2260_v41, %v2262_v42  ;;  %v2515_v14 = vmax.f32 %v20760_v11, %v2265_v40  ;;  %v2622_v11 = vld [vmem:[%s26304_s7 + $0x330] sm:$0xff] }
 0x219   : > { %4231 = vmatprep.subr.bf16.mxu1 %v26325_v35  ;;  %v2514_v32 = vmax.f32 %v20751_v54, %v2263_v21  ;;  %v2250_v54 = vrot.slane %v1889_v8, 1  ;;  %v15038_v29 = vcombine.high %v2618_v62, %v2622_v11 }
 0x21b   : > { %3872 = vmatmul.mubr.bf16.gmra.mxu1 %v14955_v28  ;;  %v20809_v28 = vmax.f32 %v1763_v53, %v1767_v1  ;;  %v2610_v53 = vld [vmem:[%s26304_s7 + $0x2d0] sm:$0xff]  ;;  %v2261_v1 = vsel %vm2024_vm1, %v2258_v24, %v2260_v41  ;;  %v2251_v41 = vsel %vm2024_vm1, %v2248_v55, %v2250_v54 }
 0x21c   : > { %4232 = vmatpush1.bf16.msra.mxu1 %v2735_v44  ;;  %3879 = vmatprep.mubr.bf16.mxu1 %v14964_v45  ;;  %v2517_v44 = vmax.f32 %v20746_v5, %v2269_v3  ;;  %v2513_v26 = vmax.f32 %v20793_v56, %v2261_v1  ;;  %v2743_v5 = vpack.c.bf16 %v2515_v14, %v2514_v32 }
 0x21d   : > { %4233 = vmatprep.subr.bf16.mxu1 %v26325_v35  ;;  %v2254_v33 = vrot.slane %v20809_v28, 1  ;;  %v15029_v47 = vcombine.low %v2610_v53, %v2614_v39 }
 0x21e   : > { %4120 = vmatmul.mubr.bf16.gmra.mxu0 %v15005_v46  ;;  %v20765_v12 = vpop.f32.mrf.mxu1  ;;  %v2569_v46 = vld [vmem:[%s26304_s7 + $0x188] sm:$0xff] }
 0x21f   : > { %4127 = vmatprep.mubr.bf16.mxu0 %v15014_v59  ;;  %v2512_v59 = vmax.f32 %v20781_v20, %v2259_v48  ;;  %v2257_v10 = vsel %vm2024_vm1, %v2254_v33, %v2256_v57  ;;  %v2577_v20 = vld [vmem:[%s26304_s7 + $0x1c8] sm:$0xff]  ;;  %v14987_v42 = vcombine.low %v2569_v46, %v2573_v23 }
 0x220   : > { %4234 = vmatpush1.bf16.msra.mxu1 %v20455_v36  ;;  %v3619_v36 = vsel %vm3617_vm2, %v3618_v27, 0  ;;  %v3659_v17 = vpop.f32.mrf.mxu1 }
 0x221   : > { %4235 = vmatprep.subr.bf16.mxu1 %v26325_v35  ;;  %v3621_v45 = vand.u32 %v3619_v36, %v2745_v58  ;;  %v2511_v36 = vmax.f32 %v20809_v28, %v2257_v10  ;;  %v2581_v58 = vld [vmem:[%s26304_s7 + $0x1e8] sm:$0xff]  ;;  %v2508_v17 = vmax.f32 %v20570_v7, %v2251_v41 }
 0x222   : > { %v20804_v16 = vpop.f32.mrf.mxu1  ;;  %v2585_v28 = vld [vmem:[%s26304_s7 + $0x208] sm:$0xff]  ;;  %v14995_v21 = vcombine.low %v2577_v20, %v2581_v58 }
 0x223   : > { %3880 = vmatmul.mubr.bf16.gmra.mxu1 %v14963_v61  ;;  %v14988_v61 = vcombine.high %v2569_v46, %v2573_v23  ;;  %v2642_v46 = vld [vmem:[%s26304_s7 + $0x3d0] sm:$0xff] }
 0x224   : > { %4236 = vmatpush1.bf16.msra.mxu1 %v20421_v30  ;;  %3887 = vmatprep.mubr.bf16.mxu1 %v14972_v2  ;;  %v2267_v30 = vsel %vm2024_vm1, %v2264_v63, %v2266_v52  ;;  %v3662_v37 = vpop.f32.mrf.mxu1  ;;  %v2255_v2 = vsel %vm2024_vm1, %v2252_v43, %v2254_v33  ;;  %v2742_v63 = vpack.c.bf16 %v2513_v26, %v2512_v59  ;;  %v2646_v23 = vld [vmem:[%s26304_s7 + $0x3f0] sm:$0xff]  ;;  %v2605_v26 = vld [vmem:[%s26304_s7 + $0x2a8] sm:$0xff] }
 0x225   : > { %4237 = vmatprep.subr.bf16.mxu1 %v26325_v35  ;;  %v2516_v31 = vmax.f32 %v20742_v49, %v2267_v30  ;;  %v15030_v49 = vcombine.high %v2610_v53, %v2614_v39  ;;  %v2510_v52 = vmax.f32 %v20802_v22, %v2255_v2  ;;  %v14996_v30 = vcombine.high %v2577_v20, %v2581_v58  ;;  %v2626_v22 = vld [vmem:[%s26304_s7 + $0x350] sm:$0xff] }
 0x226   : > { %4128 = vmatmul.mubr.bf16.gmra.mxu0 %v15013_v18  ;;  %v20819_v50 = vpop.f32.mrf.mxu1  ;;  %v2638_v53 = vld [vmem:[%s26304_s7 + $0x3b0] sm:$0xff]  ;;  %v15062_v59 = vcombine.high %v2642_v46, %v2646_v23 }
 0x227   : > { %4135 = vmatprep.mubr.bf16.mxu0 %v15022_v34  ;;  %v2744_v60 = vpack.c.bf16 %v2517_v44, %v2516_v31  ;;  %v2741_v3 = vpack.c.bf16 %v2511_v36, %v2510_v52  ;;  %v2589_v44 = vld [vmem:[%s26304_s7 + $0x228] sm:$0xff] }
 0x228   : > { %4238 = vmatpush1.bf16.msra.mxu1 %v20423_v19  ;;  %v15021_v19 = vcombine.low %v20771_v6, %v20776_v15  ;;  %v3667_v0 = vpop.f32.mrf.mxu1  ;;  %v2253_v6 = vsel %vm2024_vm1, %v2250_v54, %v2252_v43  ;;  %v15004_v24 = vcombine.high %v2585_v28, %v2589_v44  ;;  %v2593_v43 = vld [vmem:[%s26304_s7 + $0x248] sm:$0xff] }
 0x229   : > { %4243 = vmatprep.subr.bf16.mxu1 %v26325_v35  ;;  %v2509_v56 = vmax.f32 %v1889_v8, %v2253_v6  ;;  %v15003_v8 = vcombine.low %v2585_v28, %v2589_v44  ;;  %v2609_v52 = vld [vmem:[%s26304_s7 + $0x2c8] sm:$0xff]  ;;  %v15061_v6 = vcombine.low %v2642_v46, %v2646_v23 }
 0x22a   : > { %v20844_v25 = vpop.f32.mrf.mxu1  ;;  %v2613_v36 = vld [vmem:[%s26304_s7 + $0x2e8] sm:$0xff] }
 0x22b   : > { %3888 = vmatmul.mubr.bf16.gmra.mxu1 %v14971_v9  ;;  %v2630_v9 = vld [vmem:[%s26304_s7 + $0x370] sm:$0xff]  ;;  %v15028_v58 = vcombine.high %v2609_v52, %v2613_v36  ;;  %v2633_v46 = vld [vmem:[%s26304_s7 + $0x388] sm:$0xff] }
 0x22c   : > { %4244 = vmatpush2.bf16.msra.mxu1 %v3621_v45  ;;  %3895 = vmatprep.mubr.bf16.mxu1 %v14980_v4  ;;  %v3670_v13 = vpop.f32.mrf.mxu1  ;;  %v2740_v4 = vpack.c.bf16 %v2509_v56, %v2508_v17  ;;  %v15037_v45 = vcombine.low %v2618_v62, %v2622_v11  ;;  %v15046_v31 = vcombine.high %v2626_v22, %v2630_v9  ;;  %v2650_v62 = vld [vmem:[%s26304_s7 + $0x410] sm:$0xff]  ;;  %v2617_v17 = vld [vmem:[%s26304_s7 + $0x308] sm:$0xff] }
 0x22d   : > { %4245 = vmatprep.subr.bf16.mxu1 %v26325_v35  ;;  %v15045_v32 = vcombine.low %v2626_v22, %v2630_v9  ;;  %v2654_v11 = vld [vmem:[%s26304_s7 + $0x430] sm:$0xff]  ;;  %v2637_v23 = vld [vmem:[%s26304_s7 + $0x3a8] sm:$0xff] }
 0x22e   : > { %4136 = vmatmul.mubr.bf16.gmra.mxu0 %v15021_v19  ;;  %v20851_v27 = vpop.f32.mrf.mxu1  ;;  %v2634_v19 = vld [vmem:[%s26304_s7 + $0x390] sm:$0xff] }
 0x22f   : > { %4143 = vmatprep.mubr.bf16.mxu0 %v15030_v49  ;;  %v15054_v14 = vcombine.high %v2634_v19, %v2638_v53  ;;  %v2662_v56 = vld [vmem:[%s26304_s7 + $0x470] sm:$0xff] }
 0x230   : > { %4246 = vmatpush2.bf16.msra.mxu1 %v2744_v60  ;;  %v3675_v15 = vpop.f32.mrf.mxu1  ;;  %v2597_v60 = vld [vmem:[%s26304_s7 + $0x268] sm:$0xff] }
 0x231   : > { %4247 = vmatprep.subr.bf16.mxu1 %v26325_v35  ;;  %v15012_v1 = vcombine.high %v2593_v43, %v2597_v60  ;;  %v15011_v2 = vcombine.low %v2593_v43, %v2597_v60  ;;  %v15070_v15 = vcombine.high %v2650_v62, %v2654_v11 }
 0x232   : > { %v20872_v18 = vpop.f32.mrf.mxu1 }
 0x233   : > { %3896 = vmatmul.mubr.bf16.gmra.mxu1 %v14979_v51  ;;  %v2601_v51 = vld [vmem:[%s26304_s7 + $0x288] sm:$0xff] }
 0x234   : > { %4248 = vmatpush2.bf16.msra.mxu1 %v2743_v5  ;;  %3903 = vmatprep.mubr.bf16.mxu1 %v14988_v61  ;;  %v3678_v55 = vpop.f32.mrf.mxu1  ;;  %v15053_v5 = vcombine.low %v2634_v19, %v2638_v53  ;;  %v15020_v54 = vcombine.high %v2601_v51, %v2605_v26  ;;  %v15019_v20 = vcombine.low %v2601_v51, %v2605_v26 }
 0x235   : > { %4249 = vmatprep.subr.bf16.mxu1 %v26325_v35  ;;  %v15069_v55 = vcombine.low %v2650_v62, %v2654_v11  ;;  %v2641_v11 = vld [vmem:[%s26304_s7 + $0x3c8] sm:$0xff] }
 0x236   : > { %4144 = vmatmul.mubr.bf16.gmra.mxu0 %v15029_v47  ;;  %v20876_v34 = vpop.f32.mrf.mxu1 }
 0x237   : > { %4151 = vmatprep.mubr.bf16.mxu0 %v15038_v29 }
 0x238   : > { %4250 = vmatpush2.bf16.msra.mxu1 %v2742_v63  ;;  %v3683_v7 = vpop.f32.mrf.mxu1 }
 0x239   : > { %4251 = vmatprep.subr.bf16.mxu1 %v26325_v35 }
 0x23a   : > { %v20891_v57 = vpop.f32.mrf.mxu1 }
 0x23b   : > { %3904 = vmatmul.mubr.bf16.gmra.mxu1 %v14987_v42  ;;  %v2658_v42 = vld [vmem:[%s26304_s7 + $0x450] sm:$0xff] }
 0x23c   : > { %4252 = vmatpush2.bf16.msra.mxu1 %v2741_v3  ;;  %3911 = vmatprep.mubr.bf16.mxu1 %v14996_v30  ;;  %v3686_v40 = vpop.f32.mrf.mxu1  ;;  %v2621_v30 = vld [vmem:[%s26304_s7 + $0x328] sm:$0xff]  ;;  %v15078_v22 = vcombine.high %v2658_v42, %v2662_v56  ;;  %v15077_v19 = vcombine.low %v2658_v42, %v2662_v56 }
 0x23d   : > { %4253 = vmatprep.subr.bf16.mxu1 %v26325_v35  ;;  %v15036_v7 = vcombine.high %v2617_v17, %v2621_v30  ;;  %v2629_v40 = vld [vmem:[%s26304_s7 + $0x368] sm:$0xff]  ;;  %v15035_v43 = vcombine.low %v2617_v17, %v2621_v30 }
 0x23e   : > { %4152 = vmatmul.mubr.bf16.gmra.mxu0 %v15037_v45  ;;  %v20893_v37 = vpop.f32.mrf.mxu1  ;;  %v2666_v45 = vld [vmem:[%s26304_s7 + $0x490] sm:$0xff]  ;;  %v2649_v56 = vld [vmem:[%s26304_s7 + $0x408] sm:$0xff] }
 0x23f   : > { %4159 = vmatprep.mubr.bf16.mxu0 %v15046_v31  ;;  %v2670_v31 = vld [vmem:[%s26304_s7 + $0x4b0] sm:$0xff] }
 0x240   : > { %4254 = vmatpush2.bf16.msra.mxu1 %v2740_v4  ;;  %v3691_v39 = vpop.f32.mrf.mxu1  ;;  %v15027_v4 = vcombine.low %v2609_v52, %v2613_v36  ;;  %v15086_v53 = vcombine.high %v2666_v45, %v2670_v31 }
 0x242   : > { %v20907_v33 = vpop.f32.mrf.mxu1 }
 0x243   : > { %3912 = vmatmul.mubr.bf16.gmra.mxu1 %v14995_v21 }
 0x244   : > { %3919 = vmatprep.mubr.bf16.mxu1 %v15004_v24  ;;  %v3694_v0 = vpop.f32.mrf.mxu1  ;;  %v2625_v24 = vld [vmem:[%s26304_s7 + $0x348] sm:$0xff] }
 0x245   : > { %v15044_v60 = vcombine.high %v2625_v24, %v2629_v40 }
 0x246   : > { %4160 = vmatmul.mubr.bf16.gmra.mxu0 %v15045_v32  ;;  %v20909_v48 = vpop.f32.mrf.mxu1 }
 0x247   : > { %4167 = vmatprep.mubr.bf16.mxu0 %v15054_v14 }
 0x248   : > { %v3699_v49 = vpop.f32.mrf.mxu1 }
 0x249   : > { %v15085_v49 = vcombine.low %v2666_v45, %v2670_v31  ;;  %v2657_v45 = vld [vmem:[%s26304_s7 + $0x448] sm:$0xff] }
 0x24a   : > { %v20923_v61 = vpop.f32.mrf.mxu1  ;;  %v2661_v31 = vld [vmem:[%s26304_s7 + $0x468] sm:$0xff] }
 0x24b   : > { %3920 = vmatmul.mubr.bf16.gmra.mxu1 %v15003_v8  ;;  %v2674_v8 = vld [vmem:[%s26304_s7 + $0x4d0] sm:$0xff] }
 0x24c   : > { %3927 = vmatprep.mubr.bf16.mxu1 %v15012_v1  ;;  %v3702_v10 = vpop.f32.mrf.mxu1  ;;  %v2678_v1 = vld [vmem:[%s26304_s7 + $0x4f0] sm:$0xff] }
 0x24d   : > { %v15094_v51 = vcombine.high %v2674_v8, %v2678_v1  ;;  %v2682_v10 = vld [vmem:[%s26304_s7 + $0x510] sm:$0x77]  ;;  %v15093_v52 = vcombine.low %v2674_v8, %v2678_v1  ;;  %v15075_v1 = vcombine.low %v2657_v45, %v2661_v31 }
 0x24e   : > { %4168 = vmatmul.mubr.bf16.gmra.mxu0 %v15053_v5  ;;  %v20925_v13 = vpop.f32.mrf.mxu1  ;;  %v15043_v5 = vcombine.low %v2625_v24, %v2629_v40  ;;  %v15102_v36 = vcombine.high %v2682_v10, %v2682_v10  ;;  %v15101_v17 = vcombine.low %v2682_v10, %v2682_v10  ;;  %v15076_v40 = vcombine.high %v2657_v45, %v2661_v31 }
 0x24f   : > { %4175 = vmatprep.mubr.bf16.mxu0 %v15062_v59  ;;  %v15052_v59 = vcombine.high %v2633_v46, %v2637_v23 }
 0x250   : > { %v3707_v63 = vpop.f32.mrf.mxu1 }
 0x251   : > { %v2645_v63 = vld [vmem:[%s26304_s7 + $0x3e8] sm:$0xff] }
 0x252   : > { %v20939_v41 = vpop.f32.mrf.mxu1 }
 0x253   : > { %3928 = vmatmul.mubr.bf16.gmra.mxu1 %v15011_v2 }
 0x254   : > { %3935 = vmatprep.mubr.bf16.mxu1 %v15020_v54  ;;  %v3710_v47 = vpop.f32.mrf.mxu1 }
 0x256   : > { %4176 = vmatmul.mubr.bf16.gmra.mxu0 %v15061_v6  ;;  %v20941_v29 = vpop.f32.mrf.mxu1 }
 0x257   : > { %4183 = vmatprep.mubr.bf16.mxu0 %v15070_v15  ;;  %v15051_v15 = vcombine.low %v2633_v46, %v2637_v23 }
 0x258   : > { %v3715_v3 = vpop.f32.mrf.mxu1 }
 0x259   : > { %v2653_v3 = vld [vmem:[%s26304_s7 + $0x428] sm:$0xff] }
 0x25a   : > { %v20955_v9 = vpop.f32.mrf.mxu1  ;;  %v15067_v24 = vcombine.low %v2649_v56, %v2653_v3 }
 0x25b   : > { %3936 = vmatmul.mubr.bf16.gmra.mxu1 %v15019_v20  ;;  %v15060_v20 = vcombine.high %v2641_v11, %v2645_v63 }
 0x25c   : > { %3943 = vmatprep.mubr.bf16.mxu1 %v15028_v58  ;;  %v3718_v28 = vpop.f32.mrf.mxu1 }
 0x25e   : > { %4184 = vmatmul.mubr.bf16.gmra.mxu0 %v15069_v55  ;;  %v20957_v44 = vpop.f32.mrf.mxu1  ;;  %v15059_v55 = vcombine.low %v2641_v11, %v2645_v63 }
 0x25f   : > { %4191 = vmatprep.mubr.bf16.mxu0 %v15078_v22  ;;  %v15068_v22 = vcombine.high %v2649_v56, %v2653_v3 }
 0x260   : > { %v3723_v21 = vpop.f32.mrf.mxu1 }
 0x262   : > { %v20971_v39 = vpop.f32.mrf.mxu1 }
 0x263   : > { %3944 = vmatmul.mubr.bf16.gmra.mxu1 %v15027_v4 }
 0x264   : > { %3951 = vmatprep.mubr.bf16.mxu1 %v15036_v7  ;;  %v3726_v32 = vpop.f32.mrf.mxu1 }
 0x265   : > { %v2669_v32 = vld [vmem:[%s26304_s7 + $0x4a8] sm:$0xff] }
 0x266   : > { %4192 = vmatmul.mubr.bf16.gmra.mxu0 %v15077_v19  ;;  %v20973_v14 = vpop.f32.mrf.mxu1 }
 0x267   : > { %4199 = vmatprep.mubr.bf16.mxu0 %v15086_v53 }
 0x268   : > { %v3731_v0 = vpop.f32.mrf.mxu1 }
 0x26a   : > { %v20987_v26 = vpop.f32.mrf.mxu1 }
 0x26b   : > { %3952 = vmatmul.mubr.bf16.gmra.mxu1 %v15035_v43 }
 0x26c   : > { %3959 = vmatprep.mubr.bf16.mxu1 %v15044_v60  ;;  %v3734_v2 = vpop.f32.mrf.mxu1  ;;  %v2665_v60 = vld [vmem:[%s26304_s7 + $0x488] sm:$0xff] }
 0x26d   : > { %v15084_v0 = vcombine.high %v2665_v60, %v2669_v32  ;;  %v15083_v2 = vcombine.low %v2665_v60, %v2669_v32 }
 0x26e   : > { %4200 = vmatmul.mubr.bf16.gmra.mxu0 %v15085_v49  ;;  %v20989_v54 = vpop.f32.mrf.mxu1 }
 0x26f   : > { %4207 = vmatprep.mubr.bf16.mxu0 %v15094_v51  ;;  %v2673_v51 = vld [vmem:[%s26304_s7 + $0x4c8] sm:$0xff] }
 0x270   : > { %v3739_v62 = vpop.f32.mrf.mxu1 }
 0x272   : > { %v21000_v6 = vpop.f32.mrf.mxu1 }
 0x273   : > { %3960 = vmatmul.mubr.bf16.gmra.mxu1 %v15043_v5  ;;  %v2677_v5 = vld [vmem:[%s26304_s7 + $0x4e8] sm:$0xff] }
 0x274   : > { %3967 = vmatprep.mubr.bf16.mxu1 %v15052_v59  ;;  %v3742_v58 = vpop.f32.mrf.mxu1  ;;  %v15092_v10 = vcombine.high %v2673_v51, %v2677_v5 }
 0x276   : > { %4208 = vmatmul.mubr.bf16.gmra.mxu0 %v15093_v52  ;;  %v2681_v52 = vld [vmem:[%s26304_s7 + $0x508] sm:$0x77] }
 0x277   : > { %4215 = vmatprep.mubr.bf16.mxu0 %v15102_v36  ;;  %v15099_v45 = vcombine.low %v2681_v52, %v2681_v52 }
 0x278   : > { %v21002_v47 = vpop.f32.mrf.mxu1 }
 0x27a   : > { %v3747_v42 = vpop.f32.mrf.mxu1 }
 0x27b   : > { %3968 = vmatmul.mubr.bf16.gmra.mxu1 %v15051_v15  ;;  %v15091_v15 = vcombine.low %v2673_v51, %v2677_v5 }
 0x27c   : > { %3975 = vmatprep.mubr.bf16.mxu1 %v15060_v20  ;;  %v21010_v30 = vpop.f32.mrf.mxu1  ;;  %v15100_v20 = vcombine.high %v2681_v52, %v2681_v52 }
 0x27e   : > { %v3750_v4 = vpop.f32.mrf.mxu1  ;;  %4216 = vmatmul.mubr.bf16.gmra.mxu0 %v15101_v17 }
 0x281   : > { %v21012_v7 = vpop.f32.mrf.mxu1 }
 0x283   : > { %3976 = vmatmul.mubr.bf16.gmra.mxu1 %v15059_v55  ;;  %v3755_v28 = vpop.f32.mrf.mxu1  ;;  %v2523_v55 = vld [vmem:[%s26304_s7 + $0x18] sm:$0xff] }
 0x284   : > { %3983 = vmatprep.mubr.bf16.mxu1 %v15068_v22  ;;  %v2527_v22 = vld [vmem:[%s26304_s7 + $0x38] sm:$0xff] }
 0x285   : > { %v21020_v21 = vpop.f32.mrf.mxu1  ;;  %v14943_v51 = vcombine.low %v2523_v55, %v2527_v22 }
 0x287   : > { %v3758_v19 = vpop.f32.mrf.mxu1 }
 0x28b   : > { %v21022_v53 = vpop.f32.mrf.mxu1  ;;  %3984 = vmatmul.mubr.bf16.gmra.mxu1 %v15067_v24  ;;  %v14944_v24 = vcombine.high %v2523_v55, %v2527_v22 }
 0x28c   : > { %3991 = vmatprep.mubr.bf16.mxu1 %v15076_v40 }
 0x28d   : > { %v3763_v43 = vpop.f32.mrf.mxu1 }
 0x28f   : > { %v21030_v8 = vpop.f32.mrf.mxu1 }
 0x291   : > { %v3766_v46 = vpop.f32.mrf.mxu1 }
 0x293   : > { %v21032_v23 = vpop.f32.mrf.mxu1  ;;  %3992 = vmatmul.mubr.bf16.gmra.mxu1 %v15075_v1  ;;  %v2531_v1 = vld [vmem:[%s26304_s7 + $0x58] sm:$0xff] }
 0x294   : > { %3999 = vmatprep.mubr.bf16.mxu1 %v15084_v0  ;;  %v2535_v0 = vld [vmem:[%s26304_s7 + $0x78] sm:$0xff] }
 0x295   : > { %v3771_v49 = vpop.f32.mrf.mxu1  ;;  %v14951_v55 = vcombine.low %v2531_v1, %v2535_v0 }
 0x297   : > { %v21040_v59 = vpop.f32.mrf.mxu1 }
 0x299   : > { %v3774_v62 = vpop.f32.mrf.mxu1 }
 0x29b   : > { %v21042_v11 = vpop.f32.mrf.mxu1  ;;  %4000 = vmatmul.mubr.bf16.gmra.mxu1 %v15083_v2  ;;  %v14952_v2 = vcombine.high %v2531_v1, %v2535_v0  ;;  %v2551_v1 = vld [vmem:[%s26304_s7 + $0xf8] sm:$0xff] }
 0x29c   : > { %4007 = vmatprep.mubr.bf16.mxu1 %v15092_v10 }
 0x29d   : > { %v3779_v63 = vpop.f32.mrf.mxu1 }
 0x29e   : > { %v21049_v42 = vpop.f32.mrf.mxu0 }
 0x29f   : > { %v21047_v36 = vpop.f32.mrf.mxu1 }
 0x2a0   : > { %v4059_v3 = vpop.f32.mrf.mxu0 }
 0x2a1   : > { %v3782_v58 = vpop.f32.mrf.mxu1 }
 0x2a2   : > { %v21059_v4 = vpop.f32.mrf.mxu0  ;;  %v2543_v58 = vld [vmem:[%s26304_s7 + $0xb8] sm:$0xff] }
 0x2a3   : > { %v21051_v56 = vpop.f32.mrf.mxu1  ;;  %4008 = vmatmul.mubr.bf16.gmra.mxu1 %v15091_v15 }
 0x2a4   : > { %4015 = vmatprep.mubr.bf16.mxu1 %v15100_v20  ;;  %v4062_v31 = vpop.f32.mrf.mxu0  ;;  %v2539_v20 = vld [vmem:[%s26304_s7 + $0x98] sm:$0xff] }
 0x2a5   : > { %v3787_v17 = vpop.f32.mrf.mxu1 }
 0x2a6   : > { %v21063_v19 = vpop.f32.mrf.mxu0 }
 0x2a7   : > { %v21061_v28 = vpop.f32.mrf.mxu1 }
 0x2a8   : > { %v4067_v60 = vpop.f32.mrf.mxu0 }
 0x2a9   : > { %v3790_v40 = vpop.f32.mrf.mxu1 }
 0x2aa   : > { %v21074_v46 = vpop.f32.mrf.mxu0 }
 0x2ab   : > { %v21065_v43 = vpop.f32.mrf.mxu1  ;;  %4016 = vmatmul.mubr.bf16.gmra.mxu1 %v15099_v45  ;;  %v14960_v45 = vcombine.high %v2539_v20, %v2543_v58 }
 0x2ac   : > { %15105 = vmatprep.mubr.msk.bf16.mxu1 %vm3553_vm3, %v14944_v24  ;;  %v4070_v5 = vpop.f32.mrf.mxu0 }
 0x2ad   : > { %v3795_v32 = vpop.f32.mrf.mxu1 }
 0x2ae   : > { %v21078_v62 = vpop.f32.mrf.mxu0 }
 0x2af   : > { %v21076_v49 = vpop.f32.mrf.mxu1 }
 0x2b0   : > { %v4075_v52 = vpop.f32.mrf.mxu0 }
 0x2b1   : > { %v3798_v10 = vpop.f32.mrf.mxu1 }
 0x2b2   : > { %v21089_v3 = vpop.f32.mrf.mxu0 }
 0x2b3   : > { %v21080_v63 = vpop.f32.mrf.mxu1  ;;  %4256 = vmatmul.mubr.bf16.vlgmr.msra.gmra.mxu1 %v14943_v51  ;;  %v2547_v51 = vld [vmem:[%s26304_s7 + $0xd8] sm:$0xff] }
 0x2b4   : > { %15106 = vmatprep.mubr.msk.bf16.mxu1 %vm3553_vm3, %v14952_v2  ;;  %v4078_v22 = vpop.f32.mrf.mxu0  ;;  %v14959_v2 = vcombine.low %v2539_v20, %v2543_v58  ;;  %v14968_v52 = vcombine.high %v2547_v51, %v2551_v1  ;;  %v2559_v20 = vld [vmem:[%s26304_s7 + $0x138] sm:$0xff] }
 0x2b5   : > { %v3803_v15 = vpop.f32.mrf.mxu1 }
 0x2b6   : > { %v21093_v24 = vpop.f32.mrf.mxu0 }
 0x2b7   : > { %v21091_v17 = vpop.f32.mrf.mxu1 }
 0x2b8   : > { %26406 = vst [vmem:[#allocation6_spill] sm:$0xff] %v21091_v17  ;;  %v4083_v60 = vpop.f32.mrf.mxu0 }
 0x2b9   : > { %v3806_v31 = vpop.f32.mrf.mxu1  ;;  %v2555_v60 = vld [vmem:[%s26304_s7 + $0x118] sm:$0xff] }
 0x2ba   : > { %v21104_v0 = vpop.f32.mrf.mxu0  ;;  %v14976_v35 = vcombine.high %v2555_v60, %v2559_v20 }
 0x2bb   : > { %v21095_v40 = vpop.f32.mrf.mxu1  ;;  %4264 = vmatmul.mubr.bf16.gmra.mxu1 %v14951_v55 }
 0x2bc   : > { %26407 = vst [vmem:[#allocation7_spill] sm:$0xff] %v21095_v40  ;;  %15107 = vmatprep.mubr.msk.bf16.mxu1 %vm3553_vm3, %v14960_v45  ;;  %v4086_v10 = vpop.f32.mrf.mxu0  ;;  %v17868_v40 = vld [vmem:[%s26300_s3 + $0x18] sm:$0xff]  }
 0x2bd   : > { %v3811_v32 = vpop.f32.mrf.mxu1  ;;  %v14967_v10 = vcombine.low %v2547_v51, %v2551_v1  ;;  %v2567_v51 = vld [vmem:[%s26304_s7 + $0x178] sm:$0xff]  ;;  %17110 = vmatprep.subr.bf16.mxu0 %v17868_v40 }
 0x2be   : > { %v21108_v55 = vpop.f32.mrf.mxu0  ;;  %17111 = vmatpush3.bf16.msra.mxu0 %v17868_v40 }
 0x2bf   : > { %v21106_v5 = vpop.f32.mrf.mxu1 }
 0x2c0   : > { %26408 = vst [vmem:[#allocation8_spill] sm:$0xff] %v21106_v5  ;;  %v4091_v45 = vpop.f32.mrf.mxu0  ;;  %v2563_v5 = vld [vmem:[%s26304_s7 + $0x158] sm:$0xff] }
 0x2c1   : > { %v3814_v15 = vpop.f32.mrf.mxu1 }
 0x2c2   : > { %v21119_v58 = vpop.f32.mrf.mxu0 }
 0x2c3   : > { %v21110_v22 = vpop.f32.mrf.mxu1  ;;  %4272 = vmatmul.mubr.bf16.gmra.mxu1 %v14959_v2 }
 0x2c4   : > { %26409 = vst [vmem:[#allocation9_spill] sm:$0xff] %v21110_v22  ;;  %15108 = vmatprep.mubr.msk.bf16.mxu1 %vm3553_vm3, %v14968_v52  ;;  %v4094_v15 = vpop.f32.mrf.mxu0 }
 0x2c5   : > { %v3819_v31 = vpop.f32.mrf.mxu1 }
 0x2c6   : > { %v21121_v2 = vpop.f32.mrf.mxu0 }
 0x2c7   : > { %v3820_v32 = vpop.f32.mrf.mxu1 }
 0x2c8   : > { %v4099_v52 = vpop.f32.mrf.mxu0 }
 0x2c9   : > { %v3821_v38 = vpop.f32.mrf.mxu1 }
 0x2ca   : > { %v21131_v1 = vpop.f32.mrf.mxu0 }
 0x2cb   : > { %v3857_v45 = vpop.f32.mrf.mxu1  ;;  %4280 = vmatmul.mubr.bf16.gmra.mxu1 %v14967_v10  ;;  %v14975_v10 = vcombine.low %v2555_v60, %v2559_v20  ;;  %v2571_v60 = vld [vmem:[%s26304_s7 + $0x198] sm:$0xff] }
 0x2cc   : > { %v3858_v31 = vadd.f32 %v3857_v45, %v20765_v12  ;;  %15109 = vmatprep.mubr.msk.bf16.mxu1 %vm3553_vm3, %v14976_v35  ;;  %v4102_v15 = vpop.f32.mrf.mxu0  ;;  %v14984_v35 = vcombine.high %v2563_v5, %v2567_v51 }
 0x2cd   : > { %v3859_v22 = vpop.f32.mrf.mxu1 }
 0x2ce   : > { %v21134_v38 = vadd.f32 %v21049_v42, %v3858_v31  ;;  %v21137_v45 = vpop.f32.mrf.mxu0 }
 0x2cf   : > { %v3860_v32 = vpop.f32.mrf.mxu1 }
 0x2d0   : > { %v3861_v12 = vadd.f32 %v3860_v32, %v20804_v16  ;;  %v4107_v42 = vpop.f32.mrf.mxu0 }
 0x2d1   : > { %v3862_v22 = vpop.f32.mrf.mxu1 }
 0x2d2   : > { %v21140_v52 = vadd.f32 %v21059_v4, %v3861_v12  ;;  %v2575_v4 = vld [vmem:[%s26304_s7 + $0x1b8] sm:$0xff]  ;;  %v21153_v20 = vpop.f32.mrf.mxu0 }
 0x2d3   : > { %v3865_v17 = vpop.f32.mrf.mxu1  ;;  %4288 = vmatmul.mubr.bf16.gmra.mxu1 %v14975_v10  ;;  %v14992_v12 = vcombine.high %v2571_v60, %v2575_v4 }
 0x2d4   : > { %26410 = vst [vmem:[#allocation10_spill] sm:$0xff] %v21140_v52  ;;  %v3866_v31 = vadd.f32 %v3865_v17, %v20819_v50  ;;  %15110 = vmatprep.mubr.msk.bf16.mxu1 %vm3553_vm3, %v14984_v35  ;;  %v14983_v50 = vcombine.low %v2563_v5, %v2567_v51  ;;  %v4110_v17 = vpop.f32.mrf.mxu0  ;;  %v2579_v5 = vld [vmem:[%s26304_s7 + $0x1d8] sm:$0xff] }
 0x2d5   : > { %v3867_v16 = vpop.f32.mrf.mxu1 }
 0x2d6   : > { %v21156_v32 = vadd.f32 %v21063_v19, %v3866_v31  ;;  %v21159_v22 = vpop.f32.mrf.mxu0 }
 0x2d7   : > { %v3868_v10 = vpop.f32.mrf.mxu1 }
 0x2d8   : > { %v3869_v15 = vadd.f32 %v3868_v10, %v20844_v25  ;;  %v4115_v52 = vpop.f32.mrf.mxu0  ;;  %v2583_v25 = vld [vmem:[%s26304_s7 + $0x1f8] sm:$0xff] }
 0x2d9   : > { %v3870_v35 = vpop.f32.mrf.mxu1  ;;  %v14991_v52 = vcombine.low %v2571_v60, %v2575_v4  ;;  %v2587_v60 = vld [vmem:[%s26304_s7 + $0x218] sm:$0xff] }
 0x2da   : > { %v21162_v42 = vadd.f32 %v21074_v46, %v3869_v15  ;;  %v21172_v51 = vpop.f32.mrf.mxu0 }
 0x2db   : > { %v3873_v16 = vpop.f32.mrf.mxu1  ;;  %4296 = vmatmul.mubr.bf16.gmra.mxu1 %v14983_v50  ;;  %v15000_v50 = vcombine.high %v2579_v5, %v2583_v25 }
 0x2dc   : > { %v3874_v40 = vadd.f32 %v3873_v16, %v20851_v27  ;;  %15111 = vmatprep.mubr.msk.bf16.mxu1 %vm3553_vm3, %v14992_v12  ;;  %v4118_v10 = vpop.f32.mrf.mxu0 }
 0x2dd   : > { %v3875_v19 = vpop.f32.mrf.mxu1 }
 0x2de   : > { %v21175_v46 = vadd.f32 %v21078_v62, %v3874_v40  ;;  %v21178_v15 = vpop.f32.mrf.mxu0 }
 0x2df   : > { %v3876_v31 = vpop.f32.mrf.mxu1 }
 0x2e0   : > { %v3877_v27 = vadd.f32 %v3876_v31, %v20872_v18  ;;  %v4123_v16 = vpop.f32.mrf.mxu0  ;;  %v2591_v18 = vld [vmem:[%s26304_s7 + $0x238] sm:$0xff]  ;;  %v14999_v31 = vcombine.low %v2579_v5, %v2583_v25 }
 0x2e1   : > { %v3878_v17 = vpop.f32.mrf.mxu1  ;;  %v15008_v10 = vcombine.high %v2587_v60, %v2591_v18  ;;  %v2595_v5 = vld [vmem:[%s26304_s7 + $0x258] sm:$0xff] }
 0x2e2   : > { %v21181_v12 = vadd.f32 %v21089_v3, %v3877_v27  ;;  %v21191_v4 = vpop.f32.mrf.mxu0 }
 0x2e3   : > { %v3881_v35 = vpop.f32.mrf.mxu1  ;;  %4304 = vmatmul.mubr.bf16.gmra.mxu1 %v14991_v52 }
 0x2e4   : > { %v3882_v19 = vadd.f32 %v3881_v35, %v20876_v34  ;;  %15112 = vmatprep.mubr.msk.bf16.mxu1 %vm3553_vm3, %v15000_v50  ;;  %v4126_v52 = vpop.f32.mrf.mxu0 }
 0x2e5   : > { %v3883_v62 = vpop.f32.mrf.mxu1 }
 0x2e6   : > { %v21194_v3 = vadd.f32 %v21093_v24, %v3882_v19  ;;  %v21197_v50 = vpop.f32.mrf.mxu0 }
 0x2e7   : > { %v3884_v40 = vpop.f32.mrf.mxu1 }
 0x2e8   : > { %v3885_v34 = vadd.f32 %v3884_v40, %v20891_v57  ;;  %v4131_v16 = vpop.f32.mrf.mxu0  ;;  %v2599_v57 = vld [vmem:[%s26304_s7 + $0x278] sm:$0xff]  ;;  %v15007_v40 = vcombine.low %v2587_v60, %v2591_v18 }
 0x2e9   : > { %v3886_v27 = vpop.f32.mrf.mxu1  ;;  %v15016_v52 = vcombine.high %v2595_v5, %v2599_v57  ;;  %v2603_v60 = vld [vmem:[%s26304_s7 + $0x298] sm:$0xff] }
 0x2ea   : > { %v21200_v17 = vadd.f32 %v21104_v0, %v3885_v34  ;;  %v21210_v25 = vpop.f32.mrf.mxu0 }
 0x2eb   : > { %v3889_v35 = vpop.f32.mrf.mxu1  ;;  %4312 = vmatmul.mubr.bf16.gmra.mxu1 %v14999_v31 }
 0x2ec   : > { %v3890_v62 = vadd.f32 %v3889_v35, %v20893_v37  ;;  %15113 = vmatprep.mubr.msk.bf16.mxu1 %vm3553_vm3, %v15008_v10  ;;  %v4134_v31 = vpop.f32.mrf.mxu0 }
 0x2ed   : > { %v3891_v24 = vpop.f32.mrf.mxu1 }
 0x2ee   : > { %v21213_v0 = vadd.f32 %v21108_v55, %v3890_v62  ;;  %v21216_v10 = vpop.f32.mrf.mxu0 }
 0x2ef   : > { %v3892_v19 = vpop.f32.mrf.mxu1 }
 0x2f0   : > { %v3893_v37 = vadd.f32 %v3892_v19, %v20907_v33  ;;  %v4139_v16 = vpop.f32.mrf.mxu0  ;;  %v2607_v33 = vld [vmem:[%s26304_s7 + $0x2b8] sm:$0xff]  ;;  %v15015_v19 = vcombine.low %v2595_v5, %v2599_v57 }
 0x2f1   : > { %v3894_v34 = vpop.f32.mrf.mxu1  ;;  %v15024_v31 = vcombine.high %v2603_v60, %v2607_v33  ;;  %v2611_v5 = vld [vmem:[%s26304_s7 + $0x2d8] sm:$0xff] }
 0x2f2   : > { %v21219_v27 = vadd.f32 %v21119_v58, %v3893_v37  ;;  %v21229_v18 = vpop.f32.mrf.mxu0 }
 0x2f3   : > { %v3897_v35 = vpop.f32.mrf.mxu1  ;;  %4320 = vmatmul.mubr.bf16.gmra.mxu1 %v15007_v40 }
 0x2f4   : > { %v3898_v24 = vadd.f32 %v3897_v35, %v20909_v48  ;;  %15114 = vmatprep.mubr.msk.bf16.mxu1 %vm3553_vm3, %v15016_v52  ;;  %v4142_v40 = vpop.f32.mrf.mxu0 }
 0x2f5   : > { %v3899_v55 = vpop.f32.mrf.mxu1 }
 0x2f6   : > { %v21232_v58 = vadd.f32 %v21121_v2, %v3898_v24  ;;  %v21235_v52 = vpop.f32.mrf.mxu0 }
 0x2f7   : > { %v3900_v62 = vpop.f32.mrf.mxu1 }
 0x2f8   : > { %v3901_v48 = vadd.f32 %v3900_v62, %v20923_v61  ;;  %v4147_v16 = vpop.f32.mrf.mxu0  ;;  %v2615_v61 = vld [vmem:[%s26304_s7 + $0x2f8] sm:$0xff]  ;;  %v15023_v62 = vcombine.low %v2603_v60, %v2607_v33 }
 0x2f9   : > { %v3902_v37 = vpop.f32.mrf.mxu1  ;;  %v15032_v40 = vcombine.high %v2611_v5, %v2615_v61  ;;  %v2619_v60 = vld [vmem:[%s26304_s7 + $0x318] sm:$0xff] }
 0x2fa   : > { %v21238_v34 = vadd.f32 %v21131_v1, %v3901_v48  ;;  %v21248_v57 = vpop.f32.mrf.mxu0 }
 0x2fb   : > { %v3905_v35 = vpop.f32.mrf.mxu1  ;;  %4328 = vmatmul.mubr.bf16.gmra.mxu1 %v15015_v19 }
 0x2fc   : > { %v3906_v55 = vadd.f32 %v3905_v35, %v20925_v13  ;;  %15115 = vmatprep.mubr.msk.bf16.mxu1 %vm3553_vm3, %v15024_v31  ;;  %v4150_v19 = vpop.f32.mrf.mxu0 }
 0x2fd   : > { %v3907_v2 = vpop.f32.mrf.mxu1 }
 0x2fe   : > { %v21251_v1 = vadd.f32 %v21137_v45, %v3906_v55  ;;  %v21254_v31 = vpop.f32.mrf.mxu0 }
 0x2ff   : > { %v3908_v24 = vpop.f32.mrf.mxu1 }
 0x300   : > { %v3909_v13 = vadd.f32 %v3908_v24, %v20939_v41  ;;  %v4155_v16 = vpop.f32.mrf.mxu0  ;;  %v2623_v41 = vld [vmem:[%s26304_s7 + $0x338] sm:$0xff]  ;;  %v15031_v24 = vcombine.low %v2611_v5, %v2615_v61 }
 0x301   : > { %v3910_v48 = vpop.f32.mrf.mxu1 }
 0x302   : > { %v21257_v37 = vadd.f32 %v21153_v20, %v3909_v13  ;;  %v21267_v33 = vpop.f32.mrf.mxu0  ;;  %v17871_v20 = vld [vmem:[%s26300_s3 + $0x28] sm:$0xff]   ;;  %v15040_v13 = vcombine.high %v2619_v60, %v2623_v41 }
 0x303   : > { %v3913_v35 = vpop.f32.mrf.mxu1  ;;  %4336 = vmatmul.mubr.bf16.gmra.mxu1 %v15023_v62  ;;  %17190 = vmatprep.subr.bf16.mxu1 %v17871_v20 }
 0x304   : > { %v3914_v2 = vadd.f32 %v3913_v35, %v20941_v29  ;;  %15116 = vmatprep.mubr.msk.bf16.mxu1 %vm3553_vm3, %v15032_v40  ;;  %v4158_v62 = vpop.f32.mrf.mxu0  ;;  %17191 = vmatpush3.bf16.msra.mxu1 %v17871_v20  ;;  %v17872_v35 = vld [vmem:[%s26300_s3 + $0x20] sm:$0xff]  }
 0x305   : > { %v3915_v45 = vpop.f32.mrf.mxu1  ;;  %17192 = vmatprep.subr.bf16.mxu1 %v17872_v35 }
 0x306   : > { %v21273_v55 = vadd.f32 %v21159_v22, %v3914_v2  ;;  %v21276_v48 = vpop.f32.mrf.mxu0  ;;  %v2627_v45 = vld [vmem:[%s26304_s7 + $0x358] sm:$0xff] }
 0x307   : > { %v3916_v29 = vpop.f32.mrf.mxu1 }
 0x308   : > { %v3917_v19 = vadd.f32 %v3916_v29, %v20955_v9  ;;  %v4163_v2 = vpop.f32.mrf.mxu0  ;;  %v17873_v9 = vld [vmem:[%s26300_s3 + $0x10] sm:$0xff]   ;;  %17193 = vmatpush3.bf16.msra.mxu1 %v17872_v35 }
 0x309   : > { %v3918_v40 = vpop.f32.mrf.mxu1  ;;  %17112 = vmatprep.subr.bf16.mxu0 %v17873_v9 }
 0x30a   : > { %v21282_v16 = vadd.f32 %v21172_v51, %v3917_v19  ;;  %v2631_v51 = vld [vmem:[%s26304_s7 + $0x378] sm:$0xff]  ;;  %v21295_v20 = vpop.f32.mrf.mxu0  ;;  %17113 = vmatpush3.bf16.msra.mxu0 %v17873_v9 }
 0x30b   : > { %v3921_v22 = vpop.f32.mrf.mxu1  ;;  %4344 = vmatmul.mubr.bf16.gmra.mxu1 %v15031_v24  ;;  %v15039_v24 = vcombine.low %v2619_v60, %v2623_v41  ;;  %v2635_v60 = vld [vmem:[%s26304_s7 + $0x398] sm:$0xff] }
 0x30c   : > { %26411 = vst [vmem:[#allocation11_spill] sm:$0xff] %v21282_v16  ;;  %v3922_v5 = vadd.f32 %v3921_v22, %v20957_v44  ;;  %15117 = vmatprep.mubr.msk.bf16.mxu1 %vm3553_vm3, %v15040_v13  ;;  %v4166_v62 = vpop.f32.mrf.mxu0  ;;  %v15048_v13 = vcombine.high %v2627_v45, %v2631_v51 }
 0x30d   : > { %v3923_v61 = vpop.f32.mrf.mxu1 }
 0x30e   : > { %v21298_v29 = vadd.f32 %v21178_v15, %v3922_v5  ;;  %v21301_v35 = vpop.f32.mrf.mxu0  ;;  %v15047_v5 = vcombine.low %v2627_v45, %v2631_v51 }
 0x30f   : > { %v3924_v44 = vpop.f32.mrf.mxu1 }
 0x310   : > { %v3925_v19 = vadd.f32 %v3924_v44, %v20971_v39  ;;  %v4171_v61 = vpop.f32.mrf.mxu0  ;;  %v2639_v39 = vld [vmem:[%s26304_s7 + $0x3b8] sm:$0xff] }
 0x311   : > { %v3926_v40 = vpop.f32.mrf.mxu1 }
 0x312   : > { %v21304_v22 = vadd.f32 %v21191_v4, %v3925_v19  ;;  %v21314_v41 = vpop.f32.mrf.mxu0 }
 0x313   : > { %v3929_v2 = vpop.f32.mrf.mxu1  ;;  %4352 = vmatmul.mubr.bf16.gmra.mxu1 %v15039_v24  ;;  %v15056_v24 = vcombine.high %v2635_v60, %v2639_v39 }
 0x314   : > { %v3930_v16 = vadd.f32 %v3929_v2, %v20973_v14  ;;  %15118 = vmatprep.mubr.msk.bf16.mxu1 %vm3553_vm3, %v15048_v13  ;;  %v4174_v44 = vpop.f32.mrf.mxu0 }
 0x315   : > { %v3931_v15 = vpop.f32.mrf.mxu1 }
 0x316   : > { %v21317_v4 = vadd.f32 %v21197_v50, %v3930_v16  ;;  %v21320_v19 = vpop.f32.mrf.mxu0  ;;  %v2643_v16 = vld [vmem:[%s26304_s7 + $0x3d8] sm:$0xff]  ;;  %v15055_v15 = vcombine.low %v2635_v60, %v2639_v39 }
 0x317   : > { %v3932_v9 = vpop.f32.mrf.mxu1  ;;  %v2651_v60 = vld [vmem:[%s26304_s7 + $0x418] sm:$0xff] }
 0x318   : > { %v3933_v14 = vadd.f32 %v3932_v9, %v20987_v26  ;;  %v4179_v2 = vpop.f32.mrf.mxu0  ;;  %v2647_v26 = vld [vmem:[%s26304_s7 + $0x3f8] sm:$0xff] }
 0x319   : > { %v3934_v62 = vpop.f32.mrf.mxu1 }
 0x31a   : > { %v21323_v13 = vadd.f32 %v21210_v25, %v3933_v14  ;;  %v21333_v45 = vpop.f32.mrf.mxu0 }
 0x31b   : > { %v3937_v40 = vpop.f32.mrf.mxu1  ;;  %4360 = vmatmul.mubr.bf16.gmra.mxu1 %v15047_v5  ;;  %v15064_v5 = vcombine.high %v2643_v16, %v2647_v26 }
 0x31c   : > { %v3938_v61 = vadd.f32 %v3937_v40, %v20989_v54  ;;  %15119 = vmatprep.mubr.msk.bf16.mxu1 %vm3553_vm3, %v15056_v24  ;;  %v4182_v9 = vpop.f32.mrf.mxu0 }
 0x31d   : > { %v3939_v50 = vpop.f32.mrf.mxu1 }
 0x31e   : > { %v21336_v25 = vadd.f32 %v21216_v10, %v3938_v61  ;;  %v21339_v14 = vpop.f32.mrf.mxu0  ;;  %v15063_v50 = vcombine.low %v2643_v16, %v2647_v26  ;;  %v2659_v16 = vld [vmem:[%s26304_s7 + $0x458] sm:$0xff] }
 0x31f   : > { %v3940_v51 = vpop.f32.mrf.mxu1 }
 0x320   : > { %v3941_v54 = vadd.f32 %v3940_v51, %v21000_v6  ;;  %v4187_v40 = vpop.f32.mrf.mxu0  ;;  %v2655_v6 = vld [vmem:[%s26304_s7 + $0x438] sm:$0xff] }
 0x321   : > { %v3942_v44 = vpop.f32.mrf.mxu1 }
 0x322   : > { %v21342_v24 = vadd.f32 %v21229_v18, %v3941_v54  ;;  %v21352_v39 = vpop.f32.mrf.mxu0 }
 0x323   : > { %v3945_v62 = vpop.f32.mrf.mxu1  ;;  %4368 = vmatmul.mubr.bf16.gmra.mxu1 %v15055_v15  ;;  %v15072_v15 = vcombine.high %v2651_v60, %v2655_v6 }
 0x324   : > { %v3946_v2 = vadd.f32 %v3945_v62, %v21002_v47  ;;  %15120 = vmatprep.mubr.msk.bf16.mxu1 %vm3553_vm3, %v15064_v5  ;;  %v4190_v51 = vpop.f32.mrf.mxu0 }
 0x325   : > { %v3947_v10 = vpop.f32.mrf.mxu1 }
 0x326   : > { %v21355_v18 = vadd.f32 %v21235_v52, %v3946_v2  ;;  %v21358_v54 = vpop.f32.mrf.mxu0  ;;  %v15071_v10 = vcombine.low %v2651_v60, %v2655_v6  ;;  %v2667_v60 = vld [vmem:[%s26304_s7 + $0x498] sm:$0xff] }
 0x327   : > { %v3948_v61 = vpop.f32.mrf.mxu1 }
 0x328   : > { %v3949_v47 = vadd.f32 %v3948_v61, %v21010_v30  ;;  %v4195_v62 = vpop.f32.mrf.mxu0  ;;  %v2663_v30 = vld [vmem:[%s26304_s7 + $0x478] sm:$0xff] }
 0x329   : > { %v3950_v9 = vpop.f32.mrf.mxu1 }
 0x32a   : > { %v21361_v5 = vadd.f32 %v21248_v57, %v3949_v47  ;;  %v21371_v26 = vpop.f32.mrf.mxu0 }
 0x32b   : > { %v3953_v44 = vpop.f32.mrf.mxu1  ;;  %4376 = vmatmul.mubr.bf16.gmra.mxu1 %v15063_v50  ;;  %v15080_v50 = vcombine.high %v2659_v16, %v2663_v30 }
 0x32c   : > { %v3954_v40 = vadd.f32 %v3953_v44, %v21012_v7  ;;  %15121 = vmatprep.mubr.msk.bf16.mxu1 %vm3553_vm3, %v15072_v15  ;;  %v4198_v61 = vpop.f32.mrf.mxu0 }
 0x32d   : > { %v3955_v52 = vpop.f32.mrf.mxu1 }
 0x32e   : > { %v21374_v57 = vadd.f32 %v21254_v31, %v3954_v40  ;;  %v21377_v47 = vpop.f32.mrf.mxu0  ;;  %v15079_v52 = vcombine.low %v2659_v16, %v2663_v30  ;;  %v2675_v16 = vld [vmem:[%s26304_s7 + $0x4d8] sm:$0xff] }
 0x32f   : > { %v3956_v2 = vpop.f32.mrf.mxu1 }
 0x330   : > { %v3957_v7 = vadd.f32 %v3956_v2, %v21020_v21  ;;  %v4203_v44 = vpop.f32.mrf.mxu0  ;;  %v2671_v21 = vld [vmem:[%s26304_s7 + $0x4b8] sm:$0xff] }
 0x331   : > { %v3958_v51 = vpop.f32.mrf.mxu1 }
 0x332   : > { %v21380_v15 = vadd.f32 %v21267_v33, %v3957_v7  ;;  %v21390_v6 = vpop.f32.mrf.mxu0 }
 0x333   : > { %v3961_v9 = vpop.f32.mrf.mxu1  ;;  %4384 = vmatmul.mubr.bf16.gmra.mxu1 %v15071_v10  ;;  %v15088_v10 = vcombine.high %v2667_v60, %v2671_v21 }
 0x334   : > { %v3962_v62 = vadd.f32 %v3961_v9, %v21022_v53  ;;  %15122 = vmatprep.mubr.msk.bf16.mxu1 %vm3553_vm3, %v15080_v50  ;;  %v4206_v2 = vpop.f32.mrf.mxu0 }
 0x335   : > { %v3963_v31 = vpop.f32.mrf.mxu1 }
 0x336   : > { %v21393_v33 = vadd.f32 %v21276_v48, %v3962_v62  ;;  %v21396_v7 = vpop.f32.mrf.mxu0  ;;  %v15087_v31 = vcombine.low %v2667_v60, %v2671_v21  ;;  %v2683_v60 = vld [vmem:[%s26304_s7 + $0x518] sm:$0x77] }
 0x337   : > { %v3964_v40 = vpop.f32.mrf.mxu1 }
 0x338   : > { %v3965_v53 = vadd.f32 %v3964_v40, %v21030_v8  ;;  %v4211_v9 = vpop.f32.mrf.mxu0  ;;  %v2679_v8 = vld [vmem:[%s26304_s7 + $0x4f8] sm:$0xff] }
 0x339   : > { %v3966_v61 = vpop.f32.mrf.mxu1 }
 0x33a   : > { %v21399_v50 = vadd.f32 %v21295_v20, %v3965_v53  ;;  %v4212_v30 = vpop.f32.mrf.mxu0 }
 0x33b   : > { %v3969_v51 = vpop.f32.mrf.mxu1  ;;  %4392 = vmatmul.mubr.bf16.gmra.mxu1 %v15079_v52  ;;  %v15096_v52 = vcombine.high %v2675_v16, %v2679_v8 }
 0x33c   : > { %v3970_v44 = vadd.f32 %v3969_v51, %v21032_v23  ;;  %15123 = vmatprep.mubr.msk.bf16.mxu1 %vm3553_vm3, %v15088_v10  ;;  %v4214_v40 = vpop.f32.mrf.mxu0 }
 0x33d   : > { %v3971_v48 = vpop.f32.mrf.mxu1 }
 0x33e   : > { %v21410_v20 = vadd.f32 %v21301_v35, %v3970_v44  ;;  %v4217_v53 = vpop.f32.mrf.mxu0  ;;  %v15095_v48 = vcombine.low %v2675_v16, %v2679_v8  ;;  %v15103_v16 = vcombine.low %v2683_v60, %v2683_v60 }
 0x33f   : > { %v3972_v62 = vpop.f32.mrf.mxu1 }
 0x340   : > { %v3973_v23 = vadd.f32 %v3972_v62, %v21040_v59  ;;  %v4219_v51 = vpop.f32.mrf.mxu0 }
 0x341   : > { %v3974_v2 = vpop.f32.mrf.mxu1 }
 0x342   : > { %v21414_v10 = vadd.f32 %v21314_v41, %v3973_v23  ;;  %v4220_v21 = vpop.f32.mrf.mxu0 }
 0x343   : > { %v3977_v61 = vpop.f32.mrf.mxu1  ;;  %4400 = vmatmul.mubr.bf16.gmra.mxu1 %v15087_v31  ;;  %v15104_v31 = vcombine.high %v2683_v60, %v2683_v60 }
 0x344   : > { %v3978_v9 = vadd.f32 %v3977_v61, %v21042_v11  ;;  %15124 = vmatprep.mubr.msk.bf16.mxu1 %vm3553_vm3, %v15096_v52  ;;  %v4221_v41 = vpop.f32.mrf.mxu0 }
 0x345   : > { %v3979_v35 = vpop.f32.mrf.mxu1 }
 0x346   : > { %v21422_v59 = vadd.f32 %v21320_v19, %v3978_v9 }
 0x347   : > { %v3980_v44 = vpop.f32.mrf.mxu1 }
 0x348   : > { %v3981_v62 = vadd.f32 %v3980_v44, %v21047_v36 }
 0x349   : > { %v3982_v40 = vpop.f32.mrf.mxu1 }
 0x34a   : > { %v21426_v11 = vadd.f32 %v21333_v45, %v3981_v62 }
 0x34b   : > { %v3985_v23 = vpop.f32.mrf.mxu1  ;;  %4408 = vmatmul.mubr.bf16.gmra.mxu1 %v15095_v48 }
 0x34c   : > { %v3986_v52 = vadd.f32 %v3985_v23, %v21051_v56  ;;  %15125 = vmatprep.mubr.msk.bf16.mxu1 %vm3553_vm3, %v15104_v31 }
 0x34d   : > { %v3987_v2 = vpop.f32.mrf.mxu1 }
 0x34e   : > { %v21431_v19 = vadd.f32 %v21339_v14, %v3986_v52 }
 0x34f   : > { %v3988_v61 = vpop.f32.mrf.mxu1 }
 0x350   : > { %v3989_v8 = vadd.f32 %v3988_v61, %v21061_v28 }
 0x351   : > { %v3990_v36 = vpop.f32.mrf.mxu1 }
 0x352   : > { %v21435_v51 = vadd.f32 %v21352_v39, %v3989_v8 }
 0x353   : > { %v3993_v45 = vpop.f32.mrf.mxu1  ;;  %4416 = vmatmul.mubr.bf16.gmra.mxu1 %v15103_v16 }
 0x354   : > { %v3994_v9 = vadd.f32 %v3993_v45, %v21065_v43  ;;  %v26412_v43 = vld [vmem:[#allocation6_spill] sm:$0xff]  ;;  %v26415_v45 = vld [vmem:[#allocation9_spill] sm:$0xff] }
 0x355   : > { %v3995_v35 = vpop.f32.mrf.mxu1 }
 0x356   : > { %v21439_v56 = vadd.f32 %v21358_v54, %v3994_v9 }
 0x357   : > { %v3996_v21 = vpop.f32.mrf.mxu1 }
 0x358   : > { %v3997_v14 = vadd.f32 %v3996_v21, %v21076_v49  ;;  %v26413_v49 = vld [vmem:[#allocation7_spill] sm:$0xff] }
 0x359   : > { %v3998_v44 = vpop.f32.mrf.mxu1 }
 0x35a   : > { %v21443_v60 = vadd.f32 %v21371_v26, %v3997_v14 }
 0x35b   : > { %v4001_v28 = vpop.f32.mrf.mxu1 }
 0x35c   : > { %v4002_v48 = vadd.f32 %v4001_v28, %v21080_v63  ;;  %v26414_v63 = vld [vmem:[#allocation8_spill] sm:$0xff] }
 0x35d   : > { %v4003_v39 = vpop.f32.mrf.mxu1 }
 0x35e   : > { %v21447_v41 = vadd.f32 %v21377_v47, %v4002_v48  ;;  %v26416_v39 = vld [vmem:[#allocation10_spill] sm:$0xff] }
 0x35f   : > { %v4004_v62 = vpop.f32.mrf.mxu1 }
 0x360   : > { %v4005_v31 = vadd.f32 %v4004_v62, %v26412_v43 }
 0x361   : > { %v4006_v40 = vpop.f32.mrf.mxu1 }
 0x362   : > { %v21451_v54 = vadd.f32 %v21390_v6, %v4005_v31 }
 0x363   : > { %v4009_v23 = vpop.f32.mrf.mxu1 }
 0x364   : > { %v4010_v52 = vadd.f32 %v4009_v23, %v26413_v49 }
 0x365   : > { %v4011_v2 = vpop.f32.mrf.mxu1 }
 0x366   : > { %v21455_v26 = vadd.f32 %v21396_v7, %v4010_v52 }
 0x367   : > { %v4012_v61 = vpop.f32.mrf.mxu1 }
 0x368   : > { %v4013_v16 = vadd.f32 %v4012_v61, %v26414_v63 }
 0x369   : > { %v4014_v8 = vpop.f32.mrf.mxu1 }
 0x36a   : > { %v21458_v47 = vadd.f32 %v4212_v30, %v4013_v16  ;;  %v17874_v30 = vld [vmem:[%s26300_s3 + $0x8] sm:$0xff]  }
 0x36b   : > { %v4017_v36 = vpop.f32.mrf.mxu1  ;;  %17150 = vmatprep.subr.bf16.mxu0 %v17874_v30 }
 0x36c   : > { %v4018_v9 = vadd.f32 %v4017_v36, %v26415_v45 }
 0x36d   : > { %v4019_v35 = vpop.f32.mrf.mxu1 }
 0x36e   : > { %v21461_v21 = vadd.f32 %v4217_v53, %v4018_v9 }
 0x36f   : > { %v4020_v6 = vpop.f32.mrf.mxu1 }
 0x371   : > { %v4021_v14 = vpop.f32.mrf.mxu1 }
 0x373   : > { %v4257_v44 = vpop.f32.mrf.mxu1 }
 0x374   : > { %v4258_v7 = vadd.f32 %v4257_v44, %v21134_v38 }
 0x375   : > { %v4259_v28 = vpop.f32.mrf.mxu1 }
 0x377   : > { %v4260_v48 = vpop.f32.mrf.mxu1 }
 0x378   : > { %v4261_v62 = vadd.f32 %v4260_v48, %v26416_v39 }
 0x379   : > { %v4262_v43 = vpop.f32.mrf.mxu1 }
 0x37a   : > { %v21465_v31 = vpack.c.bf16 %v4261_v62, %v4258_v7 }
 0x37b   : > { %v4265_v40 = vpop.f32.mrf.mxu1 }
 0x37c   : > { %v4457_v23 = vshll.u32 %v21465_v31, 16  ;;  %v4266_v52 = vadd.f32 %v4265_v40, %v21156_v32  ;;  %v4455_v8 = vshrl.u32 %v21465_v31, 16  ;;  %v5095_v36 = vrot.slane %v21465_v31, 1 }
 0x37d   : > { %v4267_v53 = vpop.f32.mrf.mxu1 }
 0x37e   : > { %v4459_v61 = vrot.slane %v4457_v23, 1 }
 0x37f   : > { %v4268_v49 = vpop.f32.mrf.mxu1 }
 0x380   : > { %v4269_v2 = vadd.f32 %v4268_v49, %v21162_v42  ;;  %v4460_v32 = vor.u32 %v4459_v61, %v4455_v8 }
 0x381   : > { %v4270_v38 = vpop.f32.mrf.mxu1 }
 0x382   : > { %v21473_v63 = vpack.c.bf16 %v4269_v2, %v4266_v52 }
 0x383   : > { %v4273_v16 = vpop.f32.mrf.mxu1 }
 0x384   : > { %v5096_v45 = vrot.slane %v21473_v63, 1  ;;  %v4462_v9 = vshll.u32 %v21473_v63, 16  ;;  %v4466_v35 = vshrl.u32 %v21473_v63, 16  ;;  %v4274_v7 = vadd.f32 %v4273_v16, %v21175_v46  ;;  %v17875_v46 = vld [vmem:[%s26300_s3 + $0x48] sm:$0xff]  }
 0x385   : > { %v4275_v6 = vpop.f32.mrf.mxu1  ;;  %17270 = vmatprep.subr.bf16.mxu1 %v17875_v46 }
 0x386   : > { %v5097_v42 = vsel %vm2024_vm1, %v5095_v36, %v5096_v45  ;;  %v4464_v14 = vrot.slane %v4462_v9, 1  ;;  %v5653_v44 = vrot.slane %v4466_v35, 1  ;;  %v5654_v28 = vrot.slane %v4462_v9, 2 }
 0x387   : > { %v4276_v48 = vpop.f32.mrf.mxu1  ;;  %17194 = vmatprep.mubr.msk.bf16.mxu1 %vm910_vm0, %v5097_v42 }
 0x388   : > { %v4277_v39 = vadd.f32 %v4276_v48, %v21181_v12  ;;  %v4465_v62 = vsel %vm4453_vm4, %v4460_v32, %v4464_v14  ;;  %v5655_v43 = vor.u32 %v5654_v28, %v5653_v44  ;;  %v4468_v38 = vor.u32 %v4466_v35, %v4464_v14  ;;  %v17876_v28 = vld [vmem:[%s26300_s3 + $0x40] sm:$0xff]  }
 0x389   : > { %v4278_v40 = vpop.f32.mrf.mxu1  ;;  %17114 = vmatprep.mubr.msk.bf16.mxu0 %vm910_vm0, %v4465_v62 }
 0x38a   : > { %v21486_v53 = vpack.c.bf16 %v4277_v39, %v4274_v7 }
 0x38b   : > { %v4281_v23 = vpop.f32.mrf.mxu1 }
 0x38c   : > { %v4470_v49 = vshll.u32 %v21486_v53, 16  ;;  %v5098_v52 = vrot.slane %v21486_v53, 1  ;;  %v4474_v2 = vshrl.u32 %v21486_v53, 16  ;;  %v4282_v35 = vadd.f32 %v4281_v23, %v21194_v3 }
 0x38d   : > { %v4283_v61 = vpop.f32.mrf.mxu1 }
 0x38e   : > { %v21495_v12 = vsel %vm2024_vm1, %v5096_v45, %v5098_v52  ;;  %v4472_v16 = vrot.slane %v4470_v49, 1  ;;  %v5656_v8 = vrot.slane %v4474_v2, 1  ;;  %v5657_v36 = vrot.slane %v4470_v49, 2 }
 0x38f   : > { %v4284_v9 = vpop.f32.mrf.mxu1  ;;  %17195 = vmatmul.mubr.msk.bf16.vlgmr.msra.gmra.mxu1 %vm910_vm0, %v21495_v12  ;;  %v6578_v6 = vrot.slane %v4474_v2, 2  ;;  %v6579_v32 = vrot.slane %v4470_v49, 3 }
 0x390   : > { %v4285_v42 = vadd.f32 %v4284_v9, %v21200_v17  ;;  %v4473_v14 = vsel %vm4453_vm4, %v4468_v38, %v4472_v16  ;;  %17271 = vmatpush3.bf16.msra.mxu1 %v17875_v46  ;;  %v5658_v45 = vor.u32 %v5657_v36, %v5656_v8  ;;  %v17877_v17 = vld [vmem:[%s26300_s3] sm:$0xff]   ;;  %v4476_v38 = vor.u32 %v4474_v2, %v4472_v16 }
 0x391   : > { %v4286_v44 = vpop.f32.mrf.mxu1  ;;  %17115 = vmatmul.mubr.msk.bf16.vlgmr.msra.gmra.mxu0 %vm910_vm0, %v4473_v14  ;;  %v6580_v48 = vor.u32 %v6579_v32, %v6578_v6  ;;  %17272 = vmatprep.subr.bf16.mxu1 %v17876_v28 }
 0x392   : > { %v21506_v7 = vpack.c.bf16 %v4285_v42, %v4282_v35  ;;  %17151 = vmatpush3.bf16.msra.mxu0 %v17874_v30  ;;  %v21509_v39 = vsel %vm5652_vm5, %v5655_v43, %v5658_v45 }
 0x393   : > { %v4289_v3 = vpop.f32.mrf.mxu1  ;;  %17152 = vmatprep.subr.bf16.mxu0 %v17877_v17 }
 0x394   : > { %v5100_v62 = vrot.slane %v21506_v7, 1  ;;  %v4478_v40 = vshll.u32 %v21506_v7, 16  ;;  %v4482_v23 = vshrl.u32 %v21506_v7, 16  ;;  %17273 = vmatpush3.bf16.msra.mxu1 %v17876_v28  ;;  %v4290_v6 = vadd.f32 %v4289_v3, %v21213_v0 }
 0x395   : > { %v4291_v49 = vpop.f32.mrf.mxu1 }
 0x396   : > { %v21518_v30 = vsel %vm2024_vm1, %v5098_v52, %v5100_v62  ;;  %v4480_v43 = vrot.slane %v4478_v40, 1  ;;  %v5661_v61 = vrot.slane %v4478_v40, 2  ;;  %17153 = vmatpush3.bf16.msra.mxu0 %v17877_v17  ;;  %v5660_v46 = vrot.slane %v4482_v23, 1 }
 0x397   : > { %26417 = vst [vmem:[#allocation6_spill] sm:$0xff] %v21518_v30  ;;  %v4292_v8 = vpop.f32.mrf.mxu1  ;;  %17198 = vmatprep.mubr.msk.bf16.mxu1 %vm910_vm0, %v21518_v30  ;;  %v6581_v36 = vrot.slane %v4482_v23, 2  ;;  %v6582_v9 = vrot.slane %v4478_v40, 3 }
 0x398   : > { %v4293_v32 = vadd.f32 %v4292_v8, %v21219_v27  ;;  %v4481_v2 = vsel %vm4453_vm4, %v4476_v38, %v4480_v43  ;;  %v5662_v16 = vor.u32 %v5661_v61, %v5660_v46  ;;  %v4484_v17 = vor.u32 %v4482_v23, %v4480_v43 }
 0x399   : > { %v4294_v52 = vpop.f32.mrf.mxu1  ;;  %17118 = vmatprep.mubr.msk.bf16.mxu0 %vm910_vm0, %v4481_v2  ;;  %v6583_v35 = vor.u32 %v6582_v9, %v6581_v36 }
 0x39a   : > { %v21526_v42 = vpack.c.bf16 %v4293_v32, %v4290_v6  ;;  %v21529_v14 = vsel %vm5652_vm5, %v5658_v45, %v5662_v16 }
 0x39b   : > { %v4297_v44 = vpop.f32.mrf.mxu1  ;;  %v21532_v28 = vsel %vm6577_vm6, %v6580_v48, %v6583_v35 }
 0x39c   : > { %26418 = vst [vmem:[#allocation7_spill] sm:$0xff] %v21532_v28  ;;  %v5102_v0 = vrot.slane %v21526_v42, 1  ;;  %v4486_v27 = vshll.u32 %v21526_v42, 16  ;;  %v4490_v3 = vshrl.u32 %v21526_v42, 16  ;;  %v4298_v36 = vadd.f32 %v4297_v44, %v21232_v58 }
 0x39d   : > { %v4299_v40 = vpop.f32.mrf.mxu1 }
 0x39e   : > { %v21538_v49 = vsel %vm2024_vm1, %v5100_v62, %v5102_v0  ;;  %v4488_v38 = vrot.slane %v4486_v27, 1  ;;  %v6585_v61 = vrot.slane %v4490_v3, 2  ;;  %v5664_v46 = vrot.slane %v4490_v3, 1 }
 0x39f   : > { %26419 = vst [vmem:[#allocation8_spill] sm:$0xff] %v21538_v49  ;;  %v4300_v45 = vpop.f32.mrf.mxu1  ;;  %17199 = vmatmul.mubr.msk.bf16.gmra.mxu1 %vm910_vm0, %v21538_v49  ;;  %v5665_v48 = vrot.slane %v4486_v27, 2  ;;  %v6586_v8 = vrot.slane %v4486_v27, 3 }
 0x3a0   : > { %v4301_v9 = vadd.f32 %v4300_v45, %v21238_v34  ;;  %v4489_v6 = vsel %vm4453_vm4, %v4484_v17, %v4488_v38  ;;  %v4492_v17 = vor.u32 %v4490_v3, %v4488_v38 }
 0x3a1   : > { %v4302_v23 = vpop.f32.mrf.mxu1  ;;  %17119 = vmatmul.mubr.msk.bf16.gmra.mxu0 %vm910_vm0, %v4489_v6  ;;  %v5666_v62 = vor.u32 %v5665_v48, %v5664_v46  ;;  %v6587_v43 = vor.u32 %v6586_v8, %v6585_v61 }
 0x3a2   : > { %v21546_v32 = vpack.c.bf16 %v4301_v9, %v4298_v36 }
 0x3a3   : > { %v4305_v2 = vpop.f32.mrf.mxu1  ;;  %v21549_v52 = vsel %vm5652_vm5, %v5662_v16, %v5666_v62  ;;  %v21552_v40 = vsel %vm6577_vm6, %v6583_v35, %v6587_v43 }
 0x3a4   : > { %26420 = vst [vmem:[#allocation9_spill] sm:$0xff] %v21552_v40  ;;  %v5104_v58 = vrot.slane %v21546_v32, 1  ;;  %v4494_v34 = vshll.u32 %v21546_v32, 16  ;;  %v4498_v44 = vshrl.u32 %v21546_v32, 16  ;;  %v4306_v36 = vadd.f32 %v4305_v2, %v21251_v1 }
 0x3a5   : > { %v4307_v27 = vpop.f32.mrf.mxu1 }
 0x3a6   : > { %v21558_v46 = vsel %vm2024_vm1, %v5102_v0, %v5104_v58  ;;  %v4496_v61 = vrot.slane %v4494_v34, 1  ;;  %v5668_v45 = vrot.slane %v4498_v44, 1  ;;  %v5669_v48 = vrot.slane %v4494_v34, 2 }
 0x3a7   : > { %26421 = vst [vmem:[#allocation10_spill] sm:$0xff] %v21558_v46  ;;  %v4308_v8 = vpop.f32.mrf.mxu1  ;;  %17202 = vmatprep.mubr.msk.bf16.mxu1 %vm910_vm0, %v21558_v46  ;;  %v6589_v16 = vrot.slane %v4498_v44, 2  ;;  %v6590_v35 = vrot.slane %v4494_v34, 3 }
 0x3a8   : > { %v4309_v9 = vadd.f32 %v4308_v8, %v21257_v37  ;;  %v4497_v6 = vsel %vm4453_vm4, %v4492_v17, %v4496_v61  ;;  %v5670_v23 = vor.u32 %v5669_v48, %v5668_v45  ;;  %v4500_v34 = vor.u32 %v4498_v44, %v4496_v61 }
 0x3a9   : > { %v4310_v3 = vpop.f32.mrf.mxu1  ;;  %17122 = vmatprep.mubr.msk.bf16.mxu0 %vm910_vm0, %v4497_v6  ;;  %v6591_v0 = vor.u32 %v6590_v35, %v6589_v16 }
 0x3aa   : > { %v21566_v38 = vpack.c.bf16 %v4309_v9, %v4306_v36  ;;  %v21569_v27 = vsel %vm5652_vm5, %v5666_v62, %v5670_v23  ;;  %v26424_v9 = vld [vmem:[#allocation11_spill] sm:$0xff] }
 0x3ab   : > { %v4313_v40 = vpop.f32.mrf.mxu1  ;;  %v21572_v28 = vsel %vm6577_vm6, %v6587_v43, %v6591_v0 }
 0x3ac   : > { %26422 = vst [vmem:[#allocation12_spill] sm:$0xff] %v21572_v28  ;;  %v5106_v1 = vrot.slane %v21566_v38, 1  ;;  %v4502_v37 = vshll.u32 %v21566_v38, 16  ;;  %v4506_v2 = vshrl.u32 %v21566_v38, 16  ;;  %v4314_v36 = vadd.f32 %v4313_v40, %v21273_v55 }
 0x3ad   : > { %v4315_v17 = vpop.f32.mrf.mxu1 }
 0x3ae   : > { %v21578_v45 = vsel %vm2024_vm1, %v5104_v58, %v5106_v1  ;;  %v4504_v48 = vrot.slane %v4502_v37, 1  ;;  %v5672_v8 = vrot.slane %v4506_v2, 1  ;;  %v5673_v16 = vrot.slane %v4502_v37, 2 }
 0x3af   : > { %26423 = vst [vmem:[#allocation13_spill] sm:$0xff] %v21578_v45  ;;  %v4316_v62 = vpop.f32.mrf.mxu1  ;;  %17203 = vmatmul.mubr.msk.bf16.gmra.mxu1 %vm910_vm0, %v21578_v45  ;;  %v6593_v43 = vrot.slane %v4506_v2, 2  ;;  %v6594_v35 = vrot.slane %v4502_v37, 3 }
 0x3b0   : > { %v4317_v6 = vadd.f32 %v4316_v62, %v26424_v9  ;;  %v4505_v3 = vsel %vm4453_vm4, %v4500_v34, %v4504_v48  ;;  %v5674_v44 = vor.u32 %v5673_v16, %v5672_v8  ;;  %v4508_v8 = vor.u32 %v4506_v2, %v4504_v48 }
 0x3b1   : > { %v4318_v61 = vpop.f32.mrf.mxu1  ;;  %17123 = vmatmul.mubr.msk.bf16.gmra.mxu0 %vm910_vm0, %v4505_v3  ;;  %v6595_v58 = vor.u32 %v6594_v35, %v6593_v43 }
 0x3b2   : > { %v21586_v17 = vpack.c.bf16 %v4317_v6, %v4314_v36  ;;  %v21589_v28 = vsel %vm5652_vm5, %v5670_v23, %v5674_v44 }
 0x3b3   : > { %v4321_v46 = vpop.f32.mrf.mxu1  ;;  %v21592_v45 = vsel %vm6577_vm6, %v6591_v0, %v6595_v58 }
 0x3b4   : > { %26425 = vst [vmem:[#allocation11_spill] sm:$0xff] %v21592_v45  ;;  %v5108_v55 = vrot.slane %v21586_v17, 1  ;;  %v4510_v40 = vshll.u32 %v21586_v17, 16  ;;  %v4514_v37 = vshrl.u32 %v21586_v17, 16  ;;  %v4322_v9 = vadd.f32 %v4321_v46, %v21298_v29 }
 0x3b5   : > { %v4323_v34 = vpop.f32.mrf.mxu1 }
 0x3b6   : > { %v21598_v16 = vsel %vm2024_vm1, %v5106_v1, %v5108_v55  ;;  %v4512_v62 = vrot.slane %v4510_v40, 1  ;;  %v5676_v43 = vrot.slane %v4514_v37, 1  ;;  %v5677_v35 = vrot.slane %v4510_v40, 2 }
 0x3b7   : > { %26426 = vst [vmem:[#allocation14_spill] sm:$0xff] %v21598_v16  ;;  %v4324_v23 = vpop.f32.mrf.mxu1  ;;  %17206 = vmatprep.mubr.msk.bf16.mxu1 %vm910_vm0, %v21598_v16  ;;  %v6597_v0 = vrot.slane %v4514_v37, 2  ;;  %v6598_v36 = vrot.slane %v4510_v40, 3 }
 0x3b8   : > { %v4325_v6 = vadd.f32 %v4324_v23, %v21304_v22  ;;  %v4513_v3 = vsel %vm4453_vm4, %v4508_v8, %v4512_v62  ;;  %v5678_v61 = vor.u32 %v5677_v35, %v5676_v43  ;;  %v4516_v40 = vor.u32 %v4514_v37, %v4512_v62 }
 0x3b9   : > { %v4326_v2 = vpop.f32.mrf.mxu1  ;;  %17126 = vmatprep.mubr.msk.bf16.mxu0 %vm910_vm0, %v4513_v3  ;;  %v6599_v1 = vor.u32 %v6598_v36, %v6597_v0 }
 0x3ba   : > { %v21606_v48 = vpack.c.bf16 %v4325_v6, %v4322_v9  ;;  %v21609_v34 = vsel %vm5652_vm5, %v5674_v44, %v5678_v61 }
 0x3bb   : > { %v4329_v45 = vpop.f32.mrf.mxu1  ;;  %v21612_v16 = vsel %vm6577_vm6, %v6595_v58, %v6599_v1 }
 0x3bc   : > { %26427 = vst [vmem:[#allocation15_spill] sm:$0xff] %v21612_v16  ;;  %v5110_v29 = vrot.slane %v21606_v48, 1  ;;  %v4518_v22 = vshll.u32 %v21606_v48, 16  ;;  %v4522_v46 = vshrl.u32 %v21606_v48, 16  ;;  %v4330_v9 = vadd.f32 %v4329_v45, %v21317_v4 }
 0x3bd   : > { %v4331_v8 = vpop.f32.mrf.mxu1 }
 0x3be   : > { %v21618_v43 = vsel %vm2024_vm1, %v5108_v55, %v5110_v29  ;;  %v4520_v35 = vrot.slane %v4518_v22, 1  ;;  %v5680_v23 = vrot.slane %v4522_v46, 1  ;;  %v5681_v0 = vrot.slane %v4518_v22, 2  ;;  %v21629_v55 = vld [vmem:[%s26300_s3 + $0x38] sm:$0xff]  }
 0x3bf   : > { %26428 = vst [vmem:[#allocation16_spill] sm:$0xff] %v21618_v43  ;;  %v4332_v44 = vpop.f32.mrf.mxu1  ;;  %17207 = vmatmul.mubr.msk.bf16.gmra.mxu1 %vm910_vm0, %v21618_v43  ;;  %v6601_v58 = vrot.slane %v4522_v46, 2  ;;  %v6602_v36 = vrot.slane %v4518_v22, 3  ;;  %17230 = vmatprep.subr.bf16.mxu0 %v21629_v55 }
 0x3c0   : > { %v4333_v6 = vadd.f32 %v4332_v44, %v21323_v13  ;;  %v4521_v3 = vsel %vm4453_vm4, %v4516_v40, %v4520_v35  ;;  %v5682_v37 = vor.u32 %v5681_v0, %v5680_v23  ;;  %v4524_v44 = vor.u32 %v4522_v46, %v4520_v35 }
 0x3c1   : > { %v4334_v62 = vpop.f32.mrf.mxu1  ;;  %17127 = vmatmul.mubr.msk.bf16.gmra.mxu0 %vm910_vm0, %v4521_v3  ;;  %v6603_v2 = vor.u32 %v6602_v36, %v6601_v58 }
 0x3c2   : > { %v21631_v8 = vpack.c.bf16 %v4333_v6, %v4330_v9  ;;  %v21634_v22 = vsel %vm5652_vm5, %v5678_v61, %v5682_v37 }
 0x3c3   : > { %v4337_v4 = vpop.f32.mrf.mxu1  ;;  %v21638_v13 = vsel %vm6577_vm6, %v6599_v1, %v6603_v2 }
 0x3c4   : > { %26429 = vst [vmem:[#allocation17_spill] sm:$0xff] %v21638_v13  ;;  %v5112_v45 = vrot.slane %v21631_v8, 1  ;;  %v4526_v40 = vshll.u32 %v21631_v8, 16  ;;  %v4530_v23 = vshrl.u32 %v21631_v8, 16  ;;  %v4338_v62 = vadd.f32 %v4337_v4, %v21336_v25 }
 0x3c5   : > { %v4339_v0 = vpop.f32.mrf.mxu1 }
 0x3c6   : > { %v21644_v58 = vsel %vm2024_vm1, %v5110_v29, %v5112_v45  ;;  %v4528_v36 = vrot.slane %v4526_v40, 1  ;;  %v5684_v61 = vrot.slane %v4530_v23, 1  ;;  %v5685_v9 = vrot.slane %v4526_v40, 2 }
 0x3c7   : > { %26430 = vst [vmem:[#allocation18_spill] sm:$0xff] %v21644_v58  ;;  %v4340_v6 = vpop.f32.mrf.mxu1  ;;  %17210 = vmatprep.mubr.msk.bf16.mxu1 %vm910_vm0, %v21644_v58  ;;  %v6605_v1 = vrot.slane %v4530_v23, 2  ;;  %v6606_v3 = vrot.slane %v4526_v40, 3 }
 0x3c8   : > { %v4341_v13 = vadd.f32 %v4340_v6, %v21342_v24  ;;  %v4529_v16 = vsel %vm4453_vm4, %v4524_v44, %v4528_v36  ;;  %v5686_v0 = vor.u32 %v5685_v9, %v5684_v61  ;;  %v4532_v40 = vor.u32 %v4530_v23, %v4528_v36 }
 0x3c9   : > { %v4342_v46 = vpop.f32.mrf.mxu1  ;;  %17130 = vmatprep.mubr.msk.bf16.mxu0 %vm910_vm0, %v4529_v16  ;;  %v6607_v29 = vor.u32 %v6606_v3, %v6605_v1 }
 0x3ca   : > { %v21652_v35 = vpack.c.bf16 %v4341_v13, %v4338_v62  ;;  %v21655_v43 = vsel %vm5652_vm5, %v5682_v37, %v5686_v0 }
 0x3cb   : > { %v4345_v49 = vpop.f32.mrf.mxu1  ;;  %v21658_v58 = vsel %vm6577_vm6, %v6603_v2, %v6607_v29 }
 0x3cc   : > { %26431 = vst [vmem:[#allocation19_spill] sm:$0xff] %v21658_v58  ;;  %v5114_v25 = vrot.slane %v21652_v35, 1  ;;  %v4534_v24 = vshll.u32 %v21652_v35, 16  ;;  %v4538_v4 = vshrl.u32 %v21652_v35, 16  ;;  %v4346_v1 = vadd.f32 %v4345_v49, %v21355_v18 }
 0x3cd   : > { %v4347_v44 = vpop.f32.mrf.mxu1 }
 0x3ce   : > { %v21664_v16 = vsel %vm2024_vm1, %v5112_v45, %v5114_v25  ;;  %v4536_v13 = vrot.slane %v4534_v24, 1  ;;  %v5688_v61 = vrot.slane %v4538_v4, 1  ;;  %v5689_v9 = vrot.slane %v4534_v24, 2 }
 0x3cf   : > { %26432 = vst [vmem:[#allocation20_spill] sm:$0xff] %v21664_v16  ;;  %v4348_v37 = vpop.f32.mrf.mxu1  ;;  %17211 = vmatmul.mubr.msk.bf16.gmra.mxu1 %vm910_vm0, %v21664_v16  ;;  %v6609_v2 = vrot.slane %v4538_v4, 2  ;;  %v6610_v6 = vrot.slane %v4534_v24, 3 }
 0x3d0   : > { %v4349_v3 = vadd.f32 %v4348_v37, %v21361_v5  ;;  %v4537_v62 = vsel %vm4453_vm4, %v4532_v40, %v4536_v13  ;;  %v5690_v23 = vor.u32 %v5689_v9, %v5688_v61  ;;  %v4540_v40 = vor.u32 %v4538_v4, %v4536_v13 }
 0x3d1   : > { %v4350_v36 = vpop.f32.mrf.mxu1  ;;  %17131 = vmatmul.mubr.msk.bf16.gmra.mxu0 %vm910_vm0, %v4537_v62  ;;  %v6611_v45 = vor.u32 %v6610_v6, %v6609_v2 }
 0x3d2   : > { %v21672_v46 = vpack.c.bf16 %v4349_v3, %v4346_v1  ;;  %v21675_v44 = vsel %vm5652_vm5, %v5686_v0, %v5690_v23  ;;  %v21689_v0 = vld [vmem:[%s26300_s3 + $0x68] sm:$0xff]  }
 0x3d3   : > { %v4353_v58 = vpop.f32.mrf.mxu1  ;;  %v21678_v16 = vsel %vm6577_vm6, %v6607_v29, %v6611_v45  ;;  %17350 = vmatprep.subr.bf16.mxu1 %v21689_v0 }
 0x3d4   : > { %26433 = vst [vmem:[#allocation21_spill] sm:$0xff] %v21678_v16  ;;  %v5116_v18 = vrot.slane %v21672_v46, 1  ;;  %v4542_v5 = vshll.u32 %v21672_v46, 16  ;;  %v4546_v49 = vshrl.u32 %v21672_v46, 16  ;;  %v4354_v3 = vadd.f32 %v4353_v58, %v21374_v57 }
 0x3d5   : > { %v4355_v24 = vpop.f32.mrf.mxu1 }
 0x3d6   : > { %v21684_v61 = vsel %vm2024_vm1, %v5114_v25, %v5116_v18  ;;  %v4544_v9 = vrot.slane %v4542_v5, 1  ;;  %v5692_v37 = vrot.slane %v4546_v49, 1  ;;  %v5693_v2 = vrot.slane %v4542_v5, 2 }
 0x3d7   : > { %26434 = vst [vmem:[#allocation22_spill] sm:$0xff] %v21684_v61  ;;  %v4356_v29 = vpop.f32.mrf.mxu1  ;;  %17214 = vmatprep.mubr.msk.bf16.mxu1 %vm910_vm0, %v21684_v61  ;;  %v6613_v6 = vrot.slane %v4546_v49, 2  ;;  %v6614_v1 = vrot.slane %v4542_v5, 3 }
 0x3d8   : > { %v4357_v4 = vadd.f32 %v4356_v29, %v21380_v15  ;;  %v4545_v25 = vsel %vm4453_vm4, %v4540_v40, %v4544_v9  ;;  %v5694_v13 = vor.u32 %v5693_v2, %v5692_v37  ;;  %v4548_v40 = vor.u32 %v4546_v49, %v4544_v9 }
 0x3d9   : > { %v4358_v62 = vpop.f32.mrf.mxu1  ;;  %17134 = vmatprep.mubr.msk.bf16.mxu0 %vm910_vm0, %v4545_v25  ;;  %v6615_v36 = vor.u32 %v6614_v1, %v6613_v6 }
 0x3da   : > { %v21698_v24 = vpack.c.bf16 %v4357_v4, %v4354_v3  ;;  %v21701_v16 = vsel %vm5652_vm5, %v5690_v23, %v5694_v13 }
 0x3db   : > { %v4361_v61 = vpop.f32.mrf.mxu1  ;;  %v21704_v5 = vsel %vm6577_vm6, %v6611_v45, %v6615_v36 }
 0x3dc   : > { %26435 = vst [vmem:[#allocation23_spill] sm:$0xff] %v21704_v5  ;;  %v5118_v57 = vrot.slane %v21698_v24, 1  ;;  %v4550_v15 = vshll.u32 %v21698_v24, 16  ;;  %v4554_v58 = vshrl.u32 %v21698_v24, 16  ;;  %v4362_v4 = vadd.f32 %v4361_v61, %v21393_v33 }
 0x3dd   : > { %v4363_v37 = vpop.f32.mrf.mxu1 }
 0x3de   : > { %v21710_v2 = vsel %vm2024_vm1, %v5116_v18, %v5118_v57  ;;  %v4552_v29 = vrot.slane %v4550_v15, 1  ;;  %v5696_v6 = vrot.slane %v4554_v58, 1  ;;  %v5697_v1 = vrot.slane %v4550_v15, 2 }
 0x3df   : > { %26436 = vst [vmem:[#allocation24_spill] sm:$0xff] %v21710_v2  ;;  %v4364_v23 = vpop.f32.mrf.mxu1  ;;  %17215 = vmatmul.mubr.msk.bf16.gmra.mxu1 %vm910_vm0, %v21710_v2  ;;  %v6617_v45 = vrot.slane %v4554_v58, 2  ;;  %v6618_v3 = vrot.slane %v4550_v15, 3 }
 0x3e0   : > { %v4365_v25 = vadd.f32 %v4364_v23, %v21399_v50  ;;  %v4553_v62 = vsel %vm4453_vm4, %v4548_v40, %v4552_v29  ;;  %v5698_v49 = vor.u32 %v5697_v1, %v5696_v6  ;;  %v4556_v40 = vor.u32 %v4554_v58, %v4552_v29 }
 0x3e1   : > { %v4366_v9 = vpop.f32.mrf.mxu1  ;;  %17135 = vmatmul.mubr.msk.bf16.gmra.mxu0 %vm910_vm0, %v4553_v62  ;;  %v6619_v18 = vor.u32 %v6618_v3, %v6617_v45 }
 0x3e2   : > { %v21718_v37 = vpack.c.bf16 %v4365_v25, %v4362_v4  ;;  %v21721_v5 = vsel %vm5652_vm5, %v5694_v13, %v5698_v49 }
 0x3e3   : > { %v4369_v30 = vpop.f32.mrf.mxu1  ;;  %v21724_v2 = vsel %vm6577_vm6, %v6615_v36, %v6619_v18 }
 0x3e4   : > { %26437 = vst [vmem:[#allocation25_spill] sm:$0xff] %v21724_v2  ;;  %v5120_v33 = vrot.slane %v21718_v37, 1  ;;  %v4558_v50 = vshll.u32 %v21718_v37, 16  ;;  %v4562_v61 = vshrl.u32 %v21718_v37, 16  ;;  %v4370_v4 = vadd.f32 %v4369_v30, %v21410_v20 }
 0x3e5   : > { %v4371_v15 = vpop.f32.mrf.mxu1 }
 0x3e6   : > { %v21730_v6 = vsel %vm2024_vm1, %v5118_v57, %v5120_v33  ;;  %v4560_v1 = vrot.slane %v4558_v50, 1  ;;  %v5700_v23 = vrot.slane %v4562_v61, 1  ;;  %v5701_v45 = vrot.slane %v4558_v50, 2 }
 0x3e7   : > { %26438 = vst [vmem:[#allocation26_spill] sm:$0xff] %v21730_v6  ;;  %v4372_v13 = vpop.f32.mrf.mxu1  ;;  %17218 = vmatprep.mubr.msk.bf16.mxu1 %vm910_vm0, %v21730_v6  ;;  %v6621_v36 = vrot.slane %v4562_v61, 2  ;;  %v6622_v3 = vrot.slane %v4558_v50, 3 }
 0x3e8   : > { %v4373_v25 = vadd.f32 %v4372_v13, %v21414_v10  ;;  %v4561_v62 = vsel %vm4453_vm4, %v4556_v40, %v4560_v1  ;;  %v5702_v9 = vor.u32 %v5701_v45, %v5700_v23  ;;  %v4564_v50 = vor.u32 %v4562_v61, %v4560_v1 }
 0x3e9   : > { %v4374_v58 = vpop.f32.mrf.mxu1  ;;  %17138 = vmatprep.mubr.msk.bf16.mxu0 %vm910_vm0, %v4561_v62  ;;  %v6623_v57 = vor.u32 %v6622_v3, %v6621_v36 }
 0x3ea   : > { %v21738_v29 = vpack.c.bf16 %v4373_v25, %v4370_v4  ;;  %v21741_v15 = vsel %vm5652_vm5, %v5698_v49, %v5702_v9 }
 0x3eb   : > { %v4377_v2 = vpop.f32.mrf.mxu1  ;;  %v21744_v6 = vsel %vm6577_vm6, %v6619_v18, %v6623_v57 }
 0x3ec   : > { %26439 = vst [vmem:[#allocation27_spill] sm:$0xff] %v21744_v6  ;;  %v5122_v20 = vrot.slane %v21738_v29, 1  ;;  %v4566_v10 = vshll.u32 %v21738_v29, 16  ;;  %v4570_v30 = vshrl.u32 %v21738_v29, 16  ;;  %v4378_v4 = vadd.f32 %v4377_v2, %v21422_v59 }
 0x3ed   : > { %v4379_v40 = vpop.f32.mrf.mxu1 }
 0x3ee   : > { %v21750_v23 = vsel %vm2024_vm1, %v5120_v33, %v5122_v20  ;;  %v4568_v45 = vrot.slane %v4566_v10, 1  ;;  %v5704_v13 = vrot.slane %v4570_v30, 1  ;;  %v5705_v36 = vrot.slane %v4566_v10, 2 }
 0x3ef   : > { %26440 = vst [vmem:[#allocation28_spill] sm:$0xff] %v21750_v23  ;;  %v4380_v49 = vpop.f32.mrf.mxu1  ;;  %17219 = vmatmul.mubr.msk.bf16.gmra.mxu1 %vm910_vm0, %v21750_v23  ;;  %v6625_v18 = vrot.slane %v4570_v30, 2  ;;  %v6626_v3 = vrot.slane %v4566_v10, 3 }
 0x3f0   : > { %v4381_v25 = vadd.f32 %v4380_v49, %v21426_v11  ;;  %v4569_v62 = vsel %vm4453_vm4, %v4564_v50, %v4568_v45  ;;  %v5706_v61 = vor.u32 %v5705_v36, %v5704_v13  ;;  %v4572_v50 = vor.u32 %v4570_v30, %v4568_v45 }
 0x3f1   : > { %v4382_v1 = vpop.f32.mrf.mxu1  ;;  %17139 = vmatmul.mubr.msk.bf16.gmra.mxu0 %vm910_vm0, %v4569_v62  ;;  %v6627_v33 = vor.u32 %v6626_v3, %v6625_v18 }
 0x3f2   : > { %v21758_v58 = vpack.c.bf16 %v4381_v25, %v4378_v4  ;;  %v21761_v40 = vsel %vm5652_vm5, %v5702_v9, %v5706_v61 }
 0x3f3   : > { %v4385_v6 = vpop.f32.mrf.mxu1  ;;  %v21764_v23 = vsel %vm6577_vm6, %v6623_v57, %v6627_v33 }
 0x3f4   : > { %26441 = vst [vmem:[#allocation29_spill] sm:$0xff] %v21764_v23  ;;  %v5124_v59 = vrot.slane %v21758_v58, 1  ;;  %v4574_v11 = vshll.u32 %v21758_v58, 16  ;;  %v4578_v2 = vshrl.u32 %v21758_v58, 16  ;;  %v4386_v4 = vadd.f32 %v4385_v6, %v21431_v19 }
 0x3f5   : > { %v4387_v10 = vpop.f32.mrf.mxu1 }
 0x3f6   : > { %v21770_v13 = vsel %vm2024_vm1, %v5122_v20, %v5124_v59  ;;  %v4576_v36 = vrot.slane %v4574_v11, 1  ;;  %v5708_v49 = vrot.slane %v4578_v2, 1  ;;  %v5709_v18 = vrot.slane %v4574_v11, 2 }
 0x3f7   : > { %26442 = vst [vmem:[#allocation30_spill] sm:$0xff] %v21770_v13  ;;  %v4388_v9 = vpop.f32.mrf.mxu1  ;;  %17222 = vmatprep.mubr.msk.bf16.mxu1 %vm910_vm0, %v21770_v13  ;;  %v6629_v57 = vrot.slane %v4578_v2, 2  ;;  %v6630_v3 = vrot.slane %v4574_v11, 3 }
 0x3f8   : > { %v4389_v25 = vadd.f32 %v4388_v9, %v21435_v51  ;;  %v4577_v62 = vsel %vm4453_vm4, %v4572_v50, %v4576_v36  ;;  %v5710_v1 = vor.u32 %v5709_v18, %v5708_v49  ;;  %v4580_v11 = vor.u32 %v4578_v2, %v4576_v36 }
 0x3f9   : > { %v4390_v30 = vpop.f32.mrf.mxu1  ;;  %17142 = vmatprep.mubr.msk.bf16.mxu0 %vm910_vm0, %v4577_v62  ;;  %v6631_v20 = vor.u32 %v6630_v3, %v6629_v57 }
 0x3fa   : > { %v21778_v45 = vpack.c.bf16 %v4389_v25, %v4386_v4  ;;  %v21781_v10 = vsel %vm5652_vm5, %v5706_v61, %v5710_v1 }
 0x3fb   : > { %v4393_v23 = vpop.f32.mrf.mxu1  ;;  %v21784_v13 = vsel %vm6577_vm6, %v6627_v33, %v6631_v20 }
 0x3fc   : > { %26443 = vst [vmem:[#allocation31_spill] sm:$0xff] %v21784_v13  ;;  %v5126_v19 = vrot.slane %v21778_v45, 1  ;;  %v4582_v51 = vshll.u32 %v21778_v45, 16  ;;  %v4586_v6 = vshrl.u32 %v21778_v45, 16  ;;  %v4394_v4 = vadd.f32 %v4393_v23, %v21439_v56 }
 0x3fd   : > { %v4395_v50 = vpop.f32.mrf.mxu1 }
 0x3fe   : > { %v21790_v49 = vsel %vm2024_vm1, %v5124_v59, %v5126_v19  ;;  %v4584_v18 = vrot.slane %v4582_v51, 1  ;;  %v5712_v9 = vrot.slane %v4586_v6, 1  ;;  %v5713_v57 = vrot.slane %v4582_v51, 2 }
 0x3ff   : > { %26444 = vst [vmem:[#allocation32_spill] sm:$0xff] %v21790_v49  ;;  %v4396_v61 = vpop.f32.mrf.mxu1  ;;  %17223 = vmatmul.mubr.msk.bf16.gmra.mxu1 %vm910_vm0, %v21790_v49  ;;  %v6633_v33 = vrot.slane %v4586_v6, 2  ;;  %v6634_v3 = vrot.slane %v4582_v51, 3 }
 0x400   : > { %v4397_v25 = vadd.f32 %v4396_v61, %v21443_v60  ;;  %v4585_v62 = vsel %vm4453_vm4, %v4580_v11, %v4584_v18  ;;  %v5714_v2 = vor.u32 %v5713_v57, %v5712_v9  ;;  %v4588_v11 = vor.u32 %v4586_v6, %v4584_v18 }
 0x401   : > { %v4398_v36 = vpop.f32.mrf.mxu1  ;;  %17143 = vmatmul.mubr.msk.bf16.gmra.mxu0 %vm910_vm0, %v4585_v62  ;;  %v6635_v59 = vor.u32 %v6634_v3, %v6633_v33 }
 0x402   : > { %v21798_v30 = vpack.c.bf16 %v4397_v25, %v4394_v4  ;;  %v21801_v50 = vsel %vm5652_vm5, %v5710_v1, %v5714_v2 }
 0x403   : > { %v4401_v13 = vpop.f32.mrf.mxu1  ;;  %v21804_v49 = vsel %vm6577_vm6, %v6631_v20, %v6635_v59 }
 0x404   : > { %26445 = vst [vmem:[#allocation33_spill] sm:$0xff] %v21804_v49  ;;  %v5128_v56 = vrot.slane %v21798_v30, 1  ;;  %v4590_v60 = vshll.u32 %v21798_v30, 16  ;;  %v4594_v23 = vshrl.u32 %v21798_v30, 16  ;;  %v4402_v4 = vadd.f32 %v4401_v13, %v21447_v41 }
 0x405   : > { %v4403_v51 = vpop.f32.mrf.mxu1 }
 0x406   : > { %v21810_v9 = vsel %vm2024_vm1, %v5126_v19, %v5128_v56  ;;  %v4592_v57 = vrot.slane %v4590_v60, 1  ;;  %v5716_v61 = vrot.slane %v4594_v23, 1  ;;  %v5717_v33 = vrot.slane %v4590_v60, 2 }
 0x407   : > { %26446 = vst [vmem:[#allocation34_spill] sm:$0xff] %v21810_v9  ;;  %v4404_v1 = vpop.f32.mrf.mxu1  ;;  %17226 = vmatprep.mubr.msk.bf16.mxu1 %vm910_vm0, %v21810_v9  ;;  %v6637_v20 = vrot.slane %v4594_v23, 2  ;;  %v6638_v3 = vrot.slane %v4590_v60, 3 }
 0x408   : > { %v4405_v25 = vadd.f32 %v4404_v1, %v21451_v54  ;;  %v4593_v62 = vsel %vm4453_vm4, %v4588_v11, %v4592_v57  ;;  %v5718_v36 = vor.u32 %v5717_v33, %v5716_v61  ;;  %v4596_v11 = vor.u32 %v4594_v23, %v4592_v57 }
 0x409   : > { %v4406_v6 = vpop.f32.mrf.mxu1  ;;  %17146 = vmatprep.mubr.msk.bf16.mxu0 %vm910_vm0, %v4593_v62  ;;  %v6639_v19 = vor.u32 %v6638_v3, %v6637_v20 }
 0x40a   : > { %v21818_v18 = vpack.c.bf16 %v4405_v25, %v4402_v4  ;;  %v21821_v51 = vsel %vm5652_vm5, %v5714_v2, %v5718_v36 }
 0x40b   : > { %v4409_v49 = vpop.f32.mrf.mxu1  ;;  %v21824_v9 = vsel %vm6577_vm6, %v6635_v59, %v6639_v19 }
 0x40c   : > { %v4410_v41 = vadd.f32 %v4409_v49, %v21455_v26  ;;  %v5130_v54 = vrot.slane %v21818_v18, 1  ;;  %v4598_v13 = vshll.u32 %v21818_v18, 16  ;;  %v5720_v60 = vshrl.u32 %v21818_v18, 16 }
 0x40d   : > { %v4411_v61 = vpop.f32.mrf.mxu1 }
 0x40e   : > { %v21831_v33 = vsel %vm2024_vm1, %v5128_v56, %v5130_v54  ;;  %v4600_v1 = vrot.slane %v4598_v13, 1  ;;  %v5722_v2 = vrot.slane %v5720_v60, 1  ;;  %v5723_v20 = vrot.slane %v4598_v13, 2 }
 0x40f   : > { %v4412_v3 = vpop.f32.mrf.mxu1  ;;  %17227 = vmatmul.mubr.msk.bf16.gmra.mxu1 %vm910_vm0, %v21831_v33  ;;  %v6641_v59 = vrot.slane %v5720_v60, 2  ;;  %v6642_v26 = vrot.slane %v4598_v13, 3 }
 0x410   : > { %v4413_v49 = vadd.f32 %v4412_v3, %v21458_v47  ;;  %17274 = vmatprep.mubr.msk.bf16.mxu1 %vm910_vm0, %v21509_v39  ;;  %v4601_v23 = vsel %vm4453_vm4, %v4596_v11, %v4600_v1  ;;  %v5724_v57 = vor.u32 %v5723_v20, %v5722_v2  ;;  %v26343_v47 = vrot.slane %v21818_v18, 2 }
 0x411   : > { %v4414_v4 = vpop.f32.mrf.mxu1  ;;  %17147 = vmatmul.mubr.msk.bf16.gmra.mxu0 %vm910_vm0, %v4601_v23  ;;  %v6643_v56 = vor.u32 %v6642_v26, %v6641_v59  ;;  %v17881_v26 = vld [vmem:[%s26300_s3 + $0x30] sm:$0xff]  }
 0x412   : > { %v4442_v25 = vpack.c.bf16 %v4413_v49, %v4410_v41  ;;  %17154 = vmatprep.mubr.msk.bf16.mxu0 %vm910_vm0, %v21465_v31  ;;  %v21843_v62 = vsel %vm5652_vm5, %v5718_v36, %v5724_v57  ;;  %v17880_v31 = vld [vmem:[%s26300_s3 + $0x60] sm:$0xff]   ;;  %v26344_v41 = vrot.slane %v21818_v18, 3 }
 0x413   : > { %v4417_v6 = vpop.f32.mrf.mxu1  ;;  %v21847_v39 = vsel %vm6577_vm6, %v6639_v19, %v6643_v56 }
 0x414   : > { %v4418_v13 = vadd.f32 %v4417_v6, %v21461_v21  ;;  %v5727_v60 = vshrl.u32 %v4442_v25, 16  ;;  %v5730_v11 = vshll.u32 %v4442_v25, 16  ;;  %v6055_v61 = vrot.slane %v4442_v25, 2 }
 0x415   : > { %v4419_v1 = vpop.f32.mrf.mxu1  ;;  %v5417_v36 = vrot.slane %v4442_v25, 1  ;;  %v6976_v2 = vrot.slane %v4442_v25, 3 }
 0x416   : > { %v4443_v20 = vpack.c.bf16 %v4418_v13, %v4418_v13  ;;  %v5729_v3 = vrot.slane %v5727_v60, 1  ;;  %v5732_v59 = vrot.slane %v5730_v11, 2  ;;  %v21857_v21 = vsel %vm6019_vm7, %v26343_v47, %v6055_v61 }
 0x417   : > { %17275 = vmatmul.mubr.msk.bf16.vlgmr.msra.gmra.mxu1 %vm910_vm0, %v21529_v14  ;;  %v4420_v19 = vpop.f32.mrf.mxu1  ;;  %v21865_v49 = vsel %vm2024_vm1, %v5130_v54, %v5417_v36  ;;  %v21870_v23 = vsel %vm6942_vm8, %v26344_v41, %v6976_v2  ;;  %v6645_v4 = vrot.slane %v5727_v60, 2  ;;  %v6646_v25 = vrot.slane %v5730_v11, 3  ;;  %v17882_v11 = vld [vmem:[%s26300_s3 + $0x58] sm:$0xff]  }
 0x418   : > { %v6342_v6 = vrot.slane %v4443_v20, 2  ;;  %v6650_v13 = vshrl.u32 %v4443_v20, 16  ;;  %v6653_v1 = vshll.u32 %v4443_v20, 16  ;;  %v6978_v47 = vrot.slane %v4443_v20, 3  ;;  %17278 = vmatprep.mubr.msk.bf16.mxu1 %vm910_vm0, %v21549_v52  ;;  %17351 = vmatpush3.bf16.msra.mxu1 %v21689_v0 }
 0x419   : > { %17155 = vmatmul.mubr.msk.bf16.vlgmr.msra.gmra.mxu0 %vm910_vm0, %v21473_v63  ;;  %v4421_v14 = vpop.f32.mrf.mxu1  ;;  %v5733_v54 = vor.u32 %v5732_v59, %v5729_v3  ;;  %17352 = vmatprep.subr.bf16.mxu1 %v17880_v31  ;;  %v6647_v36 = vor.u32 %v6646_v25, %v6645_v4  ;;  %v26451_v4 = vld [vmem:[#allocation13_spill] sm:$0xff]  ;;  %v6033_v25 = vrot.slane %v21606_v48, 2 }
 0x41a   : > { %v6652_v19 = vrot.slane %v6650_v13, 2  ;;  %v6655_v41 = vrot.slane %v6653_v1, 3  ;;  %17158 = vmatprep.mubr.msk.bf16.mxu0 %vm910_vm0, %v21486_v53  ;;  %17231 = vmatpush3.bf16.msra.mxu0 %v21629_v55  ;;  %v21881_v60 = vsel %vm6019_vm7, %v6055_v61, %v6342_v6  ;;  %v21884_v52 = vsel %vm6942_vm8, %v6976_v2, %v6978_v47  ;;  %v17883_v55 = vld [vmem:[%s26300_s3 + $0x88] sm:$0xff]  }
 0x41b   : > { %v5734_v0 = vsel %vm5652_vm5, %v5724_v57, %v5733_v54  ;;  %17232 = vmatprep.subr.bf16.mxu0 %v17881_v26  ;;  %v21891_v20 = vsel %vm6577_vm6, %v6643_v56, %v6647_v36  ;;  %v6031_v56 = vrot.slane %v21586_v17, 2  ;;  %v6035_v13 = vrot.slane %v21631_v8, 2 }
 0x41c   : > { %17353 = vmatpush3.bf16.msra.mxu1 %v17880_v31  ;;  %v6656_v3 = vor.u32 %v6655_v41, %v6652_v19 }
 0x41d   : > { %17430 = vmatprep.subr.bf16.mxu1 %v17883_v55  ;;  %v22034_v54 = vsel %vm6019_vm7, %v6031_v56, %v6033_v25  ;;  %v22041_v19 = vsel %vm6019_vm7, %v6033_v25, %v6035_v13 }
 0x41e   : > { %17233 = vmatpush3.bf16.msra.mxu0 %v17881_v26  ;;  %v21897_v47 = vsel %vm6577_vm6, %v6647_v36, %v6656_v3  ;;  %v26450_v26 = vld [vmem:[#allocation10_spill] sm:$0xff]  ;;  %v26455_v3 = vld [vmem:[#allocation16_spill] sm:$0xff] }
 0x41f   : > { %26447 = vst [vmem:[#allocation35_spill] sm:$0xff] %v21897_v47  ;;  %17279 = vmatmul.mubr.msk.bf16.gmra.mxu1 %vm910_vm0, %v21569_v27  ;;  %17310 = vmatprep.subr.bf16.mxu0 %v17882_v11  ;;  %v26345_v27 = vrot.slane %v21486_v53, 2  ;;  %v26472_v47 = vld [vmem:[#allocation26_spill] sm:$0xff] }
 0x420   : > { %17282 = vmatprep.mubr.msk.bf16.mxu1 %vm910_vm0, %v21589_v28  ;;  %v6023_v28 = vrot.slane %v21506_v7, 2 }
 0x421   : > { %17159 = vmatmul.mubr.msk.bf16.gmra.mxu0 %vm910_vm0, %v21506_v7 }
 0x422   : > { %17162 = vmatprep.mubr.msk.bf16.mxu0 %vm910_vm0, %v21526_v42 }
 0x427   : > { %17283 = vmatmul.mubr.msk.bf16.gmra.mxu1 %vm910_vm0, %v21609_v34  ;;  %v21961_v34 = vsel %vm6019_vm7, %v26345_v27, %v6023_v28  ;;  %v26465_v27 = vld [vmem:[#allocation22_spill] sm:$0xff] }
 0x428   : > { %17286 = vmatprep.mubr.msk.bf16.mxu1 %vm910_vm0, %v21634_v22  ;;  %v6027_v22 = vrot.slane %v21546_v32, 2 }
 0x429   : > { %17163 = vmatmul.mubr.msk.bf16.gmra.mxu0 %vm910_vm0, %v21546_v32 }
 0x42a   : > { %17166 = vmatprep.mubr.msk.bf16.mxu0 %vm910_vm0, %v21566_v38 }
 0x42f   : > { %17287 = vmatmul.mubr.msk.bf16.gmra.mxu1 %vm910_vm0, %v21655_v43  ;;  %v6025_v43 = vrot.slane %v21526_v42, 2 }
 0x430   : > { %17290 = vmatprep.mubr.msk.bf16.mxu1 %vm910_vm0, %v21675_v44 }
 0x431   : > { %17167 = vmatmul.mubr.msk.bf16.gmra.mxu0 %vm910_vm0, %v21586_v17  ;;  %v21975_v44 = vsel %vm6019_vm7, %v6023_v28, %v6025_v43 }
 0x432   : > { %17170 = vmatprep.mubr.msk.bf16.mxu0 %vm910_vm0, %v21606_v48 }
 0x437   : > { %17291 = vmatmul.mubr.msk.bf16.gmra.mxu1 %vm910_vm0, %v21701_v16  ;;  %v17884_v16 = vld [vmem:[%s26300_s3 + $0x80] sm:$0xff]  }
 0x438   : > { %17294 = vmatprep.mubr.msk.bf16.mxu1 %vm910_vm0, %v21721_v5 }
 0x439   : > { %17171 = vmatmul.mubr.msk.bf16.gmra.mxu0 %vm910_vm0, %v21631_v8 }
 0x43a   : > { %17174 = vmatprep.mubr.msk.bf16.mxu0 %vm910_vm0, %v21652_v35 }
 0x43f   : > { %17295 = vmatmul.mubr.msk.bf16.gmra.mxu1 %vm910_vm0, %v21741_v15  ;;  %v21982_v15 = vsel %vm6019_vm7, %v6025_v43, %v6027_v22  ;;  %v6039_v43 = vrot.slane %v21672_v46, 2 }
 0x440   : > { %17298 = vmatprep.mubr.msk.bf16.mxu1 %vm910_vm0, %v21761_v40 }
 0x441   : > { %17175 = vmatmul.mubr.msk.bf16.gmra.mxu0 %vm910_vm0, %v21672_v46 }
 0x442   : > { %17178 = vmatprep.mubr.msk.bf16.mxu0 %vm910_vm0, %v21698_v24 }
 0x447   : > { %17299 = vmatmul.mubr.msk.bf16.gmra.mxu1 %vm910_vm0, %v21781_v10  ;;  %v26448_v10 = vld [vmem:[#allocation6_spill] sm:$0xff] }
 0x448   : > { %17302 = vmatprep.mubr.msk.bf16.mxu1 %vm910_vm0, %v21801_v50  ;;  %v26449_v50 = vld [vmem:[#allocation8_spill] sm:$0xff] }
 0x449   : > { %17179 = vmatmul.mubr.msk.bf16.gmra.mxu0 %vm910_vm0, %v21718_v37 }
 0x44a   : > { %17182 = vmatprep.mubr.msk.bf16.mxu0 %vm910_vm0, %v21738_v29 }
 0x44f   : > { %17303 = vmatmul.mubr.msk.bf16.gmra.mxu1 %vm910_vm0, %v21821_v51  ;;  %v21977_v5 = vpop.f32.mrf.mxu1  ;;  %v6029_v51 = vrot.slane %v21566_v38, 2 }
 0x450   : > { %17306 = vmatprep.mubr.msk.bf16.mxu1 %vm910_vm0, %v21843_v62  ;;  %v22002_v62 = vld [vmem:[%s26300_s3 + $0x78] sm:$0xff]  }
 0x451   : > { %17183 = vmatmul.mubr.msk.bf16.gmra.mxu0 %vm910_vm0, %v21758_v58  ;;  %v21989_v40 = vpop.f32.mrf.mxu0  ;;  %v21996_v57 = vpop.f32.mrf.mxu1  ;;  %v22007_v31 = vsel %vm6019_vm7, %v6027_v22, %v6029_v51  ;;  %v22014_v2 = vsel %vm6019_vm7, %v6029_v51, %v6031_v56  ;;  %v26458_v51 = vld [vmem:[#allocation18_spill] sm:$0xff]  ;;  %v26459_v56 = vld [vmem:[#allocation20_spill] sm:$0xff] }
 0x452   : > { %17186 = vmatprep.mubr.msk.bf16.mxu0 %vm910_vm0, %v21778_v45 }
 0x453   : > { %v22004_v61 = vpop.f32.mrf.mxu0  ;;  %v22009_v41 = vpop.f32.mrf.mxu1 }
 0x455   : > { %v22019_v59 = vpop.f32.mrf.mxu0  ;;  %v22026_v6 = vpop.f32.mrf.mxu1 }
 0x456   : > { %26452 = vst [vmem:[#allocation6_spill] sm:$0xff] %v22026_v6 }
 0x457   : > { %17307 = vmatmul.mubr.msk.bf16.gmra.mxu1 %vm910_vm0, %v5734_v0  ;;  %v22029_v1 = vpop.f32.mrf.mxu0 }
 0x458   : > { %17354 = vmatprep.mubr.msk.bf16.mxu1 %vm910_vm0, %v21961_v34  ;;  %26453 = vst [vmem:[#allocation8_spill] sm:$0xff] %v22029_v1 }
 0x459   : > { %17187 = vmatmul.mubr.msk.bf16.gmra.mxu0 %vm910_vm0, %v21798_v30 }
 0x45a   : > { %17234 = vmatprep.mubr.msk.bf16.mxu0 %vm910_vm0, %v21495_v12  ;;  %v17885_v12 = vld [vmem:[%s26300_s3 + $0x50] sm:$0xff]  }
 0x45f   : > { %17355 = vmatmul.mubr.msk.bf16.vlgmr.msra.gmra.mxu1 %vm910_vm0, %v21975_v44  ;;  %v22031_v14 = vpop.f32.mrf.mxu1 }
 0x460   : > { %17358 = vmatprep.mubr.msk.bf16.mxu1 %vm910_vm0, %v21982_v15  ;;  %17431 = vmatpush3.bf16.msra.mxu1 %v17883_v55  ;;  %v6037_v55 = vrot.slane %v21652_v35, 2 }
 0x461   : > { %17235 = vmatmul.mubr.msk.bf16.vlgmr.msra.gmra.mxu0 %vm910_vm0, %v26448_v10  ;;  %17432 = vmatprep.subr.bf16.mxu1 %v17884_v16  ;;  %v22036_v36 = vpop.f32.mrf.mxu0  ;;  %v22045_v0 = vpop.f32.mrf.mxu1 }
 0x462   : > { %17238 = vmatprep.mubr.msk.bf16.mxu0 %vm910_vm0, %v26449_v50  ;;  %17311 = vmatpush3.bf16.msra.mxu0 %v17882_v11  ;;  %v26454_v11 = vld [vmem:[#allocation14_spill] sm:$0xff]  ;;  %v22065_v10 = vsel %vm6019_vm7, %v6037_v55, %v6039_v43 }
 0x463   : > { %17312 = vmatprep.subr.bf16.mxu0 %v17885_v12  ;;  %v22052_v28 = vpop.f32.mrf.mxu0  ;;  %v22055_v22 = vpop.f32.mrf.mxu1 }
 0x464   : > { %17433 = vmatpush3.bf16.msra.mxu1 %v17884_v16  ;;  %26456 = vst [vmem:[#allocation10_spill] sm:$0xff] %v22055_v22  ;;  %v22058_v16 = vsel %vm6019_vm7, %v6035_v13, %v6037_v55  ;;  %v6043_v13 = vrot.slane %v21718_v37, 2 }
 0x465   : > { %v22069_v50 = vpop.f32.mrf.mxu1 }
 0x466   : > { %17313 = vmatpush3.bf16.msra.mxu0 %v17885_v12  ;;  %v22060_v12 = vpop.f32.mrf.mxu0  ;;  %26457 = vst [vmem:[#allocation13_spill] sm:$0xff] %v22069_v50  ;;  %v26466_v50 = vld [vmem:[#allocation24_spill] sm:$0xff] }
 0x467   : > { %17359 = vmatmul.mubr.msk.bf16.gmra.mxu1 %vm910_vm0, %v22007_v31  ;;  %17390 = vmatprep.subr.bf16.mxu0 %v22002_v62 }
 0x468   : > { %17362 = vmatprep.mubr.msk.bf16.mxu1 %vm910_vm0, %v22014_v2 }
 0x469   : > { %17239 = vmatmul.mubr.msk.bf16.gmra.mxu0 %vm910_vm0, %v26450_v26  ;;  %v6041_v26 = vrot.slane %v21698_v24, 2 }
 0x46a   : > { %17242 = vmatprep.mubr.msk.bf16.mxu0 %vm910_vm0, %v26451_v4  ;;  %v22076_v4 = vpop.f32.mrf.mxu0 }
 0x46b   : > { %26460 = vst [vmem:[#allocation14_spill] sm:$0xff] %v22076_v4  ;;  %v6047_v4 = vrot.slane %v21758_v58, 2 }
 0x46f   : > { %17363 = vmatmul.mubr.msk.bf16.gmra.mxu1 %vm910_vm0, %v22034_v54  ;;  %v22078_v25 = vpop.f32.mrf.mxu1 }
 0x470   : > { %17366 = vmatprep.mubr.msk.bf16.mxu1 %vm910_vm0, %v22041_v19  ;;  %26461 = vst [vmem:[#allocation16_spill] sm:$0xff] %v22078_v25 }
 0x471   : > { %17243 = vmatmul.mubr.msk.bf16.gmra.mxu0 %vm910_vm0, %v26454_v11  ;;  %v22081_v11 = vpop.f32.mrf.mxu0  ;;  %v22086_v55 = vpop.f32.mrf.mxu1 }
 0x472   : > { %17246 = vmatprep.mubr.msk.bf16.mxu0 %vm910_vm0, %v26455_v3  ;;  %26462 = vst [vmem:[#allocation18_spill] sm:$0xff] %v22081_v11  ;;  %v22084_v3 = vsel %vm6019_vm7, %v6039_v43, %v6041_v26  ;;  %26463 = vst [vmem:[#allocation20_spill] sm:$0xff] %v22086_v55  ;;  %v6045_v43 = vrot.slane %v21738_v29, 2 }
 0x473   : > { %v22102_v6 = vpop.f32.mrf.mxu1 }
 0x474   : > { %26467 = vst [vmem:[#allocation22_spill] sm:$0xff] %v22102_v6 }
 0x475   : > { %v22110_v55 = vpop.f32.mrf.mxu1 }
 0x476   : > { %26469 = vst [vmem:[#allocation37_spill] sm:$0xff] %v22110_v55  ;;  %v6049_v55 = vrot.slane %v21778_v45, 2 }
 0x477   : > { %17367 = vmatmul.mubr.msk.bf16.gmra.mxu1 %vm910_vm0, %v22058_v16 }
 0x478   : > { %17370 = vmatprep.mubr.msk.bf16.mxu1 %vm910_vm0, %v22065_v10 }
 0x479   : > { %17247 = vmatmul.mubr.msk.bf16.gmra.mxu0 %vm910_vm0, %v26458_v51  ;;  %v22091_v51 = vsel %vm6019_vm7, %v6041_v26, %v6043_v13  ;;  %v22108_v26 = vsel %vm6019_vm7, %v6043_v13, %v6045_v43  ;;  %v26473_v13 = vld [vmem:[#allocation28_spill] sm:$0xff] }
 0x47a   : > { %17250 = vmatprep.mubr.msk.bf16.mxu0 %vm910_vm0, %v26459_v56  ;;  %v22095_v56 = vpop.f32.mrf.mxu0 }
 0x47b   : > { %26464 = vst [vmem:[#allocation36_spill] sm:$0xff] %v22095_v56  ;;  %v22134_v56 = vsel %vm6019_vm7, %v6047_v4, %v6049_v55 }
 0x47c   : > { %v22105_v1 = vpop.f32.mrf.mxu0 }
 0x47d   : > { %26468 = vst [vmem:[#allocation24_spill] sm:$0xff] %v22105_v1 }
 0x47f   : > { %17371 = vmatmul.mubr.msk.bf16.gmra.mxu1 %vm910_vm0, %v22084_v3  ;;  %v22121_v6 = vpop.f32.mrf.mxu1 }
 0x480   : > { %17374 = vmatprep.mubr.msk.bf16.mxu1 %vm910_vm0, %v22091_v51  ;;  %26471 = vst [vmem:[#allocation39_spill] sm:$0xff] %v22121_v6  ;;  %v26478_v6 = vld [vmem:[#allocation30_spill] sm:$0xff] }
 0x481   : > { %17251 = vmatmul.mubr.msk.bf16.gmra.mxu0 %vm910_vm0, %v26465_v27  ;;  %v22115_v27 = vsel %vm6019_vm7, %v6045_v43, %v6047_v4  ;;  %v6051_v43 = vrot.slane %v21798_v30, 2  ;;  %v22131_v1 = vpop.f32.mrf.mxu1 }
 0x482   : > { %17254 = vmatprep.mubr.msk.bf16.mxu0 %vm910_vm0, %v26466_v50  ;;  %v22119_v50 = vpop.f32.mrf.mxu0  ;;  %26475 = vst [vmem:[#allocation28_spill] sm:$0xff] %v22131_v1  ;;  %v26479_v1 = vld [vmem:[#allocation32_spill] sm:$0xff] }
 0x483   : > { %26470 = vst [vmem:[#allocation38_spill] sm:$0xff] %v22119_v50 }
 0x484   : > { %v22128_v25 = vpop.f32.mrf.mxu0 }
 0x485   : > { %26474 = vst [vmem:[#allocation26_spill] sm:$0xff] %v22128_v25  ;;  %v26481_v25 = vrot.slane %v21818_v18, 2 }
 0x486   : > { %v22136_v50 = vpop.f32.mrf.mxu0 }
 0x487   : > { %17375 = vmatmul.mubr.msk.bf16.gmra.mxu1 %vm910_vm0, %v22108_v26  ;;  %26476 = vst [vmem:[#allocation40_spill] sm:$0xff] %v22136_v50 }
 0x488   : > { %17378 = vmatprep.mubr.msk.bf16.mxu1 %vm910_vm0, %v22115_v27  ;;  %v22151_v4 = vpop.f32.mrf.mxu0 }
 0x489   : > { %17255 = vmatmul.mubr.msk.bf16.gmra.mxu0 %vm910_vm0, %v26472_v47  ;;  %v22141_v47 = vsel %vm6019_vm7, %v6049_v55, %v6051_v43  ;;  %v22158_v55 = vsel %vm6019_vm7, %v6051_v43, %v26481_v25  ;;  %v6944_v43 = vrot.slane %v21506_v7, 3  ;;  %v26489_v7 = vrot.slane %v21486_v53, 2 }
 0x48a   : > { %17258 = vmatprep.mubr.msk.bf16.mxu0 %vm910_vm0, %v26473_v13  ;;  %v22145_v13 = vpop.f32.mrf.mxu1  ;;  %v22160_v22 = vpop.f32.mrf.mxu0 }
 0x48b   : > { %26477 = vst [vmem:[#allocation41_spill] sm:$0xff] %v22145_v13  ;;  %26482 = vst [vmem:[#allocation32_spill] sm:$0xff] %v22160_v22  ;;  %v6943_v22 = vrot.slane %v21486_v53, 3 }
 0x48c   : > { %v22153_v50 = vpop.f32.mrf.mxu1 }
 0x48d   : > { %26480 = vst [vmem:[#allocation30_spill] sm:$0xff] %v22153_v50  ;;  %v6945_v13 = vsel %vm6942_vm8, %v6943_v22, %v6944_v43  ;;  %v6948_v22 = vrot.slane %v21546_v32, 3  ;;  %v6950_v32 = vrot.slane %v21566_v38, 3 }
 0x48f   : > { %17379 = vmatmul.mubr.msk.bf16.gmra.mxu1 %vm910_vm0, %v22134_v56  ;;  %v22162_v11 = vpop.f32.mrf.mxu1 }
 0x490   : > { %17382 = vmatprep.mubr.msk.bf16.mxu1 %vm910_vm0, %v22141_v47  ;;  %26483 = vst [vmem:[#allocation42_spill] sm:$0xff] %v22162_v11 }
 0x491   : > { %17259 = vmatmul.mubr.msk.bf16.gmra.mxu0 %vm910_vm0, %v26478_v6  ;;  %v22168_v6 = vpop.f32.mrf.mxu0  ;;  %v22174_v25 = vpop.f32.mrf.mxu1 }
 0x492   : > { %17262 = vmatprep.mubr.msk.bf16.mxu0 %vm910_vm0, %v26479_v1  ;;  %v26484_v1 = vld [vmem:[#allocation34_spill] sm:$0xff] }
 0x493   : > { %26485 = vst [vmem:[#allocation34_spill] sm:$0xff] %v22174_v25  ;;  %v22177_v50 = vpop.f32.mrf.mxu0  ;;  %v22180_v11 = vpop.f32.mrf.mxu1 }
 0x494   : > { %26486 = vst [vmem:[#allocation43_spill] sm:$0xff] %v22177_v50  ;;  %26487 = vst [vmem:[#allocation44_spill] sm:$0xff] %v22180_v11  ;;  %v6946_v11 = vrot.slane %v21526_v42, 3  ;;  %v17887_v42 = vld [vmem:[%s26300_s3 + $0x70] sm:$0xff]  }
 0x496   : > { %v6949_v53 = vsel %vm6942_vm8, %v6946_v11, %v6948_v22 }
 0x497   : > { %17383 = vmatmul.mubr.msk.bf16.gmra.mxu1 %vm910_vm0, %v22158_v55 }
 0x498   : > { %17386 = vmatprep.mubr.msk.bf16.mxu1 %vm910_vm0, %v21857_v21 }
 0x499   : > { %17263 = vmatmul.mubr.msk.bf16.gmra.mxu0 %vm910_vm0, %v26484_v1  ;;  %v6020_v1 = vrot.slane %v21473_v63, 2 }
 0x49a   : > { %17266 = vmatprep.mubr.msk.bf16.mxu0 %vm910_vm0, %v21831_v33  ;;  %v22187_v33 = vpop.f32.mrf.mxu0 }
 0x49b   : > { %26488 = vst [vmem:[#allocation45_spill] sm:$0xff] %v22187_v33  ;;  %v6022_v25 = vsel %vm6019_vm7, %v6020_v1, %v26489_v7  ;;  %v6947_v33 = vsel %vm6942_vm8, %v6944_v43, %v6946_v11  ;;  %v6952_v11 = vrot.slane %v21586_v17, 3  ;;  %v6951_v1 = vsel %vm6942_vm8, %v6948_v22, %v6950_v32 }
 0x49c   : > { %v22199_v63 = vpop.f32.mrf.mxu0  ;;  %v6954_v17 = vrot.slane %v21606_v48, 3  ;;  %v6956_v7 = vrot.slane %v21631_v8, 3  ;;  %v6958_v48 = vrot.slane %v21652_v35, 3  ;;  %v6962_v35 = vrot.slane %v21698_v24, 3 }
 0x49d   : > { %26491 = vst [vmem:[#allocation47_spill] sm:$0xff] %v22199_v63  ;;  %v6966_v24 = vrot.slane %v21738_v29, 3 }
 0x49f   : > { %17387 = vmatmul.mubr.msk.bf16.gmra.mxu1 %vm910_vm0, %v21881_v60  ;;  %v22196_v60 = vpop.f32.mrf.mxu1 }
 0x4a0   : > { %17434 = vmatprep.mubr.msk.bf16.mxu1 %vm910_vm0, %v6945_v13  ;;  %26490 = vst [vmem:[#allocation46_spill] sm:$0xff] %v22196_v60 }
 0x4a1   : > { %17267 = vmatmul.mubr.msk.bf16.gmra.mxu0 %vm910_vm0, %v21865_v49  ;;  %v22201_v13 = vpop.f32.mrf.mxu1  ;;  %v22204_v50 = vpop.f32.mrf.mxu0 }
 0x4a2   : > { %17314 = vmatprep.mubr.msk.bf16.mxu0 %vm910_vm0, %v6022_v25 }
 0x4a3   : > { %v22212_v49 = vpop.f32.mrf.mxu1  ;;  %v22220_v25 = vpop.f32.mrf.mxu0 }
 0x4a5   : > { %v22223_v43 = vpop.f32.mrf.mxu1 }
 0x4a7   : > { %17435 = vmatmul.mubr.msk.bf16.vlgmr.msra.gmra.mxu1 %vm910_vm0, %v6947_v33  ;;  %v22226_v33 = vpop.f32.mrf.mxu0  ;;  %v22231_v38 = vpop.f32.mrf.mxu1 }
 0x4a8   : > { %17438 = vmatprep.mubr.msk.bf16.mxu1 %vm910_vm0, %v6949_v53  ;;  %26492 = vst [vmem:[#allocation48_spill] sm:$0xff] %v22231_v38  ;;  %v6955_v53 = vsel %vm6942_vm8, %v6952_v11, %v6954_v17 }
 0x4a9   : > { %17315 = vmatmul.mubr.msk.bf16.vlgmr.msra.gmra.mxu0 %vm910_vm0, %v21961_v34  ;;  %v6953_v34 = vsel %vm6942_vm8, %v6950_v32, %v6952_v11  ;;  %v6960_v32 = vrot.slane %v21672_v46, 3 }
 0x4aa   : > { %17318 = vmatprep.mubr.msk.bf16.mxu0 %vm910_vm0, %v21975_v44  ;;  %17391 = vmatpush3.bf16.msra.mxu0 %v22002_v62  ;;  %v22238_v44 = vpop.f32.mrf.mxu0 }
 0x4ab   : > { %17392 = vmatprep.subr.bf16.mxu0 %v17887_v42  ;;  %26493 = vst [vmem:[#allocation49_spill] sm:$0xff] %v22238_v44 }
 0x4ae   : > { %17393 = vmatpush3.bf16.msra.mxu0 %v17887_v42 }
 0x4af   : > { %17439 = vmatmul.mubr.msk.bf16.gmra.mxu1 %vm910_vm0, %v6951_v1  ;;  %v22240_v62 = vpop.f32.mrf.mxu1  ;;  %v6959_v1 = vsel %vm6942_vm8, %v6956_v7, %v6958_v48 }
 0x4b0   : > { %17442 = vmatprep.mubr.msk.bf16.mxu1 %vm910_vm0, %v6953_v34 }
 0x4b1   : > { %17319 = vmatmul.mubr.msk.bf16.gmra.mxu0 %vm910_vm0, %v21982_v15  ;;  %v22243_v22 = vpop.f32.mrf.mxu0  ;;  %v22246_v42 = vpop.f32.mrf.mxu1  ;;  %v6957_v15 = vsel %vm6942_vm8, %v6954_v17, %v6956_v7  ;;  %v6961_v17 = vsel %vm6942_vm8, %v6958_v48, %v6960_v32  ;;  %v6964_v7 = vrot.slane %v21718_v37, 3 }
 0x4b2   : > { %17322 = vmatprep.mubr.msk.bf16.mxu0 %vm910_vm0, %v22007_v31 }
 0x4b3   : > { %v22251_v31 = vpop.f32.mrf.mxu0  ;;  %v22258_v8 = vpop.f32.mrf.mxu1 }
 0x4b5   : > { %v22261_v11 = vpop.f32.mrf.mxu0  ;;  %v22264_v34 = vpop.f32.mrf.mxu1 }
 0x4b6   : > { %26494 = vst [vmem:[#allocation50_spill] sm:$0xff] %v22264_v34 }
 0x4b7   : > { %17443 = vmatmul.mubr.msk.bf16.gmra.mxu1 %vm910_vm0, %v6955_v53 }
 0x4b8   : > { %17446 = vmatprep.mubr.msk.bf16.mxu1 %vm910_vm0, %v6957_v15  ;;  %v6963_v15 = vsel %vm6942_vm8, %v6960_v32, %v6962_v35 }
 0x4b9   : > { %17323 = vmatmul.mubr.msk.bf16.gmra.mxu0 %vm910_vm0, %v22014_v2  ;;  %v22269_v2 = vpop.f32.mrf.mxu0 }
 0x4ba   : > { %17326 = vmatprep.mubr.msk.bf16.mxu0 %vm910_vm0, %v22034_v54  ;;  %26495 = vst [vmem:[#allocation51_spill] sm:$0xff] %v22269_v2 }
 0x4bf   : > { %17447 = vmatmul.mubr.msk.bf16.gmra.mxu1 %vm910_vm0, %v6959_v1  ;;  %v22271_v54 = vpop.f32.mrf.mxu1  ;;  %v6965_v1 = vsel %vm6942_vm8, %v6962_v35, %v6964_v7 }
 0x4c0   : > { %17450 = vmatprep.mubr.msk.bf16.mxu1 %vm910_vm0, %v6961_v17  ;;  %26496 = vst [vmem:[#allocation52_spill] sm:$0xff] %v22271_v54  ;;  %v6967_v17 = vsel %vm6942_vm8, %v6964_v7, %v6966_v24 }
 0x4c1   : > { %17327 = vmatmul.mubr.msk.bf16.gmra.mxu0 %vm910_vm0, %v22041_v19  ;;  %v22278_v46 = vpop.f32.mrf.mxu0  ;;  %v22281_v53 = vpop.f32.mrf.mxu1 }
 0x4c2   : > { %17330 = vmatprep.mubr.msk.bf16.mxu0 %vm910_vm0, %v22058_v16  ;;  %26497 = vst [vmem:[#allocation53_spill] sm:$0xff] %v22281_v53  ;;  %v6968_v16 = vrot.slane %v21758_v58, 3  ;;  %v6970_v58 = vrot.slane %v21778_v45, 3 }
 0x4c3   : > { %v22284_v48 = vpop.f32.mrf.mxu0  ;;  %v22289_v19 = vpop.f32.mrf.mxu1 }
 0x4c4   : > { %26498 = vst [vmem:[#allocation54_spill] sm:$0xff] %v22289_v19 }
 0x4c5   : > { %v22296_v37 = vpop.f32.mrf.mxu0  ;;  %v22299_v32 = vpop.f32.mrf.mxu1 }
 0x4c6   : > { %26499 = vst [vmem:[#allocation55_spill] sm:$0xff] %v22299_v32  ;;  %v6971_v32 = vsel %vm6942_vm8, %v6968_v16, %v6970_v58 }
 0x4c7   : > { %17451 = vmatmul.mubr.msk.bf16.gmra.mxu1 %vm910_vm0, %v6963_v15  ;;  %v22302_v35 = vpop.f32.mrf.mxu0 }
 0x4c8   : > { %17454 = vmatprep.mubr.msk.bf16.mxu1 %vm910_vm0, %v6965_v1  ;;  %26500 = vst [vmem:[#allocation56_spill] sm:$0xff] %v22302_v35 }
 0x4c9   : > { %17331 = vmatmul.mubr.msk.bf16.gmra.mxu0 %vm910_vm0, %v22065_v10  ;;  %v6969_v10 = vsel %vm6942_vm8, %v6966_v24, %v6968_v16  ;;  %v6972_v24 = vrot.slane %v21798_v30, 3 }
 0x4ca   : > { %17334 = vmatprep.mubr.msk.bf16.mxu0 %vm910_vm0, %v22084_v3 }
 0x4cb   : > { %v6973_v45 = vsel %vm6942_vm8, %v6970_v58, %v6972_v24  ;;  %v26513_v58 = vrot.slane %v21818_v18, 3 }
 0x4cf   : > { %v22304_v15 = vpop.f32.mrf.mxu1  ;;  %17455 = vmatmul.mubr.msk.bf16.gmra.mxu1 %vm910_vm0, %v6967_v17 }
 0x4d0   : > { %26501 = vst [vmem:[#allocation57_spill] sm:$0xff] %v22304_v15  ;;  %17458 = vmatprep.mubr.msk.bf16.mxu1 %vm910_vm0, %v6969_v10 }
 0x4d1   : > { %v22309_v3 = vpop.f32.mrf.mxu0  ;;  %v22311_v29 = vpop.f32.mrf.mxu1  ;;  %17335 = vmatmul.mubr.msk.bf16.gmra.mxu0 %vm910_vm0, %v22091_v51 }
 0x4d2   : > { %26502 = vst [vmem:[#allocation58_spill] sm:$0xff] %v22309_v3  ;;  %26503 = vst [vmem:[#allocation59_spill] sm:$0xff] %v22311_v29  ;;  %17338 = vmatprep.mubr.msk.bf16.mxu0 %vm910_vm0, %v22108_v26 }
 0x4d3   : > { %v22318_v7 = vpop.f32.mrf.mxu0  ;;  %v22320_v1 = vpop.f32.mrf.mxu1 }
 0x4d4   : > { %26504 = vst [vmem:[#allocation60_spill] sm:$0xff] %v22318_v7  ;;  %26505 = vst [vmem:[#allocation61_spill] sm:$0xff] %v22320_v1 }
 0x4d5   : > { %v22323_v17 = vpop.f32.mrf.mxu0  ;;  %v22325_v10 = vpop.f32.mrf.mxu1 }
 0x4d6   : > { %26506 = vst [vmem:[#allocation62_spill] sm:$0xff] %v22323_v17  ;;  %26507 = vst [vmem:[#allocation63_spill] sm:$0xff] %v22325_v10 }
 0x4d7   : > { %v22328_v34 = vpop.f32.mrf.mxu0  ;;  %v22330_v51 = vpop.f32.mrf.mxu1  ;;  %17459 = vmatmul.mubr.msk.bf16.gmra.mxu1 %vm910_vm0, %v6971_v32 }
 0x4d8   : > { %26508 = vst [vmem:[#allocation64_spill] sm:$0xff] %v22328_v34  ;;  %26509 = vst [vmem:[#allocation65_spill] sm:$0xff] %v22330_v51  ;;  %17462 = vmatprep.mubr.msk.bf16.mxu1 %vm910_vm0, %v6973_v45  ;;  %v6975_v45 = vsel %vm6942_vm8, %v6972_v24, %v26513_v58 }
 0x4d9   : > { %v22335_v26 = vpop.f32.mrf.mxu0  ;;  %v22337_v38 = vpop.f32.mrf.mxu1  ;;  %17339 = vmatmul.mubr.msk.bf16.gmra.mxu0 %vm910_vm0, %v22115_v27 }
 0x4da   : > { %26510 = vst [vmem:[#allocation66_spill] sm:$0xff] %v22337_v38  ;;  %17342 = vmatprep.mubr.msk.bf16.mxu0 %vm910_vm0, %v22134_v56 }
 0x4db   : > { %v22343_v30 = vpop.f32.mrf.mxu0  ;;  %v22345_v16 = vpop.f32.mrf.mxu1 }
 0x4dc   : > { %26511 = vst [vmem:[#allocation67_spill] sm:$0xff] %v22345_v16 }
 0x4dd   : > { %v22347_v10 = vpop.f32.mrf.mxu0  ;;  %v22349_v32 = vpop.f32.mrf.mxu1 }
 0x4de   : > { %26512 = vst [vmem:[#allocation68_spill] sm:$0xff] %v22349_v32 }
 0x4df   : > { %v22354_v60 = vpop.f32.mrf.mxu0  ;;  %v22356_v34 = vpop.f32.mrf.mxu1  ;;  %17463 = vmatmul.mubr.msk.bf16.gmra.mxu1 %vm910_vm0, %v6975_v45 }
 0x4e0   : > { %26514 = vst [vmem:[#allocation69_spill] sm:$0xff] %v22354_v60  ;;  %26515 = vst [vmem:[#allocation70_spill] sm:$0xff] %v22356_v34  ;;  %17466 = vmatprep.mubr.msk.bf16.mxu1 %vm910_vm0, %v21870_v23 }
 0x4e1   : > { %v22361_v56 = vpop.f32.mrf.mxu0  ;;  %v22363_v27 = vpop.f32.mrf.mxu1  ;;  %17343 = vmatmul.mubr.msk.bf16.gmra.mxu0 %vm910_vm0, %v22141_v47 }
 0x4e2   : > { %26516 = vst [vmem:[#allocation71_spill] sm:$0xff] %v22363_v27  ;;  %17346 = vmatprep.mubr.msk.bf16.mxu0 %vm910_vm0, %v22158_v55  ;;  %v26522_v55 = vld [vmem:[#allocation7_spill] sm:$0xff] }
 0x4e3   : > { %v22369_v18 = vpop.f32.mrf.mxu0  ;;  %v22371_v24 = vpop.f32.mrf.mxu1 }
 0x4e4   : > { %26517 = vst [vmem:[#allocation72_spill] sm:$0xff] %v22371_v24 }
 0x4e5   : > { %v22373_v58 = vpop.f32.mrf.mxu0  ;;  %v22375_v45 = vpop.f32.mrf.mxu1 }
 0x4e6   : > { %26518 = vst [vmem:[#allocation73_spill] sm:$0xff] %v22375_v45 }
 0x4e7   : > { %v22377_v32 = vpop.f32.mrf.mxu0  ;;  %v22379_v23 = vpop.f32.mrf.mxu1  ;;  %17467 = vmatmul.mubr.msk.bf16.gmra.mxu1 %vm910_vm0, %v21884_v52 }
 0x4e8   : > { %26519 = vst [vmem:[#allocation74_spill] sm:$0xff] %v22377_v32  ;;  %26520 = vst [vmem:[#allocation75_spill] sm:$0xff] %v22379_v23 }
 0x4e9   : > { %v22383_v35 = vpop.f32.mrf.mxu0  ;;  %v22385_v47 = vpop.f32.mrf.mxu1  ;;  %17347 = vmatmul.mubr.msk.bf16.gmra.mxu0 %vm910_vm0, %v21857_v21  ;;  %v26528_v21 = vld [vmem:[#allocation9_spill] sm:$0xff] }
 0x4ea   : > { %26521 = vst [vmem:[#allocation76_spill] sm:$0xff] %v22385_v47  ;;  %17394 = vmatprep.mubr.msk.bf16.mxu0 %vm910_vm0, %v26522_v55  ;;  %v26529_v55 = vld [vmem:[#allocation12_spill] sm:$0xff] }
 0x4eb   : > { %v22391_v2 = vpop.f32.mrf.mxu0  ;;  %v22393_v45 = vpop.f32.mrf.mxu1 }
 0x4ec   : > { %26523 = vst [vmem:[#allocation7_spill] sm:$0xff] %v22393_v45 }
 0x4ed   : > { %v22395_v44 = vpop.f32.mrf.mxu0  ;;  %v22397_v63 = vpop.f32.mrf.mxu1 }
 0x4ee   : > { %26524 = vst [vmem:[#allocation77_spill] sm:$0xff] %v22397_v63 }
 0x4ef   : > { %v22399_v32 = vpop.f32.mrf.mxu0  ;;  %v22401_v52 = vpop.f32.mrf.mxu1 }
 0x4f0   : > { %26525 = vst [vmem:[#allocation78_spill] sm:$0xff] %v22399_v32  ;;  %26526 = vst [vmem:[#allocation79_spill] sm:$0xff] %v22401_v52 }
 0x4f1   : > { %v22403_v60 = vpop.f32.mrf.mxu0  ;;  %v22405_v47 = vpop.f32.mrf.mxu1  ;;  %17395 = vmatmul.mubr.msk.bf16.vlgmr.msra.gmra.mxu0 %vm910_vm0, %v26528_v21  ;;  %v26535_v21 = vld [vmem:[#allocation11_spill] sm:$0xff] }
 0x4f2   : > { %26527 = vst [vmem:[#allocation80_spill] sm:$0xff] %v22405_v47  ;;  %17398 = vmatprep.mubr.msk.bf16.mxu0 %vm910_vm0, %v26529_v55  ;;  %v26536_v55 = vld [vmem:[#allocation15_spill] sm:$0xff] }
 0x4f3   : > { %v22411_v23 = vpop.f32.mrf.mxu0  ;;  %v22413_v45 = vpop.f32.mrf.mxu1 }
 0x4f4   : > { %26530 = vst [vmem:[#allocation9_spill] sm:$0xff] %v22413_v45 }
 0x4f5   : > { %v22415_v24 = vpop.f32.mrf.mxu0  ;;  %v22417_v63 = vpop.f32.mrf.mxu1 }
 0x4f6   : > { %26531 = vst [vmem:[#allocation12_spill] sm:$0xff] %v22417_v63 }
 0x4f7   : > { %v22419_v32 = vpop.f32.mrf.mxu0  ;;  %v22421_v52 = vpop.f32.mrf.mxu1 }
 0x4f8   : > { %26532 = vst [vmem:[#allocation81_spill] sm:$0xff] %v22419_v32  ;;  %26533 = vst [vmem:[#allocation82_spill] sm:$0xff] %v22421_v52 }
 0x4f9   : > { %v22423_v27 = vpop.f32.mrf.mxu0  ;;  %v22425_v47 = vpop.f32.mrf.mxu1  ;;  %17399 = vmatmul.mubr.msk.bf16.gmra.mxu0 %vm910_vm0, %v26535_v21  ;;  %v26542_v21 = vld [vmem:[#allocation17_spill] sm:$0xff] }
 0x4fa   : > { %26534 = vst [vmem:[#allocation83_spill] sm:$0xff] %v22425_v47  ;;  %17402 = vmatprep.mubr.msk.bf16.mxu0 %vm910_vm0, %v26536_v55  ;;  %v26543_v55 = vld [vmem:[#allocation19_spill] sm:$0xff] }
 0x4fb   : > { %v22431_v34 = vpop.f32.mrf.mxu0  ;;  %v22433_v45 = vpop.f32.mrf.mxu1 }
 0x4fc   : > { %26537 = vst [vmem:[#allocation11_spill] sm:$0xff] %v22433_v45 }
 0x4fd   : > { %v22435_v16 = vpop.f32.mrf.mxu0  ;;  %v22437_v63 = vpop.f32.mrf.mxu1 }
 0x4fe   : > { %26538 = vst [vmem:[#allocation15_spill] sm:$0xff] %v22437_v63 }
 0x4ff   : > { %v22439_v32 = vpop.f32.mrf.mxu0  ;;  %v22441_v52 = vpop.f32.mrf.mxu1 }
 0x500   : > { %26539 = vst [vmem:[#allocation84_spill] sm:$0xff] %v22439_v32  ;;  %26540 = vst [vmem:[#allocation85_spill] sm:$0xff] %v22441_v52 }
 0x501   : > { %v22443_v38 = vpop.f32.mrf.mxu0  ;;  %v22445_v47 = vpop.f32.mrf.mxu1  ;;  %17403 = vmatmul.mubr.msk.bf16.gmra.mxu0 %vm910_vm0, %v26542_v21  ;;  %v26549_v21 = vld [vmem:[#allocation21_spill] sm:$0xff] }
 0x502   : > { %26541 = vst [vmem:[#allocation86_spill] sm:$0xff] %v22445_v47  ;;  %17406 = vmatprep.mubr.msk.bf16.mxu0 %vm910_vm0, %v26543_v55  ;;  %v26550_v55 = vld [vmem:[#allocation23_spill] sm:$0xff] }
 0x503   : > { %v22451_v51 = vpop.f32.mrf.mxu0  ;;  %v22453_v45 = vpop.f32.mrf.mxu1 }
 0x504   : > { %26544 = vst [vmem:[#allocation17_spill] sm:$0xff] %v22453_v45 }
 0x505   : > { %v22455_v1 = vpop.f32.mrf.mxu0  ;;  %v22457_v63 = vpop.f32.mrf.mxu1 }
 0x506   : > { %26545 = vst [vmem:[#allocation19_spill] sm:$0xff] %v22457_v63 }
 0x507   : > { %v22459_v32 = vpop.f32.mrf.mxu0  ;;  %v22461_v52 = vpop.f32.mrf.mxu1 }
 0x508   : > { %26546 = vst [vmem:[#allocation87_spill] sm:$0xff] %v22459_v32  ;;  %26547 = vst [vmem:[#allocation88_spill] sm:$0xff] %v22461_v52 }
 0x509   : > { %v22463_v29 = vpop.f32.mrf.mxu0  ;;  %v22465_v47 = vpop.f32.mrf.mxu1  ;;  %17407 = vmatmul.mubr.msk.bf16.gmra.mxu0 %vm910_vm0, %v26549_v21  ;;  %v26556_v21 = vld [vmem:[#allocation25_spill] sm:$0xff] }
 0x50a   : > { %26548 = vst [vmem:[#allocation89_spill] sm:$0xff] %v22465_v47  ;;  %17410 = vmatprep.mubr.msk.bf16.mxu0 %vm910_vm0, %v26550_v55  ;;  %v26557_v55 = vld [vmem:[#allocation27_spill] sm:$0xff] }
 0x50b   : > { %v22471_v15 = vpop.f32.mrf.mxu0  ;;  %v22473_v45 = vpop.f32.mrf.mxu1 }
 0x50c   : > { %26551 = vst [vmem:[#allocation21_spill] sm:$0xff] %v22473_v45 }
 0x50d   : > { %v22475_v17 = vpop.f32.mrf.mxu0  ;;  %v22477_v63 = vpop.f32.mrf.mxu1 }
 0x50e   : > { %26552 = vst [vmem:[#allocation23_spill] sm:$0xff] %v22477_v63 }
 0x50f   : > { %v22479_v32 = vpop.f32.mrf.mxu0  ;;  %v22481_v52 = vpop.f32.mrf.mxu1 }
 0x510   : > { %26553 = vst [vmem:[#allocation90_spill] sm:$0xff] %v22479_v32  ;;  %26554 = vst [vmem:[#allocation91_spill] sm:$0xff] %v22481_v52 }
 0x511   : > { %v22483_v7 = vpop.f32.mrf.mxu0  ;;  %v22485_v47 = vpop.f32.mrf.mxu1  ;;  %17411 = vmatmul.mubr.msk.bf16.gmra.mxu0 %vm910_vm0, %v26556_v21  ;;  %v26565_v21 = vld [vmem:[#allocation29_spill] sm:$0xff] }
 0x512   : > { %26555 = vst [vmem:[#allocation92_spill] sm:$0xff] %v22485_v47  ;;  %17414 = vmatprep.mubr.msk.bf16.mxu0 %vm910_vm0, %v26557_v55  ;;  %v26566_v55 = vld [vmem:[#allocation31_spill] sm:$0xff] }
 0x513   : > { %v22491_v19 = vpop.f32.mrf.mxu0  ;;  %v22493_v45 = vpop.f32.mrf.mxu1 }
 0x514   : > { %26558 = vst [vmem:[#allocation25_spill] sm:$0xff] %v22493_v45 }
 0x515   : > { %v22495_v3 = vpop.f32.mrf.mxu0  ;;  %v22497_v63 = vpop.f32.mrf.mxu1 }
 0x516   : > { %26559 = vst [vmem:[#allocation27_spill] sm:$0xff] %v22495_v3  ;;  %26560 = vst [vmem:[#allocation93_spill] sm:$0xff] %v22497_v63  ;;  %v4936_v63 = vadd.f32 %v22335_v26, %v21989_v40  ;;  %v26571_v40 = vld [vmem:[#allocation33_spill] sm:$0xff] }
 0x517   : > { %v22499_v32 = vpop.f32.mrf.mxu0  ;;  %v22501_v52 = vpop.f32.mrf.mxu1 }
 0x518   : > { %26561 = vst [vmem:[#allocation94_spill] sm:$0xff] %v22499_v32  ;;  %26562 = vst [vmem:[#allocation95_spill] sm:$0xff] %v22501_v52 }
 0x519   : > { %v22503_v53 = vpop.f32.mrf.mxu0  ;;  %v22505_v47 = vpop.f32.mrf.mxu1  ;;  %17415 = vmatmul.mubr.msk.bf16.gmra.mxu0 %vm910_vm0, %v26565_v21 }
 0x51a   : > { %26563 = vst [vmem:[#allocation96_spill] sm:$0xff] %v22503_v53  ;;  %26564 = vst [vmem:[#allocation97_spill] sm:$0xff] %v22505_v47  ;;  %17418 = vmatprep.mubr.msk.bf16.mxu0 %vm910_vm0, %v26566_v55  ;;  %v4928_v47 = vadd.f32 %v22343_v30, %v22004_v61  ;;  %v4939_v55 = vadd.f32 %v22347_v10, %v22019_v59  ;;  %v4952_v59 = vadd.f32 %v22361_v56, %v22036_v36 }
 0x51b   : > { %v22511_v54 = vpop.f32.mrf.mxu0  ;;  %v22513_v45 = vpop.f32.mrf.mxu1 }
 0x51c   : > { %26567 = vst [vmem:[#allocation29_spill] sm:$0xff] %v22511_v54  ;;  %26568 = vst [vmem:[#allocation31_spill] sm:$0xff] %v22513_v45  ;;  %v5377_v54 = vadd.f32 %v21977_v5, %v4936_v63  ;;  %v5375_v61 = vadd.f32 %v21996_v57, %v4928_v47  ;;  %v5378_v63 = vadd.f32 %v22009_v41, %v4939_v55 }
 0x51d   : > { %v22517_v32 = vpop.f32.mrf.mxu0  ;;  %v22519_v52 = vpop.f32.mrf.mxu1  ;;  %v4955_v47 = vadd.f32 %v22373_v58, %v22060_v12  ;;  %v5381_v36 = vadd.f32 %v22031_v14, %v4952_v59  ;;  %v26574_v58 = vld [vmem:[#allocation10_spill] sm:$0xff] }
 0x51e   : > { %26569 = vst [vmem:[#allocation98_spill] sm:$0xff] %v22519_v52 }
 0x51f   : > { %v22523_v53 = vpop.f32.mrf.mxu0  ;;  %v22525_v21 = vpop.f32.mrf.mxu1 }
 0x521   : > { %v17236_v45 = vpop.f32.mrf.mxu0  ;;  %v22530_v3 = vpop.f32.mrf.mxu1  ;;  %17419 = vmatmul.mubr.msk.bf16.gmra.mxu0 %vm910_vm0, %v26571_v40 }
 0x522   : > { %26570 = vst [vmem:[#allocation99_spill] sm:$0xff] %v22530_v3  ;;  %v22534_v26 = vadd.f32 %v17236_v45, %v5377_v54  ;;  %17422 = vmatprep.mubr.msk.bf16.mxu0 %vm910_vm0, %v21824_v9  ;;  %v4944_v54 = vadd.f32 %v22369_v18, %v22052_v28 }
 0x523   : > { %v5468_v30 = vpop.f32.mrf.mxu0  ;;  %v22539_v52 = vpop.f32.mrf.mxu1 }
 0x524   : > { %v22543_v5 = vadd.f32 %v5468_v30, %v5375_v61  ;;  %v5379_v28 = vadd.f32 %v22045_v0, %v4944_v54  ;;  %v26573_v61 = vld [vmem:[#allocation18_spill] sm:$0xff]  ;;  %v5382_v30 = vadd.f32 %v26574_v58, %v4955_v47  ;;  %v26578_v54 = vld [vmem:[#allocation24_spill] sm:$0xff]  ;;  %v26581_v47 = vld [vmem:[#allocation35_spill] sm:$0xff] }
 0x525   : > { %v17237_v10 = vpop.f32.mrf.mxu0  ;;  %v22546_v3 = vpop.f32.mrf.mxu1  ;;  %v4968_v12 = vadd.f32 %v22383_v35, %v26573_v61  ;;  %v26579_v35 = vld [vmem:[#allocation16_spill] sm:$0xff] }
 0x526   : > { %v22550_v45 = vadd.f32 %v17237_v10, %v5378_v63 }
 0x527   : > { %v22552_v9 = vpop.f32.mrf.mxu0  ;;  %v22554_v57 = vpop.f32.mrf.mxu1 }
 0x529   : > { %v17240_v56 = vpop.f32.mrf.mxu0  ;;  %v22559_v40 = vpop.f32.mrf.mxu1  ;;  %17423 = vmatmul.mubr.msk.bf16.gmra.mxu0 %vm910_vm0, %v21847_v39  ;;  %v26576_v39 = vld [vmem:[#allocation36_spill] sm:$0xff] }
 0x52a   : > { %v22563_v41 = vadd.f32 %v17240_v56, %v5381_v36  ;;  %17426 = vmatprep.mubr.msk.bf16.mxu0 %vm910_vm0, %v21891_v20  ;;  %v4960_v10 = vadd.f32 %v22391_v2, %v26576_v39  ;;  %v4971_v56 = vadd.f32 %v22395_v44, %v26578_v54  ;;  %v26582_v2 = vld [vmem:[#allocation20_spill] sm:$0xff]  ;;  %v26585_v44 = vld [vmem:[#allocation22_spill] sm:$0xff] }
 0x52b   : > { %v5484_v18 = vpop.f32.mrf.mxu0  ;;  %v22568_v55 = vpop.f32.mrf.mxu1 }
 0x52c   : > { %26572 = vst [vmem:[#allocation33_spill] sm:$0xff] %v22568_v55  ;;  %v22572_v14 = vadd.f32 %v5484_v18, %v5379_v28  ;;  %v5385_v28 = vadd.f32 %v26579_v35, %v4968_v12  ;;  %v5386_v12 = vadd.f32 %v26585_v44, %v4971_v56  ;;  %v26591_v44 = vld [vmem:[#allocation28_spill] sm:$0xff] }
 0x52d   : > { %v17241_v59 = vpop.f32.mrf.mxu0  ;;  %v22575_v63 = vpop.f32.mrf.mxu1 }
 0x52e   : > { %26575 = vst [vmem:[#allocation18_spill] sm:$0xff] %v22575_v63  ;;  %v22579_v36 = vadd.f32 %v17241_v59, %v5382_v30  ;;  %v5383_v30 = vadd.f32 %v26582_v2, %v4960_v10  ;;  %v26584_v63 = vld [vmem:[#allocation26_spill] sm:$0xff]  ;;  %v4987_v2 = vadd.f32 %v22415_v24, %v22151_v4 }
 0x52f   : > { %v22581_v20 = vpop.f32.mrf.mxu0  ;;  %v22583_v0 = vpop.f32.mrf.mxu1 }
 0x530   : > { %26577 = vst [vmem:[#allocation10_spill] sm:$0xff] %v22583_v0  ;;  %v4984_v0 = vadd.f32 %v22403_v60, %v26584_v63  ;;  %v26589_v60 = vld [vmem:[#allocation39_spill] sm:$0xff] }
 0x531   : > { %v17244_v18 = vpop.f32.mrf.mxu0  ;;  %v22588_v61 = vpop.f32.mrf.mxu1  ;;  %17427 = vmatmul.mubr.msk.bf16.gmra.mxu0 %vm910_vm0, %v26581_v47 }
 0x532   : > { %26580 = vst [vmem:[#allocation36_spill] sm:$0xff] %v22588_v61  ;;  %v22592_v58 = vadd.f32 %v17244_v18, %v5385_v28  ;;  %v26587_v61 = vld [vmem:[#allocation40_spill] sm:$0xff]  ;;  %v5389_v63 = vadd.f32 %v26589_v60, %v4984_v0  ;;  %v26595_v0 = vld [vmem:[#allocation43_spill] sm:$0xff] }
 0x533   : > { %v5500_v59 = vpop.f32.mrf.mxu0  ;;  %v22595_v39 = vpop.f32.mrf.mxu1  ;;  %v4976_v47 = vadd.f32 %v22411_v23, %v26587_v61  ;;  %v5000_v61 = vadd.f32 %v22423_v27, %v22168_v6  ;;  %v4992_v60 = vadd.f32 %v22431_v34, %v26595_v0  ;;  %v26598_v6 = vld [vmem:[#allocation42_spill] sm:$0xff]  ;;  %v26602_v0 = vld [vmem:[#allocation44_spill] sm:$0xff] }
 0x534   : > { %26583 = vst [vmem:[#allocation24_spill] sm:$0xff] %v22595_v39  ;;  %v22599_v55 = vadd.f32 %v5500_v59, %v5383_v30 }
 0x535   : > { %v17245_v54 = vpop.f32.mrf.mxu0  ;;  %v22602_v35 = vpop.f32.mrf.mxu1  ;;  %v5393_v27 = vadd.f32 %v26598_v6, %v5000_v61  ;;  %v5008_v61 = vadd.f32 %v22451_v51, %v22220_v25  ;;  %v5032_v51 = vadd.f32 %v22463_v29, %v22243_v22 }
 0x536   : > { %26586 = vst [vmem:[#allocation16_spill] sm:$0xff] %v22602_v35  ;;  %v22606_v28 = vadd.f32 %v17245_v54, %v5386_v12  ;;  %v5387_v35 = vadd.f32 %v26591_v44, %v4976_v47  ;;  %v26593_v54 = vld [vmem:[#allocation41_spill] sm:$0xff] }
 0x537   : > { %v22608_v18 = vpop.f32.mrf.mxu0  ;;  %v22610_v10 = vpop.f32.mrf.mxu1  ;;  %v26597_v44 = vld [vmem:[#allocation45_spill] sm:$0xff]  ;;  %v5401_v22 = vadd.f32 %v22240_v62, %v5032_v51  ;;  %v5040_v62 = vadd.f32 %v22491_v19, %v22284_v48  ;;  %v26618_v19 = vld [vmem:[#allocation58_spill] sm:$0xff] }
 0x538   : > { %26588 = vst [vmem:[#allocation35_spill] sm:$0xff] %v22610_v10  ;;  %v5390_v10 = vadd.f32 %v26593_v54, %v4987_v2  ;;  %v26600_v54 = vld [vmem:[#allocation34_spill] sm:$0xff] }
 0x539   : > { %v17248_v30 = vpop.f32.mrf.mxu0  ;;  %v22615_v59 = vpop.f32.mrf.mxu1 }
 0x53a   : > { %26590 = vst [vmem:[#allocation20_spill] sm:$0xff] %v22615_v59  ;;  %v22617_v56 = vadd.f32 %v17248_v30, %v5389_v63 }
 0x53b   : > { %v5516_v39 = vpop.f32.mrf.mxu0  ;;  %v22620_v23 = vpop.f32.mrf.mxu1 }
 0x53c   : > { %26592 = vst [vmem:[#allocation26_spill] sm:$0xff] %v22620_v23  ;;  %v22624_v12 = vadd.f32 %v5516_v39, %v5387_v35  ;;  %v5003_v23 = vadd.f32 %v22435_v16, %v26597_v44 }
 0x53d   : > { %v17249_v4 = vpop.f32.mrf.mxu0  ;;  %v22627_v24 = vpop.f32.mrf.mxu1 }
 0x53e   : > { %26594 = vst [vmem:[#allocation22_spill] sm:$0xff] %v22627_v24  ;;  %v22631_v63 = vadd.f32 %v17249_v4, %v5390_v10  ;;  %v5391_v24 = vadd.f32 %v26600_v54, %v4992_v60  ;;  %v5016_v10 = vadd.f32 %v22443_v38, %v22204_v50 }
 0x53f   : > { %v22633_v30 = vpop.f32.mrf.mxu0  ;;  %v22635_v47 = vpop.f32.mrf.mxu1 }
 0x540   : > { %26596 = vst [vmem:[#allocation40_spill] sm:$0xff] %v22635_v47  ;;  %v5394_v47 = vadd.f32 %v26602_v0, %v5003_v23  ;;  %v5397_v50 = vadd.f32 %v22201_v13, %v5016_v10  ;;  %v5024_v13 = vadd.f32 %v22471_v15, %v22251_v31  ;;  %v5048_v15 = vadd.f32 %v22483_v7, %v22278_v46  ;;  %v26614_v46 = vld [vmem:[#allocation52_spill] sm:$0xff] }
 0x541   : > { %v17252_v39 = vpop.f32.mrf.mxu0  ;;  %v22640_v35 = vpop.f32.mrf.mxu1 }
 0x542   : > { %26599 = vst [vmem:[#allocation39_spill] sm:$0xff] %v22640_v35  ;;  %v22642_v2 = vadd.f32 %v17252_v39, %v5393_v27  ;;  %v5019_v39 = vadd.f32 %v22455_v1, %v22226_v33  ;;  %v5405_v7 = vadd.f32 %v26614_v46, %v5048_v15  ;;  %v26622_v15 = vld [vmem:[#allocation60_spill] sm:$0xff]  ;;  %v26623_v46 = vld [vmem:[#allocation29_spill] sm:$0xff]  ;;  %v26693_v35 = vld [vmem:[#allocation87_spill] sm:$0xff] }
 0x543   : > { %v5532_v59 = vpop.f32.mrf.mxu0  ;;  %v22645_v34 = vpop.f32.mrf.mxu1 }
 0x544   : > { %26601 = vst [vmem:[#allocation28_spill] sm:$0xff] %v22645_v34  ;;  %v22649_v4 = vadd.f32 %v5532_v59, %v5391_v24  ;;  %v5395_v24 = vadd.f32 %v22212_v49, %v5008_v61  ;;  %v5398_v0 = vadd.f32 %v22223_v43, %v5019_v39  ;;  %v5035_v61 = vadd.f32 %v22475_v17, %v22261_v11 }
 0x545   : > { %v17253_v16 = vpop.f32.mrf.mxu0  ;;  %v22652_v44 = vpop.f32.mrf.mxu1  ;;  %v5399_v39 = vadd.f32 %v22246_v42, %v5024_v13 }
 0x546   : > { %26603 = vst [vmem:[#allocation41_spill] sm:$0xff] %v22652_v44  ;;  %v22656_v6 = vadd.f32 %v17253_v16, %v5394_v47 }
 0x547   : > { %v22658_v27 = vpop.f32.mrf.mxu0  ;;  %v22660_v60 = vpop.f32.mrf.mxu1 }
 0x548   : > { %26604 = vst [vmem:[#allocation43_spill] sm:$0xff] %v22660_v60 }
 0x549   : > { %v17256_v38 = vpop.f32.mrf.mxu0  ;;  %v22665_v59 = vpop.f32.mrf.mxu1 }
 0x54a   : > { %26605 = vst [vmem:[#allocation45_spill] sm:$0xff] %v22665_v59  ;;  %v22667_v23 = vadd.f32 %v17256_v38, %v5397_v50 }
 0x54b   : > { %v5548_v54 = vpop.f32.mrf.mxu0  ;;  %v22670_v25 = vpop.f32.mrf.mxu1 }
 0x54c   : > { %26606 = vst [vmem:[#allocation42_spill] sm:$0xff] %v22670_v25  ;;  %v22674_v47 = vadd.f32 %v5548_v54, %v5395_v24  ;;  %v5402_v54 = vadd.f32 %v22258_v8, %v5035_v61  ;;  %v26616_v61 = vld [vmem:[#allocation53_spill] sm:$0xff] }
 0x54d   : > { %v17257_v33 = vpop.f32.mrf.mxu0  ;;  %v22677_v1 = vpop.f32.mrf.mxu1 }
 0x54e   : > { %26607 = vst [vmem:[#allocation34_spill] sm:$0xff] %v22677_v1  ;;  %v22681_v10 = vadd.f32 %v17257_v33, %v5398_v0  ;;  %v26613_v33 = vld [vmem:[#allocation27_spill] sm:$0xff] }
 0x54f   : > { %v22683_v16 = vpop.f32.mrf.mxu0  ;;  %v22685_v49 = vpop.f32.mrf.mxu1  ;;  %v5051_v13 = vadd.f32 %v26613_v33, %v22296_v37 }
 0x550   : > { %26608 = vst [vmem:[#allocation44_spill] sm:$0xff] %v22685_v49 }
 0x551   : > { %v17260_v29 = vpop.f32.mrf.mxu0  ;;  %v22690_v50 = vpop.f32.mrf.mxu1 }
 0x552   : > { %26609 = vst [vmem:[#allocation100_spill] sm:$0xff] %v22690_v50  ;;  %v22692_v43 = vadd.f32 %v17260_v29, %v5401_v22 }
 0x553   : > { %v5564_v38 = vpop.f32.mrf.mxu0  ;;  %v22695_v31 = vpop.f32.mrf.mxu1 }
 0x554   : > { %26610 = vst [vmem:[#allocation101_spill] sm:$0xff] %v22695_v31  ;;  %v22699_v24 = vadd.f32 %v5564_v38, %v5399_v39  ;;  %v5403_v39 = vadd.f32 %v26616_v61, %v5040_v62  ;;  %v26625_v61 = vld [vmem:[#allocation62_spill] sm:$0xff] }
 0x555   : > { %v17261_v11 = vpop.f32.mrf.mxu0  ;;  %v22702_v17 = vpop.f32.mrf.mxu1 }
 0x556   : > { %26611 = vst [vmem:[#allocation102_spill] sm:$0xff] %v22702_v17  ;;  %v22706_v51 = vadd.f32 %v17261_v11, %v5402_v54  ;;  %v26619_v54 = vld [vmem:[#allocation96_spill] sm:$0xff] }
 0x557   : > { %v22708_v0 = vpop.f32.mrf.mxu0  ;;  %v22710_v42 = vpop.f32.mrf.mxu1  ;;  %v5064_v11 = vadd.f32 %v26619_v54, %v26618_v19  ;;  %v26626_v19 = vld [vmem:[#allocation57_spill] sm:$0xff] }
 0x558   : > { %26612 = vst [vmem:[#allocation103_spill] sm:$0xff] %v22710_v42  ;;  %v26620_v42 = vld [vmem:[#allocation54_spill] sm:$0xff] }
 0x559   : > { %v17264_v22 = vpop.f32.mrf.mxu0  ;;  %v22715_v29 = vpop.f32.mrf.mxu1  ;;  %v5406_v31 = vadd.f32 %v26620_v42, %v5051_v13  ;;  %v26628_v13 = vld [vmem:[#allocation59_spill] sm:$0xff] }
 0x55a   : > { %26615 = vst [vmem:[#allocation27_spill] sm:$0xff] %v22715_v29  ;;  %v22717_v8 = vadd.f32 %v17264_v22, %v5405_v7  ;;  %v5056_v29 = vadd.f32 %v26623_v46, %v26622_v15 }
 0x55b   : > { %v5580_v38 = vpop.f32.mrf.mxu0  ;;  %v22720_v48 = vpop.f32.mrf.mxu1 }
 0x55c   : > { %26617 = vst [vmem:[#allocation52_spill] sm:$0xff] %v22720_v48  ;;  %v22724_v17 = vadd.f32 %v5580_v38, %v5403_v39  ;;  %v5067_v48 = vadd.f32 %v22517_v32, %v26625_v61  ;;  %v5409_v39 = vadd.f32 %v26626_v19, %v5064_v11  ;;  %v26631_v11 = vld [vmem:[#allocation65_spill] sm:$0xff] }
 0x55d   : > { %v17265_v37 = vpop.f32.mrf.mxu0  ;;  %v22727_v33 = vpop.f32.mrf.mxu1  ;;  %v5980_v61 = vadd.f32 %v26631_v11, %v22534_v26  ;;  %v26635_v11 = vld [vmem:[#allocation70_spill] sm:$0xff] }
 0x55e   : > { %26621 = vst [vmem:[#allocation53_spill] sm:$0xff] %v22727_v33  ;;  %v22731_v7 = vadd.f32 %v17265_v37, %v5406_v31  ;;  %v5407_v33 = vadd.f32 %v26628_v13, %v5056_v29  ;;  %v26629_v31 = vld [vmem:[#allocation61_spill] sm:$0xff]  ;;  %v26634_v13 = vld [vmem:[#allocation67_spill] sm:$0xff] }
 0x55f   : > { %v22733_v22 = vpop.f32.mrf.mxu0  ;;  %v22735_v62 = vpop.f32.mrf.mxu1  ;;  %v5410_v37 = vadd.f32 %v26629_v31, %v5067_v48 }
 0x560   : > { %26624 = vst [vmem:[#allocation58_spill] sm:$0xff] %v22735_v62 }
 0x561   : > { %v17268_v38 = vpop.f32.mrf.mxu0  ;;  %v22740_v54 = vpop.f32.mrf.mxu1 }
 0x562   : > { %26627 = vst [vmem:[#allocation96_spill] sm:$0xff] %v22740_v54  ;;  %v22742_v42 = vadd.f32 %v17268_v38, %v5409_v39 }
 0x563   : > { %v5596_v50 = vpop.f32.mrf.mxu0  ;;  %v22748_v46 = vpop.f32.mrf.mxu1 }
 0x564   : > { %v22745_v15 = vadd.f32 %v5596_v50, %v5407_v33  ;;  %26630 = vst [vmem:[#allocation54_spill] sm:$0xff] %v22748_v46  ;;  %v26633_v50 = vld [vmem:[#allocation66_spill] sm:$0xff] }
 0x565   : > { %v17269_v62 = vpop.f32.mrf.mxu0  ;;  %v22756_v19 = vpop.f32.mrf.mxu1  ;;  %v5978_v29 = vadd.f32 %v26633_v50, %v22543_v5  ;;  %v26636_v50 = vld [vmem:[#allocation71_spill] sm:$0xff] }
 0x566   : > { %v22750_v49 = vadd.f32 %v17269_v62, %v5410_v37  ;;  %26632 = vst [vmem:[#allocation60_spill] sm:$0xff] %v22756_v19  ;;  %v5981_v62 = vadd.f32 %v26634_v13, %v22550_v45  ;;  %v26637_v13 = vld [vmem:[#allocation72_spill] sm:$0xff] }
 0x567   : > { %v22752_v32 = vpop.f32.mrf.mxu0  ;;  %v22766_v31 = vpop.f32.mrf.mxu1 }
 0x569   : > { %v17316_v39 = vpop.f32.mrf.mxu0 }
 0x56a   : > { %v22758_v38 = vadd.f32 %v17316_v39, %v5980_v61  ;;  %v5984_v61 = vadd.f32 %v26635_v11, %v22563_v41  ;;  %v22774_v39 = vpop.f32.mrf.mxu1  ;;  %v26639_v11 = vld [vmem:[#allocation75_spill] sm:$0xff] }
 0x56b   : > { %v6157_v33 = vpop.f32.mrf.mxu0 }
 0x56c   : > { %v22762_v48 = vadd.f32 %v6157_v33, %v5978_v29  ;;  %v5982_v29 = vadd.f32 %v26636_v50, %v22572_v14  ;;  %v26641_v50 = vld [vmem:[#allocation76_spill] sm:$0xff] }
 0x56d   : > { %v17317_v37 = vpop.f32.mrf.mxu0 }
 0x56e   : > { %v22768_v46 = vadd.f32 %v17317_v37, %v5981_v62  ;;  %v5985_v62 = vadd.f32 %v26637_v13, %v22579_v36  ;;  %v22784_v37 = vpop.f32.mrf.mxu1  ;;  %v26642_v13 = vld [vmem:[#allocation7_spill] sm:$0xff] }
 0x56f   : > { %v22770_v26 = vpop.f32.mrf.mxu0  ;;  %26638 = vst [vmem:[#allocation29_spill] sm:$0xff] %v22784_v37  ;;  %v26705_v37 = vld [vmem:[#allocation48_spill] sm:$0xff] }
 0x571   : > { %v17320_v19 = vpop.f32.mrf.mxu0 }
 0x572   : > { %v22776_v5 = vadd.f32 %v17320_v19, %v5984_v61  ;;  %v5988_v19 = vadd.f32 %v26639_v11, %v22592_v58  ;;  %v22792_v61 = vpop.f32.mrf.mxu1  ;;  %v26644_v11 = vld [vmem:[#allocation79_spill] sm:$0xff] }
 0x573   : > { %v6173_v33 = vpop.f32.mrf.mxu0  ;;  %26640 = vst [vmem:[#allocation62_spill] sm:$0xff] %v22792_v61 }
 0x574   : > { %v22780_v45 = vadd.f32 %v6173_v33, %v5982_v29  ;;  %v5986_v29 = vadd.f32 %v26641_v50, %v22599_v55  ;;  %v26646_v50 = vld [vmem:[#allocation80_spill] sm:$0xff] }
 0x575   : > { %v17321_v54 = vpop.f32.mrf.mxu0 }
 0x576   : > { %v22786_v1 = vadd.f32 %v17321_v54, %v5985_v62  ;;  %v5989_v54 = vadd.f32 %v26642_v13, %v22606_v28  ;;  %v22802_v62 = vpop.f32.mrf.mxu1  ;;  %v26647_v13 = vld [vmem:[#allocation9_spill] sm:$0xff] }
 0x577   : > { %v22788_v41 = vpop.f32.mrf.mxu0  ;;  %26643 = vst [vmem:[#allocation57_spill] sm:$0xff] %v22802_v62 }
 0x579   : > { %v17324_v25 = vpop.f32.mrf.mxu0 }
 0x57a   : > { %v22794_v14 = vadd.f32 %v17324_v25, %v5988_v19  ;;  %v5992_v25 = vadd.f32 %v26644_v11, %v22617_v56  ;;  %v22810_v19 = vpop.f32.mrf.mxu1  ;;  %v26650_v11 = vld [vmem:[#allocation82_spill] sm:$0xff] }
 0x57b   : > { %v6189_v33 = vpop.f32.mrf.mxu0  ;;  %26645 = vst [vmem:[#allocation59_spill] sm:$0xff] %v22810_v19 }
 0x57c   : > { %v22798_v36 = vadd.f32 %v6189_v33, %v5986_v29  ;;  %v5990_v29 = vadd.f32 %v26646_v50, %v22624_v12  ;;  %v26653_v50 = vld [vmem:[#allocation83_spill] sm:$0xff] }
 0x57d   : > { %v17325_v59 = vpop.f32.mrf.mxu0 }
 0x57e   : > { %v22804_v60 = vadd.f32 %v17325_v59, %v5989_v54  ;;  %v5993_v59 = vadd.f32 %v26647_v13, %v22631_v63  ;;  %v22820_v54 = vpop.f32.mrf.mxu1  ;;  %v26655_v13 = vld [vmem:[#allocation11_spill] sm:$0xff] }
 0x57f   : > { %v22806_v58 = vpop.f32.mrf.mxu0  ;;  %26648 = vst [vmem:[#allocation61_spill] sm:$0xff] %v22820_v54 }
 0x581   : > { %v17328_v61 = vpop.f32.mrf.mxu0 }
 0x582   : > { %v22812_v55 = vadd.f32 %v17328_v61, %v5992_v25  ;;  %v5996_v61 = vadd.f32 %v26650_v11, %v22642_v2  ;;  %v22828_v25 = vpop.f32.mrf.mxu1  ;;  %v26658_v11 = vld [vmem:[#allocation85_spill] sm:$0xff] }
 0x583   : > { %v6205_v33 = vpop.f32.mrf.mxu0  ;;  %26651 = vst [vmem:[#allocation66_spill] sm:$0xff] %v22828_v25 }
 0x584   : > { %v22816_v28 = vadd.f32 %v6205_v33, %v5990_v29  ;;  %v5994_v29 = vadd.f32 %v26653_v50, %v22649_v4  ;;  %v26661_v50 = vld [vmem:[#allocation86_spill] sm:$0xff] }
 0x585   : > { %v17329_v62 = vpop.f32.mrf.mxu0 }
 0x586   : > { %v22822_v44 = vadd.f32 %v17329_v62, %v5993_v59  ;;  %v5997_v62 = vadd.f32 %v26655_v13, %v22656_v6  ;;  %v22838_v59 = vpop.f32.mrf.mxu1  ;;  %v26663_v13 = vld [vmem:[#allocation17_spill] sm:$0xff] }
 0x587   : > { %v22824_v56 = vpop.f32.mrf.mxu0  ;;  %26656 = vst [vmem:[#allocation71_spill] sm:$0xff] %v22838_v59 }
 0x588   : > { %26649 = vst [vmem:[#allocation65_spill] sm:$0xff] %v22822_v44 }
 0x589   : > { %v17332_v19 = vpop.f32.mrf.mxu0 }
 0x58a   : > { %v22830_v12 = vadd.f32 %v17332_v19, %v5996_v61  ;;  %v6000_v19 = vadd.f32 %v26658_v11, %v22667_v23  ;;  %v22846_v61 = vpop.f32.mrf.mxu1  ;;  %v26666_v11 = vld [vmem:[#allocation88_spill] sm:$0xff] }
 0x58b   : > { %v6221_v33 = vpop.f32.mrf.mxu0  ;;  %26659 = vst [vmem:[#allocation75_spill] sm:$0xff] %v22846_v61 }
 0x58c   : > { %26652 = vst [vmem:[#allocation67_spill] sm:$0xff] %v22830_v12  ;;  %v22834_v63 = vadd.f32 %v6221_v33, %v5994_v29  ;;  %v5998_v29 = vadd.f32 %v26661_v50, %v22674_v47  ;;  %v26669_v50 = vld [vmem:[#allocation89_spill] sm:$0xff]  ;;  %v26697_v12 = vld [vmem:[#allocation94_spill] sm:$0xff] }
 0x58d   : > { %v17333_v54 = vpop.f32.mrf.mxu0 }
 0x58e   : > { %26654 = vst [vmem:[#allocation70_spill] sm:$0xff] %v22834_v63  ;;  %v22840_v34 = vadd.f32 %v17333_v54, %v5997_v62  ;;  %v6001_v54 = vadd.f32 %v26663_v13, %v22681_v10  ;;  %v22856_v62 = vpop.f32.mrf.mxu1  ;;  %v26671_v13 = vld [vmem:[#allocation21_spill] sm:$0xff]  ;;  %v26696_v63 = vld [vmem:[#allocation56_spill] sm:$0xff] }
 0x58f   : > { %v22842_v2 = vpop.f32.mrf.mxu0  ;;  %26664 = vst [vmem:[#allocation79_spill] sm:$0xff] %v22856_v62 }
 0x590   : > { %26657 = vst [vmem:[#allocation72_spill] sm:$0xff] %v22840_v34 }
 0x591   : > { %v17336_v25 = vpop.f32.mrf.mxu0 }
 0x592   : > { %v22848_v4 = vadd.f32 %v17336_v25, %v6000_v19  ;;  %v6004_v25 = vadd.f32 %v26666_v11, %v22692_v43  ;;  %v22864_v19 = vpop.f32.mrf.mxu1  ;;  %v26674_v43 = vld [vmem:[#allocation8_spill] sm:$0xff]  ;;  %v26675_v11 = vld [vmem:[#allocation69_spill] sm:$0xff] }
 0x593   : > { %v6237_v33 = vpop.f32.mrf.mxu0  ;;  %26667 = vst [vmem:[#allocation9_spill] sm:$0xff] %v22864_v19  ;;  %v4931_v19 = vadd.f32 %v26675_v11, %v26674_v43  ;;  %v26684_v43 = vld [vmem:[#allocation38_spill] sm:$0xff] }
 0x594   : > { %26660 = vst [vmem:[#allocation76_spill] sm:$0xff] %v22848_v4  ;;  %v22852_v6 = vadd.f32 %v6237_v33, %v5998_v29  ;;  %v6002_v29 = vadd.f32 %v26669_v50, %v22699_v24  ;;  %v26685_v11 = vld [vmem:[#allocation78_spill] sm:$0xff]  ;;  %v26686_v4 = vld [vmem:[#allocation32_spill] sm:$0xff] }
 0x595   : > { %v17337_v59 = vpop.f32.mrf.mxu0 }
 0x596   : > { %26662 = vst [vmem:[#allocation7_spill] sm:$0xff] %v22852_v6  ;;  %v22858_v34 = vadd.f32 %v17337_v59, %v6001_v54  ;;  %v6005_v59 = vadd.f32 %v26671_v13, %v22706_v51  ;;  %v22874_v54 = vpop.f32.mrf.mxu1  ;;  %v26680_v51 = vld [vmem:[#allocation92_spill] sm:$0xff]  ;;  %v26681_v13 = vld [vmem:[#allocation14_spill] sm:$0xff] }
 0x597   : > { %v22860_v23 = vpop.f32.mrf.mxu0  ;;  %26672 = vst [vmem:[#allocation11_spill] sm:$0xff] %v22874_v54  ;;  %v26682_v54 = vld [vmem:[#allocation74_spill] sm:$0xff] }
 0x598   : > { %26665 = vst [vmem:[#allocation80_spill] sm:$0xff] %v22858_v34  ;;  %v22884_v24 = vpop.f32.mrf.mxu1 }
 0x599   : > { %v17340_v61 = vpop.f32.mrf.mxu0  ;;  %26678 = vst [vmem:[#allocation17_spill] sm:$0xff] %v22884_v24  ;;  %v26690_v24 = vld [vmem:[#allocation47_spill] sm:$0xff] }
 0x59a   : > { %v22866_v47 = vadd.f32 %v17340_v61, %v6004_v25  ;;  %v26677_v61 = vld [vmem:[#allocation91_spill] sm:$0xff] }
 0x59b   : > { %v6253_v33 = vpop.f32.mrf.mxu0  ;;  %v6008_v25 = vadd.f32 %v26677_v61, %v22717_v8 }
 0x59c   : > { %26668 = vst [vmem:[#allocation82_spill] sm:$0xff] %v22866_v47  ;;  %v22870_v10 = vadd.f32 %v6253_v33, %v6002_v29  ;;  %v6006_v33 = vadd.f32 %v26680_v51, %v22724_v17  ;;  %v4963_v47 = vadd.f32 %v26685_v11, %v26684_v43  ;;  %v26692_v51 = vld [vmem:[#allocation49_spill] sm:$0xff]  ;;  %v5043_v43 = vadd.f32 %v26697_v12, %v26696_v63  ;;  %v22909_v11 = vpop.f32.mrf.mxu1  ;;  %v26703_v12 = vld [vmem:[#allocation95_spill] sm:$0xff] }
 0x59d   : > { %v17341_v62 = vpop.f32.mrf.mxu0  ;;  %26698 = vst [vmem:[#allocation21_spill] sm:$0xff] %v22909_v11  ;;  %v6012_v63 = vadd.f32 %v26703_v12, %v22742_v42  ;;  %v26704_v11 = vld [vmem:[#allocation46_spill] sm:$0xff] }
 0x59e   : > { %26670 = vst [vmem:[#allocation83_spill] sm:$0xff] %v22870_v10  ;;  %v22876_v34 = vadd.f32 %v17341_v62, %v6005_v59  ;;  %v4947_v62 = vadd.f32 %v26682_v54, %v26681_v13  ;;  %v26683_v59 = vld [vmem:[#allocation6_spill] sm:$0xff]  ;;  %v5011_v54 = vadd.f32 %v26693_v35, %v26692_v51  ;;  %v26694_v13 = vld [vmem:[#allocation51_spill] sm:$0xff] }
 0x59f   : > { %v22880_v6 = vpop.f32.mrf.mxu0 }
 0x5a0   : > { %26673 = vst [vmem:[#allocation85_spill] sm:$0xff] %v22876_v34  ;;  %26676 = vst [vmem:[#allocation86_spill] sm:$0xff] %v22880_v6  ;;  %v5376_v34 = vadd.f32 %v26683_v59, %v4931_v19  ;;  %v26687_v6 = vld [vmem:[#allocation81_spill] sm:$0xff]  ;;  %v26695_v19 = vld [vmem:[#allocation90_spill] sm:$0xff]  ;;  %v5396_v44 = vadd.f32 %v26705_v37, %v5011_v54 }
 0x5a1   : > { %v17344_v50 = vpop.f32.mrf.mxu0  ;;  %v4979_v8 = vadd.f32 %v26687_v6, %v26686_v4  ;;  %v5027_v59 = vadd.f32 %v26695_v19, %v26694_v13  ;;  %v26699_v6 = vld [vmem:[#allocation64_spill] sm:$0xff]  ;;  %v26702_v13 = vld [vmem:[#allocation30_spill] sm:$0xff] }
 0x5a2   : > { %v22886_v29 = vadd.f32 %v17344_v50, %v6008_v25  ;;  %v26689_v25 = vld [vmem:[#allocation25_spill] sm:$0xff]  ;;  %v5632_v12 = vadd.f32 %v22683_v16, %v5396_v44 }
 0x5a3   : > { %v6269_v10 = vpop.f32.mrf.mxu0  ;;  %v6009_v50 = vadd.f32 %v26689_v25, %v22731_v7  ;;  %v5612_v7 = vadd.f32 %v22552_v9, %v5376_v34  ;;  %v26701_v25 = vld [vmem:[#allocation37_spill] sm:$0xff]  ;;  %v5388_v19 = vadd.f32 %v26702_v13, %v4979_v8  ;;  %v22927_v9 = vpop.f32.mrf.mxu1  ;;  %v26708_v8 = vld [vmem:[#allocation63_spill] sm:$0xff] }
 0x5a4   : > { %26679 = vst [vmem:[#allocation88_spill] sm:$0xff] %v22886_v29  ;;  %v22897_v61 = vadd.f32 %v6269_v10, %v6006_v33  ;;  %v26691_v29 = vld [vmem:[#allocation84_spill] sm:$0xff]  ;;  %v5059_v10 = vadd.f32 %v22523_v53, %v26699_v6  ;;  %v5384_v51 = vadd.f32 %v26701_v25, %v4963_v47  ;;  %v26706_v53 = vld [vmem:[#allocation50_spill] sm:$0xff]  ;;  %v26712_v44 = vld [vmem:[#allocation73_spill] sm:$0xff] }
 0x5a5   : > { %v4995_v17 = vadd.f32 %v26691_v29, %v26690_v24  ;;  %v17345_v4 = vpop.f32.mrf.mxu0  ;;  %v26700_v29 = vld [vmem:[#allocation13_spill] sm:$0xff]  ;;  %v17890_v47 = vld [vmem:[%s26305_s8 + $0x4] ss:$12 sps:$4 sm:$0xff]  }
 0x5a6   : > { %26688 = vst [vmem:[#allocation89_spill] sm:$0xff] %v22897_v61  ;;  %v22913_v33 = vadd.f32 %v17345_v4, %v6009_v50  ;;  %v5380_v35 = vadd.f32 %v26700_v29, %v4947_v62  ;;  %v5400_v50 = vadd.f32 %v26706_v53, %v5027_v59  ;;  %v26707_v4 = vld [vmem:[#allocation55_spill] sm:$0xff]  ;;  %v5408_v29 = vadd.f32 %v26708_v8, %v5059_v10  ;;  %v26714_v53 = vld [vmem:[#allocation12_spill] sm:$0xff] }
 0x5a7   : > { %v22916_v24 = vpop.f32.mrf.mxu0  ;;  %v5392_v61 = vadd.f32 %v26704_v11, %v4995_v17  ;;  %v5404_v6 = vadd.f32 %v26707_v4, %v5043_v43  ;;  %v26709_v17 = vld [vmem:[#allocation97_spill] sm:$0xff]  ;;  %v5620_v54 = vadd.f32 %v22608_v18, %v5384_v51  ;;  %v5624_v59 = vadd.f32 %v22633_v30, %v5388_v19  ;;  %v26710_v11 = vld [vmem:[#allocation68_spill] sm:$0xff]  ;;  %7879 = vmatprep.mubr.bf16.mxu0 %v17890_v47  ;;  %v26711_v10 = vld [vmem:[#allocation31_spill] sm:$0xff]  ;;  %v22950_v30 = vpop.f32.mrf.mxu1 }
 0x5a8   : > { %v5616_v62 = vadd.f32 %v22581_v20, %v5380_v35  ;;  %v6010_v37 = vadd.f32 %v26709_v17, %v22745_v15  ;;  %v5979_v25 = vadd.f32 %v26710_v11, %v5612_v7  ;;  %v6013_v35 = vadd.f32 %v26711_v10, %v22750_v49  ;;  %v26713_v19 = vld [vmem:[#allocation77_spill] sm:$0xff]  ;;  %v26717_v8 = vld [vmem:[#allocation23_spill] sm:$0xff] }
 0x5a9   : > { %v17348_v34 = vpop.f32.mrf.mxu0  ;;  %v5628_v43 = vadd.f32 %v22658_v27, %v5392_v61  ;;  %v5640_v15 = vadd.f32 %v22733_v22, %v5404_v6  ;;  %v5644_v18 = vadd.f32 %v22752_v32, %v5408_v29  ;;  %v26346_v61 = vmov 0.0   ;;  %v26715_v32 = vld [vmem:[#allocation15_spill] sm:$0xff]  ;;  %v26718_v17 = vld [vmem:[#allocation93_spill] sm:$0xff] }
 0x5aa   : > { %v22934_v42 = vadd.f32 %v17348_v34, %v6012_v63  ;;  %v5636_v63 = vadd.f32 %v22708_v0, %v5400_v50  ;;  %17500 = vmatprep.subr.bf16.mxu1 %v26346_v61  ;;  %v6301_v7 = vadd.f32 %v22770_v26, %v5979_v25  ;;  %v5983_v16 = vadd.f32 %v26712_v44, %v5616_v62  ;;  %v26716_v6 = vld [vmem:[#allocation19_spill] sm:$0xff]  ;;  %v22967_v62 = vpop.f32.mrf.mxu1 }
 0x5ab   : > { %v6285_v13 = vpop.f32.mrf.mxu0  ;;  %v5987_v49 = vadd.f32 %v26713_v19, %v5620_v54  ;;  %v5991_v0 = vadd.f32 %v26714_v53, %v5624_v59  ;;  %v5995_v4 = vadd.f32 %v26715_v32, %v5628_v43  ;;  %v5999_v34 = vadd.f32 %v26716_v6, %v5632_v12  ;;  %v26719_v54 = vld [vmem:[#allocation98_spill] sm:$0xff]  ;;  %v26720_v43 = vld [vmem:[#allocation99_spill] sm:$0xff] }
 0x5ac   : > { %v22943_v20 = vadd.f32 %v6285_v13, %v6010_v37  ;;  %v6305_v22 = vadd.f32 %v22788_v41, %v5983_v16  ;;  %v6538_v47 = vadd.f32 %v22525_v21, %v22758_v38  ;;  %v6003_v29 = vadd.f32 %v26717_v8, %v5636_v63  ;;  %v22985_v13 = vld [vmem:[%s26301_s4] ss:$0 sm:$0xff]  ;;  %v26727_v19 = vld [vmem:[#allocation35_spill] sm:$0xff]  ;;  %v26730_v32 = vld [vmem:[#allocation26_spill] sm:$0xff] }
 0x5ad   : > { %v17349_v27 = vpop.f32.mrf.mxu0  ;;  %v6309_v26 = vadd.f32 %v22806_v58, %v5987_v49  ;;  %v22971_v37 = vadd.f32 %v26718_v17, %v5640_v15  ;;  %v22974_v59 = vadd.f32 %v26719_v54, %v5644_v18  ;;  %v6536_v25 = vadd.f32 %v26720_v43, %v22762_v48  ;;  %v26721_v48 = vld [vmem:[#allocation33_spill] sm:$0xff]  ;;  %v26723_v15 = vld [vmem:[#allocation10_spill] sm:$0xff]  ;;  %v26734_v17 = vld [vmem:[#allocation40_spill] sm:$0xff] }
 0x5ae   : > { %v22955_v51 = vadd.f32 %v17349_v27, %v6013_v35  ;;  %v6539_v21 = vadd.f32 %v22539_v52, %v22768_v46  ;;  %v6537_v38 = vadd.f32 %v22546_v3, %v6301_v7  ;;  %v6313_v58 = vadd.f32 %v22824_v56, %v5991_v0  ;;  %v26722_v46 = vld [vmem:[#allocation18_spill] sm:$0xff]  ;;  %v22999_v27 = vpop.f32.mrf.mxu1 }
 0x5af   : > { %v22959_v50 = vpop.f32.mrf.mxu0  ;;  %v6542_v10 = vadd.f32 %v22554_v57, %v22776_v5  ;;  %v6540_v35 = vadd.f32 %v22559_v40, %v22780_v45  ;;  %v6543_v63 = vadd.f32 %v26721_v48, %v22786_v1  ;;  %v6541_v56 = vadd.f32 %v26722_v46, %v6305_v22  ;;  %v26724_v5 = vld [vmem:[#allocation36_spill] sm:$0xff]  ;;  %v26729_v22 = vld [vmem:[#allocation65_spill] sm:$0xff]  ;;  %v26731_v6 = vld [vmem:[#allocation22_spill] sm:$0xff] }
 0x5b0   : > { %v22997_v18 = vadd.f32 %v26723_v15, %v22794_v14  ;;  %v6317_v7 = vadd.f32 %v22842_v2, %v5995_v4  ;;  %v23004_v40 = vadd.f32 %v26724_v5, %v22798_v36  ;;  %v26725_v1 = vld [vmem:[#allocation24_spill] sm:$0xff]  ;;  %v23018_v49 = vadd.f32 %v26727_v19, %v22812_v55  ;;  %v26733_v55 = vld [vmem:[#allocation67_spill] sm:$0xff]  ;;  %v23046_v43 = vpop.f32.mrf.mxu1  ;;  %v26740_v48 = vld [vmem:[#allocation41_spill] sm:$0xff] }
 0x5b1   : > { %v17396_v41 = vpop.f32.mrf.mxu0  ;;  %v23008_v45 = vadd.f32 %v26725_v1, %v22804_v60  ;;  %v26728_v2 = vld [vmem:[#allocation20_spill] sm:$0xff]  ;;  %v6321_v36 = vadd.f32 %v22860_v23, %v5999_v34  ;;  %v23028_v4 = vadd.f32 %v26730_v32, %v26729_v22  ;;  %v23036_v54 = vadd.f32 %v26734_v17, %v26733_v55  ;;  %v26742_v46 = vld [vmem:[#allocation43_spill] sm:$0xff]  ;;  %v26747_v22 = vld [vmem:[#allocation34_spill] sm:$0xff] }
 0x5b2   : > { %v6903_v11 = vadd.f32 %v17396_v41, %v6538_v47  ;;  %v23022_v53 = vadd.f32 %v26728_v2, %v22816_v28  ;;  %v23031_v47 = vadd.f32 %v26731_v6, %v6313_v58  ;;  %v26735_v28 = vld [vmem:[#allocation70_spill] sm:$0xff]  ;;  %v26736_v41 = vld [vmem:[#allocation39_spill] sm:$0xff]  ;;  %v26737_v23 = vld [vmem:[#allocation72_spill] sm:$0xff] }
 0x5b3   : > { %v6758_v12 = vpop.f32.mrf.mxu0  ;;  %v26743_v1 = vld [vmem:[#allocation7_spill] sm:$0xff]  ;;  %v26745_v19 = vld [vmem:[#allocation80_spill] sm:$0xff]  ;;  %v23070_v32 = vadd.f32 %v26747_v22, %v6321_v36  ;;  %v26748_v6 = vld [vmem:[#allocation82_spill] sm:$0xff] }
 0x5b4   : > { %v7225_v52 = vadd.f32 %v22766_v31, %v6903_v11  ;;  %v6901_v3 = vadd.f32 %v6758_v12, %v6536_v25  ;;  %v26726_v31 = vld [vmem:[#allocation16_spill] sm:$0xff]  ;;  %v23040_v11 = vadd.f32 %v26736_v41, %v26735_v28  ;;  %v26739_v25 = vld [vmem:[#allocation86_spill] sm:$0xff]  ;;  %v26750_v28 = vld [vmem:[#allocation83_spill] sm:$0xff] }
 0x5b5   : > { %v17397_v57 = vpop.f32.mrf.mxu0  ;;  %v23011_v44 = vadd.f32 %v26726_v31, %v6309_v26  ;;  %v26732_v26 = vld [vmem:[#allocation29_spill] sm:$0xff]  ;;  %v26751_v41 = vld [vmem:[#allocation100_spill] sm:$0xff] }
 0x5b6   : > { %v23014_v16 = vadd.f32 %v22985_v13, %v7225_v52  ;;  %v6904_v14 = vadd.f32 %v17397_v57, %v6539_v21  ;;  %v7223_v60 = vadd.f32 %v22774_v39, %v6901_v3  ;;  %v26738_v39 = vld [vmem:[#allocation28_spill] sm:$0xff]  ;;  %v6325_v21 = vadd.f32 %v26739_v25, %v6003_v29  ;;  %v26744_v31 = vld [vmem:[#allocation45_spill] sm:$0xff]  ;;  %v26746_v29 = vld [vmem:[#allocation42_spill] sm:$0xff] }
 0x5b7   : > { %v6761_v0 = vpop.f32.mrf.mxu0  ;;  %v23044_v34 = vadd.f32 %v26738_v39, %v26737_v23  ;;  %v23050_v52 = vadd.f32 %v26740_v48, %v6317_v7  ;;  %v26741_v3 = vld [vmem:[#allocation76_spill] sm:$0xff]  ;;  %v23079_v23 = vadd.f32 %v26751_v41, %v26750_v28  ;;  %v26752_v39 = vld [vmem:[#allocation85_spill] sm:$0xff] }
 0x5b8   : > { %v7226_v8 = vadd.f32 %v26732_v26, %v6904_v14  ;;  %v6902_v58 = vadd.f32 %v6761_v0, %v6537_v38  ;;  %v23054_v15 = vadd.f32 %v26742_v46, %v26741_v3  ;;  %v26351_v57 = vmax.f32 %v23014_v16, 0.0  ;;  %v26749_v26 = vld [vmem:[#allocation44_spill] sm:$0xff]  ;;  %v26753_v25 = vld [vmem:[#allocation101_spill] sm:$0xff] }
 0x5b9   : > { %v17400_v12 = vpop.f32.mrf.mxu0  ;;  %v23062_v14 = vadd.f32 %v26744_v31, %v26743_v1  ;;  %v23066_v38 = vadd.f32 %v26746_v29, %v26745_v19  ;;  %v7266_v7 = vadd.f32 %v22985_v13, %v7223_v60  ;;  %v23074_v55 = vadd.f32 %v26749_v26, %v26748_v6  ;;  %v26754_v60 = vld [vmem:[#allocation62_spill] sm:$0xff]  ;;  %v26757_v19 = vld [vmem:[#allocation88_spill] sm:$0xff]  ;;  %v26759_v6 = vld [vmem:[#allocation59_spill] sm:$0xff] }
 0x5ba   : > { %v23058_v5 = vadd.f32 %v22985_v13, %v7226_v8  ;;  %v6907_v2 = vadd.f32 %v17400_v12, %v6542_v10  ;;  %v23083_v48 = vadd.f32 %v26753_v25, %v26752_v39  ;;  %v23085_v10 = vpop.f32.mrf.mxu1  ;;  %v7224_v36 = vadd.f32 %v26754_v60, %v6902_v58  ;;  %v26755_v12 = vld [vmem:[#allocation57_spill] sm:$0xff]  ;;  %v26756_v1 = vld [vmem:[#allocation102_spill] sm:$0xff]  ;;  %v26761_v25 = vld [vmem:[#allocation27_spill] sm:$0xff] }
 0x5bb   : > { %v6774_v0 = vpop.f32.mrf.mxu0  ;;  %v23090_v31 = vadd.f32 %v26756_v1, %v6325_v21  ;;  %v6329_v58 = vadd.f32 %v22916_v24, %v22971_v37  ;;  %v26760_v39 = vld [vmem:[#allocation89_spill] sm:$0xff] }
 0x5bc   : > { %v26350_v8 = vmax.f32 %v23058_v5, 0.0  ;;  %v6905_v17 = vadd.f32 %v6774_v0, %v6540_v35  ;;  %v7229_v3 = vadd.f32 %v26755_v12, %v6907_v2  ;;  %v26758_v35 = vld [vmem:[#allocation103_spill] sm:$0xff]  ;;  %v7373_v0 = vrot.slane %v26351_v57, 2 }
 0x5bd   : > { %v17401_v46 = vpop.f32.mrf.mxu0  ;;  %v23094_v29 = vadd.f32 %v26758_v35, %v26757_v19  ;;  %v7302_v2 = vmax.f32 %v7266_v7, 0.0  ;;  %v23108_v60 = vadd.f32 %v26761_v25, %v26760_v39  ;;  %v26762_v19 = vld [vmem:[#allocation61_spill] sm:$0xff]  ;;  %v7267_v24 = vadd.f32 %v22985_v13, %v7224_v36 }
 0x5be   : > { %v7374_v22 = vrot.slane %v26350_v8, 2  ;;  %v7227_v26 = vadd.f32 %v26759_v6, %v6905_v17  ;;  %v6908_v28 = vadd.f32 %v17401_v46, %v6543_v63  ;;  %v23104_v21 = vadd.f32 %v22985_v13, %v7229_v3  ;;  %v23113_v63 = vpop.f32.mrf.mxu1  ;;  %v26763_v3 = vld [vmem:[#allocation52_spill] sm:$0xff]  ;;  %v26766_v25 = vld [vmem:[#allocation53_spill] sm:$0xff] }
 0x5bf   : > { %v6777_v41 = vpop.f32.mrf.mxu0  ;;  %v23119_v46 = vadd.f32 %v26763_v3, %v22913_v33  ;;  %v6333_v36 = vadd.f32 %v22959_v50, %v22974_v59  ;;  %v26767_v33 = vld [vmem:[#allocation58_spill] sm:$0xff] }
 0x5c0   : > { %v7375_v12 = vsel %vm6019_vm7, %v7373_v0, %v7374_v22  ;;  %v7270_v1 = vadd.f32 %v22985_v13, %v7227_v26  ;;  %v7230_v35 = vadd.f32 %v26762_v19, %v6908_v28  ;;  %v6906_v17 = vadd.f32 %v6777_v41, %v6541_v56  ;;  %v26765_v26 = vld [vmem:[#allocation66_spill] sm:$0xff]  ;;  %v23146_v59 = vpop.f32.mrf.mxu1 }
 0x5c1   : > { %v26348_v37 = vmax.f32 %v23104_v21, 0.0  ;;  %v17404_v7 = vpop.f32.mrf.mxu0  ;;  %v23121_v6 = vmax.f32 %v7302_v2, %v7375_v12  ;;  %v23131_v19 = vadd.f32 %v26766_v25, %v6329_v58  ;;  %v23135_v3 = vadd.f32 %v26767_v33, %v22934_v42  ;;  %v26768_v2 = vld [vmem:[#allocation96_spill] sm:$0xff] }
 0x5c2   : > { %v7306_v39 = vmax.f32 %v7270_v1, 0.0  ;;  %v23124_v0 = vadd.f32 %v22985_v13, %v7230_v35  ;;  %v7228_v28 = vadd.f32 %v26765_v26, %v6906_v17  ;;  %v6911_v56 = vadd.f32 %v17404_v7, %v22997_v18  ;;  %v26769_v17 = vld [vmem:[#allocation71_spill] sm:$0xff]  ;;  %v23172_v8 = vpop.f32.mrf.mxu1 }
 0x5c3   : > { %26764 = vst [vmem:[#allocation8_spill] sm:$0xff] %v23121_v6  ;;  %v6790_v41 = vpop.f32.mrf.mxu0  ;;  %v23139_v12 = vadd.f32 %v26768_v2, %v22943_v20  ;;  %v7303_v58 = vmax.f32 %v7267_v24, 0.0  ;;  %v7380_v7 = vrot.slane %v26348_v37, 2  ;;  %v26770_v20 = vld [vmem:[#allocation54_spill] sm:$0xff]  ;;  %v26771_v24 = vld [vmem:[#allocation75_spill] sm:$0xff] }
 0x5c4   : > { %v7376_v1 = vrot.slane %v7306_v39, 2  ;;  %v26349_v35 = vmax.f32 %v23124_v0, 0.0  ;;  %v23143_v18 = vadd.f32 %v22985_v13, %v7228_v28  ;;  %v7233_v50 = vadd.f32 %v26769_v17, %v6911_v56 }
 0x5c5   : > { %v6909_v42 = vadd.f32 %v6790_v41, %v23004_v40  ;;  %v17405_v26 = vpop.f32.mrf.mxu0  ;;  %v23153_v25 = vadd.f32 %v26770_v20, %v22955_v51  ;;  %v26772_v41 = vld [vmem:[#allocation60_spill] sm:$0xff] }
 0x5c6   : > { %v7377_v33 = vsel %vm6019_vm7, %v7374_v22, %v7376_v1  ;;  %v7382_v28 = vrot.slane %v26349_v35, 2  ;;  %v7307_v56 = vmax.f32 %v23143_v18, 0.0  ;;  %v23160_v2 = vadd.f32 %v22985_v13, %v7233_v50 }
 0x5c7   : > { %v7231_v17 = vadd.f32 %v26771_v24, %v6909_v42  ;;  %v6912_v61 = vadd.f32 %v17405_v26, %v23008_v45  ;;  %v6793_v40 = vpop.f32.mrf.mxu0  ;;  %v23165_v37 = vadd.f32 %v26772_v41, %v6333_v36  ;;  %v23167_v51 = vmax.f32 %v7303_v58, %v7377_v33  ;;  %v26775_v42 = vld [vmem:[#allocation79_spill] sm:$0xff]  ;;  %v26776_v58 = vld [vmem:[#allocation9_spill] sm:$0xff] }
 0x5c8   : > { %v7383_v22 = vsel %vm6019_vm7, %v7380_v7, %v7382_v28  ;;  %v7378_v20 = vrot.slane %v7307_v56, 2  ;;  %v6910_v18 = vadd.f32 %v6793_v40, %v23011_v44  ;;  %v7542_v35 = vrot.slane %v23121_v6, 1 }
 0x5c9   : > { %26773 = vst [vmem:[#allocation69_spill] sm:$0xff] %v23165_v37  ;;  %26774 = vst [vmem:[#allocation91_spill] sm:$0xff] %v23167_v51  ;;  %v7274_v50 = vadd.f32 %v22985_v13, %v7231_v17  ;;  %v7234_v24 = vadd.f32 %v26775_v42, %v6912_v61  ;;  %v17408_v45 = vpop.f32.mrf.mxu0  ;;  %v23176_v26 = vmax.f32 %v7306_v39, %v7383_v22  ;;  %v26777_v44 = vmax.f32 %v23160_v2, 0.0  ;;  %v26778_v42 = vld [vmem:[#allocation11_spill] sm:$0xff] }
 0x5ca   : > { %v7232_v33 = vadd.f32 %v26776_v58, %v6910_v18  ;;  %v6915_v41 = vadd.f32 %v17408_v45, %v23018_v49  ;;  %v7379_v57 = vsel %vm6019_vm7, %v7376_v1, %v7378_v20  ;;  %v7381_v39 = vsel %vm6019_vm7, %v7378_v20, %v7380_v7  ;;  %v23196_v58 = vpop.f32.mrf.mxu1 }
 0x5cb   : > { %v7388_v40 = vrot.slane %v26777_v44, 2  ;;  %v7310_v37 = vmax.f32 %v7274_v50, 0.0  ;;  %v23186_v17 = vadd.f32 %v22985_v13, %v7234_v24  ;;  %v6806_v61 = vpop.f32.mrf.mxu0  ;;  %v26779_v1 = vmax.f32 %v23014_v16, 0.0 }
 0x5cc   : > { %v7275_v22 = vadd.f32 %v22985_v13, %v7232_v33  ;;  %v7237_v18 = vadd.f32 %v26778_v42, %v6915_v41  ;;  %v6913_v49 = vadd.f32 %v6806_v61, %v23022_v53  ;;  %v26780_v36 = vmax.f32 %v23058_v5, 0.0 }
 0x5cd   : > { %v23194_v45 = vmax.f32 %v26779_v1, %v7379_v57  ;;  %v7384_v44 = vrot.slane %v7310_v37, 2  ;;  %v26353_v50 = vmax.f32 %v23186_v17, 0.0  ;;  %v17409_v24 = vpop.f32.mrf.mxu0  ;;  %v26781_v7 = vrot.slane %v23167_v51, 1  ;;  %v26783_v57 = vld [vmem:[#allocation17_spill] sm:$0xff] }
 0x5ce   : > { %v23201_v6 = vmax.f32 %v26780_v36, %v7381_v39  ;;  %v7311_v53 = vmax.f32 %v7275_v22, 0.0  ;;  %v23209_v16 = vadd.f32 %v22985_v13, %v7237_v18  ;;  %v7235_v33 = vadd.f32 %v26783_v57, %v6913_v49  ;;  %v26784_v1 = vld [vmem:[#allocation21_spill] sm:$0xff]  ;;  %v23221_v49 = vpop.f32.mrf.mxu1 }
 0x5cf   : > { %v23206_v20 = vsel %vm2024_vm1, %v7542_v35, %v26781_v7  ;;  %v6916_v41 = vadd.f32 %v17409_v24, %v23028_v4  ;;  %v7385_v61 = vsel %vm6019_vm7, %v7382_v28, %v7384_v44  ;;  %v7390_v5 = vrot.slane %v26353_v50, 2  ;;  %v6809_v36 = vpop.f32.mrf.mxu0 }
 0x5d0   : > { %26782 = vst [vmem:[#allocation92_spill] sm:$0xff] %v23206_v20  ;;  %v26356_v39 = vrot.slane %v23194_v45, 1  ;;  %v26357_v42 = vrot.slane %v23201_v6, 1  ;;  %v7386_v35 = vrot.slane %v7311_v53, 2  ;;  %v7278_v18 = vadd.f32 %v22985_v13, %v7235_v33 }
 0x5d1   : > { %v7238_v7 = vadd.f32 %v26784_v1, %v6916_v41  ;;  %v7391_v4 = vsel %vm6019_vm7, %v7388_v40, %v7390_v5  ;;  %v6914_v28 = vadd.f32 %v6809_v36, %v23031_v47  ;;  %v17412_v24 = vpop.f32.mrf.mxu0  ;;  %v23225_v57 = vmax.f32 %v7307_v56, %v7385_v61 }
 0x5d2   : > { %v23232_v50 = vsel %vm2024_vm1, %v26356_v39, %v26357_v42  ;;  %v7314_v22 = vmax.f32 %v7278_v18, 0.0  ;;  %v6919_v41 = vadd.f32 %v17412_v24, %v23036_v54  ;;  %v23240_v56 = vmax.f32 %v7310_v37, %v7391_v4  ;;  %v23247_v42 = vpop.f32.mrf.mxu1 }
 0x5d3   : > { %v23235_v33 = vadd.f32 %v22985_v13, %v7238_v7  ;;  %v7236_v47 = vadd.f32 %v22927_v9, %v6914_v28  ;;  %v6822_v36 = vpop.f32.mrf.mxu0  ;;  %v7387_v61 = vsel %vm6019_vm7, %v7384_v44, %v7386_v35  ;;  %v7389_v20 = vsel %vm6019_vm7, %v7386_v35, %v7388_v40 }
 0x5d4   : > { %v7392_v51 = vrot.slane %v7314_v22, 2  ;;  %v7241_v18 = vadd.f32 %v22950_v30, %v6919_v41  ;;  %v6917_v7 = vadd.f32 %v6822_v36, %v23040_v11  ;;  %v26785_v54 = vmax.f32 %v23209_v16, 0.0 }
 0x5d5   : > { %v7317_v39 = vmax.f32 %v23235_v33, 0.0  ;;  %v7279_v9 = vadd.f32 %v22985_v13, %v7236_v47  ;;  %v17413_v37 = vpop.f32.mrf.mxu0  ;;  %v26786_v4 = vmax.f32 %v23104_v21, 0.0  ;;  %v26787_v40 = vmax.f32 %v23124_v0, 0.0 }
 0x5d6   : > { %v7396_v24 = vrot.slane %v26785_v54, 2  ;;  %v7393_v30 = vsel %vm6019_vm7, %v7390_v5, %v7392_v51  ;;  %v23264_v28 = vadd.f32 %v22985_v13, %v7241_v18  ;;  %v7239_v41 = vadd.f32 %v22967_v62, %v6917_v7  ;;  %v23275_v18 = vpop.f32.mrf.mxu1 }
 0x5d7   : > { %v23254_v44 = vmax.f32 %v26786_v4, %v7387_v61  ;;  %v23258_v35 = vmax.f32 %v26787_v40, %v7389_v20  ;;  %v7398_v11 = vrot.slane %v7317_v39, 2  ;;  %v7315_v47 = vmax.f32 %v7279_v9, 0.0  ;;  %v6825_v21 = vpop.f32.mrf.mxu0 }
 0x5d8   : > { %v6920_v36 = vadd.f32 %v17413_v37, %v23044_v34  ;;  %v23268_v61 = vmax.f32 %v7311_v53, %v7393_v30  ;;  %v26361_v0 = vrot.slane %v23240_v56, 1  ;;  %v26358_v5 = vmax.f32 %v23264_v28, 0.0 }
 0x5d9   : > { %v7399_v20 = vsel %vm6019_vm7, %v7396_v24, %v7398_v11  ;;  %v7282_v54 = vadd.f32 %v22985_v13, %v7239_v41  ;;  %v6918_v4 = vadd.f32 %v6825_v21, %v23050_v52  ;;  %v7394_v40 = vrot.slane %v7315_v47, 2  ;;  %v17416_v7 = vpop.f32.mrf.mxu0 }
 0x5da   : > { %v7242_v62 = vadd.f32 %v22999_v27, %v6920_v36  ;;  %v23278_v34 = vmax.f32 %v7314_v22, %v7399_v20  ;;  %v26362_v53 = vrot.slane %v23268_v61, 1  ;;  %v6923_v30 = vadd.f32 %v17416_v7, %v23054_v15 }
 0x5db   : > { %v7318_v9 = vmax.f32 %v7282_v54, 0.0  ;;  %v7240_v37 = vadd.f32 %v23046_v43, %v6918_v4  ;;  %v7404_v52 = vrot.slane %v26358_v5, 2  ;;  %v6838_v21 = vpop.f32.mrf.mxu0  ;;  %v7395_v27 = vsel %vm6019_vm7, %v7392_v51, %v7394_v40  ;;  %v23296_v54 = vpop.f32.mrf.mxu1 }
 0x5dc   : > { %v23287_v41 = vadd.f32 %v22985_v13, %v7242_v62  ;;  %v7397_v22 = vsel %vm6019_vm7, %v7394_v40, %v7396_v24  ;;  %v7245_v43 = vadd.f32 %v23085_v10, %v6923_v30  ;;  %v6921_v15 = vadd.f32 %v6838_v21, %v23062_v14 }
 0x5dd   : > { %v7400_v36 = vrot.slane %v7318_v9, 2  ;;  %v23292_v20 = vadd.f32 %v22985_v13, %v7240_v37  ;;  %v17417_v7 = vpop.f32.mrf.mxu0  ;;  %v26789_v62 = vmax.f32 %v23160_v2, 0.0  ;;  %v26790_v51 = vmax.f32 %v23186_v17, 0.0 }
 0x5de   : > { %v26360_v4 = vmax.f32 %v23287_v41, 0.0  ;;  %v23312_v10 = vsel %vm2024_vm1, %v26361_v0, %v26362_v53  ;;  %v23317_v37 = vadd.f32 %v22985_v13, %v7245_v43  ;;  %v7243_v2 = vadd.f32 %v23113_v63, %v6921_v15  ;;  %v23335_v15 = vpop.f32.mrf.mxu1 }
 0x5df   : > { %26788 = vst [vmem:[#allocation14_spill] sm:$0xff] %v23292_v20  ;;  %v23301_v5 = vmax.f32 %v26789_v62, %v7395_v27  ;;  %v23305_v24 = vmax.f32 %v26790_v51, %v7397_v22  ;;  %v7401_v14 = vsel %vm6019_vm7, %v7398_v11, %v7400_v36  ;;  %v26359_v40 = vmax.f32 %v23292_v20, 0.0  ;;  %v6841_v21 = vpop.f32.mrf.mxu0 }
 0x5e0   : > { %v23322_v17 = vrot.slane %v26360_v4, 2  ;;  %v6924_v30 = vadd.f32 %v17417_v7, %v23066_v38  ;;  %v23325_v27 = vmax.f32 %v7315_v47, %v7401_v14  ;;  %v26366_v22 = vrot.slane %v23278_v34, 1 }
 0x5e1   : > { %v7402_v11 = vrot.slane %v26359_v40, 2  ;;  %v26363_v62 = vmax.f32 %v23317_v37, 0.0  ;;  %v23332_v43 = vadd.f32 %v22985_v13, %v7243_v2  ;;  %v6922_v63 = vadd.f32 %v6841_v21, %v23070_v32  ;;  %v17420_v7 = vpop.f32.mrf.mxu0 }
 0x5e2   : > { %v7407_v38 = vsel %vm6019_vm7, %v7404_v52, %v23322_v17  ;;  %v7246_v47 = vadd.f32 %v23146_v59, %v6924_v30  ;;  %v7567_v51 = vrot.slane %v23325_v27, 1  ;;  %v7563_v32 = vrot.slane %v23305_v24, 1 }
 0x5e3   : > { %v23342_v40 = vmax.f32 %v7318_v9, %v7407_v38  ;;  %v26364_v4 = vmax.f32 %v23332_v43, 0.0  ;;  %v7244_v2 = vadd.f32 %v23172_v8, %v6922_v63  ;;  %v6927_v0 = vadd.f32 %v17420_v7, %v23074_v55  ;;  %v6854_v1 = vpop.f32.mrf.mxu0  ;;  %v17465_v38 = vpop.f32.mrf.mxu1 }
 0x5e4   : > { %v23348_v21 = vadd.f32 %v22985_v13, %v7246_v47  ;;  %v7403_v59 = vsel %vm6019_vm7, %v7400_v36, %v7402_v11  ;;  %v7405_v30 = vsel %vm6019_vm7, %v7402_v11, %v7404_v52  ;;  %v23356_v9 = vrot.slane %v26363_v62, 2 }
 0x5e5   : > { %26791 = vst [vmem:[#allocation74_spill] sm:$0xff] %v23342_v40  ;;  %v26370_v53 = vrot.slane %v23342_v40, 1  ;;  %v23359_v8 = vadd.f32 %v22985_v13, %v7244_v2  ;;  %v6925_v63 = vadd.f32 %v6854_v1, %v23079_v23  ;;  %v7249_v55 = vadd.f32 %v23196_v58, %v6927_v0  ;;  %v17421_v7 = vpop.f32.mrf.mxu0 }
 0x5e6   : > { %v26365_v47 = vmax.f32 %v23348_v21, 0.0  ;;  %v26792_v36 = vmax.f32 %v23209_v16, 0.0  ;;  %v7489_v11 = vmax.f32 %v7317_v39, %v7405_v30  ;;  %v23370_v62 = vrot.slane %v26364_v4, 2 }
 0x5e7   : > { %v7247_v2 = vadd.f32 %v23221_v49, %v6925_v63  ;;  %v6928_v23 = vadd.f32 %v17421_v7, %v23083_v48  ;;  %v7568_v1 = vsel %vm2024_vm1, %v26366_v22, %v7567_v51  ;;  %v23379_v16 = vadd.f32 %v22985_v13, %v7249_v55  ;;  %v6857_v0 = vpop.f32.mrf.mxu0  ;;  %v7195_v63 = vpop.f32.mrf.mxu1 }
 0x5e8   : > { %v7488_v52 = vmax.f32 %v26792_v36, %v7403_v59  ;;  %v7571_v39 = vrot.slane %v7489_v11, 1  ;;  %v23383_v59 = vrot.slane %v26365_v47, 2  ;;  %v6926_v30 = vadd.f32 %v6857_v0, %v23090_v31 }
 0x5e9   : > { %v7290_v49 = vadd.f32 %v22985_v13, %v7247_v2  ;;  %v7250_v48 = vadd.f32 %v23247_v42, %v6928_v23  ;;  %v7328_v7 = vmax.f32 %v23379_v16, 0.0  ;;  %v17424_v36 = vpop.f32.mrf.mxu0  ;;  %v7655_v40 = vmax.f32 %v23278_v34, %v7568_v1 }
 0x5ea   : > { %v7569_v33 = vrot.slane %v7488_v52, 1  ;;  %v7574_v4 = vsel %vm2024_vm1, %v7571_v39, %v26370_v53  ;;  %v7248_v42 = vadd.f32 %v23275_v18, %v6926_v30  ;;  %v6931_v31 = vadd.f32 %v17424_v36, %v23094_v29  ;;  %v17468_v18 = vpop.f32.mrf.mxu1 }
 0x5eb   : > { %v7326_v47 = vmax.f32 %v7290_v49, 0.0  ;;  %v23395_v22 = vadd.f32 %v22985_v13, %v7250_v48  ;;  %v7420_v2 = vrot.slane %v7328_v7, 2  ;;  %v6870_v23 = vpop.f32.mrf.mxu0  ;;  %v7658_v14 = vmax.f32 %v7489_v11, %v7574_v4 }
 0x5ec   : > { %v7572_v55 = vsel %vm2024_vm1, %v7569_v33, %v7571_v39  ;;  %v7570_v58 = vsel %vm2024_vm1, %v7567_v51, %v7569_v33  ;;  %v23406_v33 = vadd.f32 %v22985_v13, %v7248_v42  ;;  %v7253_v39 = vadd.f32 %v23296_v54, %v6931_v31 }
 0x5ed   : > { %v7657_v0 = vmax.f32 %v7488_v52, %v7572_v55  ;;  %v23402_v20 = vrot.slane %v7326_v47, 2  ;;  %v7329_v51 = vmax.f32 %v23395_v22, 0.0  ;;  %v6929_v29 = vadd.f32 %v6870_v23, %v23108_v60  ;;  %v17425_v49 = vpop.f32.mrf.mxu0 }
 0x5ee   : > { %v7656_v52 = vmax.f32 %v23325_v27, %v7570_v58  ;;  %v26793_v4 = vrot.slane %v23301_v5, 1  ;;  %v7327_v30 = vmax.f32 %v23406_v33, 0.0  ;;  %v23420_v36 = vadd.f32 %v22985_v13, %v7253_v39  ;;  %v7208_v39 = vpop.f32.mrf.mxu1 }
 0x5ef   : > { %v23410_v48 = vpack.c.bf16 %v7658_v14, %v7657_v0  ;;  %v7422_v1 = vrot.slane %v7329_v51, 2  ;;  %v6932_v54 = vadd.f32 %v17425_v49, %v23119_v46  ;;  %v7251_v60 = vadd.f32 %v23335_v15, %v6929_v29  ;;  %v6873_v14 = vpop.f32.mrf.mxu0 }
 0x5f0   : > { %v7564_v11 = vsel %vm2024_vm1, %v26793_v4, %v7563_v32  ;;  %v23424_v55 = vpack.c.bf16 %v7656_v52, %v7655_v40  ;;  %v26794_v27 = vrot.slane %v23278_v34, 1  ;;  %v7418_v31 = vrot.slane %v7327_v30, 2 }
 0x5f1   : > { %v7653_v42 = vmax.f32 %v23301_v5, %v7564_v11  ;;  %v7332_v23 = vmax.f32 %v23420_v36, 0.0  ;;  %v7254_v0 = vadd.f32 %v17465_v38, %v6932_v54  ;;  %v6930_v33 = vadd.f32 %v6873_v14, %v23131_v19  ;;  %v17428_v49 = vpop.f32.mrf.mxu0 }
 0x5f2   : > { %v7566_v58 = vsel %vm2024_vm1, %v7563_v32, %v26794_v27  ;;  %v7294_v46 = vadd.f32 %v22985_v13, %v7251_v60  ;;  %v7423_v40 = vsel %vm6019_vm7, %v7420_v2, %v7422_v1  ;;  %v26795_v34 = vmov %v26793_v4 }
 0x5f3   : > { %v7654_v15 = vmax.f32 %v23305_v24, %v7566_v58  ;;  %v26796_v32 = vrot.slane %v23268_v61, 1  ;;  %v7428_v52 = vrot.slane %v7332_v23, 2  ;;  %v23443_v38 = vadd.f32 %v22985_v13, %v7254_v0  ;;  %v6886_v54 = vpop.f32.mrf.mxu0 }
 0x5f4   : > { %v7252_v19 = vadd.f32 %v7195_v63, %v6930_v33  ;;  %v6935_v4 = vadd.f32 %v17428_v49, %v23135_v3  ;;  %v7330_v11 = vmax.f32 %v7294_v46, 0.0  ;;  %v23448_v60 = vmax.f32 %v7326_v47, %v7423_v40 }
 0x5f5   : > { %v7562_v29 = vsel %vm2024_vm1, %v26796_v32, %v26795_v34  ;;  %v23446_v24 = vpack.c.bf16 %v7654_v15, %v7653_v42  ;;  %v7651_v5 = vmax.f32 %v23240_v56, %v23312_v10  ;;  %v26371_v14 = vmax.f32 %v23443_v38, 0.0  ;;  %v17469_v34 = vpop.f32.mrf.mxu1  ;;  %v17429_v33 = vpop.f32.mrf.mxu0 }
 0x5f6   : > { %v7295_v27 = vadd.f32 %v22985_v13, %v7252_v19  ;;  %v7257_v58 = vadd.f32 %v17468_v18, %v6935_v4  ;;  %v6933_v0 = vadd.f32 %v6886_v54, %v23139_v12  ;;  %v7424_v63 = vrot.slane %v7330_v11, 2  ;;  %v26797_v54 = vld [vmem:[#allocation69_spill] sm:$0xff] }
 0x5f7   : > { %v7589_v3 = vrot.slane %v23448_v60, 1  ;;  %v7652_v42 = vmax.f32 %v23268_v61, %v7562_v29  ;;  %v7419_v47 = vsel %vm6019_vm7, %v23402_v20, %v7418_v31  ;;  %v7430_v10 = vrot.slane %v26371_v14, 2  ;;  %v6889_v12 = vpop.f32.mrf.mxu0  ;;  %v7211_v14 = vpop.f32.mrf.mxu1 }
 0x5f8   : > { %v7331_v46 = vmax.f32 %v7295_v27, 0.0  ;;  %v7300_v49 = vadd.f32 %v22985_v13, %v7257_v58  ;;  %v7255_v15 = vadd.f32 %v7208_v39, %v6933_v0  ;;  %v6936_v18 = vadd.f32 %v17429_v33, %v23153_v25 }
 0x5f9   : > { %v7425_v40 = vsel %vm6019_vm7, %v7422_v1, %v7424_v63  ;;  %v23464_v32 = vpack.c.bf16 %v7652_v42, %v7651_v5  ;;  %v7421_v19 = vsel %vm6019_vm7, %v7418_v31, %v7420_v2  ;;  %v6934_v53 = vadd.f32 %v6889_v12, %v26797_v54 }
 0x5fa   : > { %v7426_v61 = vrot.slane %v7331_v46, 2  ;;  %v7336_v29 = vmax.f32 %v7300_v49, 0.0  ;;  %v7298_v4 = vadd.f32 %v22985_v13, %v7255_v15  ;;  %v7258_v27 = vadd.f32 %v17469_v34, %v6936_v18 }
 0x5fb   : > { %v7431_v58 = vsel %vm6019_vm7, %v7428_v52, %v7430_v10  ;;  %v7499_v39 = vmax.f32 %v7327_v30, %v7425_v40  ;;  %v26798_v25 = vmax.f32 %v23317_v37, 0.0  ;;  %v7256_v33 = vadd.f32 %v7211_v14, %v6934_v53 }
 0x5fc   : > { %v7436_v1 = vrot.slane %v7336_v29, 2  ;;  %v7334_v5 = vmax.f32 %v7298_v4, 0.0  ;;  %v23474_v42 = vmax.f32 %v7330_v11, %v7431_v58  ;;  %v7301_v2 = vadd.f32 %v22985_v13, %v7258_v27 }
 0x5fd   : > { %v23472_v0 = vmax.f32 %v26798_v25, %v7419_v47  ;;  %v7427_v31 = vsel %vm6019_vm7, %v7424_v63, %v7426_v61  ;;  %v7429_v49 = vsel %vm6019_vm7, %v7426_v61, %v7428_v52  ;;  %v7591_v15 = vrot.slane %v7499_v39, 1 }
 0x5fe   : > { %v7432_v34 = vrot.slane %v7334_v5, 2  ;;  %v7299_v18 = vadd.f32 %v22985_v13, %v7256_v33  ;;  %v7597_v30 = vrot.slane %v23474_v42, 1  ;;  %v7500_v37 = vmax.f32 %v7328_v7, %v7427_v31 }
 0x5ff   : > { %v7337_v47 = vmax.f32 %v7301_v2, 0.0  ;;  %v7501_v53 = vmax.f32 %v7329_v51, %v7429_v49  ;;  %v7592_v11 = vsel %vm2024_vm1, %v7589_v3, %v7591_v15  ;;  %v26799_v14 = vmax.f32 %v23348_v21, 0.0 }
 0x600   : > { %v7335_v63 = vmax.f32 %v7299_v18, 0.0  ;;  %v7433_v12 = vsel %vm6019_vm7, %v7430_v10, %v7432_v34  ;;  %v7593_v13 = vrot.slane %v7500_v37, 1  ;;  %v7667_v40 = vmax.f32 %v23448_v60, %v7592_v11 }
 0x601   : > { %v7497_v52 = vmax.f32 %v26799_v14, %v7421_v19  ;;  %v7438_v61 = vrot.slane %v7337_v47, 2  ;;  %v7503_v16 = vmax.f32 %v7331_v46, %v7433_v12  ;;  %v7595_v7 = vrot.slane %v7501_v53, 1 }
 0x602   : > { %v7585_v29 = vrot.slane %v23472_v0, 1  ;;  %v7434_v22 = vrot.slane %v7335_v63, 2  ;;  %v7594_v51 = vsel %vm2024_vm1, %v7591_v15, %v7593_v13  ;;  %v7555_v54 = vrot.slane %v23258_v35, 1 }
 0x603   : > { %v7587_v4 = vrot.slane %v7497_v52, 1  ;;  %v7439_v21 = vsel %vm6019_vm7, %v7436_v1, %v7438_v61  ;;  %v23496_v19 = vmax.f32 %v7335_v63, %v7438_v61  ;;  %v7599_v27 = vrot.slane %v7503_v16, 1 }
 0x604   : > { %v7596_v10 = vsel %vm2024_vm1, %v7593_v13, %v7595_v7  ;;  %v23499_v58 = vmax.f32 %v7334_v5, %v7439_v21  ;;  %v7435_v46 = vsel %vm6019_vm7, %v7432_v34, %v7434_v22  ;;  %v7437_v25 = vsel %vm6019_vm7, %v7434_v22, %v7436_v1 }
 0x605   : > { %v7598_v33 = vsel %vm2024_vm1, %v7595_v7, %v7597_v30  ;;  %v26800_v2 = vmax.f32 %v23359_v8, 0.0  ;;  %v7504_v49 = vmax.f32 %v7332_v23, %v7435_v46  ;;  %v26801_v15 = vmax.f32 %v23443_v38, 0.0 }
 0x606   : > { %v7600_v47 = vsel %vm2024_vm1, %v7597_v30, %v7599_v27  ;;  %v7607_v5 = vrot.slane %v23496_v19, 1  ;;  %v7669_v34 = vmax.f32 %v7500_v37, %v7596_v10  ;;  %v7670_v14 = vmax.f32 %v7501_v53, %v7598_v33 }
 0x607   : > { %v7410_v31 = vrot.slane %v26800_v2, 2  ;;  %v7505_v18 = vmax.f32 %v26801_v15, %v7437_v25  ;;  %v7671_v11 = vmax.f32 %v23474_v42, %v7600_v47  ;;  %v7601_v1 = vrot.slane %v7504_v49, 1 }
 0x608   : > { %v7605_v12 = vrot.slane %v23499_v58, 1  ;;  %v7668_v13 = vmax.f32 %v7499_v39, %v7594_v51  ;;  %v7716_v61 = vpack.c.bf16 %v7670_v14, %v7669_v34  ;;  %v7588_v36 = vsel %vm2024_vm1, %v7585_v29, %v7587_v4 }
 0x609   : > { %v7603_v63 = vrot.slane %v7505_v18, 1  ;;  %v7590_v23 = vsel %vm2024_vm1, %v7587_v4, %v7589_v3  ;;  %v26802_v38 = vrot.slane %v23254_v44, 1  ;;  %v7602_v53 = vsel %vm2024_vm1, %v7599_v27, %v7601_v1 }
 0x60a   : > { %v7715_v39 = vpack.c.bf16 %v7668_v13, %v7667_v40  ;;  %v7672_v51 = vmax.f32 %v7503_v16, %v7602_v53  ;;  %v7665_v21 = vmax.f32 %v23472_v0, %v7588_v36  ;;  %v7666_v10 = vmax.f32 %v7497_v52, %v7590_v23 }
 0x60b   : > { %v7556_v42 = vsel %vm2024_vm1, %v26802_v38, %v7555_v54  ;;  %v7604_v30 = vsel %vm2024_vm1, %v7601_v1, %v7603_v63  ;;  %v7606_v37 = vsel %vm2024_vm1, %v7603_v63, %v7605_v12  ;;  %v26803_v60 = vrot.slane %v23240_v56, 1 }
 0x60c   : > { %v7673_v7 = vmax.f32 %v7504_v49, %v7604_v30  ;;  %v7674_v22 = vmax.f32 %v7505_v18, %v7606_v37  ;;  %v7649_v4 = vmax.f32 %v23254_v44, %v7556_v42  ;;  %v7415_v46 = vsel %vm6019_vm7, %v23356_v9, %v23383_v59 }
 0x60d   : > { %v7558_v3 = vsel %vm2024_vm1, %v7555_v54, %v26803_v60  ;;  %v7717_v33 = vpack.c.bf16 %v7672_v51, %v7671_v11  ;;  %v7417_v16 = vsel %vm6019_vm7, %v23383_v59, %v23402_v20  ;;  %v7714_v27 = vpack.c.bf16 %v7666_v10, %v7665_v21  ;;  %v26817_v10 = vld [vmem:[#allocation92_spill] sm:$0xff] }
 0x60e   : > { %v7718_v25 = vpack.c.bf16 %v7674_v22, %v7673_v7  ;;  %v7650_v40 = vmax.f32 %v23258_v35, %v7558_v3  ;;  %v26804_v52 = vmax.f32 %v23332_v43, 0.0  ;;  %v26805_v54 = vmov %v26800_v2  ;;  %v26815_v22 = vld [vmem:[#allocation14_spill] sm:$0xff]  ;;  %v26818_v60 = vld [vmem:[#allocation8_spill] sm:$0xff] }
 0x60f   : > { %v7495_v2 = vmax.f32 %v26805_v54, %v7417_v16  ;;  %v7551_v49 = vrot.slane %v23225_v57, 1  ;;  %v7411_v18 = vsel %vm6019_vm7, %v23370_v62, %v7410_v31  ;;  %v7413_v35 = vsel %vm6019_vm7, %v7410_v31, %v23356_v9 }
 0x610   : > { %v7494_v56 = vmax.f32 %v26804_v52, %v7415_v46  ;;  %16787 = vmatprep.subr.bf16.mxu0 %v7718_v25  ;;  %v7706_v15 = vpack.c.bf16 %v7650_v40, %v7649_v4  ;;  %v26806_v47 = vrot.slane %v23176_v26, 1  ;;  %v26807_v20 = vrot.slane %v23201_v6, 1  ;;  %v26819_v52 = vld [vmem:[#allocation74_spill] sm:$0xff] }
 0x611   : > { %16788 = vmatpush3.bf16.msra.mxu0 %v23410_v48  ;;  %v7583_v59 = vrot.slane %v7495_v2, 1  ;;  %v26809_v14 = vmov %v26802_v38  ;;  %v26810_v63 = vmax.f32 %v23264_v28, 0.0  ;;  %v26811_v48 = vmax.f32 %v23287_v41, 0.0 }
 0x612   : > { %v7550_v43 = vsel %vm2024_vm1, %v26807_v20, %v26806_v47  ;;  %v7581_v8 = vrot.slane %v7494_v56, 1  ;;  %v26808_v11 = vmov %v26806_v47  ;;  %v7554_v1 = vsel %vm2024_vm1, %v7551_v49, %v26809_v14  ;;  %16789 = vmatprep.subr.bf16.mxu0 %v7717_v33  ;;  %v17896_v47 = vld [vmem:[%s26305_s8 + $0x34] ss:$12 sps:$4 sm:$0xff]   ;;  %v17894_v20 = vld [vmem:[%s26305_s8 + $0x30] ss:$12 sps:$4 sm:$0xff]  }
 0x613   : > { %v7552_v34 = vsel %vm2024_vm1, %v26808_v11, %v7551_v49  ;;  %v7648_v31 = vmax.f32 %v23225_v57, %v7554_v1  ;;  %v7492_v13 = vmax.f32 %v26810_v63, %v7411_v18  ;;  %v7493_v36 = vmax.f32 %v26811_v48, %v7413_v35  ;;  %v17900_v11 = vld [vmem:[%s26305_s8 + $0x60] ss:$12 sps:$4 sm:$0xff]   ;;  %v7701_v14 = vld [vmem:[%s26305_s8 + $0x90] sm:$0x77]  ;;  %v17903_v1 = vld [vmem:[%s26305_s8 + $0x78] ss:$12 sps:$4 sm:$0xff]  }
 0x614   : > { %v7647_v9 = vmax.f32 %v23176_v26, %v7552_v34  ;;  %v7584_v23 = vsel %vm2024_vm1, %v7581_v8, %v7583_v59  ;;  %v7586_v38 = vsel %vm2024_vm1, %v7583_v59, %v7585_v29  ;;  %v7645_v44 = vmax.f32 %v23194_v45, %v23232_v50  ;;  %v26813_v29 = vld [vmem:[#allocation91_spill] sm:$0xff]  ;;  %v17910_v48 = vld [vmem:[%s26305_s8 + $0x38] ss:$12 sps:$4 sm:$0xff]  }
 0x615   : > { %v7646_v42 = vmax.f32 %v23201_v6, %v7550_v43  ;;  %v7663_v26 = vmax.f32 %v7494_v56, %v7584_v23  ;;  %v7664_v30 = vmax.f32 %v7495_v2, %v7586_v38  ;;  %v7577_v37 = vrot.slane %v7492_v13, 1  ;;  %16790 = vmatpush3.bf16.msra.mxu0 %v23424_v55  ;;  %v17899_v43 = vld [vmem:[%s26305_s8 + $0x4c] ss:$12 sps:$4 sm:$0xff]   ;;  %v17902_v59 = vld [vmem:[%s26305_s8 + $0x64] ss:$12 sps:$4 sm:$0xff]  }
 0x616   : > { %v7705_v57 = vpack.c.bf16 %v7648_v31, %v7647_v9  ;;  %v7579_v28 = vrot.slane %v7493_v36, 1  ;;  %v7409_v53 = vsel %vm6019_vm7, %v23322_v17, %v23370_v62  ;;  %v26812_v0 = vrot.slane %v23194_v45, 1  ;;  %16791 = vmatprep.subr.bf16.mxu0 %v7716_v61  ;;  %v17905_v34 = vld [vmem:[%s26305_s8 + $0x7c] ss:$12 sps:$4 sm:$0xff]   ;;  %v17913_v38 = vld [vmem:[%s26305_s8 + $0x80] ss:$12 sps:$4 sm:$0xff]  }
 0x617   : > { %v7704_v41 = vpack.c.bf16 %v7646_v42, %v7645_v44  ;;  %v26814_v7 = vrot.slane %v26813_v29, 1  ;;  %v7713_v6 = vpack.c.bf16 %v7664_v30, %v7663_v26  ;;  %v26816_v51 = vmax.f32 %v26815_v22, 0.0  ;;  %v17908_v63 = vld [vmem:[%s26305_s8 + $0x8] ss:$12 sps:$4 sm:$0xff]   ;;  %v17915_v42 = vld [vmem:[%s26302_s5 + $0x38] sm:$0xff]  }
 0x618   : > { %v7643_v55 = vmax.f32 %v26818_v60, %v26817_v10  ;;  %v7580_v4 = vsel %vm2024_vm1, %v7577_v37, %v7579_v28  ;;  %v7582_v17 = vsel %vm2024_vm1, %v7579_v28, %v7581_v8  ;;  %v7608_v45 = vsel %vm2024_vm1, %v7605_v12, %v7607_v5  ;;  %v17897_v8 = vld [vmem:[%s26305_s8 + $0x48] ss:$12 sps:$4 sm:$0xff]   ;;  %v17914_v44 = vld [vmem:[%s26305_s8 + $0x98] ss:$0 sps:$4 sm:$0x77]   ;;  %17501 = vmatpush3.bf16.msra.mxu1 %v17915_v42 }
 0x619   : > { %v7546_v50 = vsel %vm2024_vm1, %v26814_v7, %v26812_v0  ;;  %v7491_v21 = vmax.f32 %v26816_v51, %v7409_v53  ;;  %v7661_v62 = vmax.f32 %v7492_v13, %v7580_v4  ;;  %v7662_v46 = vmax.f32 %v7493_v36, %v7582_v17  ;;  %16792 = vmatpush3.bf16.msra.mxu0 %v23446_v24  ;;  %v17909_v13 = vld [vmem:[%s26305_s8 + $0x20] ss:$12 sps:$4 sm:$0xff]   ;;  %v17911_v36 = vld [vmem:[%s26305_s8 + $0x50] ss:$12 sps:$4 sm:$0xff]   ;;  %v17912_v23 = vld [vmem:[%s26305_s8 + $0x68] ss:$12 sps:$4 sm:$0xff]  }
 0x61a   : > { %v7644_v3 = vmax.f32 %v26813_v29, %v7546_v50  ;;  %v7676_v33 = vmax.f32 %v23496_v19, %v7607_v5  ;;  %v7675_v40 = vmax.f32 %v23499_v58, %v7608_v45  ;;  %16793 = vmatprep.subr.bf16.mxu0 %v7715_v39  ;;  %v26820_v56 = vrot.slane %v26819_v52, 1  ;;  %v17888_v39 = vld [vmem:[%s26305_s8] ss:$12 sps:$4 sm:$0xff]   ;;  %v17916_v26 = vld [vmem:[%s26302_s5 + $0x58] sm:$0xff]   ;;  %v17917_v30 = vld [vmem:[%s26302_s5 + $0x30] sm:$0xff]  }
 0x61b   : > { %v7575_v61 = vrot.slane %v7491_v21, 1  ;;  %v7712_v16 = vpack.c.bf16 %v7662_v46, %v7661_v62  ;;  %v26821_v2 = vmov 0.0   ;;  %v26822_v58 = vmov 65535   ;;  %v17920_v28 = vld [vmem:[%s26302_s5 + $0x28] sm:$0xff]   ;;  %v17922_v53 = vld [vmem:[%s26302_s5 + $0x20] sm:$0xff]  }
 0x61c   : > { %v7703_v25 = vpack.c.bf16 %v7644_v3, %v7643_v55  ;;  %17508 = vmatprep.mubr.msk.bf16.mxu1 %vm18818_vm9, %v26821_v2  ;;  %v7719_v19 = vpack.c.bf16 %v7676_v33, %v7675_v40  ;;  %v7842_v5 = vsel %vm6019_vm7, 4294967295, %v26822_v58  ;;  %v15358_v9 = vcombine.high %v7701_v14, %v7701_v14  ;;  %17502 = vmatprep.subr.bf16.mxu1 %v26821_v2 }
 0x61d   : > { %v7576_v54 = vsel %vm2024_vm1, %v26820_v56, %v7575_v61  ;;  %v7578_v12 = vsel %vm2024_vm1, %v7575_v61, %v7577_v37  ;;  %16794 = vmatpush3.bf16.msra.mxu0 %v23464_v32  ;;  %v7843_v35 = vsel %vm2024_vm1, %v7842_v5, 0  ;;  %v17893_v32 = vld [vmem:[%s26305_s8 + $0x1c] ss:$12 sps:$4 sm:$0xff]   ;;  %v15357_v31 = vcombine.low %v7701_v14, %v7701_v14  ;;  %17503 = vmatpush3.bf16.msra.mxu1 %v17917_v30 }
 0x61e   : > { %v7659_v49 = vmax.f32 %v26819_v52, %v7576_v54  ;;  %v7660_v18 = vmax.f32 %v7491_v21, %v7578_v12  ;;  %16795 = vmatprep.subr.bf16.mxu0 %v7714_v27  ;;  %v7845_v27 = vand.u32 %v7843_v35, %v7719_v19  ;;  %17504 = vmatprep.subr.bf16.mxu1 %v26821_v2  ;;  %v17919_v37 = vld [vmem:[%s26302_s5 + $0x48] sm:$0xff]  }
 0x620   : > { %v7711_v24 = vpack.c.bf16 %v7660_v18, %v7659_v49 }
 0x621   : > { %16796 = vmatpush3.bf16.msra.mxu0 %v7706_v15  ;;  %v17891_v15 = vld [vmem:[%s26305_s8 + $0x18] ss:$12 sps:$4 sm:$0xff]   ;;  %17505 = vmatpush3.bf16.msra.mxu1 %v17920_v28 }
 0x622   : > { %16797 = vmatprep.subr.bf16.mxu0 %v7713_v6  ;;  %17506 = vmatprep.subr.bf16.mxu1 %v26821_v2 }
 0x625   : > { %16798 = vmatpush3.bf16.msra.mxu0 %v7705_v57  ;;  %v17918_v57 = vld [vmem:[%s26302_s5 + $0x50] sm:$0xff]   ;;  %17507 = vmatpush3.bf16.msra.mxu1 %v17922_v53 }
 0x626   : > { %16799 = vmatprep.subr.bf16.mxu0 %v7712_v16  ;;  %17528 = vmatprep.subr.bf16.mxu1 %v26821_v2 }
 0x629   : > { %16800 = vmatpush3.bf16.msra.mxu0 %v7704_v41  ;;  %v17921_v41 = vld [vmem:[%s26302_s5 + $0x40] sm:$0xff]  }
 0x62a   : > { %16801 = vmatprep.subr.bf16.mxu0 %v7711_v24 }
 0x62d   : > { %16802 = vmatpush3.bf16.msra.mxu0 %v7703_v25 }
 0x62e   : > { %17470 = vmatprep.subr.bf16.mxu0 %v26821_v2 }
 0x630   : > { %7880 = vmatmul.mubr.bf16.vlgmr.msra.gmra.mxu0 %v17888_v39 }
 0x631   : > { %17471 = vmatpush3.bf16.msra.mxu0 %v7845_v27  ;;  %7887 = vmatprep.mubr.bf16.mxu0 %v17893_v32 }
 0x632   : > { %17556 = vmatprep.subr.bf16.mxu0 %v26821_v2 }
 0x638   : > { %7888 = vmatmul.mubr.bf16.gmra.mxu0 %v17891_v15 }
 0x639   : > { %7895 = vmatprep.mubr.bf16.mxu0 %v17896_v47 }
 0x640   : > { %7896 = vmatmul.mubr.bf16.gmra.mxu0 %v17894_v20 }
 0x641   : > { %7903 = vmatprep.mubr.bf16.mxu0 %v17899_v43 }
 0x648   : > { %7904 = vmatmul.mubr.bf16.gmra.mxu0 %v17897_v8 }
 0x649   : > { %7911 = vmatprep.mubr.bf16.mxu0 %v17902_v59 }
 0x650   : > { %7912 = vmatmul.mubr.bf16.gmra.mxu0 %v17900_v11 }
 0x651   : > { %7919 = vmatprep.mubr.bf16.mxu0 %v17905_v34 }
 0x658   : > { %7920 = vmatmul.mubr.bf16.gmra.mxu0 %v17903_v1 }
 0x659   : > { %7927 = vmatprep.mubr.bf16.mxu0 %v15358_v9 }
 0x660   : > { %7928 = vmatmul.mubr.bf16.gmra.mxu0 %v15357_v31 }
 0x661   : > { %17472 = vmatprep.mubr.msk.bf16.mxu0 %vm18818_vm9, %v26821_v2 }
 0x668   : > { %17473 = vmatmul.mubr.msk.bf16.vlgmr.msra.gmra.mxu0 %vm7820_vm10, %v17908_v63 }
 0x669   : > { %17476 = vmatprep.mubr.msk.bf16.mxu0 %vm18818_vm9, %v26821_v2  ;;  %17557 = vmatpush3.bf16.msra.mxu0 %v17916_v26  ;;  %v17923_v26 = vld [vmem:[%s26302_s5 + $0x98] sm:$0xff]  }
 0x66a   : > { %17558 = vmatprep.subr.bf16.mxu0 %v26821_v2 }
 0x66d   : > { %17559 = vmatpush3.bf16.msra.mxu0 %v17918_v57 }
 0x66e   : > { %17560 = vmatprep.subr.bf16.mxu0 %v26821_v2 }
 0x670   : > { %17477 = vmatmul.mubr.msk.bf16.gmra.mxu0 %vm7820_vm10, %v17909_v13 }
 0x671   : > { %17480 = vmatprep.mubr.msk.bf16.mxu0 %vm18818_vm9, %v26821_v2  ;;  %17561 = vmatpush3.bf16.msra.mxu0 %v17919_v37 }
 0x672   : > { %17562 = vmatprep.subr.bf16.mxu0 %v26821_v2 }
 0x675   : > { %17563 = vmatpush3.bf16.msra.mxu0 %v17921_v41 }
 0x676   : > { %17612 = vmatprep.subr.bf16.mxu0 %v26821_v2 }
 0x678   : > { %17481 = vmatmul.mubr.msk.bf16.gmra.mxu0 %vm7820_vm10, %v17910_v48 }
 0x679   : > { %17484 = vmatprep.mubr.msk.bf16.mxu0 %vm18818_vm9, %v26821_v2 }
 0x680   : > { %17485 = vmatmul.mubr.msk.bf16.gmra.mxu0 %vm7820_vm10, %v17911_v36 }
 0x681   : > { %17488 = vmatprep.mubr.msk.bf16.mxu0 %vm18818_vm9, %v26821_v2 }
 0x688   : > { %17489 = vmatmul.mubr.msk.bf16.gmra.mxu0 %vm7820_vm10, %v17912_v23 }
 0x689   : > { %17492 = vmatprep.mubr.msk.bf16.mxu0 %vm18818_vm9, %v26821_v2 }
 0x690   : > { %17493 = vmatmul.mubr.msk.bf16.gmra.mxu0 %vm7820_vm10, %v17913_v38 }
 0x691   : > { %17496 = vmatprep.mubr.msk.bf16.mxu0 %vm18818_vm9, %v26821_v2 }
 0x698   : > { %17497 = vmatmul.mubr.msk.bf16.gmra.mxu0 %vm7820_vm10, %v17914_v44 }
 0x699   : > { %17564 = vmatprep.mubr.msk.bf16.mxu0 %vm18818_vm9, %v26821_v2 }
 0x6f0   : > { %v16803_v0 = vpop.f32.mrf.mxu0 }
 0x6f2   : > { %v16804_v29 = vpop.f32.mrf.mxu0 }
 0x6f3   : > { %v16805_v5 = vadd.f32 %v16804_v29, %v16803_v0 }
 0x6f4   : > { %v16806_v7 = vpop.f32.mrf.mxu0 }
 0x6f6   : > { %v16807_v50 = vpop.f32.mrf.mxu0 }
 0x6f7   : > { %v16808_v39 = vadd.f32 %v16807_v50, %v16806_v7  ;;  %v17924_v50 = vld [vmem:[%s26302_s5 + $0x18] sm:$0xff]  }
 0x6f8   : > { %v16809_v6 = vpop.f32.mrf.mxu0 }
 0x6fa   : > { %v16810_v22 = vpop.f32.mrf.mxu0 }
 0x6fb   : > { %v16811_v8 = vadd.f32 %v16810_v22, %v16809_v6 }
 0x6fc   : > { %v16812_v51 = vpop.f32.mrf.mxu0 }
 0x6fe   : > { %v16813_v21 = vpop.f32.mrf.mxu0 }
 0x6ff   : > { %v16814_v59 = vadd.f32 %v16813_v21, %v16812_v51 }
 0x700   : > { %v16815_v10 = vpop.f32.mrf.mxu0 }
 0x702   : > { %v16816_v60 = vpop.f32.mrf.mxu0 }
 0x703   : > { %v16817_v13 = vadd.f32 %v16816_v60, %v16815_v10 }
 0x704   : > { %v16818_v55 = vpop.f32.mrf.mxu0 }
 0x706   : > { %v16819_v3 = vpop.f32.mrf.mxu0 }
 0x707   : > { %v16820_v53 = vadd.f32 %v16819_v3, %v16818_v55 }
 0x708   : > { %v23721_v4 = vpop.f32.mrf.mxu0 }
 0x70a   : > { %v23723_v17 = vpop.f32.mrf.mxu0 }
 0x70c   : > { %v23725_v45 = vpop.f32.mrf.mxu0 }
 0x70e   : > { %v23727_v62 = vpop.f32.mrf.mxu0 }
 0x710   : > { %v23729_v46 = vpop.f32.mrf.mxu0 }
 0x712   : > { %v23731_v61 = vpop.f32.mrf.mxu0 }
 0x714   : > { %v23733_v25 = vpop.f32.mrf.mxu0 }
 0x716   : > { %v23735_v33 = vpop.f32.mrf.mxu0 }
 0x718   : > { %v23737_v40 = vpop.f32.mrf.mxu0 }
 0x71a   : > { %v23739_v16 = vpop.f32.mrf.mxu0 }
 0x71c   : > { %v23741_v52 = vpop.f32.mrf.mxu0 }
 0x71e   : > { %v23743_v56 = vpop.f32.mrf.mxu0 }
 0x720   : > { %v16839_v54 = vpop.f32.mrf.mxu0 }
 0x722   : > { %v16840_v12 = vpop.f32.mrf.mxu0 }
 0x723   : > { %v23745_v49 = vadd.f32 %v16840_v12, %v16839_v54  ;;  %v17925_v54 = vld [vmem:[%s26302_s5 + $0x90] sm:$0xff]  }
 0x724   : > { %v16842_v18 = vpop.f32.mrf.mxu0 }
 0x726   : > { %v16843_v19 = vpop.f32.mrf.mxu0 }
 0x728   : > { %v7969_v24 = vpop.f32.mrf.mxu0 }
 0x729   : > { %v7970_v32 = vadd.f32 %v16805_v5, %v7969_v24  ;;  %v17926_v24 = vld [vmem:[%s26302_s5 + $0x10] sm:$0xff]  }
 0x72a   : > { %v17474_v58 = vpop.f32.mrf.mxu0 }
 0x72b   : > { %v16823_v58 = vadd.f32 %v23723_v17, %v23721_v4 }
 0x72c   : > { %v7972_v35 = vpop.f32.mrf.mxu0 }
 0x72d   : > { %v7973_v27 = vadd.f32 %v16808_v39, %v7972_v35 }
 0x72e   : > { %v17475_v15 = vpop.f32.mrf.mxu0 }
 0x72f   : > { %v23747_v47 = vpack.c.bf16 %v7973_v27, %v7970_v32  ;;  %v17927_v15 = vld [vmem:[%s26302_s5 + $0x88] sm:$0xff]  }
 0x730   : > { %v7977_v20 = vpop.f32.mrf.mxu0 }
 0x731   : > { %v8050_v11 = vshll.u32 %v23747_v47, 16  ;;  %v7978_v14 = vadd.f32 %v16811_v8, %v7977_v20  ;;  %v8326_v36 = vrot.slane %v23747_v47, 1  ;;  %v8048_v38 = vshrl.u32 %v23747_v47, 16 }
 0x732   : > { %v17478_v43 = vpop.f32.mrf.mxu0  ;;  %v8469_v57 = vrot.slane %v23747_v47, 5  ;;  %v8769_v28 = vrot.slane %v23747_v47, 6 }
 0x733   : > { %v8052_v63 = vrot.slane %v8050_v11, 1 }
 0x734   : > { %v7980_v34 = vpop.f32.mrf.mxu0 }
 0x735   : > { %v7981_v1 = vadd.f32 %v16814_v59, %v7980_v34  ;;  %v8053_v29 = vor.u32 %v8052_v63, %v8048_v38  ;;  %v16826_v34 = vadd.f32 %v23727_v62, %v23725_v45  ;;  %v17928_v63 = vld [vmem:[%s26302_s5 + $0x8] sm:$0xff]  }
 0x736   : > { %v17479_v9 = vpop.f32.mrf.mxu0 }
 0x737   : > { %v23750_v31 = vpack.c.bf16 %v7981_v1, %v7978_v14 }
 0x738   : > { %v7985_v48 = vpop.f32.mrf.mxu0 }
 0x739   : > { %v8327_v23 = vrot.slane %v23750_v31, 1  ;;  %v23758_v44 = vshll.u32 %v23750_v31, 16  ;;  %v23761_v42 = vshrl.u32 %v23750_v31, 16  ;;  %v8470_v37 = vrot.slane %v23750_v31, 5 }
 0x73a   : > { %v17482_v30 = vpop.f32.mrf.mxu0  ;;  %v8770_v41 = vrot.slane %v23750_v31, 6  ;;  %v7986_v60 = vadd.f32 %v16817_v13, %v7985_v48  ;;  %v8912_v39 = vrot.slane %v23750_v31, 2  ;;  %v9213_v4 = vrot.slane %v23750_v31, 3 }
 0x73b   : > { %v8328_v0 = vsel %vm2024_vm1, %v8326_v36, %v8327_v23  ;;  %v8057_v7 = vrot.slane %v23758_v44, 1  ;;  %v23779_v22 = vsel %vm8468_vm12, %v8469_v57, %v8470_v37  ;;  %v9054_v21 = vrot.slane %v23761_v42, 2  ;;  %v17929_v57 = vld [vmem:[%s26302_s5 + $0x80] sm:$0xff]  }
 0x73c   : > { %v7988_v6 = vpop.f32.mrf.mxu0  ;;  %17565 = vmatmul.mubr.msk.bf16.vlgmr.msra.gmra.mxu0 %vm8115_vm11, %v8328_v0  ;;  %v23784_v51 = vsel %vm8768_vm13, %v8769_v28, %v8770_v41  ;;  %v9055_v10 = vrot.slane %v23758_v44, 3 }
 0x73d   : > { %v7989_v55 = vadd.f32 %v16820_v53, %v7988_v6  ;;  %v8058_v3 = vsel %vm4453_vm4, %v8053_v29, %v8057_v7  ;;  %17568 = vmatprep.mubr.msk.bf16.mxu0 %vm18818_vm9, %v26821_v2  ;;  %17613 = vmatpush3.bf16.msra.mxu0 %v17923_v26  ;;  %v8061_v1 = vor.u32 %v23761_v42, %v8057_v7  ;;  %v17930_v29 = vld [vmem:[%s26302_s5] sm:$0xff]  }
 0x73e   : > { %v17483_v12 = vpop.f32.mrf.mxu0  ;;  %17509 = vmatmul.mubr.msk.bf16.vlgmr.msra.gmra.mxu1 %vm8115_vm11, %v8058_v3  ;;  %17614 = vmatprep.subr.bf16.mxu0 %v26821_v2  ;;  %v23796_v18 = vor.u32 %v9055_v10, %v9054_v21  ;;  %v16829_v6 = vadd.f32 %v23731_v61, %v23729_v46  ;;  %v16832_v61 = vadd.f32 %v23735_v33, %v23733_v25 }
 0x73f   : > { %v23798_v19 = vpack.c.bf16 %v7989_v55, %v7986_v60  ;;  %17512 = vmatprep.mubr.msk.bf16.mxu1 %vm18818_vm9, %v26821_v2  ;;  %17529 = vmatpush3.bf16.msra.mxu1 %v17924_v50 }
 0x740   : > { %v7993_v5 = vpop.f32.mrf.mxu0  ;;  %17530 = vmatprep.subr.bf16.mxu1 %v26821_v2 }
 0x741   : > { %v8329_v35 = vrot.slane %v23798_v19, 1  ;;  %v23811_v32 = vshll.u32 %v23798_v19, 16  ;;  %v23814_v27 = vshrl.u32 %v23798_v19, 16  ;;  %17615 = vmatpush3.bf16.msra.mxu0 %v17925_v54  ;;  %v8913_v20 = vrot.slane %v23798_v19, 2 }
 0x742   : > { %v17486_v17 = vpop.f32.mrf.mxu0  ;;  %17616 = vmatprep.subr.bf16.mxu0 %v26821_v2  ;;  %v8472_v43 = vrot.slane %v23798_v19, 5  ;;  %v9214_v8 = vrot.slane %v23798_v19, 3  ;;  %v8772_v59 = vrot.slane %v23798_v19, 6 }
 0x743   : > { %v8330_v14 = vsel %vm2024_vm1, %v8327_v23, %v8329_v35  ;;  %v8065_v9 = vrot.slane %v23811_v32, 1  ;;  %17531 = vmatpush3.bf16.msra.mxu1 %v17926_v24  ;;  %v23836_v48 = vsel %vm6019_vm7, %v8912_v39, %v8913_v20  ;;  %v9057_v36 = vrot.slane %v23814_v27, 2 }
 0x744   : > { %v7996_v13 = vpop.f32.mrf.mxu0  ;;  %17569 = vmatmul.mubr.msk.bf16.gmra.mxu0 %vm8115_vm11, %v8330_v14  ;;  %17532 = vmatprep.subr.bf16.mxu1 %v26821_v2  ;;  %v23839_v45 = vsel %vm8468_vm12, %v8470_v37, %v8472_v43  ;;  %v23842_v62 = vsel %vm6942_vm8, %v9213_v4, %v9214_v8  ;;  %v7994_v23 = vadd.f32 %v16823_v58, %v7993_v5  ;;  %v9058_v37 = vrot.slane %v23811_v32, 3 }
 0x745   : > { %v7997_v26 = vadd.f32 %v16826_v34, %v7996_v13  ;;  %v8066_v30 = vsel %vm4453_vm4, %v8061_v1, %v8065_v9  ;;  %17572 = vmatprep.mubr.msk.bf16.mxu0 %vm18818_vm9, %v26821_v2  ;;  %17617 = vmatpush3.bf16.msra.mxu0 %v17927_v15  ;;  %v23857_v53 = vsel %vm8768_vm13, %v8770_v41, %v8772_v59 }
 0x746   : > { %v17487_v28 = vpop.f32.mrf.mxu0  ;;  %17513 = vmatmul.mubr.msk.bf16.gmra.mxu1 %vm8115_vm11, %v8066_v30  ;;  %17618 = vmatprep.subr.bf16.mxu0 %v26821_v2  ;;  %v23866_v7 = vor.u32 %v9058_v37, %v9057_v36  ;;  %v8069_v24 = vor.u32 %v23814_v27, %v8065_v9 }
 0x747   : > { %v23859_v0 = vpack.c.bf16 %v7997_v26, %v7994_v23  ;;  %17516 = vmatprep.mubr.msk.bf16.mxu1 %vm18818_vm9, %v26821_v2  ;;  %17533 = vmatpush3.bf16.msra.mxu1 %v17928_v63  ;;  %v16835_v63 = vadd.f32 %v23739_v16, %v23737_v40  ;;  %v16838_v40 = vadd.f32 %v23743_v56, %v23741_v52 }
 0x748   : > { %v8001_v50 = vpop.f32.mrf.mxu0  ;;  %17534 = vmatprep.subr.bf16.mxu1 %v26821_v2 }
 0x749   : > { %v8331_v41 = vrot.slane %v23859_v0, 1  ;;  %v23873_v21 = vshll.u32 %v23859_v0, 16  ;;  %v23876_v10 = vshrl.u32 %v23859_v0, 16  ;;  %17619 = vmatpush3.bf16.msra.mxu0 %v17929_v57  ;;  %v8915_v55 = vrot.slane %v23859_v0, 2 }
 0x74a   : > { %v17490_v60 = vpop.f32.mrf.mxu0  ;;  %17668 = vmatprep.subr.bf16.mxu0 %v26821_v2  ;;  %v8474_v3 = vrot.slane %v23859_v0, 5  ;;  %v9216_v54 = vrot.slane %v23859_v0, 3  ;;  %v8774_v46 = vrot.slane %v23859_v0, 6 }
 0x74b   : > { %v8332_v12 = vsel %vm2024_vm1, %v8329_v35, %v8331_v41  ;;  %v8073_v58 = vrot.slane %v23873_v21, 1  ;;  %17535 = vmatpush3.bf16.msra.mxu1 %v17930_v29  ;;  %v23891_v39 = vsel %vm6019_vm7, %v8913_v20, %v8915_v55  ;;  %v9061_v33 = vrot.slane %v23876_v10, 2 }
 0x74c   : > { %v8004_v5 = vpop.f32.mrf.mxu0  ;;  %17573 = vmatmul.mubr.msk.bf16.gmra.mxu0 %vm8115_vm11, %v8332_v12  ;;  %17584 = vmatprep.subr.bf16.mxu1 %v26821_v2  ;;  %v23894_v15 = vsel %vm8468_vm12, %v8472_v43, %v8474_v3  ;;  %v23897_v25 = vsel %vm6942_vm8, %v9214_v8, %v9216_v54  ;;  %v8002_v35 = vadd.f32 %v16829_v6, %v8001_v50  ;;  %v9062_v8 = vrot.slane %v23873_v21, 3 }
 0x74d   : > { %v8005_v4 = vadd.f32 %v16832_v61, %v8004_v5  ;;  %v8074_v17 = vsel %vm4453_vm4, %v8069_v24, %v8073_v58  ;;  %17576 = vmatprep.mubr.msk.bf16.mxu0 %vm18818_vm9, %v26821_v2  ;;  %v23905_v20 = vsel %vm8768_vm13, %v8772_v59, %v8774_v46  ;;  %v23910_v43 = vsel %vm6577_vm6, %v23796_v18, %v23866_v7 }
 0x74e   : > { %v17491_v34 = vpop.f32.mrf.mxu0  ;;  %17517 = vmatmul.mubr.msk.bf16.gmra.mxu1 %vm8115_vm11, %v8074_v17  ;;  %v23917_v9 = vor.u32 %v9062_v8, %v9061_v33  ;;  %v8077_v37 = vor.u32 %v23876_v10, %v8073_v58  ;;  %v8612_v58 = vrot.slane %v8048_v38, 5  ;;  %v8613_v5 = vrot.slane %v8050_v11, 6 }
 0x74f   : > { %v23913_v14 = vpack.c.bf16 %v8005_v4, %v8002_v35  ;;  %17520 = vmatprep.mubr.msk.bf16.mxu1 %vm18818_vm9, %v26821_v2  ;;  %v8615_v33 = vrot.slane %v23761_v42, 5  ;;  %v8616_v34 = vrot.slane %v23758_v44, 6 }
 0x750   : > { %v8009_v1 = vpop.f32.mrf.mxu0 }
 0x751   : > { %v8333_v59 = vrot.slane %v23913_v14, 1  ;;  %v23923_v13 = vshll.u32 %v23913_v14, 16  ;;  %v23926_v18 = vshrl.u32 %v23913_v14, 16  ;;  %v8917_v23 = vrot.slane %v23913_v14, 2 }
 0x752   : > { %v17494_v36 = vpop.f32.mrf.mxu0  ;;  %v8476_v26 = vrot.slane %v23913_v14, 5  ;;  %v9218_v30 = vrot.slane %v23913_v14, 3  ;;  %v8776_v57 = vrot.slane %v23913_v14, 6  ;;  %v8010_v56 = vadd.f32 %v16835_v63, %v8009_v1 }
 0x753   : > { %v8334_v16 = vsel %vm2024_vm1, %v8331_v41, %v8333_v59  ;;  %v8081_v28 = vrot.slane %v23923_v13, 1  ;;  %v23939_v50 = vsel %vm6019_vm7, %v8915_v55, %v8917_v23  ;;  %v23957_v55 = vsel %vm6577_vm6, %v23866_v7, %v23917_v9 }
 0x754   : > { %v8012_v29 = vpop.f32.mrf.mxu0  ;;  %17577 = vmatmul.mubr.msk.bf16.gmra.mxu0 %vm8115_vm11, %v8334_v16  ;;  %v23942_v6 = vsel %vm8468_vm12, %v8474_v3, %v8476_v26  ;;  %v23945_v60 = vsel %vm6942_vm8, %v9216_v54, %v9218_v30  ;;  %v23948_v52 = vsel %vm8768_vm13, %v8774_v46, %v8776_v57  ;;  %v9065_v3 = vrot.slane %v23926_v18, 2 }
 0x755   : > { %v8013_v41 = vadd.f32 %v16838_v40, %v8012_v29  ;;  %v8082_v61 = vsel %vm4453_vm4, %v8077_v37, %v8081_v28  ;;  %17580 = vmatprep.mubr.msk.bf16.mxu0 %vm18818_vm9, %v26821_v2  ;;  %v9066_v54 = vrot.slane %v23923_v13, 3 }
 0x756   : > { %v17495_v12 = vpop.f32.mrf.mxu0  ;;  %17521 = vmatmul.mubr.msk.bf16.gmra.mxu1 %vm8115_vm11, %v8082_v61 }
 0x757   : > { %v23961_v46 = vpack.c.bf16 %v8013_v41, %v8010_v56  ;;  %17524 = vmatprep.mubr.msk.bf16.mxu1 %vm18818_vm9, %v26821_v2  ;;  %v9067_v7 = vor.u32 %v9066_v54, %v9065_v3  ;;  %v8617_v3 = vor.u32 %v8616_v34, %v8615_v33  ;;  %v8614_v33 = vor.u32 %v8613_v5, %v8612_v58  ;;  %v17931_v34 = vld [vmem:[%s26302_s5 + $0xd8] sm:$0xff]  }
 0x758   : > { %v8017_v24 = vpop.f32.mrf.mxu0 }
 0x759   : > { %v8018_v35 = vadd.f32 %v23745_v49, %v8017_v24  ;;  %v8335_v4 = vrot.slane %v23961_v46, 1  ;;  %v23973_v17 = vshll.u32 %v23961_v46, 16  ;;  %v8919_v8 = vrot.slane %v23961_v46, 2 }
 0x75a   : > { %v8478_v1 = vrot.slane %v23961_v46, 5  ;;  %v9220_v38 = vrot.slane %v23961_v46, 3  ;;  %v8778_v11 = vrot.slane %v23961_v46, 6  ;;  %v17498_v63 = vpop.f32.mrf.mxu0  ;;  %v8085_v49 = vor.u32 %v23926_v18, %v8081_v28 }
 0x75b   : > { %v8029_v42 = vpack.c.bf16 %v8018_v35, %v8018_v35  ;;  %v8336_v36 = vsel %vm2024_vm1, %v8333_v59, %v8335_v4  ;;  %v8089_v40 = vrot.slane %v23973_v17, 1  ;;  %v8631_v44 = vshrl.u32 %v23961_v46, 16  ;;  %v17940_v46 = vld [vmem:[%s26302_s5 + $0xb8] sm:$0xff]  }
 0x75c   : > { %17581 = vmatmul.mubr.msk.bf16.gmra.mxu0 %vm8115_vm11, %v8336_v36  ;;  %v23986_v16 = vsel %vm6019_vm7, %v8917_v23, %v8919_v8  ;;  %v23989_v37 = vsel %vm8468_vm12, %v8476_v26, %v8478_v1  ;;  %v23992_v29 = vsel %vm6942_vm8, %v9218_v30, %v9220_v38  ;;  %v8020_v56 = vpop.f32.mrf.mxu0  ;;  %v23998_v23 = vsel %vm8768_vm13, %v8776_v57, %v8778_v11  ;;  %v17935_v36 = vld [vmem:[%s26302_s5 + $0xc8] sm:$0xff]  }
 0x75d   : > { %v8921_v41 = vrot.slane %v8029_v42, 2  ;;  %v9074_v59 = vshrl.u32 %v8029_v42, 16  ;;  %v9077_v61 = vshll.u32 %v8029_v42, 16  ;;  %v9222_v28 = vrot.slane %v8029_v42, 3  ;;  %17620 = vmatprep.mubr.msk.bf16.mxu0 %vm18818_vm9, %v26821_v2  ;;  %v17932_v42 = vld [vmem:[%s26302_s5 + $0x78] sm:$0xff]   ;;  %v17936_v56 = vld [vmem:[%s26302_s5 + $0x68] sm:$0xff]  }
 0x75e   : > { %v8090_v12 = vsel %vm4453_vm4, %v8085_v49, %v8089_v40  ;;  %v24002_v26 = vsel %vm6577_vm6, %v23917_v9, %v9067_v7  ;;  %v17499_v30 = vpop.f32.mrf.mxu0  ;;  %v9069_v57 = vrot.slane %v8631_v44, 2  ;;  %v9070_v9 = vrot.slane %v23973_v17, 3 }
 0x75f   : > { %v9076_v54 = vrot.slane %v9074_v59, 2  ;;  %v9079_v24 = vrot.slane %v9077_v61, 3  ;;  %17525 = vmatmul.mubr.msk.bf16.gmra.mxu1 %vm8115_vm11, %v8090_v12  ;;  %v24006_v35 = vsel %vm6019_vm7, %v8919_v8, %v8921_v41  ;;  %v24009_v4 = vsel %vm6942_vm8, %v9220_v38, %v9222_v28  ;;  %v17937_v41 = vld [vmem:[%s26302_s5 + $0xc0] sm:$0xff]  }
 0x760   : > { %17536 = vmatprep.mubr.msk.bf16.mxu1 %vm18818_vm9, %v26821_v2  ;;  %v9071_v8 = vor.u32 %v9070_v9, %v9069_v57  ;;  %v8618_v11 = vsel %vm8611_vm14, %v8614_v33, %v8617_v3  ;;  %v8619_v38 = vrot.slane %v23814_v27, 5  ;;  %v8620_v63 = vrot.slane %v23811_v32, 6  ;;  %v17933_v32 = vld [vmem:[%s26302_s5 + $0xd0] sm:$0xff]  }
 0x761   : > { %v9080_v1 = vor.u32 %v9079_v24, %v9076_v54  ;;  %v8623_v49 = vrot.slane %v23876_v10, 5  ;;  %v8624_v40 = vrot.slane %v23873_v21, 6  ;;  %v17938_v10 = vld [vmem:[%s26302_s5 + $0x60] sm:$0xff]   ;;  %v8627_v61 = vrot.slane %v23926_v18, 5 }
 0x762   : > { %v24027_v58 = vsel %vm6577_vm6, %v9067_v7, %v9071_v8  ;;  %v8621_v27 = vor.u32 %v8620_v63, %v8619_v38  ;;  %v17934_v7 = vld [vmem:[%s26302_s5 + $0x70] sm:$0xff]   ;;  %v8634_v18 = vrot.slane %v23973_v17, 6  ;;  %v17943_v17 = vld [vmem:[%s26302_s5 + $0x108] sm:$0xff]  }
 0x763   : > { %v24030_v5 = vsel %vm6577_vm6, %v9071_v8, %v9080_v1  ;;  %v8625_v21 = vor.u32 %v8624_v40, %v8623_v49 }
 0x764   : > { %17621 = vmatmul.mubr.msk.bf16.vlgmr.msra.gmra.mxu0 %vm8115_vm11, %v8618_v11 }
 0x765   : > { %17624 = vmatprep.mubr.msk.bf16.mxu0 %vm18818_vm9, %v26821_v2  ;;  %17669 = vmatpush3.bf16.msra.mxu0 %v17931_v34  ;;  %v8626_v59 = vsel %vm8611_vm14, %v8621_v27, %v8625_v21 }
 0x766   : > { %17670 = vmatprep.subr.bf16.mxu0 %v26821_v2 }
 0x767   : > { %17537 = vmatmul.mubr.msk.bf16.vlgmr.msra.gmra.mxu1 %vm8115_vm11, %v23747_v47  ;;  %v8622_v47 = vsel %vm8611_vm14, %v8617_v3, %v8621_v27 }
 0x768   : > { %17540 = vmatprep.mubr.msk.bf16.mxu1 %vm18818_vm9, %v26821_v2  ;;  %17585 = vmatpush3.bf16.msra.mxu1 %v17932_v42 }
 0x769   : > { %17671 = vmatpush3.bf16.msra.mxu0 %v17933_v32  ;;  %17586 = vmatprep.subr.bf16.mxu1 %v26821_v2 }
 0x76a   : > { %17672 = vmatprep.subr.bf16.mxu0 %v26821_v2 }
 0x76c   : > { %17625 = vmatmul.mubr.msk.bf16.gmra.mxu0 %vm8115_vm11, %v8622_v47  ;;  %17587 = vmatpush3.bf16.msra.mxu1 %v17934_v7 }
 0x76d   : > { %17628 = vmatprep.mubr.msk.bf16.mxu0 %vm18818_vm9, %v26821_v2  ;;  %17673 = vmatpush3.bf16.msra.mxu0 %v17935_v36 }
 0x76e   : > { %17588 = vmatprep.subr.bf16.mxu1 %v26821_v2  ;;  %17674 = vmatprep.subr.bf16.mxu0 %v26821_v2 }
 0x76f   : > { %17541 = vmatmul.mubr.msk.bf16.gmra.mxu1 %vm8115_vm11, %v23750_v31  ;;  %v8628_v31 = vrot.slane %v23923_v13, 6  ;;  %v8633_v13 = vrot.slane %v8631_v44, 5  ;;  %v17945_v44 = vld [vmem:[%s26302_s5 + $0x100] sm:$0xff]  }
 0x770   : > { %17544 = vmatprep.mubr.msk.bf16.mxu1 %vm18818_vm9, %v26821_v2  ;;  %17589 = vmatpush3.bf16.msra.mxu1 %v17936_v56 }
 0x771   : > { %17675 = vmatpush3.bf16.msra.mxu0 %v17937_v41  ;;  %17590 = vmatprep.subr.bf16.mxu1 %v26821_v2  ;;  %v8629_v28 = vor.u32 %v8628_v31, %v8627_v61  ;;  %v17953_v61 = vld [vmem:[%s26306_s9 + $0xe4] ss:$16 sps:$4 sm:$0xff]   ;;  %v17954_v31 = vld [vmem:[%s26306_s9 + $0xe8] ss:$16 sps:$4 sm:$0xff]  }
 0x772   : > { %17724 = vmatprep.subr.bf16.mxu0 %v26821_v2 }
 0x773   : > { %v8630_v12 = vsel %vm8611_vm14, %v8625_v21, %v8629_v28 }
 0x774   : > { %17629 = vmatmul.mubr.msk.bf16.gmra.mxu0 %vm8115_vm11, %v8626_v59  ;;  %17591 = vmatpush3.bf16.msra.mxu1 %v17938_v10  ;;  %v17951_v59 = vld [vmem:[%s26306_s9 + $0xe0] ss:$16 sps:$4 sm:$0xff]  }
 0x775   : > { %17632 = vmatprep.mubr.msk.bf16.mxu0 %vm18818_vm9, %v26821_v2  ;;  %17640 = vmatprep.subr.bf16.mxu1 %v26821_v2 }
 0x777   : > { %17545 = vmatmul.mubr.msk.bf16.gmra.mxu1 %vm8115_vm11, %v23798_v19  ;;  %v8635_v19 = vor.u32 %v8634_v18, %v8633_v13 }
 0x778   : > { %17548 = vmatprep.mubr.msk.bf16.mxu1 %vm18818_vm9, %v26821_v2 }
 0x779   : > { %v8636_v3 = vsel %vm8611_vm14, %v8629_v28, %v8635_v19 }
 0x77c   : > { %17633 = vmatmul.mubr.msk.bf16.gmra.mxu0 %vm8115_vm11, %v8630_v12  ;;  %v17956_v12 = vld [vmem:[%s26306_s9 + $0xec] ss:$16 sps:$4 sm:$0xff]  }
 0x77d   : > { %17636 = vmatprep.mubr.msk.bf16.mxu0 %vm18818_vm9, %v26821_v2 }
 0x77f   : > { %17549 = vmatmul.mubr.msk.bf16.gmra.mxu1 %vm8115_vm11, %v23859_v0  ;;  %v17939_v0 = vld [vmem:[%s26302_s5 + $0x118] sm:$0xff]  }
 0x780   : > { %17552 = vmatprep.mubr.msk.bf16.mxu1 %vm18818_vm9, %v26821_v2 }
 0x784   : > { %17637 = vmatmul.mubr.msk.bf16.gmra.mxu0 %vm8115_vm11, %v8636_v3 }
 0x785   : > { %17676 = vmatprep.mubr.msk.bf16.mxu0 %vm18818_vm9, %v26821_v2 }
 0x787   : > { %17553 = vmatmul.mubr.msk.bf16.gmra.mxu1 %vm8115_vm11, %v23913_v14  ;;  %v17941_v14 = vld [vmem:[%s26302_s5 + $0x110] sm:$0xff]  }
 0x788   : > { %17592 = vmatprep.mubr.msk.bf16.mxu1 %vm18818_vm9, %v26821_v2 }
 0x78c   : > { %17677 = vmatmul.mubr.msk.bf16.vlgmr.msra.gmra.mxu0 %vm8115_vm11, %v23836_v48  ;;  %v17942_v48 = vld [vmem:[%s26302_s5 + $0xb0] sm:$0xff]  }
 0x78d   : > { %17680 = vmatprep.mubr.msk.bf16.mxu0 %vm18818_vm9, %v26821_v2  ;;  %17725 = vmatpush3.bf16.msra.mxu0 %v17939_v0 }
 0x78e   : > { %17726 = vmatprep.subr.bf16.mxu0 %v26821_v2 }
 0x78f   : > { %17593 = vmatmul.mubr.msk.bf16.vlgmr.msra.gmra.mxu1 %vm8115_vm11, %v23779_v22  ;;  %v17944_v22 = vld [vmem:[%s26302_s5 + $0xa8] sm:$0xff]  }
 0x790   : > { %17596 = vmatprep.mubr.msk.bf16.mxu1 %vm18818_vm9, %v26821_v2  ;;  %17641 = vmatpush3.bf16.msra.mxu1 %v17940_v46 }
 0x791   : > { %17727 = vmatpush3.bf16.msra.mxu0 %v17941_v14  ;;  %17642 = vmatprep.subr.bf16.mxu1 %v26821_v2 }
 0x792   : > { %17728 = vmatprep.subr.bf16.mxu0 %v26821_v2 }
 0x794   : > { %17681 = vmatmul.mubr.msk.bf16.gmra.mxu0 %vm8115_vm11, %v23891_v39  ;;  %17643 = vmatpush3.bf16.msra.mxu1 %v17942_v48  ;;  %v17946_v39 = vld [vmem:[%s26302_s5 + $0xa0] sm:$0xff]  }
 0x795   : > { %17684 = vmatprep.mubr.msk.bf16.mxu0 %vm18818_vm9, %v26821_v2  ;;  %17729 = vmatpush3.bf16.msra.mxu0 %v17943_v17  ;;  %v17957_v17 = vld [vmem:[%s26306_s9 + $0xc0] ss:$16 sps:$4 sm:$0xff]  }
 0x796   : > { %17644 = vmatprep.subr.bf16.mxu1 %v26821_v2  ;;  %17730 = vmatprep.subr.bf16.mxu0 %v26821_v2 }
 0x797   : > { %17597 = vmatmul.mubr.msk.bf16.gmra.mxu1 %vm8115_vm11, %v23839_v45  ;;  %v17947_v45 = vld [vmem:[%s26302_s5 + $0xf8] sm:$0xff]  }
 0x798   : > { %17600 = vmatprep.mubr.msk.bf16.mxu1 %vm18818_vm9, %v26821_v2  ;;  %17645 = vmatpush3.bf16.msra.mxu1 %v17944_v22  ;;  %v17959_v22 = vld [vmem:[%s26306_s9 + $0xc4] ss:$16 sps:$4 sm:$0xff]  }
 0x799   : > { %17731 = vmatpush3.bf16.msra.mxu0 %v17945_v44  ;;  %17646 = vmatprep.subr.bf16.mxu1 %v26821_v2  ;;  %v17960_v44 = vld [vmem:[%s26306_s9 + $0xc8] ss:$16 sps:$4 sm:$0xff]  }
 0x79a   : > { %9687 = vmatprep.subr.bf16.mxu0 %v17956_v12 }
 0x79c   : > { %17685 = vmatmul.mubr.msk.bf16.gmra.mxu0 %vm8115_vm11, %v23939_v50  ;;  %17647 = vmatpush3.bf16.msra.mxu1 %v17946_v39 }
 0x79d   : > { %17688 = vmatprep.mubr.msk.bf16.mxu0 %vm18818_vm9, %v26821_v2  ;;  %17696 = vmatprep.subr.bf16.mxu1 %v26821_v2 }
 0x79f   : > { %17601 = vmatmul.mubr.msk.bf16.gmra.mxu1 %vm8115_vm11, %v23894_v15  ;;  %v17948_v15 = vld [vmem:[%s26302_s5 + $0xf0] sm:$0xff]  }
 0x7a0   : > { %17604 = vmatprep.mubr.msk.bf16.mxu1 %vm18818_vm9, %v26821_v2 }
 0x7a4   : > { %17689 = vmatmul.mubr.msk.bf16.gmra.mxu0 %vm8115_vm11, %v23986_v16 }
 0x7a5   : > { %17692 = vmatprep.mubr.msk.bf16.mxu0 %vm18818_vm9, %v26821_v2 }
 0x7a7   : > { %17605 = vmatmul.mubr.msk.bf16.gmra.mxu1 %vm8115_vm11, %v23942_v6 }
 0x7a8   : > { %17608 = vmatprep.mubr.msk.bf16.mxu1 %vm18818_vm9, %v26821_v2 }
 0x7ac   : > { %17693 = vmatmul.mubr.msk.bf16.gmra.mxu0 %vm8115_vm11, %v24006_v35 }
 0x7ad   : > { %17732 = vmatprep.mubr.msk.bf16.mxu0 %vm18818_vm9, %v26821_v2 }
 0x7af   : > { %17609 = vmatmul.mubr.msk.bf16.gmra.mxu1 %vm8115_vm11, %v23989_v37 }
 0x7b0   : > { %17648 = vmatprep.mubr.msk.bf16.mxu1 %vm18818_vm9, %v26821_v2 }
 0x7b4   : > { %17733 = vmatmul.mubr.msk.bf16.vlgmr.msra.gmra.mxu0 %vm8115_vm11, %v23842_v62  ;;  %v17949_v62 = vld [vmem:[%s26302_s5 + $0xe8] sm:$0xff]  }
 0x7b5   : > { %17736 = vmatprep.mubr.msk.bf16.mxu0 %vm18818_vm9, %v26821_v2  ;;  %9688 = vmatpush1.bf16.msra.mxu0 %v17954_v31 }
 0x7b7   : > { %17649 = vmatmul.mubr.msk.bf16.vlgmr.msra.gmra.mxu1 %vm8115_vm11, %v23784_v51  ;;  %v17950_v51 = vld [vmem:[%s26302_s5 + $0xe0] sm:$0xff]  }
 0x7b8   : > { %17652 = vmatprep.mubr.msk.bf16.mxu1 %vm18818_vm9, %v26821_v2  ;;  %17697 = vmatpush3.bf16.msra.mxu1 %v17947_v45  ;;  %v17962_v45 = vld [vmem:[%s26306_s9 + $0xcc] ss:$16 sps:$4 sm:$0xff]  }
 0x7b9   : > { %17698 = vmatprep.subr.bf16.mxu1 %v26821_v2  ;;  %9689 = vmatprep.subr.bf16.mxu0 %v17962_v45  ;;  %v17989_v45 = vld [vmem:[%s26306_s9 + $0x24] ss:$16 sps:$4 sm:$0xff]  }
 0x7ba   : > { %9690 = vmatpush1.bf16.msra.mxu0 %v17960_v44 }
 0x7bc   : > { %17737 = vmatmul.mubr.msk.bf16.gmra.mxu0 %vm8115_vm11, %v23897_v25  ;;  %17699 = vmatpush3.bf16.msra.mxu1 %v17948_v15 }
 0x7bd   : > { %17740 = vmatprep.mubr.msk.bf16.mxu0 %vm18818_vm9, %v26821_v2  ;;  %17700 = vmatprep.subr.bf16.mxu1 %v26821_v2 }
 0x7bf   : > { %17653 = vmatmul.mubr.msk.bf16.gmra.mxu1 %vm8115_vm11, %v23857_v53  ;;  %v26823_v53 = vmov 0  }
 0x7c0   : > { %17656 = vmatprep.mubr.msk.bf16.mxu1 %vm18818_vm9, %v26821_v2  ;;  %17701 = vmatpush3.bf16.msra.mxu1 %v17949_v62 }
 0x7c1   : > { %17702 = vmatprep.subr.bf16.mxu1 %v26821_v2 }
 0x7c4   : > { %17741 = vmatmul.mubr.msk.bf16.gmra.mxu0 %vm8115_vm11, %v23945_v60  ;;  %17703 = vmatpush3.bf16.msra.mxu1 %v17950_v51 }
 0x7c5   : > { %17744 = vmatprep.mubr.msk.bf16.mxu0 %vm18818_vm9, %v26821_v2  ;;  %9646 = vmatprep.subr.bf16.mxu1 %v17953_v61  ;;  %v17980_v61 = vld [vmem:[%s26306_s9 + $0x6c] ss:$16 sps:$4 sm:$0xff]  }
 0x7c7   : > { %17657 = vmatmul.mubr.msk.bf16.gmra.mxu1 %vm8115_vm11, %v23905_v20 }
 0x7c8   : > { %17660 = vmatprep.mubr.msk.bf16.mxu1 %vm18818_vm9, %v26821_v2 }
 0x7cc   : > { %17745 = vmatmul.mubr.msk.bf16.gmra.mxu0 %vm8115_vm11, %v23992_v29 }
 0x7cd   : > { %17748 = vmatprep.mubr.msk.bf16.mxu0 %vm18818_vm9, %v26821_v2 }
 0x7cf   : > { %17661 = vmatmul.mubr.msk.bf16.gmra.mxu1 %vm8115_vm11, %v23948_v52 }
 0x7d0   : > { %17664 = vmatprep.mubr.msk.bf16.mxu1 %vm18818_vm9, %v26821_v2 }
 0x7d4   : > { %17749 = vmatmul.mubr.msk.bf16.gmra.mxu0 %vm8115_vm11, %v24009_v4 }
 0x7d5   : > { %9719 = vmatprep.mubr.bf16.mxu0 %v26823_v53 }
 0x7d7   : > { %17665 = vmatmul.mubr.msk.bf16.gmra.mxu1 %vm8115_vm11, %v23998_v23 }
 0x7d8   : > { %17704 = vmatprep.mubr.msk.bf16.mxu1 %vm18818_vm9, %v26821_v2 }
 0x7df   : > { %17705 = vmatmul.mubr.msk.bf16.vlgmr.msra.gmra.mxu1 %vm8115_vm11, %v23910_v43 }
 0x7e0   : > { %17708 = vmatprep.mubr.msk.bf16.mxu1 %vm18818_vm9, %v26821_v2  ;;  %9647 = vmatpush1.bf16.msra.mxu1 %v17951_v59 }
 0x7e1   : > { %9648 = vmatprep.subr.bf16.mxu1 %v17959_v22  ;;  %v17984_v22 = vld [vmem:[%s26306_s9 + $0x48] ss:$16 sps:$4 sm:$0xff]  }
 0x7e4   : > { %9649 = vmatpush1.bf16.msra.mxu1 %v17957_v17 }
 0x7e7   : > { %17709 = vmatmul.mubr.msk.bf16.gmra.mxu1 %vm8115_vm11, %v23957_v55 }
 0x7e8   : > { %17712 = vmatprep.mubr.msk.bf16.mxu1 %vm18818_vm9, %v26821_v2 }
 0x7ef   : > { %17713 = vmatmul.mubr.msk.bf16.gmra.mxu1 %vm8115_vm11, %v24002_v26 }
 0x7f0   : > { %17716 = vmatprep.mubr.msk.bf16.mxu1 %vm18818_vm9, %v26821_v2 }
 0x7f7   : > { %17717 = vmatmul.mubr.msk.bf16.gmra.mxu1 %vm8115_vm11, %v24027_v58 }
 0x7f8   : > { %17720 = vmatprep.mubr.msk.bf16.mxu1 %vm18818_vm9, %v26821_v2 }
 0x7fc   : > { %v8410_v25 = vpop.f32.mrf.mxu0 }
 0x7fe   : > { %v8165_v20 = vpop.f32.mrf.mxu1  ;;  %v17566_v43 = vpop.f32.mrf.mxu0 }
 0x7ff   : > { %17721 = vmatmul.mubr.msk.bf16.gmra.mxu1 %vm8115_vm11, %v24030_v5 }
 0x800   : > { %v17510_v50 = vpop.f32.mrf.mxu1  ;;  %v8413_v6 = vpop.f32.mrf.mxu0  ;;  %9678 = vmatprep.mubr.bf16.mxu1 %v26823_v53 }
 0x802   : > { %v8168_v60 = vpop.f32.mrf.mxu1  ;;  %v17567_v52 = vpop.f32.mrf.mxu0 }
 0x804   : > { %v17511_v55 = vpop.f32.mrf.mxu1  ;;  %v24247_v16 = vpop.f32.mrf.mxu0 }
 0x806   : > { %v8173_v37 = vpop.f32.mrf.mxu1  ;;  %v17570_v29 = vpop.f32.mrf.mxu0 }
 0x808   : > { %v17514_v23 = vpop.f32.mrf.mxu1  ;;  %v24249_v26 = vpop.f32.mrf.mxu0 }
 0x809   : > { %v17963_v23 = vld [vmem:[%s26306_s9 + $0xa0] ss:$16 sps:$4 sm:$0xff]  }
 0x80a   : > { %v24251_v2 = vpop.f32.mrf.mxu1  ;;  %v17571_v30 = vpop.f32.mrf.mxu0 }
 0x80b   : > { %v17966_v30 = vld [vmem:[%s26306_s9 + $0xa8] ss:$16 sps:$4 sm:$0xff]  }
 0x80c   : > { %v17515_v54 = vpop.f32.mrf.mxu1  ;;  %v24253_v24 = vpop.f32.mrf.mxu0 }
 0x80e   : > { %v24255_v35 = vpop.f32.mrf.mxu1  ;;  %v17574_v4 = vpop.f32.mrf.mxu0 }
 0x810   : > { %v17518_v57 = vpop.f32.mrf.mxu1  ;;  %v24257_v9 = vpop.f32.mrf.mxu0 }
 0x812   : > { %v24259_v33 = vpop.f32.mrf.mxu1  ;;  %v17575_v34 = vpop.f32.mrf.mxu0 }
 0x814   : > { %v17519_v1 = vpop.f32.mrf.mxu1  ;;  %v24261_v8 = vpop.f32.mrf.mxu0 }
 0x816   : > { %v24263_v11 = vpop.f32.mrf.mxu1  ;;  %v17578_v38 = vpop.f32.mrf.mxu0 }
 0x818   : > { %v17522_v63 = vpop.f32.mrf.mxu1  ;;  %v24265_v42 = vpop.f32.mrf.mxu0 }
 0x81a   : > { %v24267_v58 = vpop.f32.mrf.mxu1  ;;  %v17579_v5 = vpop.f32.mrf.mxu0 }
 0x81b   : > { %v17969_v5 = vld [vmem:[%s26306_s9 + $0x80] ss:$16 sps:$4 sm:$0xff]  }
 0x81c   : > { %v17523_v32 = vpop.f32.mrf.mxu1  ;;  %v24269_v27 = vpop.f32.mrf.mxu0 }
 0x81d   : > { %v17971_v32 = vld [vmem:[%s26306_s9 + $0x84] ss:$16 sps:$4 sm:$0xff]  }
 0x81e   : > { %v17582_v7 = vpop.f32.mrf.mxu0 }
 0x81f   : > { %v24271_v36 = vpop.f32.mrf.mxu1 }
 0x820   : > { %v24273_v47 = vpop.f32.mrf.mxu0 }
 0x821   : > { %v17526_v49 = vpop.f32.mrf.mxu1 }
 0x822   : > { %v17583_v40 = vpop.f32.mrf.mxu0 }
 0x823   : > { %v24275_v56 = vpop.f32.mrf.mxu1 }
 0x824   : > { %v24277_v41 = vpop.f32.mrf.mxu0 }
 0x825   : > { %v17527_v21 = vpop.f32.mrf.mxu1 }
 0x826   : > { %v17622_v10 = vpop.f32.mrf.mxu0  ;;  %v17977_v21 = vld [vmem:[%s26306_s9 + $0x64] ss:$16 sps:$4 sm:$0xff]  }
 0x827   : > { %v8272_v28 = vpop.f32.mrf.mxu1 }
 0x828   : > { %v8273_v13 = vadd.f32 %v8272_v28, %v8165_v20  ;;  %v24291_v18 = vpop.f32.mrf.mxu0  ;;  %v17978_v28 = vld [vmem:[%s26306_s9 + $0x68] ss:$16 sps:$4 sm:$0xff]  }
 0x829   : > { %v17538_v19 = vpop.f32.mrf.mxu1 }
 0x82a   : > { %v17623_v3 = vpop.f32.mrf.mxu0  ;;  %v24293_v0 = vadd.f32 %v8410_v25, %v8273_v13  ;;  %v17983_v19 = vld [vmem:[%s26306_s9 + $0x44] ss:$16 sps:$4 sm:$0xff]  }
 0x82b   : > { %v8275_v46 = vpop.f32.mrf.mxu1 }
 0x82c   : > { %v8276_v14 = vadd.f32 %v8275_v46, %v8168_v60  ;;  %v24295_v48 = vpop.f32.mrf.mxu0 }
 0x82d   : > { %v17539_v39 = vpop.f32.mrf.mxu1 }
 0x82e   : > { %v17626_v15 = vpop.f32.mrf.mxu0  ;;  %v24309_v62 = vadd.f32 %v8413_v6, %v8276_v14  ;;  %v17981_v14 = vld [vmem:[%s26306_s9 + $0x40] ss:$16 sps:$4 sm:$0xff]  }
 0x82f   : > { %v8280_v51 = vpop.f32.mrf.mxu1 }
 0x830   : > { %v8281_v25 = vadd.f32 %v8280_v51, %v8173_v37  ;;  %v24311_v20 = vpop.f32.mrf.mxu0  ;;  %v17965_v37 = vld [vmem:[%s26306_s9 + $0xa4] ss:$16 sps:$4 sm:$0xff]  }
 0x831   : > { %v17542_v43 = vpop.f32.mrf.mxu1  ;;  %9650 = vmatprep.subr.bf16.mxu1 %v17965_v37 }
 0x832   : > { %v17627_v50 = vpop.f32.mrf.mxu0  ;;  %v24314_v60 = vadd.f32 %v24247_v16, %v8281_v25  ;;  %9651 = vmatpush1.bf16.msra.mxu1 %v17963_v23  ;;  %v17987_v25 = vld [vmem:[%s26306_s9 + $0x20] ss:$16 sps:$4 sm:$0xff]  }
 0x833   : > { %v8283_v52 = vpop.f32.mrf.mxu1  ;;  %9652 = vmatprep.subr.bf16.mxu1 %v17971_v32  ;;  %v17990_v50 = vld [vmem:[%s26306_s9 + $0x28] ss:$16 sps:$4 sm:$0xff]  }
 0x834   : > { %v8284_v55 = vadd.f32 %v8283_v52, %v24251_v2  ;;  %v24317_v29 = vpop.f32.mrf.mxu0  ;;  %v17968_v2 = vld [vmem:[%s26306_s9 + $0xac] ss:$16 sps:$4 sm:$0xff]  }
 0x835   : > { %v17543_v6 = vpop.f32.mrf.mxu1  ;;  %9691 = vmatprep.subr.bf16.mxu0 %v17968_v2  ;;  %v17996_v2 = vld [vmem:[%s26306_s9 + $0x8] ss:$16 sps:$4 sm:$0xff]  }
 0x836   : > { %v17630_v16 = vpop.f32.mrf.mxu0  ;;  %v24329_v54 = vadd.f32 %v24249_v26, %v8284_v55  ;;  %9692 = vmatpush1.bf16.msra.mxu0 %v17966_v30  ;;  %9653 = vmatpush1.bf16.msra.mxu1 %v17969_v5  ;;  %v17995_v6 = vld [vmem:[%s26306_s9 + $0x4] ss:$16 sps:$4 sm:$0xff]   ;;  %v17993_v30 = vld [vmem:[%s26306_s9] ss:$16 sps:$4 sm:$0xff]   ;;  %v18004_v5 = vld [vmem:[%s26306_s9 + $0x1ec] ss:$16 sps:$4 sm:$0xff]  }
 0x837   : > { %v8288_v4 = vpop.f32.mrf.mxu1  ;;  %9654 = vmatprep.subr.bf16.mxu1 %v17977_v21 }
 0x838   : > { %v8289_v57 = vadd.f32 %v8288_v4, %v24255_v35  ;;  %v24335_v34 = vpop.f32.mrf.mxu0  ;;  %v17972_v35 = vld [vmem:[%s26306_s9 + $0x88] ss:$16 sps:$4 sm:$0xff]  }
 0x839   : > { %v17546_v1 = vpop.f32.mrf.mxu1 }
 0x83a   : > { %v17631_v38 = vpop.f32.mrf.mxu0  ;;  %v24338_v63 = vadd.f32 %v24253_v24, %v8289_v57  ;;  %v17974_v24 = vld [vmem:[%s26306_s9 + $0x8c] ss:$16 sps:$4 sm:$0xff]   ;;  %v18001_v1 = vld [vmem:[%s26306_s9 + $0x1e4] ss:$16 sps:$4 sm:$0xff]  }
 0x83b   : > { %v8291_v26 = vpop.f32.mrf.mxu1  ;;  %9693 = vmatprep.subr.bf16.mxu0 %v17974_v24 }
 0x83c   : > { %v8292_v7 = vadd.f32 %v8291_v26, %v24259_v33  ;;  %v24350_v49 = vpop.f32.mrf.mxu0  ;;  %v17975_v33 = vld [vmem:[%s26306_s9 + $0x60] ss:$16 sps:$4 sm:$0xff]   ;;  %9694 = vmatpush1.bf16.msra.mxu0 %v17972_v35 }
 0x83d   : > { %v17547_v40 = vpop.f32.mrf.mxu1  ;;  %9695 = vmatprep.subr.bf16.mxu0 %v17980_v61  ;;  %9655 = vmatpush1.bf16.msra.mxu1 %v17975_v33 }
 0x83e   : > { %v17634_v10 = vpop.f32.mrf.mxu0  ;;  %v24359_v59 = vadd.f32 %v24257_v9, %v8292_v7  ;;  %9656 = vmatprep.subr.bf16.mxu1 %v17983_v19 }
 0x83f   : > { %v8296_v31 = vpop.f32.mrf.mxu1 }
 0x840   : > { %v8297_v9 = vadd.f32 %v8296_v31, %v24263_v11  ;;  %v24371_v12 = vpop.f32.mrf.mxu0  ;;  %v17986_v11 = vld [vmem:[%s26306_s9 + $0x4c] ss:$16 sps:$4 sm:$0xff]   ;;  %9696 = vmatpush1.bf16.msra.mxu0 %v17978_v28 }
 0x841   : > { %v17550_v13 = vpop.f32.mrf.mxu1  ;;  %9697 = vmatprep.subr.bf16.mxu0 %v17986_v11  ;;  %9657 = vmatpush1.bf16.msra.mxu1 %v17981_v14 }
 0x842   : > { %v17635_v3 = vpop.f32.mrf.mxu0  ;;  %v24377_v46 = vadd.f32 %v24261_v8, %v8297_v9  ;;  %9658 = vmatprep.subr.bf16.mxu1 %v17989_v45 }
 0x843   : > { %v8299_v17 = vpop.f32.mrf.mxu1 }
 0x844   : > { %v8300_v44 = vadd.f32 %v8299_v17, %v24267_v58  ;;  %v24389_v8 = vpop.f32.mrf.mxu0  ;;  %v17992_v58 = vld [vmem:[%s26306_s9 + $0x2c] ss:$16 sps:$4 sm:$0xff]   ;;  %9698 = vmatpush1.bf16.msra.mxu0 %v17984_v22 }
 0x845   : > { %v17551_v39 = vpop.f32.mrf.mxu1  ;;  %9699 = vmatprep.subr.bf16.mxu0 %v17992_v58  ;;  %9659 = vmatpush1.bf16.msra.mxu1 %v17987_v25 }
 0x846   : > { %v17638_v15 = vpop.f32.mrf.mxu0  ;;  %v24395_v51 = vadd.f32 %v24265_v42, %v8300_v44  ;;  %9660 = vmatprep.subr.bf16.mxu1 %v17995_v6 }
 0x847   : > { %v8304_v43 = vpop.f32.mrf.mxu1 }
 0x848   : > { %v8305_v52 = vadd.f32 %v8304_v43, %v24271_v36  ;;  %v24407_v42 = vpop.f32.mrf.mxu0  ;;  %v17998_v36 = vld [vmem:[%s26306_s9 + $0xc] ss:$16 sps:$4 sm:$0xff]   ;;  %9700 = vmatpush1.bf16.msra.mxu0 %v17990_v50 }
 0x849   : > { %v17554_v55 = vpop.f32.mrf.mxu1  ;;  %9701 = vmatprep.subr.bf16.mxu0 %v17998_v36  ;;  %9661 = vmatpush1.bf16.msra.mxu1 %v17993_v30 }
 0x84a   : > { %v17639_v23 = vpop.f32.mrf.mxu0  ;;  %v24413_v37 = vadd.f32 %v24269_v27, %v8305_v52  ;;  %9954 = vmatprep.subr.bf16.mxu1 %v18001_v1 }
 0x84b   : > { %v8307_v16 = vpop.f32.mrf.mxu1 }
 0x84c   : > { %v8308_v4 = vadd.f32 %v8307_v16, %v24275_v56  ;;  %v24425_v27 = vpop.f32.mrf.mxu0  ;;  %9702 = vmatpush1.bf16.msra.mxu0 %v17996_v2 }
 0x84d   : > { %v17555_v57 = vpop.f32.mrf.mxu1  ;;  %9995 = vmatprep.subr.bf16.mxu0 %v18004_v5 }
 0x84e   : > { %v17678_v38 = vpop.f32.mrf.mxu0  ;;  %v8458_v26 = vadd.f32 %v24273_v47, %v8308_v4 }
 0x84f   : > { %v8553_v32 = vpop.f32.mrf.mxu1 }
 0x850   : > { %v8592_v56 = vadd.f32 %v8553_v32, %v24293_v0  ;;  %v24435_v35 = vpop.f32.mrf.mxu0 }
 0x851   : > { %v17594_v7 = vpop.f32.mrf.mxu1 }
 0x852   : > { %v17679_v24 = vpop.f32.mrf.mxu0  ;;  %v8749_v40 = vadd.f32 %v24277_v41, %v8592_v56 }
 0x853   : > { %v8556_v21 = vpop.f32.mrf.mxu1 }
 0x854   : > { %v8593_v47 = vadd.f32 %v8556_v21, %v24309_v62  ;;  %v24439_v10 = vpop.f32.mrf.mxu0 }
 0x855   : > { %v17595_v33 = vpop.f32.mrf.mxu1 }
 0x856   : > { %v17682_v61 = vpop.f32.mrf.mxu0  ;;  %v8750_v31 = vadd.f32 %v24291_v18, %v8593_v47 }
 0x857   : > { %v8561_v28 = vpop.f32.mrf.mxu1 }
 0x858   : > { %v8594_v9 = vadd.f32 %v8561_v28, %v24314_v60  ;;  %v24443_v0 = vpop.f32.mrf.mxu0 }
 0x859   : > { %v17598_v13 = vpop.f32.mrf.mxu1 }
 0x85a   : > { %v17683_v19 = vpop.f32.mrf.mxu0  ;;  %v8751_v3 = vadd.f32 %v24295_v48, %v8594_v9 }
 0x85b   : > { %v8564_v14 = vpop.f32.mrf.mxu1 }
 0x85c   : > { %v8595_v41 = vadd.f32 %v8564_v14, %v24329_v54  ;;  %v24447_v11 = vpop.f32.mrf.mxu0 }
 0x85d   : > { %v17599_v62 = vpop.f32.mrf.mxu1 }
 0x85e   : > { %v17686_v17 = vpop.f32.mrf.mxu0  ;;  %v8752_v22 = vadd.f32 %v24311_v20, %v8595_v41 }
 0x85f   : > { %v8569_v44 = vpop.f32.mrf.mxu1 }
 0x860   : > { %v8596_v18 = vadd.f32 %v8569_v44, %v24338_v63  ;;  %v24451_v39 = vpop.f32.mrf.mxu0 }
 0x861   : > { %v17602_v60 = vpop.f32.mrf.mxu1 }
 0x862   : > { %v17687_v45 = vpop.f32.mrf.mxu0  ;;  %v8753_v15 = vadd.f32 %v24317_v29, %v8596_v18 }
 0x863   : > { %v8572_v25 = vpop.f32.mrf.mxu1 }
 0x864   : > { %v8597_v48 = vadd.f32 %v8572_v25, %v24359_v59  ;;  %v24455_v58 = vpop.f32.mrf.mxu0 }
 0x865   : > { %v17603_v54 = vpop.f32.mrf.mxu1 }
 0x866   : > { %v17690_v43 = vpop.f32.mrf.mxu0  ;;  %v8754_v50 = vadd.f32 %v24335_v34, %v8597_v48 }
 0x867   : > { %v8577_v52 = vpop.f32.mrf.mxu1 }
 0x868   : > { %v8598_v20 = vadd.f32 %v8577_v52, %v24377_v46  ;;  %v24459_v55 = vpop.f32.mrf.mxu0 }
 0x869   : > { %v17606_v63 = vpop.f32.mrf.mxu1 }
 0x86a   : > { %v17691_v6 = vpop.f32.mrf.mxu0  ;;  %v8755_v23 = vadd.f32 %v24350_v49, %v8598_v20 }
 0x86b   : > { %v8580_v30 = vpop.f32.mrf.mxu1 }
 0x86c   : > { %v8599_v29 = vadd.f32 %v8580_v30, %v24395_v51  ;;  %v24463_v36 = vpop.f32.mrf.mxu0 }
 0x86d   : > { %v17607_v59 = vpop.f32.mrf.mxu1 }
 0x86e   : > { %v17694_v16 = vpop.f32.mrf.mxu0  ;;  %v8756_v2 = vadd.f32 %v24371_v12, %v8599_v29 }
 0x86f   : > { %v8585_v4 = vpop.f32.mrf.mxu1 }
 0x870   : > { %v8600_v34 = vadd.f32 %v8585_v4, %v24413_v37  ;;  %v24467_v57 = vpop.f32.mrf.mxu0 }
 0x871   : > { %v17610_v46 = vpop.f32.mrf.mxu1 }
 0x872   : > { %v17695_v1 = vpop.f32.mrf.mxu0  ;;  %v8757_v38 = vadd.f32 %v24389_v8, %v8600_v34 }
 0x873   : > { %v8588_v5 = vpop.f32.mrf.mxu1 }
 0x874   : > { %v8601_v49 = vadd.f32 %v8588_v5, %v8458_v26  ;;  %v24470_v32 = vpop.f32.mrf.mxu0 }
 0x875   : > { %v17611_v51 = vpop.f32.mrf.mxu1 }
 0x876   : > { %v17734_v56 = vpop.f32.mrf.mxu0  ;;  %v8758_v7 = vadd.f32 %v24407_v42, %v8601_v49 }
 0x877   : > { %v8853_v24 = vpop.f32.mrf.mxu1 }
 0x878   : > { %v8892_v21 = vadd.f32 %v8853_v24, %v8749_v40  ;;  %v9300_v12 = vpop.f32.mrf.mxu0 }
 0x879   : > { %v17650_v47 = vpop.f32.mrf.mxu1 }
 0x87a   : > { %v17735_v33 = vpop.f32.mrf.mxu0  ;;  %v9035_v37 = vadd.f32 %v24425_v27, %v8892_v21 }
 0x87b   : > { %v8856_v61 = vpop.f32.mrf.mxu1 }
 0x87c   : > { %v8893_v28 = vadd.f32 %v8856_v61, %v8750_v31  ;;  %v24474_v9 = vpop.f32.mrf.mxu0 }
 0x87d   : > { %v17651_v8 = vpop.f32.mrf.mxu1 }
 0x87e   : > { %v17738_v13 = vpop.f32.mrf.mxu0  ;;  %v9036_v26 = vadd.f32 %v24435_v35, %v8893_v28  ;;  %v24508_v8 = vld [vmem:[%s26303_s6] ss:$0 sm:$0xff] }
 0x87f   : > { %v8861_v19 = vpop.f32.mrf.mxu1 }
 0x880   : > { %v8894_v14 = vadd.f32 %v8861_v19, %v8751_v3  ;;  %v24477_v41 = vpop.f32.mrf.mxu0 }
 0x881   : > { %v17654_v42 = vpop.f32.mrf.mxu1 }
 0x882   : > { %v17739_v62 = vpop.f32.mrf.mxu0  ;;  %v9037_v40 = vadd.f32 %v24439_v10, %v8894_v14 }
 0x883   : > { %v8864_v17 = vpop.f32.mrf.mxu1 }
 0x884   : > { %v8895_v44 = vadd.f32 %v8864_v17, %v8752_v22  ;;  %v24480_v18 = vpop.f32.mrf.mxu0 }
 0x885   : > { %v17655_v27 = vpop.f32.mrf.mxu1 }
 0x886   : > { %v17742_v31 = vpop.f32.mrf.mxu0  ;;  %v9038_v60 = vadd.f32 %v24443_v0, %v8895_v44 }
 0x887   : > { %v8869_v45 = vpop.f32.mrf.mxu1 }
 0x888   : > { %v8896_v25 = vadd.f32 %v8869_v45, %v8753_v15  ;;  %v24483_v48 = vpop.f32.mrf.mxu0 }
 0x889   : > { %v17658_v35 = vpop.f32.mrf.mxu1 }
 0x88a   : > { %v17743_v3 = vpop.f32.mrf.mxu0  ;;  %v9039_v54 = vadd.f32 %v24447_v11, %v8896_v25 }
 0x88b   : > { %v8872_v43 = vpop.f32.mrf.mxu1 }
 0x88c   : > { %v8897_v52 = vadd.f32 %v8872_v43, %v8754_v50  ;;  %v24486_v20 = vpop.f32.mrf.mxu0 }
 0x88d   : > { %v17659_v10 = vpop.f32.mrf.mxu1 }
 0x88e   : > { %v17746_v22 = vpop.f32.mrf.mxu0  ;;  %v9040_v63 = vadd.f32 %v24451_v39, %v8897_v52 }
 0x88f   : > { %v8877_v6 = vpop.f32.mrf.mxu1 }
 0x890   : > { %v8898_v30 = vadd.f32 %v8877_v6, %v8755_v23  ;;  %v24489_v29 = vpop.f32.mrf.mxu0 }
 0x891   : > { %v17662_v0 = vpop.f32.mrf.mxu1 }
 0x892   : > { %v17747_v15 = vpop.f32.mrf.mxu0  ;;  %v9041_v59 = vadd.f32 %v24455_v58, %v8898_v30 }
 0x893   : > { %v8880_v16 = vpop.f32.mrf.mxu1 }
 0x894   : > { %v8899_v4 = vadd.f32 %v8880_v16, %v8756_v2  ;;  %v24492_v34 = vpop.f32.mrf.mxu0 }
 0x895   : > { %v17663_v11 = vpop.f32.mrf.mxu1 }
 0x896   : > { %v17750_v50 = vpop.f32.mrf.mxu0  ;;  %v24495_v46 = vadd.f32 %v24459_v55, %v8899_v4 }
 0x897   : > { %v8885_v1 = vpop.f32.mrf.mxu1 }
 0x898   : > { %v8900_v5 = vadd.f32 %v8885_v1, %v8757_v38  ;;  %v24497_v39 = vpop.f32.mrf.mxu0 }
 0x899   : > { %v17666_v23 = vpop.f32.mrf.mxu1 }
 0x89a   : > { %v17751_v49 = vpop.f32.mrf.mxu0  ;;  %v24500_v51 = vadd.f32 %v24463_v36, %v8900_v5 }
 0x89b   : > { %v8888_v56 = vpop.f32.mrf.mxu1 }
 0x89c   : > { %v8901_v58 = vadd.f32 %v8888_v56, %v8758_v7 }
 0x89d   : > { %v17667_v24 = vpop.f32.mrf.mxu1 }
 0x89e   : > { %v24503_v2 = vadd.f32 %v24467_v57, %v8901_v58 }
 0x89f   : > { %v9155_v21 = vpop.f32.mrf.mxu1 }
 0x8a0   : > { %v9194_v61 = vadd.f32 %v9155_v21, %v9035_v37 }
 0x8a1   : > { %v17706_v47 = vpop.f32.mrf.mxu1 }
 0x8a2   : > { %v9336_v19 = vadd.f32 %v24470_v32, %v9194_v61  ;;  %v17999_v61 = vld [vmem:[%s26306_s9 + $0x1e0] ss:$16 sps:$4 sm:$0xff]  }
 0x8a3   : > { %v9158_v33 = vpop.f32.mrf.mxu1 }
 0x8a4   : > { %v9195_v55 = vadd.f32 %v9158_v33, %v9036_v26 }
 0x8a5   : > { %v17707_v28 = vpop.f32.mrf.mxu1 }
 0x8a6   : > { %v9337_v38 = vadd.f32 %v9300_v12, %v9195_v55  ;;  %v9353_v12 = vadd.f32 %v24508_v8, %v9336_v19 }
 0x8a7   : > { %v9163_v36 = vpop.f32.mrf.mxu1 }
 0x8a8   : > { %v9354_v13 = vadd.f32 %v24508_v8, %v9337_v38  ;;  %v9196_v7 = vadd.f32 %v9163_v36, %v9037_v40  ;;  %v9363_v35 = vmax.f32 %v9353_v12, 0.0  ;;  %v18005_v12 = vld [vmem:[%s26306_s9 + $0x1c0] ss:$16 sps:$4 sm:$0xff]  }
 0x8a9   : > { %v17710_v57 = vpop.f32.mrf.mxu1 }
 0x8aa   : > { %v9338_v14 = vadd.f32 %v24474_v9, %v9196_v7  ;;  %v9364_v62 = vmax.f32 %v9354_v13, 0.0  ;;  %v18010_v7 = vld [vmem:[%s26306_s9 + $0x1cc] ss:$16 sps:$4 sm:$0xff]  }
 0x8ab   : > { %v9166_v42 = vpop.f32.mrf.mxu1 }
 0x8ac   : > { %v9355_v37 = vadd.f32 %v24508_v8, %v9338_v14  ;;  %v9197_v26 = vadd.f32 %v9166_v42, %v9038_v60  ;;  %v9382_v45 = vrot.slane %v9364_v62, 2 }
 0x8ad   : > { %v17711_v17 = vpop.f32.mrf.mxu1 }
 0x8ae   : > { %v9365_v44 = vmax.f32 %v9355_v37, 0.0  ;;  %v9339_v27 = vadd.f32 %v24477_v41, %v9197_v26  ;;  %v18008_v17 = vld [vmem:[%s26306_s9 + $0x1c8] ss:$16 sps:$4 sm:$0xff]  }
 0x8af   : > { %v9171_v31 = vpop.f32.mrf.mxu1 }
 0x8b0   : > { %v9383_v25 = vrot.slane %v9365_v44, 2  ;;  %v9356_v40 = vadd.f32 %v24508_v8, %v9339_v27  ;;  %v9198_v32 = vadd.f32 %v9171_v31, %v9039_v54  ;;  %v18013_v31 = vld [vmem:[%s26306_s9 + $0x1a4] ss:$16 sps:$4 sm:$0xff]  }
 0x8b1   : > { %v17714_v3 = vpop.f32.mrf.mxu1 }
 0x8b2   : > { %v9384_v9 = vsel %vm6019_vm7, %v9382_v45, %v9383_v25  ;;  %v9366_v43 = vmax.f32 %v9356_v40, 0.0  ;;  %v9340_v52 = vadd.f32 %v24480_v18, %v9198_v32  ;;  %v18016_v45 = vld [vmem:[%s26306_s9 + $0x1ac] ss:$16 sps:$4 sm:$0xff]  }
 0x8b3   : > { %v9408_v60 = vmax.f32 %v9363_v35, %v9384_v9  ;;  %v9174_v10 = vpop.f32.mrf.mxu1 }
 0x8b4   : > { %v9385_v22 = vrot.slane %v9366_v43, 2  ;;  %v9357_v6 = vadd.f32 %v24508_v8, %v9340_v52  ;;  %v9199_v30 = vadd.f32 %v9174_v10, %v9040_v63  ;;  %v18014_v10 = vld [vmem:[%s26306_s9 + $0x1a8] ss:$16 sps:$4 sm:$0xff]  }
 0x8b5   : > { %v17715_v41 = vpop.f32.mrf.mxu1  ;;  %v9426_v18 = vrot.slane %v9408_v60, 1 }
 0x8b6   : > { %v9386_v0 = vsel %vm6019_vm7, %v9383_v25, %v9385_v22  ;;  %v9367_v15 = vmax.f32 %v9357_v6, 0.0  ;;  %v9341_v16 = vadd.f32 %v24483_v48, %v9199_v30  ;;  %v18022_v41 = vld [vmem:[%s26306_s9 + $0x18c] ss:$16 sps:$4 sm:$0xff]  }
 0x8b7   : > { %v9409_v54 = vmax.f32 %v9364_v62, %v9386_v0  ;;  %v9179_v4 = vpop.f32.mrf.mxu1 }
 0x8b8   : > { %v9387_v11 = vrot.slane %v9367_v15, 2  ;;  %v24523_v50 = vadd.f32 %v24508_v8, %v9341_v16  ;;  %v9200_v1 = vadd.f32 %v9179_v4, %v9041_v59  ;;  %v18020_v4 = vld [vmem:[%s26306_s9 + $0x188] ss:$16 sps:$4 sm:$0xff]  }
 0x8b9   : > { %v9427_v5 = vrot.slane %v9409_v54, 1  ;;  %v17718_v23 = vpop.f32.mrf.mxu1 }
 0x8ba   : > { %v9388_v49 = vsel %vm6019_vm7, %v9385_v22, %v9387_v11  ;;  %v9368_v63 = vmax.f32 %v24523_v50, 0.0  ;;  %v9342_v56 = vadd.f32 %v24486_v20, %v9200_v1  ;;  %v18002_v20 = vld [vmem:[%s26306_s9 + $0x1e8] ss:$16 sps:$4 sm:$0xff]  }
 0x8bb   : > { %v9428_v58 = vsel %vm2024_vm1, %v9426_v18, %v9427_v5  ;;  %v9410_v24 = vmax.f32 %v9365_v44, %v9388_v49  ;;  %v9182_v48 = vpop.f32.mrf.mxu1  ;;  %v18028_v18 = vld [vmem:[%s26306_s9 + $0x16c] ss:$16 sps:$4 sm:$0xff]  }
 0x8bc   : > { %v9389_v21 = vrot.slane %v9368_v63, 2  ;;  %v24530_v47 = vadd.f32 %v24508_v8, %v9342_v56  ;;  %v9201_v33 = vadd.f32 %v9182_v48, %v24495_v46  ;;  %v9446_v59 = vmax.f32 %v9408_v60, %v9428_v58  ;;  %v18007_v46 = vld [vmem:[%s26306_s9 + $0x1c4] ss:$16 sps:$4 sm:$0xff]   ;;  %v18011_v60 = vld [vmem:[%s26306_s9 + $0x1a0] ss:$16 sps:$4 sm:$0xff]  }
 0x8bd   : > { %v17719_v55 = vpop.f32.mrf.mxu1  ;;  %v9429_v62 = vrot.slane %v9410_v24, 1  ;;  %v18023_v56 = vld [vmem:[%s26306_s9 + $0x160] ss:$16 sps:$4 sm:$0xff]   ;;  %v18026_v58 = vld [vmem:[%s26306_s9 + $0x168] ss:$16 sps:$4 sm:$0xff]  }
 0x8be   : > { %v9390_v28 = vsel %vm6019_vm7, %v9387_v11, %v9389_v21  ;;  %v9369_v38 = vmax.f32 %v24530_v47, 0.0  ;;  %v9343_v36 = vadd.f32 %v24489_v29, %v9201_v33  ;;  %v24542_v13 = vpack.c.bf16 %v9446_v59, %v9446_v59  ;;  %v18034_v47 = vld [vmem:[%s26306_s9 + $0x14c] ss:$16 sps:$4 sm:$0xff]  }
 0x8bf   : > { %v9411_v19 = vmax.f32 %v9366_v43, %v9390_v28  ;;  %v9187_v57 = vpop.f32.mrf.mxu1  ;;  %v18029_v28 = vld [vmem:[%s26306_s9 + $0x140] ss:$16 sps:$4 sm:$0xff]  }
 0x8c0   : > { %v9391_v14 = vrot.slane %v9369_v38, 2  ;;  %v24553_v42 = vadd.f32 %v24508_v8, %v9343_v36  ;;  %v9202_v29 = vadd.f32 %v9187_v57, %v24500_v51  ;;  %9679 = vmatmul.mubr.bf16.vlgmr.msra.gmra.mxu1 %v24542_v13  ;;  %9720 = vmatmul.mubr.bf16.vlgmr.msra.gmra.mxu0 %v24542_v13 }
 0x8c1   : > { %v9430_v37 = vrot.slane %v9411_v19, 1  ;;  %9955 = vmatpush1.bf16.msra.mxu1 %v17999_v61  ;;  %9996 = vmatpush1.bf16.msra.mxu0 %v18002_v20  ;;  %v17722_v26 = vpop.f32.mrf.mxu1 }
 0x8c2   : > { %v9392_v44 = vsel %vm6019_vm7, %v9389_v21, %v9391_v14  ;;  %v9370_v51 = vmax.f32 %v24553_v42, 0.0  ;;  %v9344_v27 = vadd.f32 %v24492_v34, %v9202_v29  ;;  %9956 = vmatprep.subr.bf16.mxu1 %v18007_v46  ;;  %9997 = vmatprep.subr.bf16.mxu0 %v18010_v7  ;;  %v18031_v21 = vld [vmem:[%s26306_s9 + $0x144] ss:$16 sps:$4 sm:$0xff]   ;;  %v18040_v7 = vld [vmem:[%s26306_s9 + $0x12c] ss:$16 sps:$4 sm:$0xff]  }
 0x8c3   : > { %v9412_v25 = vmax.f32 %v9367_v15, %v9392_v44  ;;  %v9190_v40 = vpop.f32.mrf.mxu1  ;;  %9986 = vmatprep.mubr.bf16.mxu1 %v26823_v53  ;;  %10027 = vmatprep.mubr.bf16.mxu0 %v26823_v53  ;;  %v9431_v32 = vsel %vm2024_vm1, %v9429_v62, %v9430_v37  ;;  %v18037_v46 = vld [vmem:[%s26306_s9 + $0x124] ss:$16 sps:$4 sm:$0xff]   ;;  %v18038_v42 = vld [vmem:[%s26306_s9 + $0x128] ss:$16 sps:$4 sm:$0xff]   ;;  %v18046_v62 = vld [vmem:[%s26306_s9 + $0x10c] ss:$16 sps:$4 sm:$0xff]  }
 0x8c4   : > { %v9393_v35 = vrot.slane %v9370_v51, 2  ;;  %v9361_v34 = vadd.f32 %v24508_v8, %v9344_v27  ;;  %v9203_v3 = vadd.f32 %v9190_v40, %v24503_v2  ;;  %v24578_v9 = vmax.f32 %v9410_v24, %v9431_v32  ;;  %v18019_v2 = vld [vmem:[%s26306_s9 + $0x184] ss:$16 sps:$4 sm:$0xff]   ;;  %v18044_v26 = vld [vmem:[%s26306_s9 + $0x108] ss:$16 sps:$4 sm:$0xff]  }
 0x8c5   : > { %v9432_v43 = vrot.slane %v9412_v25, 1  ;;  %9957 = vmatpush1.bf16.msra.mxu1 %v18005_v12  ;;  %9998 = vmatpush1.bf16.msra.mxu0 %v18008_v17  ;;  %v17723_v52 = vpop.f32.mrf.mxu1  ;;  %v18043_v29 = vld [vmem:[%s26306_s9 + $0x104] ss:$16 sps:$4 sm:$0xff]   ;;  %v18052_v17 = vld [vmem:[%s26306_s9 + $0x2ec] ss:$16 sps:$4 sm:$0xff]   ;;  %v9792_v27 = vrot.slane %v24542_v13, 1 }
 0x8c6   : > { %v9394_v22 = vsel %vm6019_vm7, %v9391_v14, %v9393_v35  ;;  %v9371_v6 = vmax.f32 %v9361_v34, 0.0  ;;  %v9345_v30 = vadd.f32 %v24497_v39, %v9203_v3  ;;  %9958 = vmatprep.subr.bf16.mxu1 %v18013_v31  ;;  %9999 = vmatprep.subr.bf16.mxu0 %v18016_v45  ;;  %v18017_v39 = vld [vmem:[%s26306_s9 + $0x180] ss:$16 sps:$4 sm:$0xff]   ;;  %v18049_v12 = vld [vmem:[%s26306_s9 + $0x2e4] ss:$16 sps:$4 sm:$0xff]  }
 0x8c7   : > { %v9413_v0 = vmax.f32 %v9368_v63, %v9394_v22  ;;  %v9433_v15 = vsel %vm2024_vm1, %v9430_v37, %v9432_v43  ;;  %v18035_v14 = vld [vmem:[%s26306_s9 + $0x120] ss:$16 sps:$4 sm:$0xff]   ;;  %v18055_v31 = vld [vmem:[%s26306_s9 + $0x2c4] ss:$16 sps:$4 sm:$0xff]   ;;  %v18058_v45 = vld [vmem:[%s26306_s9 + $0x2cc] ss:$16 sps:$4 sm:$0xff]  }
 0x8c8   : > { %v9395_v16 = vrot.slane %v9371_v6, 2  ;;  %v9362_v54 = vadd.f32 %v24508_v8, %v9345_v30  ;;  %v24602_v11 = vmax.f32 %v9411_v19, %v9433_v15  ;;  %v18025_v8 = vld [vmem:[%s26306_s9 + $0x164] ss:$16 sps:$4 sm:$0xff]   ;;  %v18041_v37 = vld [vmem:[%s26306_s9 + $0x100] ss:$16 sps:$4 sm:$0xff]  }
 0x8c9   : > { %9959 = vmatpush1.bf16.msra.mxu1 %v18011_v60  ;;  %10000 = vmatpush1.bf16.msra.mxu0 %v18014_v10  ;;  %v9434_v49 = vrot.slane %v9413_v0, 1  ;;  %v18047_v44 = vld [vmem:[%s26306_s9 + $0x2e0] ss:$16 sps:$4 sm:$0xff]   ;;  %v18056_v40 = vld [vmem:[%s26306_s9 + $0x2c8] ss:$16 sps:$4 sm:$0xff]  }
 0x8ca   : > { %v9396_v50 = vsel %vm6019_vm7, %v9393_v35, %v9395_v16  ;;  %v9372_v1 = vmax.f32 %v9362_v54, 0.0  ;;  %9960 = vmatprep.subr.bf16.mxu1 %v18019_v2  ;;  %10001 = vmatprep.subr.bf16.mxu0 %v18022_v41  ;;  %v18053_v25 = vld [vmem:[%s26306_s9 + $0x2c0] ss:$16 sps:$4 sm:$0xff]   ;;  %v18061_v32 = vld [vmem:[%s26306_s9 + $0x2a4] ss:$16 sps:$4 sm:$0xff]  }
 0x8cb   : > { %v9414_v5 = vmax.f32 %v9369_v38, %v9396_v50  ;;  %v18032_v38 = vld [vmem:[%s26306_s9 + $0x148] ss:$16 sps:$4 sm:$0xff]   ;;  %v18064_v35 = vld [vmem:[%s26306_s9 + $0x2ac] ss:$16 sps:$4 sm:$0xff]   ;;  %v18059_v34 = vld [vmem:[%s26306_s9 + $0x2a0] ss:$16 sps:$4 sm:$0xff]  }
 0x8cc   : > { %v9397_v23 = vrot.slane %v9372_v1, 2  ;;  %v18062_v3 = vld [vmem:[%s26306_s9 + $0x2a8] ss:$16 sps:$4 sm:$0xff]   ;;  %v18067_v43 = vld [vmem:[%s26306_s9 + $0x284] ss:$16 sps:$4 sm:$0xff]  }
 0x8cd   : > { %v9435_v63 = vrot.slane %v9414_v5, 1  ;;  %9961 = vmatpush1.bf16.msra.mxu1 %v18017_v39  ;;  %10002 = vmatpush1.bf16.msra.mxu0 %v18020_v4  ;;  %v18070_v52 = vld [vmem:[%s26306_s9 + $0x28c] ss:$16 sps:$4 sm:$0xff]   ;;  %v18065_v60 = vld [vmem:[%s26306_s9 + $0x280] ss:$16 sps:$4 sm:$0xff]  }
 0x8ce   : > { %v9398_v24 = vsel %vm6019_vm7, %v9395_v16, %v9397_v23  ;;  %v9416_v48 = vmax.f32 %v9371_v6, %v9397_v23  ;;  %9962 = vmatprep.subr.bf16.mxu1 %v18025_v8  ;;  %10003 = vmatprep.subr.bf16.mxu0 %v18028_v18  ;;  %v18068_v10 = vld [vmem:[%s26306_s9 + $0x288] ss:$16 sps:$4 sm:$0xff]   ;;  %v18073_v22 = vld [vmem:[%s26306_s9 + $0x264] ss:$16 sps:$4 sm:$0xff]   ;;  %v18076_v6 = vld [vmem:[%s26306_s9 + $0x26c] ss:$16 sps:$4 sm:$0xff]  }
 0x8cf   : > { %v9415_v33 = vmax.f32 %v9370_v51, %v9398_v24  ;;  %v9436_v59 = vsel %vm2024_vm1, %v9434_v49, %v9435_v63  ;;  %v18050_v51 = vld [vmem:[%s26306_s9 + $0x2e8] ss:$16 sps:$4 sm:$0xff]   ;;  %v18071_v30 = vld [vmem:[%s26306_s9 + $0x260] ss:$16 sps:$4 sm:$0xff]   ;;  %v18079_v41 = vld [vmem:[%s26306_s9 + $0x244] ss:$16 sps:$4 sm:$0xff]  }
 0x8d0   : > { %v9438_v55 = vrot.slane %v9416_v48, 1  ;;  %v24627_v61 = vmax.f32 %v9413_v0, %v9436_v59  ;;  %v18074_v2 = vld [vmem:[%s26306_s9 + $0x268] ss:$16 sps:$4 sm:$0xff]   ;;  %v18082_v0 = vld [vmem:[%s26306_s9 + $0x24c] ss:$16 sps:$4 sm:$0xff]  }
 0x8d1   : > { %v9437_v20 = vrot.slane %v9415_v33, 1  ;;  %9963 = vmatpush1.bf16.msra.mxu1 %v18023_v56  ;;  %10004 = vmatpush1.bf16.msra.mxu0 %v18026_v58  ;;  %v18077_v15 = vld [vmem:[%s26306_s9 + $0x240] ss:$16 sps:$4 sm:$0xff]   ;;  %v18080_v16 = vld [vmem:[%s26306_s9 + $0x248] ss:$16 sps:$4 sm:$0xff]   ;;  %v10099_v58 = vrot.slane %v24542_v13, 2 }
 0x8d2   : > { %v24635_v36 = vmax.f32 %v9416_v48, %v9438_v55  ;;  %9964 = vmatprep.subr.bf16.mxu1 %v18031_v21  ;;  %10005 = vmatprep.subr.bf16.mxu0 %v18034_v47  ;;  %v18085_v54 = vld [vmem:[%s26306_s9 + $0x224] ss:$16 sps:$4 sm:$0xff]   ;;  %v18088_v39 = vld [vmem:[%s26306_s9 + $0x22c] ss:$16 sps:$4 sm:$0xff]   ;;  %v18083_v4 = vld [vmem:[%s26306_s9 + $0x220] ss:$16 sps:$4 sm:$0xff]  }
 0x8d3   : > { %v9439_v19 = vsel %vm2024_vm1, %v9437_v20, %v9438_v55  ;;  %v18086_v50 = vld [vmem:[%s26306_s9 + $0x228] ss:$16 sps:$4 sm:$0xff]   ;;  %v18091_v1 = vld [vmem:[%s26306_s9 + $0x204] ss:$16 sps:$4 sm:$0xff]   ;;  %v18094_v8 = vld [vmem:[%s26306_s9 + $0x20c] ss:$16 sps:$4 sm:$0xff]  }
 0x8d4   : > { %v24644_v57 = vmax.f32 %v9415_v33, %v9439_v19  ;;  %v18089_v18 = vld [vmem:[%s26306_s9 + $0x200] ss:$16 sps:$4 sm:$0xff]   ;;  %v18092_v5 = vld [vmem:[%s26306_s9 + $0x208] ss:$16 sps:$4 sm:$0xff]   ;;  %v18097_v23 = vld [vmem:[%s26306_s9 + $0x3e4] ss:$16 sps:$4 sm:$0xff]  }
 0x8d5   : > { %9965 = vmatpush1.bf16.msra.mxu1 %v18029_v28  ;;  %10006 = vmatpush1.bf16.msra.mxu0 %v18032_v38  ;;  %v18100_v49 = vld [vmem:[%s26306_s9 + $0x3ec] ss:$16 sps:$4 sm:$0xff]   ;;  %v18095_v63 = vld [vmem:[%s26306_s9 + $0x3e0] ss:$16 sps:$4 sm:$0xff]   ;;  %v18098_v56 = vld [vmem:[%s26306_s9 + $0x3e8] ss:$16 sps:$4 sm:$0xff]  }
 0x8d6   : > { %9966 = vmatprep.subr.bf16.mxu1 %v18037_v46  ;;  %10007 = vmatprep.subr.bf16.mxu0 %v18040_v7  ;;  %v18103_v24 = vld [vmem:[%s26306_s9 + $0x3c4] ss:$16 sps:$4 sm:$0xff]   ;;  %v18106_v48 = vld [vmem:[%s26306_s9 + $0x3cc] ss:$16 sps:$4 sm:$0xff]   ;;  %v18101_v21 = vld [vmem:[%s26306_s9 + $0x3c0] ss:$16 sps:$4 sm:$0xff]  }
 0x8d7   : > { %v18104_v47 = vld [vmem:[%s26306_s9 + $0x3c8] ss:$16 sps:$4 sm:$0xff]   ;;  %v18109_v33 = vld [vmem:[%s26306_s9 + $0x3a4] ss:$16 sps:$4 sm:$0xff]   ;;  %v18112_v59 = vld [vmem:[%s26306_s9 + $0x3ac] ss:$16 sps:$4 sm:$0xff]  }
 0x8d8   : > { %v18107_v55 = vld [vmem:[%s26306_s9 + $0x3a0] ss:$16 sps:$4 sm:$0xff]   ;;  %v18110_v20 = vld [vmem:[%s26306_s9 + $0x3a8] ss:$16 sps:$4 sm:$0xff]   ;;  %v18115_v28 = vld [vmem:[%s26306_s9 + $0x384] ss:$16 sps:$4 sm:$0xff]  }
 0x8d9   : > { %9967 = vmatpush1.bf16.msra.mxu1 %v18035_v14  ;;  %10008 = vmatpush1.bf16.msra.mxu0 %v18038_v42  ;;  %v18118_v38 = vld [vmem:[%s26306_s9 + $0x38c] ss:$16 sps:$4 sm:$0xff]   ;;  %v18113_v46 = vld [vmem:[%s26306_s9 + $0x380] ss:$16 sps:$4 sm:$0xff]   ;;  %v18116_v7 = vld [vmem:[%s26306_s9 + $0x388] ss:$16 sps:$4 sm:$0xff]  }
 0x8da   : > { %9968 = vmatprep.subr.bf16.mxu1 %v18043_v29  ;;  %10009 = vmatprep.subr.bf16.mxu0 %v18046_v62  ;;  %v18121_v19 = vld [vmem:[%s26306_s9 + $0x364] ss:$16 sps:$4 sm:$0xff]   ;;  %v18124_v14 = vld [vmem:[%s26306_s9 + $0x36c] ss:$16 sps:$4 sm:$0xff]   ;;  %v18119_v42 = vld [vmem:[%s26306_s9 + $0x360] ss:$16 sps:$4 sm:$0xff]  }
 0x8db   : > { %v18122_v29 = vld [vmem:[%s26306_s9 + $0x368] ss:$16 sps:$4 sm:$0xff]   ;;  %v18127_v62 = vld [vmem:[%s26306_s9 + $0x344] ss:$16 sps:$4 sm:$0xff]  }
 0x8dd   : > { %9969 = vmatpush1.bf16.msra.mxu1 %v18041_v37  ;;  %10010 = vmatpush1.bf16.msra.mxu0 %v18044_v26  ;;  %v18130_v37 = vld [vmem:[%s26306_s9 + $0x34c] ss:$16 sps:$4 sm:$0xff]   ;;  %v18125_v26 = vld [vmem:[%s26306_s9 + $0x340] ss:$16 sps:$4 sm:$0xff]  }
 0x8de   : > { %10261 = vmatprep.subr.bf16.mxu1 %v18049_v12  ;;  %10302 = vmatprep.subr.bf16.mxu0 %v18052_v17  ;;  %v18128_v12 = vld [vmem:[%s26306_s9 + $0x348] ss:$16 sps:$4 sm:$0xff]   ;;  %v18133_v17 = vld [vmem:[%s26306_s9 + $0x324] ss:$16 sps:$4 sm:$0xff]  }
 0x8e0   : > { %9987 = vmatmul.mubr.bf16.vlgmr.msra.gmra.mxu1 %v9792_v27  ;;  %10028 = vmatmul.mubr.bf16.vlgmr.msra.gmra.mxu0 %v9792_v27  ;;  %v18134_v27 = vld [vmem:[%s26306_s9 + $0x328] ss:$16 sps:$4 sm:$0xff]  }
 0x8e1   : > { %10262 = vmatpush1.bf16.msra.mxu1 %v18047_v44  ;;  %10303 = vmatpush1.bf16.msra.mxu0 %v18050_v51  ;;  %v18136_v44 = vld [vmem:[%s26306_s9 + $0x32c] ss:$16 sps:$4 sm:$0xff]   ;;  %v18131_v51 = vld [vmem:[%s26306_s9 + $0x320] ss:$16 sps:$4 sm:$0xff]  }
 0x8e2   : > { %10263 = vmatprep.subr.bf16.mxu1 %v18055_v31  ;;  %10304 = vmatprep.subr.bf16.mxu0 %v18058_v45  ;;  %v18139_v31 = vld [vmem:[%s26306_s9 + $0x304] ss:$16 sps:$4 sm:$0xff]   ;;  %v18142_v45 = vld [vmem:[%s26306_s9 + $0x30c] ss:$16 sps:$4 sm:$0xff]  }
 0x8e3   : > { %10293 = vmatprep.mubr.bf16.mxu1 %v26823_v53  ;;  %10334 = vmatprep.mubr.bf16.mxu0 %v26823_v53 }
 0x8e5   : > { %10264 = vmatpush1.bf16.msra.mxu1 %v18053_v25  ;;  %10305 = vmatpush1.bf16.msra.mxu0 %v18056_v40  ;;  %v18137_v25 = vld [vmem:[%s26306_s9 + $0x300] ss:$16 sps:$4 sm:$0xff]   ;;  %v18140_v40 = vld [vmem:[%s26306_s9 + $0x308] ss:$16 sps:$4 sm:$0xff]  }
 0x8e6   : > { %10265 = vmatprep.subr.bf16.mxu1 %v18061_v32  ;;  %10306 = vmatprep.subr.bf16.mxu0 %v18064_v35  ;;  %v18145_v32 = vld [vmem:[%s26306_s9 + $0x4e4] ss:$16 sps:$4 sm:$0xff]   ;;  %v18148_v35 = vld [vmem:[%s26306_s9 + $0x4ec] ss:$16 sps:$4 sm:$0xff]  }
 0x8e9   : > { %10266 = vmatpush1.bf16.msra.mxu1 %v18059_v34  ;;  %10307 = vmatpush1.bf16.msra.mxu0 %v18062_v3  ;;  %v18143_v34 = vld [vmem:[%s26306_s9 + $0x4e0] ss:$16 sps:$4 sm:$0xff]   ;;  %v18146_v3 = vld [vmem:[%s26306_s9 + $0x4e8] ss:$16 sps:$4 sm:$0xff]  }
 0x8ea   : > { %10267 = vmatprep.subr.bf16.mxu1 %v18067_v43  ;;  %10308 = vmatprep.subr.bf16.mxu0 %v18070_v52  ;;  %v10406_v43 = vrot.slane %v24542_v13, 3  ;;  %v18151_v52 = vld [vmem:[%s26306_s9 + $0x4c4] ss:$16 sps:$4 sm:$0xff]   ;;  %v18152_v13 = vld [vmem:[%s26306_s9 + $0x4c8] ss:$16 sps:$4 sm:$0xff]  }
 0x8ed   : > { %10268 = vmatpush1.bf16.msra.mxu1 %v18065_v60  ;;  %10309 = vmatpush1.bf16.msra.mxu0 %v18068_v10  ;;  %v18154_v60 = vld [vmem:[%s26306_s9 + $0x4cc] ss:$16 sps:$4 sm:$0xff]   ;;  %v18149_v10 = vld [vmem:[%s26306_s9 + $0x4c0] ss:$16 sps:$4 sm:$0xff]  }
 0x8ee   : > { %10269 = vmatprep.subr.bf16.mxu1 %v18073_v22  ;;  %10310 = vmatprep.subr.bf16.mxu0 %v18076_v6  ;;  %v18157_v22 = vld [vmem:[%s26306_s9 + $0x4a4] ss:$16 sps:$4 sm:$0xff]   ;;  %v18160_v6 = vld [vmem:[%s26306_s9 + $0x4ac] ss:$16 sps:$4 sm:$0xff]  }
 0x8f1   : > { %10270 = vmatpush1.bf16.msra.mxu1 %v18071_v30  ;;  %10311 = vmatpush1.bf16.msra.mxu0 %v18074_v2  ;;  %v18155_v30 = vld [vmem:[%s26306_s9 + $0x4a0] ss:$16 sps:$4 sm:$0xff]   ;;  %v18158_v2 = vld [vmem:[%s26306_s9 + $0x4a8] ss:$16 sps:$4 sm:$0xff]  }
 0x8f2   : > { %10271 = vmatprep.subr.bf16.mxu1 %v18079_v41  ;;  %10312 = vmatprep.subr.bf16.mxu0 %v18082_v0  ;;  %v18163_v41 = vld [vmem:[%s26306_s9 + $0x484] ss:$16 sps:$4 sm:$0xff]   ;;  %v18166_v0 = vld [vmem:[%s26306_s9 + $0x48c] ss:$16 sps:$4 sm:$0xff]  }
 0x8f5   : > { %10272 = vmatpush1.bf16.msra.mxu1 %v18077_v15  ;;  %10313 = vmatpush1.bf16.msra.mxu0 %v18080_v16  ;;  %v18161_v15 = vld [vmem:[%s26306_s9 + $0x480] ss:$16 sps:$4 sm:$0xff]   ;;  %v18164_v16 = vld [vmem:[%s26306_s9 + $0x488] ss:$16 sps:$4 sm:$0xff]  }
 0x8f6   : > { %10273 = vmatprep.subr.bf16.mxu1 %v18085_v54  ;;  %10314 = vmatprep.subr.bf16.mxu0 %v18088_v39  ;;  %v18169_v54 = vld [vmem:[%s26306_s9 + $0x464] ss:$16 sps:$4 sm:$0xff]   ;;  %v18172_v39 = vld [vmem:[%s26306_s9 + $0x46c] ss:$16 sps:$4 sm:$0xff]  }
 0x8f9   : > { %10274 = vmatpush1.bf16.msra.mxu1 %v18083_v4  ;;  %10315 = vmatpush1.bf16.msra.mxu0 %v18086_v50  ;;  %v18167_v4 = vld [vmem:[%s26306_s9 + $0x460] ss:$16 sps:$4 sm:$0xff]   ;;  %v18170_v50 = vld [vmem:[%s26306_s9 + $0x468] ss:$16 sps:$4 sm:$0xff]  }
 0x8fa   : > { %10275 = vmatprep.subr.bf16.mxu1 %v18091_v1  ;;  %10316 = vmatprep.subr.bf16.mxu0 %v18094_v8  ;;  %v18175_v1 = vld [vmem:[%s26306_s9 + $0x444] ss:$16 sps:$4 sm:$0xff]   ;;  %v18178_v8 = vld [vmem:[%s26306_s9 + $0x44c] ss:$16 sps:$4 sm:$0xff]  }
 0x8fd   : > { %10276 = vmatpush1.bf16.msra.mxu1 %v18089_v18  ;;  %10317 = vmatpush1.bf16.msra.mxu0 %v18092_v5  ;;  %v18173_v18 = vld [vmem:[%s26306_s9 + $0x440] ss:$16 sps:$4 sm:$0xff]   ;;  %v18176_v5 = vld [vmem:[%s26306_s9 + $0x448] ss:$16 sps:$4 sm:$0xff]  }
 0x8fe   : > { %10568 = vmatprep.subr.bf16.mxu1 %v18097_v23  ;;  %10609 = vmatprep.subr.bf16.mxu0 %v18100_v49  ;;  %v18181_v23 = vld [vmem:[%s26306_s9 + $0x424] ss:$16 sps:$4 sm:$0xff]   ;;  %v18184_v49 = vld [vmem:[%s26306_s9 + $0x42c] ss:$16 sps:$4 sm:$0xff]  }
 0x900   : > { %10294 = vmatmul.mubr.bf16.vlgmr.msra.gmra.mxu1 %v10099_v58  ;;  %10335 = vmatmul.mubr.bf16.vlgmr.msra.gmra.mxu0 %v10099_v58  ;;  %v18187_v58 = vld [vmem:[%s26306_s9 + $0x404] ss:$16 sps:$4 sm:$0xff]  }
 0x901   : > { %10569 = vmatpush1.bf16.msra.mxu1 %v18095_v63  ;;  %10610 = vmatpush1.bf16.msra.mxu0 %v18098_v56  ;;  %v18179_v63 = vld [vmem:[%s26306_s9 + $0x420] ss:$16 sps:$4 sm:$0xff]   ;;  %v18182_v56 = vld [vmem:[%s26306_s9 + $0x428] ss:$16 sps:$4 sm:$0xff]  }
 0x902   : > { %10570 = vmatprep.subr.bf16.mxu1 %v18103_v24  ;;  %10611 = vmatprep.subr.bf16.mxu0 %v18106_v48  ;;  %v18190_v24 = vld [vmem:[%s26306_s9 + $0x40c] ss:$16 sps:$4 sm:$0xff]   ;;  %v18185_v48 = vld [vmem:[%s26306_s9 + $0x400] ss:$16 sps:$4 sm:$0xff]  }
 0x903   : > { %10600 = vmatprep.mubr.bf16.mxu1 %v26823_v53  ;;  %10641 = vmatprep.mubr.bf16.mxu0 %v26823_v53 }
 0x905   : > { %10571 = vmatpush1.bf16.msra.mxu1 %v18101_v21  ;;  %10612 = vmatpush1.bf16.msra.mxu0 %v18104_v47  ;;  %v18188_v21 = vld [vmem:[%s26306_s9 + $0x408] ss:$16 sps:$4 sm:$0xff]   ;;  %v24963_v47 = vpack.c.bf16 %v24578_v9, %v24578_v9 }
 0x906   : > { %10572 = vmatprep.subr.bf16.mxu1 %v18109_v33  ;;  %10613 = vmatprep.subr.bf16.mxu0 %v18112_v59  ;;  %v18193_v33 = vld [vmem:[%s26306_s9 + $0x5e4] ss:$16 sps:$4 sm:$0xff]   ;;  %v18196_v59 = vld [vmem:[%s26306_s9 + $0x5ec] ss:$16 sps:$4 sm:$0xff]  }
 0x907   : > { %v10715_v9 = vrot.slane %v24963_v47, 2 }
 0x909   : > { %10573 = vmatpush1.bf16.msra.mxu1 %v18107_v55  ;;  %10614 = vmatpush1.bf16.msra.mxu0 %v18110_v20  ;;  %v18191_v55 = vld [vmem:[%s26306_s9 + $0x5e0] ss:$16 sps:$4 sm:$0xff]   ;;  %v18194_v20 = vld [vmem:[%s26306_s9 + $0x5e8] ss:$16 sps:$4 sm:$0xff]  }
 0x90a   : > { %10574 = vmatprep.subr.bf16.mxu1 %v18115_v28  ;;  %10615 = vmatprep.subr.bf16.mxu0 %v18118_v38  ;;  %v18199_v28 = vld [vmem:[%s26306_s9 + $0x5c4] ss:$16 sps:$4 sm:$0xff]   ;;  %v18202_v38 = vld [vmem:[%s26306_s9 + $0x5cc] ss:$16 sps:$4 sm:$0xff]  }
 0x90d   : > { %10575 = vmatpush1.bf16.msra.mxu1 %v18113_v46  ;;  %10616 = vmatpush1.bf16.msra.mxu0 %v18116_v7  ;;  %v18197_v46 = vld [vmem:[%s26306_s9 + $0x5c0] ss:$16 sps:$4 sm:$0xff]   ;;  %v18200_v7 = vld [vmem:[%s26306_s9 + $0x5c8] ss:$16 sps:$4 sm:$0xff]  }
 0x90e   : > { %10576 = vmatprep.subr.bf16.mxu1 %v18121_v19  ;;  %10617 = vmatprep.subr.bf16.mxu0 %v18124_v14  ;;  %v18205_v19 = vld [vmem:[%s26306_s9 + $0x5a4] ss:$16 sps:$4 sm:$0xff]   ;;  %v18208_v14 = vld [vmem:[%s26306_s9 + $0x5ac] ss:$16 sps:$4 sm:$0xff]  }
 0x911   : > { %10577 = vmatpush1.bf16.msra.mxu1 %v18119_v42  ;;  %10618 = vmatpush1.bf16.msra.mxu0 %v18122_v29  ;;  %v18203_v42 = vld [vmem:[%s26306_s9 + $0x5a0] ss:$16 sps:$4 sm:$0xff]   ;;  %v18206_v29 = vld [vmem:[%s26306_s9 + $0x5a8] ss:$16 sps:$4 sm:$0xff]  }
 0x912   : > { %10578 = vmatprep.subr.bf16.mxu1 %v18127_v62  ;;  %10619 = vmatprep.subr.bf16.mxu0 %v18130_v37  ;;  %v18211_v62 = vld [vmem:[%s26306_s9 + $0x584] ss:$16 sps:$4 sm:$0xff]   ;;  %v18214_v37 = vld [vmem:[%s26306_s9 + $0x58c] ss:$16 sps:$4 sm:$0xff]  }
 0x915   : > { %10579 = vmatpush1.bf16.msra.mxu1 %v18125_v26  ;;  %10620 = vmatpush1.bf16.msra.mxu0 %v18128_v12  ;;  %v18209_v26 = vld [vmem:[%s26306_s9 + $0x580] ss:$16 sps:$4 sm:$0xff]   ;;  %v18212_v12 = vld [vmem:[%s26306_s9 + $0x588] ss:$16 sps:$4 sm:$0xff]  }
 0x916   : > { %10580 = vmatprep.subr.bf16.mxu1 %v18133_v17  ;;  %10621 = vmatprep.subr.bf16.mxu0 %v18136_v44  ;;  %v18217_v17 = vld [vmem:[%s26306_s9 + $0x564] ss:$16 sps:$4 sm:$0xff]   ;;  %v18220_v44 = vld [vmem:[%s26306_s9 + $0x56c] ss:$16 sps:$4 sm:$0xff]  }
 0x919   : > { %10581 = vmatpush1.bf16.msra.mxu1 %v18131_v51  ;;  %10622 = vmatpush1.bf16.msra.mxu0 %v18134_v27  ;;  %v18215_v51 = vld [vmem:[%s26306_s9 + $0x560] ss:$16 sps:$4 sm:$0xff]   ;;  %v18218_v27 = vld [vmem:[%s26306_s9 + $0x568] ss:$16 sps:$4 sm:$0xff]  }
 0x91a   : > { %10582 = vmatprep.subr.bf16.mxu1 %v18139_v31  ;;  %10623 = vmatprep.subr.bf16.mxu0 %v18142_v45  ;;  %v18223_v31 = vld [vmem:[%s26306_s9 + $0x544] ss:$16 sps:$4 sm:$0xff]   ;;  %v18226_v45 = vld [vmem:[%s26306_s9 + $0x54c] ss:$16 sps:$4 sm:$0xff]  }
 0x91d   : > { %10583 = vmatpush1.bf16.msra.mxu1 %v18137_v25  ;;  %10624 = vmatpush1.bf16.msra.mxu0 %v18140_v40  ;;  %v18221_v25 = vld [vmem:[%s26306_s9 + $0x540] ss:$16 sps:$4 sm:$0xff]   ;;  %v18224_v40 = vld [vmem:[%s26306_s9 + $0x548] ss:$16 sps:$4 sm:$0xff]  }
 0x91e   : > { %10877 = vmatprep.subr.bf16.mxu1 %v18145_v32  ;;  %10918 = vmatprep.subr.bf16.mxu0 %v18148_v35  ;;  %v18229_v32 = vld [vmem:[%s26306_s9 + $0x524] ss:$16 sps:$4 sm:$0xff]   ;;  %v18232_v35 = vld [vmem:[%s26306_s9 + $0x52c] ss:$16 sps:$4 sm:$0xff]  }
 0x920   : > { %10601 = vmatmul.mubr.bf16.vlgmr.msra.gmra.mxu1 %v10406_v43  ;;  %10642 = vmatmul.mubr.bf16.vlgmr.msra.gmra.mxu0 %v10406_v43  ;;  %v18235_v43 = vld [vmem:[%s26306_s9 + $0x504] ss:$16 sps:$4 sm:$0xff]  }
 0x921   : > { %10878 = vmatpush1.bf16.msra.mxu1 %v18143_v34  ;;  %10919 = vmatpush1.bf16.msra.mxu0 %v18146_v3  ;;  %v18227_v34 = vld [vmem:[%s26306_s9 + $0x520] ss:$16 sps:$4 sm:$0xff]   ;;  %v18230_v3 = vld [vmem:[%s26306_s9 + $0x528] ss:$16 sps:$4 sm:$0xff]  }
 0x922   : > { %10879 = vmatprep.subr.bf16.mxu1 %v18151_v52  ;;  %10920 = vmatprep.subr.bf16.mxu0 %v18154_v60  ;;  %v18238_v52 = vld [vmem:[%s26306_s9 + $0x50c] ss:$16 sps:$4 sm:$0xff]   ;;  %v18233_v60 = vld [vmem:[%s26306_s9 + $0x500] ss:$16 sps:$4 sm:$0xff]  }
 0x923   : > { %10909 = vmatprep.mubr.bf16.mxu1 %v26823_v53  ;;  %10950 = vmatprep.mubr.bf16.mxu0 %v26823_v53 }
 0x925   : > { %10880 = vmatpush1.bf16.msra.mxu1 %v18149_v10  ;;  %10921 = vmatpush1.bf16.msra.mxu0 %v18152_v13  ;;  %v18236_v10 = vld [vmem:[%s26306_s9 + $0x508] ss:$16 sps:$4 sm:$0xff]   ;;  %v18241_v13 = vld [vmem:[%s26306_s9 + $0x6e4] ss:$16 sps:$4 sm:$0xff]  }
 0x926   : > { %10881 = vmatprep.subr.bf16.mxu1 %v18157_v22  ;;  %10922 = vmatprep.subr.bf16.mxu0 %v18160_v6  ;;  %v18244_v22 = vld [vmem:[%s26306_s9 + $0x6ec] ss:$16 sps:$4 sm:$0xff]   ;;  %v18239_v6 = vld [vmem:[%s26306_s9 + $0x6e0] ss:$16 sps:$4 sm:$0xff]  }
 0x929   : > { %10882 = vmatpush1.bf16.msra.mxu1 %v18155_v30  ;;  %10923 = vmatpush1.bf16.msra.mxu0 %v18158_v2  ;;  %v18242_v30 = vld [vmem:[%s26306_s9 + $0x6e8] ss:$16 sps:$4 sm:$0xff]   ;;  %v11022_v2 = vrot.slane %v24963_v47, 3  ;;  %v18277_v47 = vld [vmem:[%s26306_s9 + $0x624] ss:$16 sps:$4 sm:$0xff]  }
 0x92a   : > { %10883 = vmatprep.subr.bf16.mxu1 %v18163_v41  ;;  %10924 = vmatprep.subr.bf16.mxu0 %v18166_v0  ;;  %v18247_v41 = vld [vmem:[%s26306_s9 + $0x6c4] ss:$16 sps:$4 sm:$0xff]   ;;  %v18250_v0 = vld [vmem:[%s26306_s9 + $0x6cc] ss:$16 sps:$4 sm:$0xff]  }
 0x92d   : > { %10884 = vmatpush1.bf16.msra.mxu1 %v18161_v15  ;;  %10925 = vmatpush1.bf16.msra.mxu0 %v18164_v16  ;;  %v18245_v15 = vld [vmem:[%s26306_s9 + $0x6c0] ss:$16 sps:$4 sm:$0xff]   ;;  %v18248_v16 = vld [vmem:[%s26306_s9 + $0x6c8] ss:$16 sps:$4 sm:$0xff]  }
 0x92e   : > { %10885 = vmatprep.subr.bf16.mxu1 %v18169_v54  ;;  %10926 = vmatprep.subr.bf16.mxu0 %v18172_v39  ;;  %v18253_v54 = vld [vmem:[%s26306_s9 + $0x6a4] ss:$16 sps:$4 sm:$0xff]   ;;  %v18256_v39 = vld [vmem:[%s26306_s9 + $0x6ac] ss:$16 sps:$4 sm:$0xff]  }
 0x931   : > { %10886 = vmatpush1.bf16.msra.mxu1 %v18167_v4  ;;  %10927 = vmatpush1.bf16.msra.mxu0 %v18170_v50  ;;  %v18251_v4 = vld [vmem:[%s26306_s9 + $0x6a0] ss:$16 sps:$4 sm:$0xff]   ;;  %v18254_v50 = vld [vmem:[%s26306_s9 + $0x6a8] ss:$16 sps:$4 sm:$0xff]  }
 0x932   : > { %10887 = vmatprep.subr.bf16.mxu1 %v18175_v1  ;;  %10928 = vmatprep.subr.bf16.mxu0 %v18178_v8  ;;  %v18259_v1 = vld [vmem:[%s26306_s9 + $0x684] ss:$16 sps:$4 sm:$0xff]   ;;  %v18262_v8 = vld [vmem:[%s26306_s9 + $0x68c] ss:$16 sps:$4 sm:$0xff]  }
 0x935   : > { %10888 = vmatpush1.bf16.msra.mxu1 %v18173_v18  ;;  %10929 = vmatpush1.bf16.msra.mxu0 %v18176_v5  ;;  %v18257_v18 = vld [vmem:[%s26306_s9 + $0x680] ss:$16 sps:$4 sm:$0xff]   ;;  %v18260_v5 = vld [vmem:[%s26306_s9 + $0x688] ss:$16 sps:$4 sm:$0xff]  }
 0x936   : > { %10889 = vmatprep.subr.bf16.mxu1 %v18181_v23  ;;  %10930 = vmatprep.subr.bf16.mxu0 %v18184_v49  ;;  %v18265_v23 = vld [vmem:[%s26306_s9 + $0x664] ss:$16 sps:$4 sm:$0xff]   ;;  %v18268_v49 = vld [vmem:[%s26306_s9 + $0x66c] ss:$16 sps:$4 sm:$0xff]  }
 0x939   : > { %10890 = vmatpush1.bf16.msra.mxu1 %v18179_v63  ;;  %10931 = vmatpush1.bf16.msra.mxu0 %v18182_v56  ;;  %v18263_v63 = vld [vmem:[%s26306_s9 + $0x660] ss:$16 sps:$4 sm:$0xff]   ;;  %v18266_v56 = vld [vmem:[%s26306_s9 + $0x668] ss:$16 sps:$4 sm:$0xff]  }
 0x93a   : > { %10891 = vmatprep.subr.bf16.mxu1 %v18187_v58  ;;  %10932 = vmatprep.subr.bf16.mxu0 %v18190_v24  ;;  %v18271_v58 = vld [vmem:[%s26306_s9 + $0x644] ss:$16 sps:$4 sm:$0xff]   ;;  %v18274_v24 = vld [vmem:[%s26306_s9 + $0x64c] ss:$16 sps:$4 sm:$0xff]  }
 0x93d   : > { %10892 = vmatpush1.bf16.msra.mxu1 %v18185_v48  ;;  %10933 = vmatpush1.bf16.msra.mxu0 %v18188_v21  ;;  %v18269_v48 = vld [vmem:[%s26306_s9 + $0x640] ss:$16 sps:$4 sm:$0xff]   ;;  %v18272_v21 = vld [vmem:[%s26306_s9 + $0x648] ss:$16 sps:$4 sm:$0xff]  }
 0x93e   : > { %11184 = vmatprep.subr.bf16.mxu1 %v18193_v33  ;;  %11225 = vmatprep.subr.bf16.mxu0 %v18196_v59  ;;  %v18280_v33 = vld [vmem:[%s26306_s9 + $0x62c] ss:$16 sps:$4 sm:$0xff]   ;;  %v18275_v59 = vld [vmem:[%s26306_s9 + $0x620] ss:$16 sps:$4 sm:$0xff]  }
 0x940   : > { %10910 = vmatmul.mubr.bf16.vlgmr.msra.gmra.mxu1 %v10715_v9  ;;  %10951 = vmatmul.mubr.bf16.vlgmr.msra.gmra.mxu0 %v10715_v9  ;;  %v18286_v9 = vld [vmem:[%s26306_s9 + $0x60c] ss:$16 sps:$4 sm:$0xff]  }
 0x941   : > { %11185 = vmatpush1.bf16.msra.mxu1 %v18191_v55  ;;  %11226 = vmatpush1.bf16.msra.mxu0 %v18194_v20  ;;  %v18278_v55 = vld [vmem:[%s26306_s9 + $0x628] ss:$16 sps:$4 sm:$0xff]   ;;  %v18283_v20 = vld [vmem:[%s26306_s9 + $0x604] ss:$16 sps:$4 sm:$0xff]  }
 0x942   : > { %11186 = vmatprep.subr.bf16.mxu1 %v18199_v28  ;;  %11227 = vmatprep.subr.bf16.mxu0 %v18202_v38  ;;  %v18281_v28 = vld [vmem:[%s26306_s9 + $0x600] ss:$16 sps:$4 sm:$0xff]   ;;  %v18284_v38 = vld [vmem:[%s26306_s9 + $0x608] ss:$16 sps:$4 sm:$0xff]  }
 0x943   : > { %11216 = vmatprep.mubr.bf16.mxu1 %v26823_v53  ;;  %11257 = vmatprep.mubr.bf16.mxu0 %v26823_v53 }
 0x945   : > { %11187 = vmatpush1.bf16.msra.mxu1 %v18197_v46  ;;  %11228 = vmatpush1.bf16.msra.mxu0 %v18200_v7  ;;  %v18819_v46 = vmov 1966171168  }
 0x946   : > { %11188 = vmatprep.subr.bf16.mxu1 %v18205_v19  ;;  %11229 = vmatprep.subr.bf16.mxu0 %v18208_v14  ;;  %v9735_v7 = vunpack.c.l.s4 %v18819_v46  ;;  %v9737_v19 = vlaneseq  ;;  %v18289_v14 = vld [vmem:[%s26306_s9 + $0x7e4] ss:$16 sps:$4 sm:$0xff]  }
 0x949   : > { %11189 = vmatpush1.bf16.msra.mxu1 %v18203_v42  ;;  %11230 = vmatpush1.bf16.msra.mxu0 %v18206_v29  ;;  %v18292_v42 = vld [vmem:[%s26306_s9 + $0x7ec] ss:$16 sps:$4 sm:$0xff]   ;;  %v18287_v29 = vld [vmem:[%s26306_s9 + $0x7e0] ss:$16 sps:$4 sm:$0xff]  }
 0x94a   : > { %11190 = vmatprep.subr.bf16.mxu1 %v18211_v62  ;;  %11231 = vmatprep.subr.bf16.mxu0 %v18214_v37  ;;  %v18290_v62 = vld [vmem:[%s26306_s9 + $0x7e8] ss:$16 sps:$4 sm:$0xff]   ;;  %v9736_v37 = vunpack.c.0.s8 %v9735_v7  ;;  %v18341_v7 = vld [vmem:[%s26306_s9 + $0x8c0] ss:$16 sps:$4 sm:$0xff]  }
 0x94d   : > { %11191 = vmatpush1.bf16.msra.mxu1 %v18209_v26  ;;  %11232 = vmatpush1.bf16.msra.mxu0 %v18212_v12  ;;  %v25175_v26 = vshrl.u32 %v9737_v19, 7  ;;  %v25179_v12 = vpack.c.bf16 %v24602_v11, %v24602_v11  ;;  %v18344_v19 = vld [vmem:[%s26306_s9 + $0x8c8] ss:$16 sps:$4 sm:$0xff]  }
 0x94e   : > { %11192 = vmatprep.subr.bf16.mxu1 %v18217_v17  ;;  %11233 = vmatprep.subr.bf16.mxu0 %v18220_v44  ;;  %v18295_v17 = vld [vmem:[%s26306_s9 + $0x7c4] ss:$16 sps:$4 sm:$0xff]   ;;  %v18298_v44 = vld [vmem:[%s26306_s9 + $0x7cc] ss:$16 sps:$4 sm:$0xff]  }
 0x94f   : > { %v25190_v11 = vsub.s32 %v9736_v37, %v25175_v26 }
 0x951   : > { %11193 = vmatpush1.bf16.msra.mxu1 %v18215_v51  ;;  %11234 = vmatpush1.bf16.msra.mxu0 %v18218_v27 }
 0x952   : > { %11194 = vmatprep.subr.bf16.mxu1 %v18223_v31  ;;  %11235 = vmatprep.subr.bf16.mxu0 %v18226_v45  ;;  %v18293_v31 = vld [vmem:[%s26306_s9 + $0x7c0] ss:$16 sps:$4 sm:$0xff]   ;;  %v18296_v45 = vld [vmem:[%s26306_s9 + $0x7c8] ss:$16 sps:$4 sm:$0xff]  }
 0x955   : > { %11195 = vmatpush1.bf16.msra.mxu1 %v18221_v25  ;;  %11236 = vmatpush1.bf16.msra.mxu0 %v18224_v40 }
 0x956   : > { %11196 = vmatprep.subr.bf16.mxu1 %v18229_v32  ;;  %11237 = vmatprep.subr.bf16.mxu0 %v18232_v35  ;;  %v18301_v32 = vld [vmem:[%s26306_s9 + $0x7a4] ss:$16 sps:$4 sm:$0xff]   ;;  %v18304_v35 = vld [vmem:[%s26306_s9 + $0x7ac] ss:$16 sps:$4 sm:$0xff]  }
 0x959   : > { %11197 = vmatpush1.bf16.msra.mxu1 %v18227_v34  ;;  %11238 = vmatpush1.bf16.msra.mxu0 %v18230_v3 }
 0x95a   : > { %11198 = vmatprep.subr.bf16.mxu1 %v18235_v43  ;;  %11239 = vmatprep.subr.bf16.mxu0 %v18238_v52 }
 0x95d   : > { %11199 = vmatpush1.bf16.msra.mxu1 %v18233_v60  ;;  %11240 = vmatpush1.bf16.msra.mxu0 %v18236_v10 }
 0x95e   : > { %11490 = vmatprep.subr.bf16.mxu1 %v18241_v13  ;;  %11531 = vmatprep.subr.bf16.mxu0 %v18244_v22  ;;  %v18299_v13 = vld [vmem:[%s26306_s9 + $0x7a0] ss:$16 sps:$4 sm:$0xff]   ;;  %v18302_v22 = vld [vmem:[%s26306_s9 + $0x7a8] ss:$16 sps:$4 sm:$0xff]  }
 0x960   : > { %11217 = vmatmul.mubr.bf16.vlgmr.msra.gmra.mxu1 %v11022_v2  ;;  %11258 = vmatmul.mubr.bf16.vlgmr.msra.gmra.mxu0 %v11022_v2  ;;  %v18307_v2 = vld [vmem:[%s26306_s9 + $0x784] ss:$16 sps:$4 sm:$0xff]  }
 0x961   : > { %11491 = vmatpush1.bf16.msra.mxu1 %v18239_v6  ;;  %11532 = vmatpush1.bf16.msra.mxu0 %v18242_v30 }
 0x962   : > { %11492 = vmatprep.subr.bf16.mxu1 %v18247_v41  ;;  %11533 = vmatprep.subr.bf16.mxu0 %v18250_v0  ;;  %v18310_v41 = vld [vmem:[%s26306_s9 + $0x78c] ss:$16 sps:$4 sm:$0xff]  }
 0x963   : > { %11522 = vmatprep.mubr.bf16.mxu1 %v26823_v53  ;;  %11563 = vmatprep.mubr.bf16.mxu0 %v26823_v53 }
 0x965   : > { %11493 = vmatpush1.bf16.msra.mxu1 %v18245_v15  ;;  %11534 = vmatpush1.bf16.msra.mxu0 %v18248_v16  ;;  %v18305_v15 = vld [vmem:[%s26306_s9 + $0x780] ss:$16 sps:$4 sm:$0xff]   ;;  %v18308_v16 = vld [vmem:[%s26306_s9 + $0x788] ss:$16 sps:$4 sm:$0xff]  }
 0x966   : > { %11494 = vmatprep.subr.bf16.mxu1 %v18253_v54  ;;  %11535 = vmatprep.subr.bf16.mxu0 %v18256_v39  ;;  %v18313_v54 = vld [vmem:[%s26306_s9 + $0x764] ss:$16 sps:$4 sm:$0xff]   ;;  %v18316_v39 = vld [vmem:[%s26306_s9 + $0x76c] ss:$16 sps:$4 sm:$0xff]  }
 0x969   : > { %11495 = vmatpush1.bf16.msra.mxu1 %v18251_v4  ;;  %11536 = vmatpush1.bf16.msra.mxu0 %v18254_v50  ;;  %v18311_v4 = vld [vmem:[%s26306_s9 + $0x760] ss:$16 sps:$4 sm:$0xff]   ;;  %v18314_v50 = vld [vmem:[%s26306_s9 + $0x768] ss:$16 sps:$4 sm:$0xff]  }
 0x96a   : > { %11496 = vmatprep.subr.bf16.mxu1 %v18259_v1  ;;  %11537 = vmatprep.subr.bf16.mxu0 %v18262_v8  ;;  %v18319_v1 = vld [vmem:[%s26306_s9 + $0x744] ss:$16 sps:$4 sm:$0xff]   ;;  %v18322_v8 = vld [vmem:[%s26306_s9 + $0x74c] ss:$16 sps:$4 sm:$0xff]  }
 0x96d   : > { %11497 = vmatpush1.bf16.msra.mxu1 %v18257_v18  ;;  %11538 = vmatpush1.bf16.msra.mxu0 %v18260_v5  ;;  %v18317_v18 = vld [vmem:[%s26306_s9 + $0x740] ss:$16 sps:$4 sm:$0xff]   ;;  %v18320_v5 = vld [vmem:[%s26306_s9 + $0x748] ss:$16 sps:$4 sm:$0xff]  }
 0x96e   : > { %11498 = vmatprep.subr.bf16.mxu1 %v18265_v23  ;;  %11539 = vmatprep.subr.bf16.mxu0 %v18268_v49  ;;  %v18325_v23 = vld [vmem:[%s26306_s9 + $0x724] ss:$16 sps:$4 sm:$0xff]   ;;  %v18328_v49 = vld [vmem:[%s26306_s9 + $0x72c] ss:$16 sps:$4 sm:$0xff]  }
 0x971   : > { %11499 = vmatpush1.bf16.msra.mxu1 %v18263_v63  ;;  %11540 = vmatpush1.bf16.msra.mxu0 %v18266_v56  ;;  %v18323_v63 = vld [vmem:[%s26306_s9 + $0x720] ss:$16 sps:$4 sm:$0xff]   ;;  %v18326_v56 = vld [vmem:[%s26306_s9 + $0x728] ss:$16 sps:$4 sm:$0xff]  }
 0x972   : > { %11500 = vmatprep.subr.bf16.mxu1 %v18271_v58  ;;  %11541 = vmatprep.subr.bf16.mxu0 %v18274_v24  ;;  %v18331_v58 = vld [vmem:[%s26306_s9 + $0x704] ss:$16 sps:$4 sm:$0xff]   ;;  %v18334_v24 = vld [vmem:[%s26306_s9 + $0x70c] ss:$16 sps:$4 sm:$0xff]  }
 0x975   : > { %11501 = vmatpush1.bf16.msra.mxu1 %v18269_v48  ;;  %11542 = vmatpush1.bf16.msra.mxu0 %v18272_v21  ;;  %v18329_v48 = vld [vmem:[%s26306_s9 + $0x700] ss:$16 sps:$4 sm:$0xff]   ;;  %v18332_v21 = vld [vmem:[%s26306_s9 + $0x708] ss:$16 sps:$4 sm:$0xff]  }
 0x976   : > { %11502 = vmatprep.subr.bf16.mxu1 %v18277_v47  ;;  %11543 = vmatprep.subr.bf16.mxu0 %v18280_v33  ;;  %v18337_v47 = vld [vmem:[%s26306_s9 + $0x8e4] ss:$16 sps:$4 sm:$0xff]   ;;  %v18340_v33 = vld [vmem:[%s26306_s9 + $0x8ec] ss:$16 sps:$4 sm:$0xff]  }
 0x979   : > { %11503 = vmatpush1.bf16.msra.mxu1 %v18275_v59  ;;  %11544 = vmatpush1.bf16.msra.mxu0 %v18278_v55  ;;  %v18335_v59 = vld [vmem:[%s26306_s9 + $0x8e0] ss:$16 sps:$4 sm:$0xff]   ;;  %v18338_v55 = vld [vmem:[%s26306_s9 + $0x8e8] ss:$16 sps:$4 sm:$0xff]  }
 0x97a   : > { %11504 = vmatprep.subr.bf16.mxu1 %v18283_v20  ;;  %11545 = vmatprep.subr.bf16.mxu0 %v18286_v9  ;;  %v11636_v20 = vrot.slane %v25179_v12, 1  ;;  %v18343_v9 = vld [vmem:[%s26306_s9 + $0x8c4] ss:$16 sps:$4 sm:$0xff]  }
 0x97d   : > { %11505 = vmatpush1.bf16.msra.mxu1 %v18281_v28  ;;  %11546 = vmatpush1.bf16.msra.mxu0 %v18284_v38  ;;  %v18346_v28 = vld [vmem:[%s26306_s9 + $0x8cc] ss:$16 sps:$4 sm:$0xff]  }
 0x97e   : > { %11798 = vmatprep.subr.bf16.mxu1 %v18289_v14  ;;  %11839 = vmatprep.subr.bf16.mxu0 %v18292_v42 }
 0x980   : > { %11523 = vmatmul.mubr.bf16.vlgmr.msra.gmra.mxu1 %v25179_v12  ;;  %11564 = vmatmul.mubr.bf16.vlgmr.msra.gmra.mxu0 %v25179_v12  ;;  %v9680_v51 = vpop.f32.mrf.mxu1  ;;  %v9721_v27 = vpop.f32.mrf.mxu0 }
 0x981   : > { %11799 = vmatpush1.bf16.msra.mxu1 %v18287_v29  ;;  %11840 = vmatpush1.bf16.msra.mxu0 %v18290_v62  ;;  %v18349_v29 = vld [vmem:[%s26306_s9 + $0x8a4] ss:$16 sps:$4 sm:$0xff]   ;;  %v18352_v62 = vld [vmem:[%s26306_s9 + $0x8ac] ss:$16 sps:$4 sm:$0xff]  }
 0x982   : > { %v9682_v25 = vpop.f32.mrf.mxu1  ;;  %v9723_v40 = vpop.f32.mrf.mxu0  ;;  %11800 = vmatprep.subr.bf16.mxu1 %v18295_v17  ;;  %11841 = vmatprep.subr.bf16.mxu0 %v18298_v44 }
 0x983   : > { %v9732_v34 = vcombine.low %v9680_v51, %v9682_v25  ;;  %v9733_v3 = vcombine.low %v9721_v27, %v9723_v40  ;;  %11830 = vmatprep.mubr.bf16.mxu1 %v26823_v53  ;;  %11871 = vmatprep.mubr.bf16.mxu0 %v26823_v53  ;;  %v18350_v25 = vld [vmem:[%s26306_s9 + $0x8a8] ss:$16 sps:$4 sm:$0xff]   ;;  %v9452_v40 = vld [vmem:[%s26307_s10] sm:$0xf] }
 0x984   : > { %v9684_v43 = vpop.f32.mrf.mxu1  ;;  %v9725_v52 = vpop.f32.mrf.mxu0 }
 0x985   : > { %v25207_v60 = vrot.slane %v9732_v34, %v25190_v11  ;;  %v25210_v10 = vrot.slane %v9733_v3, %v25190_v11  ;;  %11801 = vmatpush1.bf16.msra.mxu1 %v18293_v31  ;;  %11842 = vmatpush1.bf16.msra.mxu0 %v18296_v45  ;;  %v18347_v45 = vld [vmem:[%s26306_s9 + $0x8a0] ss:$16 sps:$4 sm:$0xff]   ;;  %v18355_v34 = vld [vmem:[%s26306_s9 + $0x884] ss:$16 sps:$4 sm:$0xff]   ;;  %v18358_v3 = vld [vmem:[%s26306_s9 + $0x88c] ss:$16 sps:$4 sm:$0xff]  }
 0x986   : > { %v9685_v6 = vpop.f32.mrf.mxu1  ;;  %v9726_v30 = vpop.f32.mrf.mxu0  ;;  %11802 = vmatprep.subr.bf16.mxu1 %v18301_v32  ;;  %11843 = vmatprep.subr.bf16.mxu0 %v18304_v35 }
 0x987   : > { %v9748_v0 = vcombine.low %v25207_v60, %v25210_v10  ;;  %v18353_v10 = vld [vmem:[%s26306_s9 + $0x880] ss:$16 sps:$4 sm:$0xff]   ;;  %v18364_v6 = vld [vmem:[%s26306_s9 + $0x86c] ss:$16 sps:$4 sm:$0xff]  }
 0x989   : > { %11803 = vmatpush1.bf16.msra.mxu1 %v18299_v13  ;;  %11844 = vmatpush1.bf16.msra.mxu0 %v18302_v22  ;;  %v9755_v51 = vrot.slane %v9748_v0, %v25190_v11  ;;  %v18356_v13 = vld [vmem:[%s26306_s9 + $0x888] ss:$16 sps:$4 sm:$0xff]   ;;  %v18361_v22 = vld [vmem:[%s26306_s9 + $0x864] ss:$16 sps:$4 sm:$0xff]  }
 0x98a   : > { %11804 = vmatprep.subr.bf16.mxu1 %v18307_v2  ;;  %11845 = vmatprep.subr.bf16.mxu0 %v18310_v41  ;;  %v18359_v2 = vld [vmem:[%s26306_s9 + $0x860] ss:$16 sps:$4 sm:$0xff]   ;;  %v18362_v41 = vld [vmem:[%s26306_s9 + $0x868] ss:$16 sps:$4 sm:$0xff]   ;;  %v18367_v0 = vld [vmem:[%s26306_s9 + $0x844] ss:$16 sps:$4 sm:$0xff]  }
 0x98b   : > { %v9757_v52 = vadd.f32 %v9755_v51, %v9452_v40  ;;  %v18412_v40 = vld [vmem:[%s26306_s9 + $0x96c] ss:$16 sps:$4 sm:$0xff]  }
 0x98d   : > { %11805 = vmatpush1.bf16.msra.mxu1 %v18305_v15  ;;  %11846 = vmatpush1.bf16.msra.mxu0 %v18308_v16  ;;  %v18370_v15 = vld [vmem:[%s26306_s9 + $0x84c] ss:$16 sps:$4 sm:$0xff]   ;;  %v18365_v16 = vld [vmem:[%s26306_s9 + $0x840] ss:$16 sps:$4 sm:$0xff]  }
 0x98e   : > { %11806 = vmatprep.subr.bf16.mxu1 %v18313_v54  ;;  %11847 = vmatprep.subr.bf16.mxu0 %v18316_v39  ;;  %v18368_v54 = vld [vmem:[%s26306_s9 + $0x848] ss:$16 sps:$4 sm:$0xff]   ;;  %v18373_v39 = vld [vmem:[%s26306_s9 + $0x824] ss:$16 sps:$4 sm:$0xff]  }
 0x991   : > { %11807 = vmatpush1.bf16.msra.mxu1 %v18311_v4  ;;  %11848 = vmatpush1.bf16.msra.mxu0 %v18314_v50  ;;  %v18376_v4 = vld [vmem:[%s26306_s9 + $0x82c] ss:$16 sps:$4 sm:$0xff]   ;;  %v18371_v50 = vld [vmem:[%s26306_s9 + $0x820] ss:$16 sps:$4 sm:$0xff]  }
 0x992   : > { %11808 = vmatprep.subr.bf16.mxu1 %v18319_v1  ;;  %11849 = vmatprep.subr.bf16.mxu0 %v18322_v8  ;;  %v18374_v1 = vld [vmem:[%s26306_s9 + $0x828] ss:$16 sps:$4 sm:$0xff]   ;;  %v18379_v8 = vld [vmem:[%s26306_s9 + $0x804] ss:$16 sps:$4 sm:$0xff]  }
 0x995   : > { %11809 = vmatpush1.bf16.msra.mxu1 %v18317_v18  ;;  %11850 = vmatpush1.bf16.msra.mxu0 %v18320_v5  ;;  %v18382_v18 = vld [vmem:[%s26306_s9 + $0x80c] ss:$16 sps:$4 sm:$0xff]   ;;  %v18377_v5 = vld [vmem:[%s26306_s9 + $0x800] ss:$16 sps:$4 sm:$0xff]  }
 0x996   : > { %11810 = vmatprep.subr.bf16.mxu1 %v18325_v23  ;;  %11851 = vmatprep.subr.bf16.mxu0 %v18328_v49  ;;  %v18380_v23 = vld [vmem:[%s26306_s9 + $0x808] ss:$16 sps:$4 sm:$0xff]   ;;  %v18385_v49 = vld [vmem:[%s26306_s9 + $0x9e4] ss:$16 sps:$4 sm:$0xff]  }
 0x999   : > { %11811 = vmatpush1.bf16.msra.mxu1 %v18323_v63  ;;  %11852 = vmatpush1.bf16.msra.mxu0 %v18326_v56  ;;  %v18388_v63 = vld [vmem:[%s26306_s9 + $0x9ec] ss:$16 sps:$4 sm:$0xff]   ;;  %v18383_v56 = vld [vmem:[%s26306_s9 + $0x9e0] ss:$16 sps:$4 sm:$0xff]  }
 0x99a   : > { %11812 = vmatprep.subr.bf16.mxu1 %v18331_v58  ;;  %11853 = vmatprep.subr.bf16.mxu0 %v18334_v24  ;;  %v18386_v58 = vld [vmem:[%s26306_s9 + $0x9e8] ss:$16 sps:$4 sm:$0xff]   ;;  %v25405_v24 = vpack.c.bf16 %v24627_v61, %v24627_v61  ;;  %v18389_v61 = vld [vmem:[%s26306_s9 + $0x9c0] ss:$16 sps:$4 sm:$0xff]  }
 0x99d   : > { %11813 = vmatpush1.bf16.msra.mxu1 %v18329_v48  ;;  %11854 = vmatpush1.bf16.msra.mxu0 %v18332_v21  ;;  %v18391_v48 = vld [vmem:[%s26306_s9 + $0x9c4] ss:$16 sps:$4 sm:$0xff]   ;;  %v18394_v21 = vld [vmem:[%s26306_s9 + $0x9cc] ss:$16 sps:$4 sm:$0xff]  }
 0x99e   : > { %12104 = vmatprep.subr.bf16.mxu1 %v18337_v47  ;;  %12145 = vmatprep.subr.bf16.mxu0 %v18340_v33 }
 0x9a0   : > { %v9988_v38 = vpop.f32.mrf.mxu1  ;;  %v10029_v46 = vpop.f32.mrf.mxu0  ;;  %11831 = vmatmul.mubr.bf16.vlgmr.msra.gmra.mxu1 %v11636_v20  ;;  %11872 = vmatmul.mubr.bf16.vlgmr.msra.gmra.mxu0 %v11636_v20 }
 0x9a1   : > { %12105 = vmatpush1.bf16.msra.mxu1 %v18335_v59  ;;  %12146 = vmatpush1.bf16.msra.mxu0 %v18338_v55  ;;  %v18392_v59 = vld [vmem:[%s26306_s9 + $0x9c8] ss:$16 sps:$4 sm:$0xff]  }
 0x9a2   : > { %v9990_v14 = vpop.f32.mrf.mxu1  ;;  %v10031_v42 = vpop.f32.mrf.mxu0  ;;  %12106 = vmatprep.subr.bf16.mxu1 %v18343_v9  ;;  %12147 = vmatprep.subr.bf16.mxu0 %v18346_v28  ;;  %v18397_v9 = vld [vmem:[%s26306_s9 + $0x9a4] ss:$16 sps:$4 sm:$0xff]   ;;  %v18400_v28 = vld [vmem:[%s26306_s9 + $0x9ac] ss:$16 sps:$4 sm:$0xff]  }
 0x9a3   : > { %v10040_v37 = vcombine.low %v9988_v38, %v9990_v14  ;;  %v10041_v12 = vcombine.low %v10029_v46, %v10031_v42  ;;  %12136 = vmatprep.mubr.bf16.mxu1 %v26823_v53  ;;  %12177 = vmatprep.mubr.bf16.mxu0 %v26823_v53 }
 0x9a4   : > { %v9992_v17 = vpop.f32.mrf.mxu1  ;;  %v10033_v44 = vpop.f32.mrf.mxu0 }
 0x9a5   : > { %v10048_v27 = vrot.slane %v10040_v37, %v25190_v11  ;;  %v10055_v31 = vrot.slane %v10041_v12, %v25190_v11  ;;  %12107 = vmatpush1.bf16.msra.mxu1 %v18341_v7  ;;  %12148 = vmatpush1.bf16.msra.mxu0 %v18344_v19  ;;  %v18403_v17 = vld [vmem:[%s26306_s9 + $0x984] ss:$16 sps:$4 sm:$0xff]   ;;  %v18406_v44 = vld [vmem:[%s26306_s9 + $0x98c] ss:$16 sps:$4 sm:$0xff]  }
 0x9a6   : > { %v9993_v32 = vpop.f32.mrf.mxu1  ;;  %v10034_v35 = vpop.f32.mrf.mxu0  ;;  %12108 = vmatprep.subr.bf16.mxu1 %v18349_v29  ;;  %12149 = vmatprep.subr.bf16.mxu0 %v18352_v62  ;;  %v18395_v29 = vld [vmem:[%s26306_s9 + $0x9a0] ss:$16 sps:$4 sm:$0xff]   ;;  %v18398_v62 = vld [vmem:[%s26306_s9 + $0x9a8] ss:$16 sps:$4 sm:$0xff]  }
 0x9a7   : > { %v10056_v43 = vcombine.low %v10048_v27, %v10055_v31  ;;  %v18401_v31 = vld [vmem:[%s26306_s9 + $0x980] ss:$16 sps:$4 sm:$0xff]  }
 0x9a8   : > { %v18407_v35 = vld [vmem:[%s26306_s9 + $0x960] ss:$16 sps:$4 sm:$0xff]  }
 0x9a9   : > { %v10063_v60 = vrot.slane %v10056_v43, %v25190_v11  ;;  %12109 = vmatpush1.bf16.msra.mxu1 %v18347_v45  ;;  %12150 = vmatpush1.bf16.msra.mxu0 %v18350_v25  ;;  %v18404_v45 = vld [vmem:[%s26306_s9 + $0x988] ss:$16 sps:$4 sm:$0xff]   ;;  %v18409_v25 = vld [vmem:[%s26306_s9 + $0x964] ss:$16 sps:$4 sm:$0xff]   ;;  %v18418_v43 = vld [vmem:[%s26306_s9 + $0x94c] ss:$16 sps:$4 sm:$0xff]  }
 0x9aa   : > { %12110 = vmatprep.subr.bf16.mxu1 %v18355_v34  ;;  %12151 = vmatprep.subr.bf16.mxu0 %v18358_v3  ;;  %v18410_v34 = vld [vmem:[%s26306_s9 + $0x968] ss:$16 sps:$4 sm:$0xff]   ;;  %v18415_v3 = vld [vmem:[%s26306_s9 + $0x944] ss:$16 sps:$4 sm:$0xff]  }
 0x9ab   : > { %v25347_v30 = vadd.f32 %v10063_v60, %v9757_v52  ;;  %v18413_v52 = vld [vmem:[%s26306_s9 + $0x940] ss:$16 sps:$4 sm:$0xff]   ;;  %v18416_v60 = vld [vmem:[%s26306_s9 + $0x948] ss:$16 sps:$4 sm:$0xff]  }
 0x9ad   : > { %12111 = vmatpush1.bf16.msra.mxu1 %v18353_v10  ;;  %12152 = vmatpush1.bf16.msra.mxu0 %v18356_v13  ;;  %v18421_v10 = vld [vmem:[%s26306_s9 + $0x924] ss:$16 sps:$4 sm:$0xff]   ;;  %v18424_v13 = vld [vmem:[%s26306_s9 + $0x92c] ss:$16 sps:$4 sm:$0xff]  }
 0x9ae   : > { %12112 = vmatprep.subr.bf16.mxu1 %v18361_v22  ;;  %12153 = vmatprep.subr.bf16.mxu0 %v18364_v6  ;;  %v18419_v22 = vld [vmem:[%s26306_s9 + $0x920] ss:$16 sps:$4 sm:$0xff]   ;;  %v18422_v6 = vld [vmem:[%s26306_s9 + $0x928] ss:$16 sps:$4 sm:$0xff]  }
 0x9b1   : > { %12113 = vmatpush1.bf16.msra.mxu1 %v18359_v2  ;;  %12154 = vmatpush1.bf16.msra.mxu0 %v18362_v41  ;;  %v18430_v2 = vld [vmem:[%s26306_s9 + $0x90c] ss:$16 sps:$4 sm:$0xff]   ;;  %v18425_v41 = vld [vmem:[%s26306_s9 + $0x900] ss:$16 sps:$4 sm:$0xff]  }
 0x9b2   : > { %12114 = vmatprep.subr.bf16.mxu1 %v18367_v0  ;;  %12155 = vmatprep.subr.bf16.mxu0 %v18370_v15  ;;  %v18428_v0 = vld [vmem:[%s26306_s9 + $0x908] ss:$16 sps:$4 sm:$0xff]   ;;  %v18433_v15 = vld [vmem:[%s26306_s9 + $0xae4] ss:$16 sps:$4 sm:$0xff]  }
 0x9b5   : > { %12115 = vmatpush1.bf16.msra.mxu1 %v18365_v16  ;;  %12156 = vmatpush1.bf16.msra.mxu0 %v18368_v54  ;;  %v18436_v16 = vld [vmem:[%s26306_s9 + $0xaec] ss:$16 sps:$4 sm:$0xff]   ;;  %v18431_v54 = vld [vmem:[%s26306_s9 + $0xae0] ss:$16 sps:$4 sm:$0xff]  }
 0x9b6   : > { %12116 = vmatprep.subr.bf16.mxu1 %v18373_v39  ;;  %12157 = vmatprep.subr.bf16.mxu0 %v18376_v4  ;;  %v18434_v39 = vld [vmem:[%s26306_s9 + $0xae8] ss:$16 sps:$4 sm:$0xff]   ;;  %v12250_v4 = vrot.slane %v25405_v24, 1 }
 0x9b9   : > { %12117 = vmatpush1.bf16.msra.mxu1 %v18371_v50  ;;  %12158 = vmatpush1.bf16.msra.mxu0 %v18374_v1  ;;  %v18439_v50 = vld [vmem:[%s26306_s9 + $0xac4] ss:$16 sps:$4 sm:$0xff]   ;;  %v18442_v1 = vld [vmem:[%s26306_s9 + $0xacc] ss:$16 sps:$4 sm:$0xff]  }
 0x9ba   : > { %12118 = vmatprep.subr.bf16.mxu1 %v18379_v8  ;;  %12159 = vmatprep.subr.bf16.mxu0 %v18382_v18 }
 0x9bd   : > { %12119 = vmatpush1.bf16.msra.mxu1 %v18377_v5  ;;  %12160 = vmatpush1.bf16.msra.mxu0 %v18380_v23  ;;  %v18437_v5 = vld [vmem:[%s26306_s9 + $0xac0] ss:$16 sps:$4 sm:$0xff]   ;;  %v18440_v23 = vld [vmem:[%s26306_s9 + $0xac8] ss:$16 sps:$4 sm:$0xff]  }
 0x9be   : > { %12412 = vmatprep.subr.bf16.mxu1 %v18385_v49  ;;  %12453 = vmatprep.subr.bf16.mxu0 %v18388_v63 }
 0x9c0   : > { %v10295_v47 = vpop.f32.mrf.mxu1  ;;  %v10336_v33 = vpop.f32.mrf.mxu0  ;;  %12137 = vmatmul.mubr.bf16.vlgmr.msra.gmra.mxu1 %v25405_v24  ;;  %12178 = vmatmul.mubr.bf16.vlgmr.msra.gmra.mxu0 %v25405_v24 }
 0x9c1   : > { %12413 = vmatpush1.bf16.msra.mxu1 %v18383_v56  ;;  %12454 = vmatpush1.bf16.msra.mxu0 %v18386_v58  ;;  %v18445_v56 = vld [vmem:[%s26306_s9 + $0xaa4] ss:$16 sps:$4 sm:$0xff]   ;;  %v18448_v58 = vld [vmem:[%s26306_s9 + $0xaac] ss:$16 sps:$4 sm:$0xff]  }
 0x9c2   : > { %v10297_v55 = vpop.f32.mrf.mxu1  ;;  %v10338_v20 = vpop.f32.mrf.mxu0  ;;  %12414 = vmatprep.subr.bf16.mxu1 %v18391_v48  ;;  %12455 = vmatprep.subr.bf16.mxu0 %v18394_v21 }
 0x9c3   : > { %v10347_v38 = vcombine.low %v10295_v47, %v10297_v55  ;;  %v10348_v46 = vcombine.low %v10336_v33, %v10338_v20  ;;  %12444 = vmatprep.mubr.bf16.mxu1 %v26823_v53  ;;  %12485 = vmatprep.mubr.bf16.mxu0 %v26823_v53  ;;  %v18443_v55 = vld [vmem:[%s26306_s9 + $0xaa0] ss:$16 sps:$4 sm:$0xff]   ;;  %v18446_v20 = vld [vmem:[%s26306_s9 + $0xaa8] ss:$16 sps:$4 sm:$0xff]  }
 0x9c4   : > { %v10299_v7 = vpop.f32.mrf.mxu1  ;;  %v10340_v19 = vpop.f32.mrf.mxu0 }
 0x9c5   : > { %v10355_v14 = vrot.slane %v10347_v38, %v25190_v11  ;;  %v10362_v42 = vrot.slane %v10348_v46, %v25190_v11  ;;  %12415 = vmatpush1.bf16.msra.mxu1 %v18389_v61  ;;  %12456 = vmatpush1.bf16.msra.mxu0 %v18392_v59  ;;  %v18451_v38 = vld [vmem:[%s26306_s9 + $0xa84] ss:$16 sps:$4 sm:$0xff]   ;;  %v18454_v46 = vld [vmem:[%s26306_s9 + $0xa8c] ss:$16 sps:$4 sm:$0xff]  }
 0x9c6   : > { %v10300_v37 = vpop.f32.mrf.mxu1  ;;  %v10341_v12 = vpop.f32.mrf.mxu0  ;;  %12416 = vmatprep.subr.bf16.mxu1 %v18397_v9  ;;  %12457 = vmatprep.subr.bf16.mxu0 %v18400_v28 }
 0x9c7   : > { %v10363_v51 = vcombine.low %v10355_v14, %v10362_v42  ;;  %v18449_v14 = vld [vmem:[%s26306_s9 + $0xa80] ss:$16 sps:$4 sm:$0xff]   ;;  %v18452_v42 = vld [vmem:[%s26306_s9 + $0xa88] ss:$16 sps:$4 sm:$0xff]  }
 0x9c8   : > { %v18455_v12 = vld [vmem:[%s26306_s9 + $0xa60] ss:$16 sps:$4 sm:$0xff]  }
 0x9c9   : > { %v10370_v27 = vrot.slane %v10363_v51, %v25190_v11  ;;  %12417 = vmatpush1.bf16.msra.mxu1 %v18395_v29  ;;  %12458 = vmatpush1.bf16.msra.mxu0 %v18398_v62  ;;  %v18457_v29 = vld [vmem:[%s26306_s9 + $0xa64] ss:$16 sps:$4 sm:$0xff]   ;;  %v18460_v62 = vld [vmem:[%s26306_s9 + $0xa6c] ss:$16 sps:$4 sm:$0xff]  }
 0x9ca   : > { %12418 = vmatprep.subr.bf16.mxu1 %v18403_v17  ;;  %12459 = vmatprep.subr.bf16.mxu0 %v18406_v44  ;;  %v18458_v17 = vld [vmem:[%s26306_s9 + $0xa68] ss:$16 sps:$4 sm:$0xff]   ;;  %v18463_v44 = vld [vmem:[%s26306_s9 + $0xa44] ss:$16 sps:$4 sm:$0xff]   ;;  %v18466_v51 = vld [vmem:[%s26306_s9 + $0xa4c] ss:$16 sps:$4 sm:$0xff]  }
 0x9cb   : > { %v25457_v32 = vadd.f32 %v10370_v27, %v25347_v30  ;;  %v18427_v30 = vld [vmem:[%s26306_s9 + $0x904] ss:$16 sps:$4 sm:$0xff]   ;;  %v18461_v27 = vld [vmem:[%s26306_s9 + $0xa40] ss:$16 sps:$4 sm:$0xff]  }
 0x9cd   : > { %12419 = vmatpush1.bf16.msra.mxu1 %v18401_v31  ;;  %12460 = vmatpush1.bf16.msra.mxu0 %v18404_v45  ;;  %v18464_v31 = vld [vmem:[%s26306_s9 + $0xa48] ss:$16 sps:$4 sm:$0xff]   ;;  %v18469_v45 = vld [vmem:[%s26306_s9 + $0xa24] ss:$16 sps:$4 sm:$0xff]  }
 0x9ce   : > { %12420 = vmatprep.subr.bf16.mxu1 %v18409_v25  ;;  %12461 = vmatprep.subr.bf16.mxu0 %v18412_v40  ;;  %v18472_v25 = vld [vmem:[%s26306_s9 + $0xa2c] ss:$16 sps:$4 sm:$0xff]   ;;  %v18467_v40 = vld [vmem:[%s26306_s9 + $0xa20] ss:$16 sps:$4 sm:$0xff]  }
 0x9d1   : > { %12421 = vmatpush1.bf16.msra.mxu1 %v18407_v35  ;;  %12462 = vmatpush1.bf16.msra.mxu0 %v18410_v34  ;;  %v18475_v35 = vld [vmem:[%s26306_s9 + $0xa04] ss:$16 sps:$4 sm:$0xff]   ;;  %v18478_v34 = vld [vmem:[%s26306_s9 + $0xa0c] ss:$16 sps:$4 sm:$0xff]  }
 0x9d2   : > { %12422 = vmatprep.subr.bf16.mxu1 %v18415_v3  ;;  %12463 = vmatprep.subr.bf16.mxu0 %v18418_v43  ;;  %v18473_v3 = vld [vmem:[%s26306_s9 + $0xa00] ss:$16 sps:$4 sm:$0xff]   ;;  %v18476_v43 = vld [vmem:[%s26306_s9 + $0xa08] ss:$16 sps:$4 sm:$0xff]  }
 0x9d5   : > { %12423 = vmatpush1.bf16.msra.mxu1 %v18413_v52  ;;  %12464 = vmatpush1.bf16.msra.mxu0 %v18416_v60  ;;  %v18481_v52 = vld [vmem:[%s26306_s9 + $0xbe4] ss:$16 sps:$4 sm:$0xff]   ;;  %v18484_v60 = vld [vmem:[%s26306_s9 + $0xbec] ss:$16 sps:$4 sm:$0xff]  }
 0x9d6   : > { %12424 = vmatprep.subr.bf16.mxu1 %v18421_v10  ;;  %12465 = vmatprep.subr.bf16.mxu0 %v18424_v13  ;;  %v18479_v10 = vld [vmem:[%s26306_s9 + $0xbe0] ss:$16 sps:$4 sm:$0xff]   ;;  %v18482_v13 = vld [vmem:[%s26306_s9 + $0xbe8] ss:$16 sps:$4 sm:$0xff]  }
 0x9d9   : > { %12425 = vmatpush1.bf16.msra.mxu1 %v18419_v22  ;;  %12466 = vmatpush1.bf16.msra.mxu0 %v18422_v6  ;;  %v12557_v22 = vrot.slane %v25405_v24, 2  ;;  %v18487_v6 = vld [vmem:[%s26306_s9 + $0xbc4] ss:$16 sps:$4 sm:$0xff]  }
 0x9da   : > { %12426 = vmatprep.subr.bf16.mxu1 %v18427_v30  ;;  %12467 = vmatprep.subr.bf16.mxu0 %v18430_v2  ;;  %v18490_v30 = vld [vmem:[%s26306_s9 + $0xbcc] ss:$16 sps:$4 sm:$0xff]  }
 0x9dd   : > { %12427 = vmatpush1.bf16.msra.mxu1 %v18425_v41  ;;  %12468 = vmatpush1.bf16.msra.mxu0 %v18428_v0  ;;  %v18485_v0 = vld [vmem:[%s26306_s9 + $0xbc0] ss:$16 sps:$4 sm:$0xff]  }
 0x9de   : > { %12719 = vmatprep.subr.bf16.mxu1 %v18433_v15  ;;  %12760 = vmatprep.subr.bf16.mxu0 %v18436_v16  ;;  %v18488_v15 = vld [vmem:[%s26306_s9 + $0xbc8] ss:$16 sps:$4 sm:$0xff]  }
 0x9e0   : > { %v10602_v8 = vpop.f32.mrf.mxu1  ;;  %v10643_v18 = vpop.f32.mrf.mxu0  ;;  %12445 = vmatmul.mubr.bf16.vlgmr.msra.gmra.mxu1 %v12250_v4  ;;  %12486 = vmatmul.mubr.bf16.vlgmr.msra.gmra.mxu0 %v12250_v4  ;;  %v18496_v4 = vld [vmem:[%s26306_s9 + $0xbac] ss:$16 sps:$4 sm:$0xff]  }
 0x9e1   : > { %12720 = vmatpush1.bf16.msra.mxu1 %v18431_v54  ;;  %12761 = vmatpush1.bf16.msra.mxu0 %v18434_v39  ;;  %v18493_v39 = vld [vmem:[%s26306_s9 + $0xba4] ss:$16 sps:$4 sm:$0xff]  }
 0x9e2   : > { %v10604_v49 = vpop.f32.mrf.mxu1  ;;  %v10645_v63 = vpop.f32.mrf.mxu0  ;;  %12721 = vmatprep.subr.bf16.mxu1 %v18439_v50  ;;  %12762 = vmatprep.subr.bf16.mxu0 %v18442_v1 }
 0x9e3   : > { %v10654_v48 = vcombine.low %v10602_v8, %v10604_v49  ;;  %v10655_v21 = vcombine.low %v10643_v18, %v10645_v63  ;;  %12751 = vmatprep.mubr.bf16.mxu1 %v26823_v53  ;;  %12792 = vmatprep.mubr.bf16.mxu0 %v26823_v53  ;;  %v18491_v49 = vld [vmem:[%s26306_s9 + $0xba0] ss:$16 sps:$4 sm:$0xff]   ;;  %v18494_v63 = vld [vmem:[%s26306_s9 + $0xba8] ss:$16 sps:$4 sm:$0xff]  }
 0x9e4   : > { %v10606_v47 = vpop.f32.mrf.mxu1  ;;  %v10647_v33 = vpop.f32.mrf.mxu0 }
 0x9e5   : > { %v10662_v61 = vrot.slane %v10654_v48, %v25190_v11  ;;  %v10669_v59 = vrot.slane %v10655_v21, %v25190_v11  ;;  %12722 = vmatpush1.bf16.msra.mxu1 %v18437_v5  ;;  %12763 = vmatpush1.bf16.msra.mxu0 %v18440_v23  ;;  %v18499_v48 = vld [vmem:[%s26306_s9 + $0xb84] ss:$16 sps:$4 sm:$0xff]   ;;  %v18502_v21 = vld [vmem:[%s26306_s9 + $0xb8c] ss:$16 sps:$4 sm:$0xff]  }
 0x9e6   : > { %v10607_v9 = vpop.f32.mrf.mxu1  ;;  %v10648_v28 = vpop.f32.mrf.mxu0  ;;  %12723 = vmatprep.subr.bf16.mxu1 %v18445_v56  ;;  %12764 = vmatprep.subr.bf16.mxu0 %v18448_v58 }
 0x9e7   : > { %v10670_v7 = vcombine.low %v10662_v61, %v10669_v59  ;;  %v18497_v61 = vld [vmem:[%s26306_s9 + $0xb80] ss:$16 sps:$4 sm:$0xff]   ;;  %v18500_v59 = vld [vmem:[%s26306_s9 + $0xb88] ss:$16 sps:$4 sm:$0xff]  }
 0x9e8   : > { %v18503_v28 = vld [vmem:[%s26306_s9 + $0xb60] ss:$16 sps:$4 sm:$0xff]  }
 0x9e9   : > { %v10677_v19 = vrot.slane %v10670_v7, %v25190_v11  ;;  %12724 = vmatpush1.bf16.msra.mxu1 %v18443_v55  ;;  %12765 = vmatpush1.bf16.msra.mxu0 %v18446_v20  ;;  %v18505_v55 = vld [vmem:[%s26306_s9 + $0xb64] ss:$16 sps:$4 sm:$0xff]   ;;  %v18508_v20 = vld [vmem:[%s26306_s9 + $0xb6c] ss:$16 sps:$4 sm:$0xff]  }
 0x9ea   : > { %12725 = vmatprep.subr.bf16.mxu1 %v18451_v38  ;;  %12766 = vmatprep.subr.bf16.mxu0 %v18454_v46  ;;  %v18506_v38 = vld [vmem:[%s26306_s9 + $0xb68] ss:$16 sps:$4 sm:$0xff]   ;;  %v18511_v46 = vld [vmem:[%s26306_s9 + $0xb44] ss:$16 sps:$4 sm:$0xff]   ;;  %v18514_v7 = vld [vmem:[%s26306_s9 + $0xb4c] ss:$16 sps:$4 sm:$0xff]  }
 0x9eb   : > { %v25562_v37 = vadd.f32 %v10677_v19, %v25457_v32  ;;  %v18470_v32 = vld [vmem:[%s26306_s9 + $0xa28] ss:$16 sps:$4 sm:$0xff]   ;;  %v18509_v19 = vld [vmem:[%s26306_s9 + $0xb40] ss:$16 sps:$4 sm:$0xff]  }
 0x9ed   : > { %12726 = vmatpush1.bf16.msra.mxu1 %v18449_v14  ;;  %12767 = vmatpush1.bf16.msra.mxu0 %v18452_v42  ;;  %v18512_v14 = vld [vmem:[%s26306_s9 + $0xb48] ss:$16 sps:$4 sm:$0xff]   ;;  %v18517_v42 = vld [vmem:[%s26306_s9 + $0xb24] ss:$16 sps:$4 sm:$0xff]  }
 0x9ee   : > { %12727 = vmatprep.subr.bf16.mxu1 %v18457_v29  ;;  %12768 = vmatprep.subr.bf16.mxu0 %v18460_v62  ;;  %v18520_v29 = vld [vmem:[%s26306_s9 + $0xb2c] ss:$16 sps:$4 sm:$0xff]   ;;  %v18515_v62 = vld [vmem:[%s26306_s9 + $0xb20] ss:$16 sps:$4 sm:$0xff]  }
 0x9f1   : > { %12728 = vmatpush1.bf16.msra.mxu1 %v18455_v12  ;;  %12769 = vmatpush1.bf16.msra.mxu0 %v18458_v17  ;;  %v18523_v12 = vld [vmem:[%s26306_s9 + $0xb04] ss:$16 sps:$4 sm:$0xff]   ;;  %v18526_v17 = vld [vmem:[%s26306_s9 + $0xb0c] ss:$16 sps:$4 sm:$0xff]  }
 0x9f2   : > { %12729 = vmatprep.subr.bf16.mxu1 %v18463_v44  ;;  %12770 = vmatprep.subr.bf16.mxu0 %v18466_v51  ;;  %v18521_v44 = vld [vmem:[%s26306_s9 + $0xb00] ss:$16 sps:$4 sm:$0xff]   ;;  %v18524_v51 = vld [vmem:[%s26306_s9 + $0xb08] ss:$16 sps:$4 sm:$0xff]  }
 0x9f5   : > { %12730 = vmatpush1.bf16.msra.mxu1 %v18461_v27  ;;  %12771 = vmatpush1.bf16.msra.mxu0 %v18464_v31  ;;  %v18529_v27 = vld [vmem:[%s26306_s9 + $0xce4] ss:$16 sps:$4 sm:$0xff]   ;;  %v18532_v31 = vld [vmem:[%s26306_s9 + $0xcec] ss:$16 sps:$4 sm:$0xff]  }
 0x9f6   : > { %12731 = vmatprep.subr.bf16.mxu1 %v18469_v45  ;;  %12772 = vmatprep.subr.bf16.mxu0 %v18472_v25  ;;  %v18527_v45 = vld [vmem:[%s26306_s9 + $0xce0] ss:$16 sps:$4 sm:$0xff]   ;;  %v18530_v25 = vld [vmem:[%s26306_s9 + $0xce8] ss:$16 sps:$4 sm:$0xff]  }
 0x9f9   : > { %12732 = vmatpush1.bf16.msra.mxu1 %v18467_v40  ;;  %12773 = vmatpush1.bf16.msra.mxu0 %v18470_v32  ;;  %v12864_v40 = vrot.slane %v25405_v24, 3  ;;  %v18535_v32 = vld [vmem:[%s26306_s9 + $0xcc4] ss:$16 sps:$4 sm:$0xff]   ;;  %v18533_v24 = vld [vmem:[%s26306_s9 + $0xcc0] ss:$16 sps:$4 sm:$0xff]  }
 0x9fa   : > { %12733 = vmatprep.subr.bf16.mxu1 %v18475_v35  ;;  %12774 = vmatprep.subr.bf16.mxu0 %v18478_v34  ;;  %v18538_v35 = vld [vmem:[%s26306_s9 + $0xccc] ss:$16 sps:$4 sm:$0xff]  }
 0x9fd   : > { %12734 = vmatpush1.bf16.msra.mxu1 %v18473_v3  ;;  %12775 = vmatpush1.bf16.msra.mxu0 %v18476_v43  ;;  %v18536_v43 = vld [vmem:[%s26306_s9 + $0xcc8] ss:$16 sps:$4 sm:$0xff]  }
 0x9fe   : > { %13026 = vmatprep.subr.bf16.mxu1 %v18481_v52  ;;  %13067 = vmatprep.subr.bf16.mxu0 %v18484_v60 }
 0xa00   : > { %v10911_v2 = vpop.f32.mrf.mxu1  ;;  %v10952_v41 = vpop.f32.mrf.mxu0  ;;  %12752 = vmatmul.mubr.bf16.vlgmr.msra.gmra.mxu1 %v12557_v22  ;;  %12793 = vmatmul.mubr.bf16.vlgmr.msra.gmra.mxu0 %v12557_v22 }
 0xa01   : > { %13027 = vmatpush1.bf16.msra.mxu1 %v18479_v10  ;;  %13068 = vmatpush1.bf16.msra.mxu0 %v18482_v13  ;;  %v18541_v10 = vld [vmem:[%s26306_s9 + $0xca4] ss:$16 sps:$4 sm:$0xff]   ;;  %v18544_v13 = vld [vmem:[%s26306_s9 + $0xcac] ss:$16 sps:$4 sm:$0xff]  }
 0xa02   : > { %v10913_v16 = vpop.f32.mrf.mxu1  ;;  %v10954_v54 = vpop.f32.mrf.mxu0  ;;  %13028 = vmatprep.subr.bf16.mxu1 %v18487_v6  ;;  %13069 = vmatprep.subr.bf16.mxu0 %v18490_v30 }
 0xa03   : > { %v10963_v50 = vcombine.low %v10911_v2, %v10913_v16  ;;  %v10964_v1 = vcombine.low %v10952_v41, %v10954_v54  ;;  %13058 = vmatprep.mubr.bf16.mxu1 %v26823_v53  ;;  %13099 = vmatprep.mubr.bf16.mxu0 %v26823_v53  ;;  %v18542_v16 = vld [vmem:[%s26306_s9 + $0xca8] ss:$16 sps:$4 sm:$0xff]  }
 0xa04   : > { %v10915_v8 = vpop.f32.mrf.mxu1  ;;  %v10956_v18 = vpop.f32.mrf.mxu0 }
 0xa05   : > { %v10971_v5 = vrot.slane %v10963_v50, %v25190_v11  ;;  %v10978_v23 = vrot.slane %v10964_v1, %v25190_v11  ;;  %13029 = vmatpush1.bf16.msra.mxu1 %v18485_v0  ;;  %13070 = vmatpush1.bf16.msra.mxu0 %v18488_v15  ;;  %v18539_v15 = vld [vmem:[%s26306_s9 + $0xca0] ss:$16 sps:$4 sm:$0xff]   ;;  %v18550_v50 = vld [vmem:[%s26306_s9 + $0xc8c] ss:$16 sps:$4 sm:$0xff]  }
 0xa06   : > { %v10916_v56 = vpop.f32.mrf.mxu1  ;;  %v10957_v58 = vpop.f32.mrf.mxu0  ;;  %13030 = vmatprep.subr.bf16.mxu1 %v18493_v39  ;;  %13071 = vmatprep.subr.bf16.mxu0 %v18496_v4  ;;  %v18547_v4 = vld [vmem:[%s26306_s9 + $0xc84] ss:$16 sps:$4 sm:$0xff]   ;;  %v18545_v18 = vld [vmem:[%s26306_s9 + $0xc80] ss:$16 sps:$4 sm:$0xff]  }
 0xa07   : > { %v10979_v47 = vcombine.low %v10971_v5, %v10978_v23  ;;  %v18548_v5 = vld [vmem:[%s26306_s9 + $0xc88] ss:$16 sps:$4 sm:$0xff]   ;;  %v18553_v23 = vld [vmem:[%s26306_s9 + $0xc64] ss:$16 sps:$4 sm:$0xff]   ;;  %v18551_v56 = vld [vmem:[%s26306_s9 + $0xc60] ss:$16 sps:$4 sm:$0xff]  }
 0xa08   : > { %v18554_v58 = vld [vmem:[%s26306_s9 + $0xc68] ss:$16 sps:$4 sm:$0xff]  }
 0xa09   : > { %v10986_v33 = vrot.slane %v10979_v47, %v25190_v11  ;;  %13031 = vmatpush1.bf16.msra.mxu1 %v18491_v49  ;;  %13072 = vmatpush1.bf16.msra.mxu0 %v18494_v63  ;;  %v18556_v49 = vld [vmem:[%s26306_s9 + $0xc6c] ss:$16 sps:$4 sm:$0xff]   ;;  %v18557_v47 = vld [vmem:[%s26306_s9 + $0xc40] ss:$16 sps:$4 sm:$0xff]  }
 0xa0a   : > { %13032 = vmatprep.subr.bf16.mxu1 %v18499_v48  ;;  %13073 = vmatprep.subr.bf16.mxu0 %v18502_v21  ;;  %v18559_v48 = vld [vmem:[%s26306_s9 + $0xc44] ss:$16 sps:$4 sm:$0xff]   ;;  %v18562_v21 = vld [vmem:[%s26306_s9 + $0xc4c] ss:$16 sps:$4 sm:$0xff]  }
 0xa0b   : > { %v25667_v9 = vadd.f32 %v10986_v33, %v25562_v37  ;;  %v18518_v37 = vld [vmem:[%s26306_s9 + $0xb28] ss:$16 sps:$4 sm:$0xff]  }
 0xa0c   : > { %v18560_v33 = vld [vmem:[%s26306_s9 + $0xc48] ss:$16 sps:$4 sm:$0xff]  }
 0xa0d   : > { %13033 = vmatpush1.bf16.msra.mxu1 %v18497_v61  ;;  %13074 = vmatpush1.bf16.msra.mxu0 %v18500_v59  ;;  %v18565_v61 = vld [vmem:[%s26306_s9 + $0xc24] ss:$16 sps:$4 sm:$0xff]   ;;  %v18568_v59 = vld [vmem:[%s26306_s9 + $0xc2c] ss:$16 sps:$4 sm:$0xff]  }
 0xa0e   : > { %13034 = vmatprep.subr.bf16.mxu1 %v18505_v55  ;;  %13075 = vmatprep.subr.bf16.mxu0 %v18508_v20  ;;  %v18563_v55 = vld [vmem:[%s26306_s9 + $0xc20] ss:$16 sps:$4 sm:$0xff]   ;;  %v18566_v20 = vld [vmem:[%s26306_s9 + $0xc28] ss:$16 sps:$4 sm:$0xff]  }
 0xa11   : > { %13035 = vmatpush1.bf16.msra.mxu1 %v18503_v28  ;;  %13076 = vmatpush1.bf16.msra.mxu0 %v18506_v38  ;;  %v18574_v28 = vld [vmem:[%s26306_s9 + $0xc0c] ss:$16 sps:$4 sm:$0xff]   ;;  %v18569_v38 = vld [vmem:[%s26306_s9 + $0xc00] ss:$16 sps:$4 sm:$0xff]  }
 0xa12   : > { %13036 = vmatprep.subr.bf16.mxu1 %v18511_v46  ;;  %13077 = vmatprep.subr.bf16.mxu0 %v18514_v7  ;;  %v18572_v46 = vld [vmem:[%s26306_s9 + $0xc08] ss:$16 sps:$4 sm:$0xff]   ;;  %v25818_v7 = vpack.c.bf16 %v24644_v57, %v24644_v57 }
 0xa13   : > { %v18578_v57 = vld [vmem:[%s26306_s9 + $0xde8] ss:$16 sps:$4 sm:$0xff]  }
 0xa15   : > { %13037 = vmatpush1.bf16.msra.mxu1 %v18509_v19  ;;  %13078 = vmatpush1.bf16.msra.mxu0 %v18512_v14  ;;  %v18577_v19 = vld [vmem:[%s26306_s9 + $0xde4] ss:$16 sps:$4 sm:$0xff]   ;;  %v18580_v14 = vld [vmem:[%s26306_s9 + $0xdec] ss:$16 sps:$4 sm:$0xff]  }
 0xa16   : > { %13038 = vmatprep.subr.bf16.mxu1 %v18517_v42  ;;  %13079 = vmatprep.subr.bf16.mxu0 %v18520_v29  ;;  %v18575_v42 = vld [vmem:[%s26306_s9 + $0xde0] ss:$16 sps:$4 sm:$0xff]   ;;  %v13173_v29 = vrot.slane %v25818_v7, 2 }
 0xa19   : > { %13039 = vmatpush1.bf16.msra.mxu1 %v18515_v62  ;;  %13080 = vmatpush1.bf16.msra.mxu0 %v18518_v37  ;;  %v18583_v62 = vld [vmem:[%s26306_s9 + $0xdc4] ss:$16 sps:$4 sm:$0xff]   ;;  %v18586_v37 = vld [vmem:[%s26306_s9 + $0xdcc] ss:$16 sps:$4 sm:$0xff]  }
 0xa1a   : > { %13040 = vmatprep.subr.bf16.mxu1 %v18523_v12  ;;  %13081 = vmatprep.subr.bf16.mxu0 %v18526_v17 }
 0xa1d   : > { %13041 = vmatpush1.bf16.msra.mxu1 %v18521_v44  ;;  %13082 = vmatpush1.bf16.msra.mxu0 %v18524_v51  ;;  %v18581_v44 = vld [vmem:[%s26306_s9 + $0xdc0] ss:$16 sps:$4 sm:$0xff]   ;;  %v18584_v51 = vld [vmem:[%s26306_s9 + $0xdc8] ss:$16 sps:$4 sm:$0xff]  }
 0xa1e   : > { %13335 = vmatprep.subr.bf16.mxu1 %v18529_v27  ;;  %13376 = vmatprep.subr.bf16.mxu0 %v18532_v31 }
 0xa20   : > { %v11218_v34 = vpop.f32.mrf.mxu1  ;;  %v11259_v3 = vpop.f32.mrf.mxu0  ;;  %13059 = vmatmul.mubr.bf16.vlgmr.msra.gmra.mxu1 %v12864_v40  ;;  %13100 = vmatmul.mubr.bf16.vlgmr.msra.gmra.mxu0 %v12864_v40 }
 0xa21   : > { %13336 = vmatpush1.bf16.msra.mxu1 %v18527_v45  ;;  %13377 = vmatpush1.bf16.msra.mxu0 %v18530_v25  ;;  %v18589_v45 = vld [vmem:[%s26306_s9 + $0xda4] ss:$16 sps:$4 sm:$0xff]   ;;  %v18592_v25 = vld [vmem:[%s26306_s9 + $0xdac] ss:$16 sps:$4 sm:$0xff]  }
 0xa22   : > { %v11220_v52 = vpop.f32.mrf.mxu1  ;;  %v11261_v60 = vpop.f32.mrf.mxu0  ;;  %13337 = vmatprep.subr.bf16.mxu1 %v18535_v32  ;;  %13378 = vmatprep.subr.bf16.mxu0 %v18538_v35 }
 0xa23   : > { %v11270_v22 = vcombine.low %v11218_v34, %v11220_v52  ;;  %v11271_v6 = vcombine.low %v11259_v3, %v11261_v60  ;;  %13367 = vmatprep.mubr.bf16.mxu1 %v26823_v53  ;;  %13408 = vmatprep.mubr.bf16.mxu0 %v26823_v53  ;;  %v18590_v52 = vld [vmem:[%s26306_s9 + $0xda8] ss:$16 sps:$4 sm:$0xff]  }
 0xa24   : > { %v11222_v30 = vpop.f32.mrf.mxu1  ;;  %v11263_v2 = vpop.f32.mrf.mxu0 }
 0xa25   : > { %v11278_v41 = vrot.slane %v11270_v22, %v25190_v11  ;;  %v11285_v0 = vrot.slane %v11271_v6, %v25190_v11  ;;  %13338 = vmatpush1.bf16.msra.mxu1 %v18533_v24  ;;  %13379 = vmatpush1.bf16.msra.mxu0 %v18536_v43  ;;  %v18587_v43 = vld [vmem:[%s26306_s9 + $0xda0] ss:$16 sps:$4 sm:$0xff]   ;;  %v18598_v22 = vld [vmem:[%s26306_s9 + $0xd8c] ss:$16 sps:$4 sm:$0xff]  }
 0xa26   : > { %v11223_v54 = vpop.f32.mrf.mxu1  ;;  %v11264_v39 = vpop.f32.mrf.mxu0  ;;  %13339 = vmatprep.subr.bf16.mxu1 %v18541_v10  ;;  %13380 = vmatprep.subr.bf16.mxu0 %v18544_v13  ;;  %v18595_v13 = vld [vmem:[%s26306_s9 + $0xd84] ss:$16 sps:$4 sm:$0xff]   ;;  %v18593_v2 = vld [vmem:[%s26306_s9 + $0xd80] ss:$16 sps:$4 sm:$0xff]  }
 0xa27   : > { %v11286_v1 = vcombine.low %v11278_v41, %v11285_v0  ;;  %v18596_v41 = vld [vmem:[%s26306_s9 + $0xd88] ss:$16 sps:$4 sm:$0xff]   ;;  %v18601_v0 = vld [vmem:[%s26306_s9 + $0xd64] ss:$16 sps:$4 sm:$0xff]   ;;  %v18599_v54 = vld [vmem:[%s26306_s9 + $0xd60] ss:$16 sps:$4 sm:$0xff]  }
 0xa28   : > { %v18602_v39 = vld [vmem:[%s26306_s9 + $0xd68] ss:$16 sps:$4 sm:$0xff]  }
 0xa29   : > { %v11293_v8 = vrot.slane %v11286_v1, %v25190_v11  ;;  %13340 = vmatpush1.bf16.msra.mxu1 %v18539_v15  ;;  %13381 = vmatpush1.bf16.msra.mxu0 %v18542_v16  ;;  %v18604_v15 = vld [vmem:[%s26306_s9 + $0xd6c] ss:$16 sps:$4 sm:$0xff]   ;;  %v18605_v1 = vld [vmem:[%s26306_s9 + $0xd40] ss:$16 sps:$4 sm:$0xff]  }
 0xa2a   : > { %13341 = vmatprep.subr.bf16.mxu1 %v18547_v4  ;;  %13382 = vmatprep.subr.bf16.mxu0 %v18550_v50  ;;  %v18607_v4 = vld [vmem:[%s26306_s9 + $0xd44] ss:$16 sps:$4 sm:$0xff]   ;;  %v18610_v50 = vld [vmem:[%s26306_s9 + $0xd4c] ss:$16 sps:$4 sm:$0xff]  }
 0xa2b   : > { %v25772_v63 = vadd.f32 %v11293_v8, %v25667_v9  ;;  %v18571_v9 = vld [vmem:[%s26306_s9 + $0xc04] ss:$16 sps:$4 sm:$0xff]   ;;  %v18608_v8 = vld [vmem:[%s26306_s9 + $0xd48] ss:$16 sps:$4 sm:$0xff]  }
 0xa2d   : > { %13342 = vmatpush1.bf16.msra.mxu1 %v18545_v18  ;;  %13383 = vmatpush1.bf16.msra.mxu0 %v18548_v5  ;;  %v18613_v18 = vld [vmem:[%s26306_s9 + $0xd24] ss:$16 sps:$4 sm:$0xff]   ;;  %v18616_v5 = vld [vmem:[%s26306_s9 + $0xd2c] ss:$16 sps:$4 sm:$0xff]  }
 0xa2e   : > { %13343 = vmatprep.subr.bf16.mxu1 %v18553_v23  ;;  %13384 = vmatprep.subr.bf16.mxu0 %v18556_v49  ;;  %v18611_v23 = vld [vmem:[%s26306_s9 + $0xd20] ss:$16 sps:$4 sm:$0xff]   ;;  %v18614_v49 = vld [vmem:[%s26306_s9 + $0xd28] ss:$16 sps:$4 sm:$0xff]  }
 0xa31   : > { %13344 = vmatpush1.bf16.msra.mxu1 %v18551_v56  ;;  %13385 = vmatpush1.bf16.msra.mxu0 %v18554_v58  ;;  %v18622_v56 = vld [vmem:[%s26306_s9 + $0xd0c] ss:$16 sps:$4 sm:$0xff]   ;;  %v18617_v58 = vld [vmem:[%s26306_s9 + $0xd00] ss:$16 sps:$4 sm:$0xff]  }
 0xa32   : > { %13345 = vmatprep.subr.bf16.mxu1 %v18559_v48  ;;  %13386 = vmatprep.subr.bf16.mxu0 %v18562_v21  ;;  %v18620_v48 = vld [vmem:[%s26306_s9 + $0xd08] ss:$16 sps:$4 sm:$0xff]   ;;  %v18625_v21 = vld [vmem:[%s26306_s9 + $0xee4] ss:$16 sps:$4 sm:$0xff]  }
 0xa35   : > { %13346 = vmatpush1.bf16.msra.mxu1 %v18557_v47  ;;  %13387 = vmatpush1.bf16.msra.mxu0 %v18560_v33  ;;  %v18628_v47 = vld [vmem:[%s26306_s9 + $0xeec] ss:$16 sps:$4 sm:$0xff]   ;;  %v18623_v33 = vld [vmem:[%s26306_s9 + $0xee0] ss:$16 sps:$4 sm:$0xff]  }
 0xa36   : > { %13347 = vmatprep.subr.bf16.mxu1 %v18565_v61  ;;  %13388 = vmatprep.subr.bf16.mxu0 %v18568_v59  ;;  %v18626_v61 = vld [vmem:[%s26306_s9 + $0xee8] ss:$16 sps:$4 sm:$0xff]   ;;  %v13480_v59 = vrot.slane %v25818_v7, 3 }
 0xa39   : > { %13348 = vmatpush1.bf16.msra.mxu1 %v18563_v55  ;;  %13389 = vmatpush1.bf16.msra.mxu0 %v18566_v20  ;;  %v18631_v55 = vld [vmem:[%s26306_s9 + $0xec4] ss:$16 sps:$4 sm:$0xff]   ;;  %v18634_v20 = vld [vmem:[%s26306_s9 + $0xecc] ss:$16 sps:$4 sm:$0xff]  }
 0xa3a   : > { %13349 = vmatprep.subr.bf16.mxu1 %v18571_v9  ;;  %13390 = vmatprep.subr.bf16.mxu0 %v18574_v28 }
 0xa3d   : > { %13350 = vmatpush1.bf16.msra.mxu1 %v18569_v38  ;;  %13391 = vmatpush1.bf16.msra.mxu0 %v18572_v46  ;;  %v18629_v38 = vld [vmem:[%s26306_s9 + $0xec0] ss:$16 sps:$4 sm:$0xff]   ;;  %v18632_v46 = vld [vmem:[%s26306_s9 + $0xec8] ss:$16 sps:$4 sm:$0xff]  }
 0xa3e   : > { %13642 = vmatprep.subr.bf16.mxu1 %v18577_v19  ;;  %13683 = vmatprep.subr.bf16.mxu0 %v18580_v14  ;;  %v18637_v14 = vld [vmem:[%s26306_s9 + $0xea4] ss:$16 sps:$4 sm:$0xff]  }
 0xa40   : > { %v11524_v12 = vpop.f32.mrf.mxu1  ;;  %v11565_v17 = vpop.f32.mrf.mxu0  ;;  %13368 = vmatmul.mubr.bf16.vlgmr.msra.gmra.mxu1 %v13173_v29  ;;  %13409 = vmatmul.mubr.bf16.vlgmr.msra.gmra.mxu0 %v13173_v29 }
 0xa41   : > { %13643 = vmatpush1.bf16.msra.mxu1 %v18575_v42  ;;  %13684 = vmatpush1.bf16.msra.mxu0 %v18578_v57  ;;  %v18640_v42 = vld [vmem:[%s26306_s9 + $0xeac] ss:$16 sps:$4 sm:$0xff]  }
 0xa42   : > { %v11526_v27 = vpop.f32.mrf.mxu1  ;;  %v11567_v31 = vpop.f32.mrf.mxu0  ;;  %13644 = vmatprep.subr.bf16.mxu1 %v18583_v62  ;;  %13685 = vmatprep.subr.bf16.mxu0 %v18586_v37 }
 0xa43   : > { %v11576_v40 = vcombine.low %v11524_v12, %v11526_v27  ;;  %v11577_v32 = vcombine.low %v11565_v17, %v11567_v31  ;;  %13674 = vmatprep.mubr.bf16.mxu1 %v26823_v53  ;;  %13715 = vmatprep.mubr.bf16.mxu0 %v26823_v53 }
 0xa44   : > { %v11528_v35 = vpop.f32.mrf.mxu1  ;;  %v11569_v34 = vpop.f32.mrf.mxu0 }
 0xa45   : > { %v11584_v3 = vrot.slane %v11576_v40, %v25190_v11  ;;  %v11591_v24 = vrot.slane %v11577_v32, %v25190_v11  ;;  %13645 = vmatpush1.bf16.msra.mxu1 %v18581_v44  ;;  %13686 = vmatpush1.bf16.msra.mxu0 %v18584_v51  ;;  %v18635_v44 = vld [vmem:[%s26306_s9 + $0xea0] ss:$16 sps:$4 sm:$0xff]   ;;  %v18638_v51 = vld [vmem:[%s26306_s9 + $0xea8] ss:$16 sps:$4 sm:$0xff]  }
 0xa46   : > { %v11529_v60 = vpop.f32.mrf.mxu1  ;;  %v11570_v10 = vpop.f32.mrf.mxu0  ;;  %13646 = vmatprep.subr.bf16.mxu1 %v18589_v45  ;;  %13687 = vmatprep.subr.bf16.mxu0 %v18592_v25  ;;  %v18643_v45 = vld [vmem:[%s26306_s9 + $0xe84] ss:$16 sps:$4 sm:$0xff]   ;;  %v18646_v25 = vld [vmem:[%s26306_s9 + $0xe8c] ss:$16 sps:$4 sm:$0xff]   ;;  %v18641_v35 = vld [vmem:[%s26306_s9 + $0xe80] ss:$16 sps:$4 sm:$0xff]  }
 0xa47   : > { %v11592_v6 = vcombine.low %v11584_v3, %v11591_v24  ;;  %v18644_v34 = vld [vmem:[%s26306_s9 + $0xe88] ss:$16 sps:$4 sm:$0xff]   ;;  %v18649_v3 = vld [vmem:[%s26306_s9 + $0xe64] ss:$16 sps:$4 sm:$0xff]   ;;  %v18652_v24 = vld [vmem:[%s26306_s9 + $0xe6c] ss:$16 sps:$4 sm:$0xff]  }
 0xa48   : > { %v18650_v60 = vld [vmem:[%s26306_s9 + $0xe68] ss:$16 sps:$4 sm:$0xff]   ;;  %v18655_v10 = vld [vmem:[%s26306_s9 + $0xe44] ss:$16 sps:$4 sm:$0xff]  }
 0xa49   : > { %v11599_v30 = vrot.slane %v11592_v6, %v25190_v11  ;;  %13647 = vmatpush1.bf16.msra.mxu1 %v18587_v43  ;;  %13688 = vmatpush1.bf16.msra.mxu0 %v18590_v52  ;;  %v18647_v52 = vld [vmem:[%s26306_s9 + $0xe60] ss:$16 sps:$4 sm:$0xff]   ;;  %v18656_v6 = vld [vmem:[%s26306_s9 + $0xe48] ss:$16 sps:$4 sm:$0xff]  }
 0xa4a   : > { %13648 = vmatprep.subr.bf16.mxu1 %v18595_v13  ;;  %13689 = vmatprep.subr.bf16.mxu0 %v18598_v22  ;;  %v18658_v13 = vld [vmem:[%s26306_s9 + $0xe4c] ss:$16 sps:$4 sm:$0xff]   ;;  %v18653_v22 = vld [vmem:[%s26306_s9 + $0xe40] ss:$16 sps:$4 sm:$0xff]  }
 0xa4b   : > { %v25881_v16 = vadd.f32 %v11599_v30, %v25772_v63  ;;  %v18619_v63 = vld [vmem:[%s26306_s9 + $0xd04] ss:$16 sps:$4 sm:$0xff]  }
 0xa4c   : > { %v18661_v30 = vld [vmem:[%s26306_s9 + $0xe24] ss:$16 sps:$4 sm:$0xff]  }
 0xa4d   : > { %13649 = vmatpush1.bf16.msra.mxu1 %v18593_v2  ;;  %13690 = vmatpush1.bf16.msra.mxu0 %v18596_v41  ;;  %v18664_v2 = vld [vmem:[%s26306_s9 + $0xe2c] ss:$16 sps:$4 sm:$0xff]   ;;  %v18659_v41 = vld [vmem:[%s26306_s9 + $0xe20] ss:$16 sps:$4 sm:$0xff]  }
 0xa4e   : > { %13650 = vmatprep.subr.bf16.mxu1 %v18601_v0  ;;  %13691 = vmatprep.subr.bf16.mxu0 %v18604_v15  ;;  %v18662_v0 = vld [vmem:[%s26306_s9 + $0xe28] ss:$16 sps:$4 sm:$0xff]   ;;  %v18667_v15 = vld [vmem:[%s26306_s9 + $0xe04] ss:$16 sps:$4 sm:$0xff]  }
 0xa51   : > { %13651 = vmatpush1.bf16.msra.mxu1 %v18599_v54  ;;  %13692 = vmatpush1.bf16.msra.mxu0 %v18602_v39  ;;  %v18665_v54 = vld [vmem:[%s26306_s9 + $0xe00] ss:$16 sps:$4 sm:$0xff]   ;;  %v18668_v39 = vld [vmem:[%s26306_s9 + $0xe08] ss:$16 sps:$4 sm:$0xff]  }
 0xa52   : > { %13652 = vmatprep.subr.bf16.mxu1 %v18607_v4  ;;  %13693 = vmatprep.subr.bf16.mxu0 %v18610_v50  ;;  %v18673_v4 = vld [vmem:[%s26306_s9 + $0xfe4] ss:$16 sps:$4 sm:$0xff]   ;;  %v18676_v50 = vld [vmem:[%s26306_s9 + $0xfec] ss:$16 sps:$4 sm:$0xff]  }
 0xa55   : > { %13653 = vmatpush1.bf16.msra.mxu1 %v18605_v1  ;;  %13694 = vmatpush1.bf16.msra.mxu0 %v18608_v8  ;;  %v18671_v1 = vld [vmem:[%s26306_s9 + $0xfe0] ss:$16 sps:$4 sm:$0xff]   ;;  %v18674_v8 = vld [vmem:[%s26306_s9 + $0xfe8] ss:$16 sps:$4 sm:$0xff]  }
 0xa56   : > { %13654 = vmatprep.subr.bf16.mxu1 %v18613_v18  ;;  %13695 = vmatprep.subr.bf16.mxu0 %v18616_v5  ;;  %v26044_v18 = vpack.c.bf16 %v24635_v36, %v24635_v36  ;;  %v18679_v5 = vld [vmem:[%s26306_s9 + $0xfc4] ss:$16 sps:$4 sm:$0xff]   ;;  %v18677_v36 = vld [vmem:[%s26306_s9 + $0xfc0] ss:$16 sps:$4 sm:$0xff]  }
 0xa59   : > { %13655 = vmatpush1.bf16.msra.mxu1 %v18611_v23  ;;  %13696 = vmatpush1.bf16.msra.mxu0 %v18614_v49  ;;  %v18682_v23 = vld [vmem:[%s26306_s9 + $0xfcc] ss:$16 sps:$4 sm:$0xff]  }
 0xa5a   : > { %13656 = vmatprep.subr.bf16.mxu1 %v18619_v63  ;;  %13697 = vmatprep.subr.bf16.mxu0 %v18622_v56  ;;  %v18680_v56 = vld [vmem:[%s26306_s9 + $0xfc8] ss:$16 sps:$4 sm:$0xff]  }
 0xa5d   : > { %13657 = vmatpush1.bf16.msra.mxu1 %v18617_v58  ;;  %13698 = vmatpush1.bf16.msra.mxu0 %v18620_v48 }
 0xa5e   : > { %13948 = vmatprep.subr.bf16.mxu1 %v18625_v21  ;;  %13989 = vmatprep.subr.bf16.mxu0 %v18628_v47  ;;  %v18685_v21 = vld [vmem:[%s26306_s9 + $0xfa4] ss:$16 sps:$4 sm:$0xff]   ;;  %v18688_v47 = vld [vmem:[%s26306_s9 + $0xfac] ss:$16 sps:$4 sm:$0xff]  }
 0xa60   : > { %v11832_v9 = vpop.f32.mrf.mxu1  ;;  %v11873_v28 = vpop.f32.mrf.mxu0  ;;  %13675 = vmatmul.mubr.bf16.vlgmr.msra.gmra.mxu1 %v13480_v59  ;;  %13716 = vmatmul.mubr.bf16.vlgmr.msra.gmra.mxu0 %v13480_v59 }
 0xa61   : > { %13949 = vmatpush1.bf16.msra.mxu1 %v18623_v33  ;;  %13990 = vmatpush1.bf16.msra.mxu0 %v18626_v61 }
 0xa62   : > { %v11834_v7 = vpop.f32.mrf.mxu1  ;;  %v11875_v19 = vpop.f32.mrf.mxu0  ;;  %13950 = vmatprep.subr.bf16.mxu1 %v18631_v55  ;;  %13991 = vmatprep.subr.bf16.mxu0 %v18634_v20 }
 0xa63   : > { %v11884_v57 = vcombine.low %v11832_v9, %v11834_v7  ;;  %v11885_v29 = vcombine.low %v11873_v28, %v11875_v19  ;;  %13980 = vmatprep.mubr.bf16.mxu1 %v26823_v53  ;;  %14021 = vmatprep.mubr.bf16.mxu0 %v26823_v53  ;;  %v18683_v28 = vld [vmem:[%s26306_s9 + $0xfa0] ss:$16 sps:$4 sm:$0xff]   ;;  %v18694_v19 = vld [vmem:[%s26306_s9 + $0xf8c] ss:$16 sps:$4 sm:$0xff]  }
 0xa64   : > { %v11836_v62 = vpop.f32.mrf.mxu1  ;;  %v11877_v37 = vpop.f32.mrf.mxu0 }
 0xa65   : > { %v11892_v12 = vrot.slane %v11884_v57, %v25190_v11  ;;  %v11899_v17 = vrot.slane %v11885_v29, %v25190_v11  ;;  %13951 = vmatpush1.bf16.msra.mxu1 %v18629_v38  ;;  %13992 = vmatpush1.bf16.msra.mxu0 %v18632_v46  ;;  %v18686_v38 = vld [vmem:[%s26306_s9 + $0xfa8] ss:$16 sps:$4 sm:$0xff]   ;;  %v18689_v57 = vld [vmem:[%s26306_s9 + $0xf80] ss:$16 sps:$4 sm:$0xff]   ;;  %v18697_v62 = vld [vmem:[%s26306_s9 + $0xf64] ss:$16 sps:$4 sm:$0xff]  }
 0xa66   : > { %v11837_v27 = vpop.f32.mrf.mxu1  ;;  %v11878_v31 = vpop.f32.mrf.mxu0  ;;  %13952 = vmatprep.subr.bf16.mxu1 %v18637_v14  ;;  %13993 = vmatprep.subr.bf16.mxu0 %v18640_v42  ;;  %v18692_v29 = vld [vmem:[%s26306_s9 + $0xf88] ss:$16 sps:$4 sm:$0xff]   ;;  %v18700_v37 = vld [vmem:[%s26306_s9 + $0xf6c] ss:$16 sps:$4 sm:$0xff]  }
 0xa67   : > { %v11900_v40 = vcombine.low %v11892_v12, %v11899_v17  ;;  %v18695_v17 = vld [vmem:[%s26306_s9 + $0xf60] ss:$16 sps:$4 sm:$0xff]   ;;  %v18706_v27 = vld [vmem:[%s26306_s9 + $0xf4c] ss:$16 sps:$4 sm:$0xff]  }
 0xa68   : > { %v18701_v31 = vld [vmem:[%s26306_s9 + $0xf40] ss:$16 sps:$4 sm:$0xff]  }
 0xa69   : > { %v11907_v32 = vrot.slane %v11900_v40, %v25190_v11  ;;  %13953 = vmatpush1.bf16.msra.mxu1 %v18635_v44  ;;  %13994 = vmatpush1.bf16.msra.mxu0 %v18638_v51  ;;  %v18698_v44 = vld [vmem:[%s26306_s9 + $0xf68] ss:$16 sps:$4 sm:$0xff]   ;;  %v18703_v51 = vld [vmem:[%s26306_s9 + $0xf44] ss:$16 sps:$4 sm:$0xff]   ;;  %v18712_v40 = vld [vmem:[%s26306_s9 + $0xf2c] ss:$16 sps:$4 sm:$0xff]  }
 0xa6a   : > { %13954 = vmatprep.subr.bf16.mxu1 %v18643_v45  ;;  %13995 = vmatprep.subr.bf16.mxu0 %v18646_v25  ;;  %v18704_v45 = vld [vmem:[%s26306_s9 + $0xf48] ss:$16 sps:$4 sm:$0xff]   ;;  %v18709_v25 = vld [vmem:[%s26306_s9 + $0xf24] ss:$16 sps:$4 sm:$0xff]  }
 0xa6b   : > { %v25986_v43 = vadd.f32 %v11907_v32, %v25881_v16  ;;  %v18670_v16 = vld [vmem:[%s26306_s9 + $0xe0c] ss:$16 sps:$4 sm:$0xff]   ;;  %v18707_v32 = vld [vmem:[%s26306_s9 + $0xf20] ss:$16 sps:$4 sm:$0xff]  }
 0xa6d   : > { %13955 = vmatpush1.bf16.msra.mxu1 %v18641_v35  ;;  %13996 = vmatpush1.bf16.msra.mxu0 %v18644_v34  ;;  %v18710_v35 = vld [vmem:[%s26306_s9 + $0xf28] ss:$16 sps:$4 sm:$0xff]   ;;  %v18715_v34 = vld [vmem:[%s26306_s9 + $0xf04] ss:$16 sps:$4 sm:$0xff]  }
 0xa6e   : > { %13956 = vmatprep.subr.bf16.mxu1 %v18649_v3  ;;  %13997 = vmatprep.subr.bf16.mxu0 %v18652_v24  ;;  %v18718_v3 = vld [vmem:[%s26306_s9 + $0xf0c] ss:$16 sps:$4 sm:$0xff]   ;;  %v18713_v24 = vld [vmem:[%s26306_s9 + $0xf00] ss:$16 sps:$4 sm:$0xff]  }
 0xa71   : > { %13957 = vmatpush1.bf16.msra.mxu1 %v18647_v52  ;;  %13998 = vmatpush1.bf16.msra.mxu0 %v18650_v60  ;;  %v14094_v52 = vrot.slane %v26044_v18, 1 }
 0xa72   : > { %13958 = vmatprep.subr.bf16.mxu1 %v18655_v10  ;;  %13999 = vmatprep.subr.bf16.mxu0 %v18658_v13 }
 0xa75   : > { %13959 = vmatpush1.bf16.msra.mxu1 %v18653_v22  ;;  %14000 = vmatpush1.bf16.msra.mxu0 %v18656_v6 }
 0xa76   : > { %13960 = vmatprep.subr.bf16.mxu1 %v18661_v30  ;;  %14001 = vmatprep.subr.bf16.mxu0 %v18664_v2 }
 0xa79   : > { %13961 = vmatpush1.bf16.msra.mxu1 %v18659_v41  ;;  %14002 = vmatpush1.bf16.msra.mxu0 %v18662_v0 }
 0xa7a   : > { %13962 = vmatprep.subr.bf16.mxu1 %v18667_v15  ;;  %14003 = vmatprep.subr.bf16.mxu0 %v18670_v16 }
 0xa7d   : > { %13963 = vmatpush1.bf16.msra.mxu1 %v18665_v54  ;;  %14004 = vmatpush1.bf16.msra.mxu0 %v18668_v39 }
 0xa7e   : > { %14256 = vmatprep.subr.bf16.mxu1 %v18673_v4  ;;  %14297 = vmatprep.subr.bf16.mxu0 %v18676_v50 }
 0xa80   : > { %v12138_v49 = vpop.f32.mrf.mxu1  ;;  %v12179_v63 = vpop.f32.mrf.mxu0  ;;  %13981 = vmatmul.mubr.bf16.vlgmr.msra.gmra.mxu1 %v26044_v18  ;;  %14022 = vmatmul.mubr.bf16.vlgmr.msra.gmra.mxu0 %v26044_v18 }
 0xa81   : > { %14257 = vmatpush1.bf16.msra.mxu1 %v18671_v1  ;;  %14298 = vmatpush1.bf16.msra.mxu0 %v18674_v8 }
 0xa82   : > { %v12140_v58 = vpop.f32.mrf.mxu1  ;;  %v12181_v48 = vpop.f32.mrf.mxu0  ;;  %14258 = vmatprep.subr.bf16.mxu1 %v18679_v5  ;;  %14299 = vmatprep.subr.bf16.mxu0 %v18682_v23 }
 0xa83   : > { %v12190_v33 = vcombine.low %v12138_v49, %v12140_v58  ;;  %v12191_v61 = vcombine.low %v12179_v63, %v12181_v48  ;;  %14288 = vmatprep.mubr.bf16.mxu1 %v26823_v53  ;;  %14329 = vmatprep.mubr.bf16.mxu0 %v26823_v53  ;;  %v18691_v53 = vld [vmem:[%s26306_s9 + $0xf84] ss:$16 sps:$4 sm:$0xff]  }
 0xa84   : > { %v12142_v59 = vpop.f32.mrf.mxu1  ;;  %v12183_v55 = vpop.f32.mrf.mxu0 }
 0xa85   : > { %v12198_v20 = vrot.slane %v12190_v33, %v25190_v11  ;;  %v12205_v9 = vrot.slane %v12191_v61, %v25190_v11  ;;  %14259 = vmatpush1.bf16.msra.mxu1 %v18677_v36  ;;  %14300 = vmatpush1.bf16.msra.mxu0 %v18680_v56  ;;  %v18719_v59 = vld [vmem:[%s26308_s11 + $0x78] sm:$0xff]  }
 0xa86   : > { %v12143_v46 = vpop.f32.mrf.mxu1  ;;  %v12184_v7 = vpop.f32.mrf.mxu0  ;;  %14260 = vmatprep.subr.bf16.mxu1 %v18685_v21  ;;  %14301 = vmatprep.subr.bf16.mxu0 %v18688_v47  ;;  %v18720_v55 = vld [vmem:[%s26308_s11 + $0xf8] sm:$0xff]  }
 0xa87   : > { %v12206_v14 = vcombine.low %v12198_v20, %v12205_v9  ;;  %v18721_v20 = vld [vmem:[%s26308_s11 + $0x38] sm:$0xff]   ;;  %v18725_v46 = vld [vmem:[%s26308_s11 + $0x30] sm:$0xff]  }
 0xa88   : > { %v18722_v9 = vld [vmem:[%s26308_s11 + $0xb8] sm:$0xff]   ;;  %v18726_v7 = vld [vmem:[%s26308_s11 + $0xb0] sm:$0xff]  }
 0xa89   : > { %v12213_v42 = vrot.slane %v12206_v14, %v25190_v11  ;;  %14261 = vmatpush1.bf16.msra.mxu1 %v18683_v28  ;;  %14302 = vmatpush1.bf16.msra.mxu0 %v18686_v38  ;;  %v18723_v28 = vld [vmem:[%s26308_s11 + $0x70] sm:$0xff]   ;;  %v18729_v14 = vld [vmem:[%s26308_s11 + $0x28] sm:$0xff]  }
 0xa8a   : > { %14262 = vmatprep.subr.bf16.mxu1 %v18691_v53  ;;  %14303 = vmatprep.subr.bf16.mxu0 %v18694_v19  ;;  %v18724_v38 = vld [vmem:[%s26308_s11 + $0xf0] sm:$0xff]   ;;  %v18727_v53 = vld [vmem:[%s26308_s11 + $0x68] sm:$0xff]  }
 0xa8b   : > { %v12215_v12 = vadd.f32 %v12213_v42, %v25986_v43  ;;  %v18716_v43 = vld [vmem:[%s26306_s9 + $0xf08] ss:$16 sps:$4 sm:$0xff]  }
 0xa8c   : > { %v18728_v19 = vld [vmem:[%s26308_s11 + $0xe8] sm:$0xff]  }
 0xa8d   : > { %14263 = vmatpush1.bf16.msra.mxu1 %v18689_v57  ;;  %14304 = vmatpush1.bf16.msra.mxu0 %v18692_v29  ;;  %v18730_v42 = vld [vmem:[%s26308_s11 + $0xa8] sm:$0xff]  }
 0xa8e   : > { %14264 = vmatprep.subr.bf16.mxu1 %v18697_v62  ;;  %14305 = vmatprep.subr.bf16.mxu0 %v18700_v37  ;;  %v18731_v62 = vld [vmem:[%s26308_s11 + $0x60] sm:$0xff]  }
 0xa8f   : > { %v18732_v37 = vld [vmem:[%s26308_s11 + $0xe0] sm:$0xff]  }
 0xa91   : > { %14265 = vmatpush1.bf16.msra.mxu1 %v18695_v17  ;;  %14306 = vmatpush1.bf16.msra.mxu0 %v18698_v44  ;;  %v18734_v17 = vld [vmem:[%s26308_s11 + $0xa0] sm:$0xff]  }
 0xa92   : > { %14266 = vmatprep.subr.bf16.mxu1 %v18703_v51  ;;  %14307 = vmatprep.subr.bf16.mxu0 %v18706_v27 }
 0xa95   : > { %14267 = vmatpush1.bf16.msra.mxu1 %v18701_v31  ;;  %14308 = vmatpush1.bf16.msra.mxu0 %v18704_v45 }
 0xa96   : > { %14268 = vmatprep.subr.bf16.mxu1 %v18709_v25  ;;  %14309 = vmatprep.subr.bf16.mxu0 %v18712_v40 }
 0xa99   : > { %14269 = vmatpush1.bf16.msra.mxu1 %v18707_v32  ;;  %14310 = vmatpush1.bf16.msra.mxu0 %v18710_v35 }
 0xa9a   : > { %14270 = vmatprep.subr.bf16.mxu1 %v18715_v34  ;;  %14311 = vmatprep.subr.bf16.mxu0 %v18718_v3 }
 0xa9d   : > { %14271 = vmatpush1.bf16.msra.mxu1 %v18713_v24  ;;  %14312 = vmatpush1.bf16.msra.mxu0 %v18716_v43 }
 0xa9e   : > { %16934 = vmatprep.subr.bf16.mxu1 %v18719_v59  ;;  %16956 = vmatprep.subr.bf16.mxu0 %v18720_v55 }
 0xaa0   : > { %v12446_v60 = vpop.f32.mrf.mxu1  ;;  %v12487_v10 = vpop.f32.mrf.mxu0  ;;  %14289 = vmatmul.mubr.bf16.vlgmr.msra.gmra.mxu1 %v14094_v52  ;;  %14330 = vmatmul.mubr.bf16.vlgmr.msra.gmra.mxu0 %v14094_v52  ;;  %v18735_v52 = vld [vmem:[%s26308_s11 + $0x58] sm:$0xff]  }
 0xaa1   : > { %16935 = vmatpush3.bf16.msra.mxu1 %v18721_v20  ;;  %16957 = vmatpush3.bf16.msra.mxu0 %v18722_v9 }
 0xaa2   : > { %v12448_v13 = vpop.f32.mrf.mxu1  ;;  %v12489_v22 = vpop.f32.mrf.mxu0  ;;  %16936 = vmatprep.subr.bf16.mxu1 %v18723_v28  ;;  %16958 = vmatprep.subr.bf16.mxu0 %v18724_v38 }
 0xaa3   : > { %v12498_v6 = vcombine.low %v12446_v60, %v12448_v13  ;;  %v12499_v30 = vcombine.low %v12487_v10, %v12489_v22  ;;  %v18736_v60 = vld [vmem:[%s26308_s11 + $0xd8] sm:$0xff]   ;;  %v18739_v22 = vld [vmem:[%s26308_s11 + $0x50] sm:$0xff]  }
 0xaa4   : > { %v12450_v2 = vpop.f32.mrf.mxu1  ;;  %v12491_v41 = vpop.f32.mrf.mxu0  ;;  %v18737_v10 = vld [vmem:[%s26308_s11 + $0x18] sm:$0xff]  }
 0xaa5   : > { %v12506_v0 = vrot.slane %v12498_v6, %v25190_v11  ;;  %v12513_v15 = vrot.slane %v12499_v30, %v25190_v11  ;;  %16937 = vmatpush3.bf16.msra.mxu1 %v18725_v46  ;;  %16959 = vmatpush3.bf16.msra.mxu0 %v18726_v7  ;;  %v18738_v13 = vld [vmem:[%s26308_s11 + $0x98] sm:$0xff]   ;;  %v18740_v6 = vld [vmem:[%s26308_s11 + $0xd0] sm:$0xff]   ;;  %v18743_v41 = vld [vmem:[%s26308_s11 + $0x48] sm:$0xff]  }
 0xaa6   : > { %v12451_v16 = vpop.f32.mrf.mxu1  ;;  %v12492_v54 = vpop.f32.mrf.mxu0  ;;  %16938 = vmatprep.subr.bf16.mxu1 %v18727_v53  ;;  %16960 = vmatprep.subr.bf16.mxu0 %v18728_v19  ;;  %v18741_v30 = vld [vmem:[%s26308_s11 + $0x10] sm:$0xff]  }
 0xaa7   : > { %v12514_v39 = vcombine.low %v12506_v0, %v12513_v15  ;;  %v18742_v2 = vld [vmem:[%s26308_s11 + $0x90] sm:$0xff]   ;;  %v18744_v0 = vld [vmem:[%s26308_s11 + $0xc8] sm:$0xff]   ;;  %v18747_v54 = vld [vmem:[%s26308_s11 + $0x40] sm:$0xff]  }
 0xaa8   : > { %v18745_v15 = vld [vmem:[%s26308_s11 + $0x8] sm:$0xff]  }
 0xaa9   : > { %v12521_v4 = vrot.slane %v12514_v39, %v25190_v11  ;;  %16939 = vmatpush3.bf16.msra.mxu1 %v18729_v14  ;;  %16961 = vmatpush3.bf16.msra.mxu0 %v18730_v42  ;;  %v18746_v16 = vld [vmem:[%s26308_s11 + $0x88] sm:$0xff]   ;;  %v18748_v39 = vld [vmem:[%s26308_s11 + $0xc0] sm:$0xff]  }
 0xaaa   : > { %16940 = vmatprep.subr.bf16.mxu1 %v18731_v62  ;;  %16962 = vmatprep.subr.bf16.mxu0 %v18732_v37 }
 0xaab   : > { %v12523_v50 = vadd.f32 %v12521_v4, %v12215_v12  ;;  %v18733_v12 = vld [vmem:[%s26308_s11 + $0x20] sm:$0xff]  }
 0xaac   : > { %v18749_v4 = vld [vmem:[%s26308_s11] sm:$0xff]  }
 0xaad   : > { %16941 = vmatpush3.bf16.msra.mxu1 %v18733_v12  ;;  %16963 = vmatpush3.bf16.msra.mxu0 %v18734_v17 }
 0xaae   : > { %16942 = vmatprep.subr.bf16.mxu1 %v18735_v52  ;;  %16964 = vmatprep.subr.bf16.mxu0 %v18736_v60 }
 0xab1   : > { %16943 = vmatpush3.bf16.msra.mxu1 %v18737_v10  ;;  %16965 = vmatpush3.bf16.msra.mxu0 %v18738_v13 }
 0xab2   : > { %16944 = vmatprep.subr.bf16.mxu1 %v18739_v22  ;;  %16966 = vmatprep.subr.bf16.mxu0 %v18740_v6 }
 0xab5   : > { %16945 = vmatpush3.bf16.msra.mxu1 %v18741_v30  ;;  %16967 = vmatpush3.bf16.msra.mxu0 %v18742_v2 }
 0xab6   : > { %16946 = vmatprep.subr.bf16.mxu1 %v18743_v41  ;;  %16968 = vmatprep.subr.bf16.mxu0 %v18744_v0 }
 0xab9   : > { %16947 = vmatpush3.bf16.msra.mxu1 %v18745_v15  ;;  %16969 = vmatpush3.bf16.msra.mxu0 %v18746_v16 }
 0xaba   : > { %16948 = vmatprep.subr.bf16.mxu1 %v18747_v54  ;;  %16970 = vmatprep.subr.bf16.mxu0 %v18748_v39  ;;  %v14376_v39 = vsub.s32 1, %v25175_v26 }
 0xabd   : > { %16949 = vmatpush3.bf16.msra.mxu1 %v18749_v4 }
 0xac0   : > { %v12753_v1 = vpop.f32.mrf.mxu1  ;;  %v12794_v8 = vpop.f32.mrf.mxu0 }
 0xac2   : > { %v12755_v18 = vpop.f32.mrf.mxu1  ;;  %v12796_v5 = vpop.f32.mrf.mxu0 }
 0xac3   : > { %v12805_v23 = vcombine.low %v12753_v1, %v12755_v18  ;;  %v12806_v49 = vcombine.low %v12794_v8, %v12796_v5 }
 0xac4   : > { %v12757_v63 = vpop.f32.mrf.mxu1  ;;  %v12798_v36 = vpop.f32.mrf.mxu0 }
 0xac5   : > { %v12813_v56 = vrot.slane %v12805_v23, %v25190_v11  ;;  %v12820_v58 = vrot.slane %v12806_v49, %v25190_v11 }
 0xac6   : > { %v12758_v48 = vpop.f32.mrf.mxu1  ;;  %v12799_v21 = vpop.f32.mrf.mxu0 }
 0xac7   : > { %v12821_v47 = vcombine.low %v12813_v56, %v12820_v58 }
 0xac9   : > { %v12828_v33 = vrot.slane %v12821_v47, %v25190_v11 }
 0xacb   : > { %v12830_v61 = vadd.f32 %v12828_v33, %v12523_v50  ;;  %v18750_v50 = vld [vmem:[%s26308_s11 + $0x80] sm:$0xff]  }
 0xacc   : > { %16971 = vmatpush3.bf16.msra.mxu0 %v18750_v50  ;;  %v14384_v50 = vsub.s32 3, %v25175_v26 }
 0xae0   : > { %v13060_v57 = vpop.f32.mrf.mxu1  ;;  %v13101_v29 = vpop.f32.mrf.mxu0 }
 0xae2   : > { %v13062_v44 = vpop.f32.mrf.mxu1  ;;  %v13103_v51 = vpop.f32.mrf.mxu0 }
 0xae3   : > { %v13112_v27 = vcombine.low %v13060_v57, %v13062_v44  ;;  %v13113_v31 = vcombine.low %v13101_v29, %v13103_v51 }
 0xae4   : > { %v13064_v45 = vpop.f32.mrf.mxu1  ;;  %v13105_v25 = vpop.f32.mrf.mxu0 }
 0xae5   : > { %v13120_v40 = vrot.slane %v13112_v27, %v25190_v11  ;;  %v13127_v32 = vrot.slane %v13113_v31, %v25190_v11 }
 0xae6   : > { %v13065_v35 = vpop.f32.mrf.mxu1  ;;  %v13106_v34 = vpop.f32.mrf.mxu0 }
 0xae7   : > { %v13128_v3 = vcombine.low %v13120_v40, %v13127_v32 }
 0xae9   : > { %v13135_v24 = vrot.slane %v13128_v3, %v25190_v11 }
 0xaeb   : > { %v13137_v43 = vadd.f32 %v13135_v24, %v12830_v61 }
 0xb00   : > { %v13369_v1 = vpop.f32.mrf.mxu1  ;;  %v13410_v8 = vpop.f32.mrf.mxu0 }
 0xb02   : > { %v13371_v18 = vpop.f32.mrf.mxu1  ;;  %v13412_v5 = vpop.f32.mrf.mxu0 }
 0xb03   : > { %v13421_v23 = vcombine.low %v13369_v1, %v13371_v18  ;;  %v13422_v49 = vcombine.low %v13410_v8, %v13412_v5  ;;  %v14372_v1 = vsub.s32 0, %v25175_v26  ;;  %v14380_v8 = vsub.s32 2, %v25175_v26  ;;  %v14458_v26 = vld [vmem:[%s26309_s12] sm:$0x1] }
 0xb04   : > { %v13373_v63 = vpop.f32.mrf.mxu1  ;;  %v13414_v36 = vpop.f32.mrf.mxu0 }
 0xb05   : > { %v13429_v56 = vrot.slane %v13421_v23, %v25190_v11  ;;  %v13436_v58 = vrot.slane %v13422_v49, %v25190_v11 }
 0xb06   : > { %v13374_v48 = vpop.f32.mrf.mxu1  ;;  %v13415_v21 = vpop.f32.mrf.mxu0 }
 0xb07   : > { %v13437_v47 = vcombine.low %v13429_v56, %v13436_v58 }
 0xb09   : > { %v13444_v33 = vrot.slane %v13437_v47, %v25190_v11 }
 0xb0b   : > { %v13446_v61 = vadd.f32 %v13444_v33, %v13137_v43 }
 0xb20   : > { %v13676_v59 = vpop.f32.mrf.mxu1  ;;  %v13717_v55 = vpop.f32.mrf.mxu0 }
 0xb22   : > { %v13678_v20 = vpop.f32.mrf.mxu1  ;;  %v13719_v9 = vpop.f32.mrf.mxu0 }
 0xb23   : > { %v13728_v12 = vcombine.low %v13676_v59, %v13678_v20  ;;  %v13729_v17 = vcombine.low %v13717_v55, %v13719_v9 }
 0xb24   : > { %v13680_v28 = vpop.f32.mrf.mxu1  ;;  %v13721_v38 = vpop.f32.mrf.mxu0 }
 0xb25   : > { %v13736_v27 = vrot.slane %v13728_v12, %v25190_v11  ;;  %v13743_v31 = vrot.slane %v13729_v17, %v25190_v11 }
 0xb26   : > { %v13681_v46 = vpop.f32.mrf.mxu1  ;;  %v13722_v7 = vpop.f32.mrf.mxu0 }
 0xb27   : > { %v13744_v40 = vcombine.low %v13736_v27, %v13743_v31 }
 0xb29   : > { %v13751_v43 = vrot.slane %v13744_v40, %v25190_v11 }
 0xb2b   : > { %v13753_v0 = vadd.f32 %v13751_v43, %v13446_v61 }
 0xb40   : > { %v13982_v53 = vpop.f32.mrf.mxu1  ;;  %v14023_v19 = vpop.f32.mrf.mxu0 }
 0xb42   : > { %v13984_v14 = vpop.f32.mrf.mxu1  ;;  %v14025_v42 = vpop.f32.mrf.mxu0 }
 0xb43   : > { %v14034_v44 = vcombine.low %v13982_v53, %v13984_v14  ;;  %v14035_v51 = vcombine.low %v14023_v19, %v14025_v42 }
 0xb44   : > { %v13986_v57 = vpop.f32.mrf.mxu1  ;;  %v14027_v29 = vpop.f32.mrf.mxu0 }
 0xb45   : > { %v14042_v45 = vrot.slane %v14034_v44, %v25190_v11  ;;  %v14049_v25 = vrot.slane %v14035_v51, %v25190_v11 }
 0xb46   : > { %v13987_v62 = vpop.f32.mrf.mxu1  ;;  %v14028_v37 = vpop.f32.mrf.mxu0 }
 0xb47   : > { %v14050_v34 = vcombine.low %v14042_v45, %v14049_v25 }
 0xb49   : > { %v14057_v22 = vrot.slane %v14050_v34, %v25190_v11 }
 0xb4b   : > { %v14059_v16 = vadd.f32 %v14057_v22, %v13753_v0 }
 0xb60   : > { %v14290_v32 = vpop.f32.mrf.mxu1  ;;  %v14331_v35 = vpop.f32.mrf.mxu0 }
 0xb62   : > { %v14292_v3 = vpop.f32.mrf.mxu1  ;;  %v14333_v24 = vpop.f32.mrf.mxu0 }
 0xb63   : > { %v14342_v52 = vcombine.low %v14290_v32, %v14292_v3  ;;  %v14343_v60 = vcombine.low %v14331_v35, %v14333_v24 }
 0xb64   : > { %v14294_v10 = vpop.f32.mrf.mxu1  ;;  %v14335_v13 = vpop.f32.mrf.mxu0 }
 0xb65   : > { %v14350_v6 = vrot.slane %v14342_v52, %v25190_v11  ;;  %v14357_v30 = vrot.slane %v14343_v60, %v25190_v11 }
 0xb66   : > { %v14295_v2 = vpop.f32.mrf.mxu1  ;;  %v14336_v41 = vpop.f32.mrf.mxu0 }
 0xb67   : > { %v14358_v15 = vcombine.low %v14350_v6, %v14357_v30 }
 0xb69   : > { %v14365_v54 = vrot.slane %v14358_v15, %v25190_v11 }
 0xb6b   : > { %v14367_v4 = vadd.f32 %v14365_v54, %v14059_v16 }
 0xb6d   : > { %v14368_v18 = vmax.f32 %v14367_v4, 0.0 }
 0xb6f   : > { %v14377_v5 = vrot.slane %v14368_v18, %v14376_v39  ;;  %v14385_v23 = vrot.slane %v14368_v18, %v14384_v50  ;;  %v14373_v49 = vrot.slane %v14368_v18, %v14372_v1  ;;  %v14381_v63 = vrot.slane %v14368_v18, %v14380_v8 }
 0xb71   : > { %v14391_v36 = vpack.c.bf16 %v14377_v5, %v14377_v5  ;;  %v14393_v56 = vpack.c.bf16 %v14385_v23, %v14385_v23  ;;  %v14390_v58 = vpack.c.bf16 %v14373_v49, %v14373_v49  ;;  %v14392_v11 = vpack.c.bf16 %v14381_v63, %v14381_v63 }
 0xb73   : > { %14683 = vmatprep.mubr.bf16.mxu1 %v14391_v36  ;;  %14723 = vmatprep.mubr.bf16.mxu0 %v14393_v56 }
 0xb74   : > { %14684 = vmatmul.mubr.bf16.vlgmr.msra.gmra.mxu1 %v14390_v58  ;;  %14724 = vmatmul.mubr.bf16.vlgmr.msra.gmra.mxu0 %v14392_v11 }
 0xc34   : > { %v16950_v48 = vpop.f32.mrf.mxu1  ;;  %v16972_v21 = vpop.f32.mrf.mxu0 }
 0xc36   : > { %v16951_v47 = vpop.f32.mrf.mxu1  ;;  %v16973_v33 = vpop.f32.mrf.mxu0 }
 0xc37   : > { %v16952_v61 = vadd.f32 %v16951_v47, %v16950_v48  ;;  %v16974_v9 = vadd.f32 %v16973_v33, %v16972_v21 }
 0xc38   : > { %v16953_v59 = vpop.f32.mrf.mxu1  ;;  %v16975_v55 = vpop.f32.mrf.mxu0 }
 0xc39   : > { %v14686_v20 = vadd.f32 %v16952_v61, %v14458_v26 }
 0xc3a   : > { %v16954_v28 = vpop.f32.mrf.mxu1  ;;  %v16976_v38 = vpop.f32.mrf.mxu0 }
 0xc3b   : > { %v14726_v46 = vadd.f32 %v16974_v9, %v14686_v20 }
 0xc3d   : > { %14731 = vst [vmem:[%s432_s20] sm:$0x1] %v14726_v46 }
 0xc3e   : > { %18766 = shalt.err (!%p18763_p3)
}
 0xc3f   : > { %s18767_s1 = scalar_lea.hbm %s14743_s24, 16  ;;  %s18771_s20 = scalar_lea.hbm %s26310_s13, 32 }
 0xc40   : > { %p18768_p4 = scmp.ne.s32.totalorder %s14743_s24, %s18767_s1  ;;  %p18772_p9 = scmp.lt.s32.totalorder %s14743_s24, %s26310_s13 }
 0xc41   : > { %p18773_p10 = scmp.lt.s32.totalorder %s18771_s20, %s18767_s1 }
 0xc42   : > { %p18769_p7 = pnand %p18768_p4, %p18929_p5 }
 0xc43   : > { %p18774_p11 = por %p18773_p10, %p18772_p9 }
 0xc44   : > { %p18770_p8 = pneg %p18769_p7 }
 0xc46   : > { %p18775_p12 = pnand %p18774_p11, %p18770_p8 }
 0xc48   : > { %18778 = shalt.err (!%p18775_p12)
}
 0xc49   : > { %17752 = dma.vmem_to_hbm [thread:$0]  (%p18929_p5), %s14746_s21, 16, %s14743_s24, %s14733_s30  }
 0xc4a PF: > { %p17758_p13 = scmp.ge.s32.totalorder %s18813_s28, 2  ;;  %s14757_s17 = sand.u32 1, %s18801_s25  }
 0xc4b   : > { %s14758_s29 = scalar_lea.sflag [#allocation3], %s14757_s17 }
 0xc4c   : > { %p17755_p0 = pnand %p17758_p13, %p18933_p6 }
 0xc4e   : > { %p17756_p1 = pneg %p17755_p0 }
 0xc50   : > { %18796 = dma.done.wait (%p17756_p1), %s14758_s29, 16  }
 0xc51   : > { %18798 = vsyncadd (%p17756_p1), %s14758_s29, 4294967280  ;;  %s26824_s15 = sld [smem:[#allocation5_spill]]  ;;  %p23_p2 = scmp.ge.s32.totalorder %s18916_s14, 4  }
 0xc52   : > { %s26825_s25 = smov %s18805_s26  ;;  %s26826_s26 = smov %s18809_s27 }
 0xc53   : > { %s26828_s28 = smov %s18916_s14  ;;  %25 = sbr.rel (!%p23_p2) target bundleno = 7 (0x7), region = 138 }
 0xc57   : > { %s26827_s27 = smov %s26824_s15 }
 0xc58   :  { %14762 = vsyncpa [#allocation3], 1 }
 0xc59   :  { %14764 = vsyncpa [#allocation3 + $0x1], 1 }

</bundles_post_ra>
